<compile_context>
chip_gen: v7x
topology: tpu7x:2x2x1
jax: 0.10.0
libtpu: 0.0.40
codegen_flags: <defaults>
</compile_context>

<pallas_src>
import math
import jax
import jax.numpy as jnp
from jax import lax
from jax.experimental import pallas as pl
from jax.experimental.pallas import tpu as pltpu


def _round_up(x, m):
    return (x + m - 1) // m * m


# ----------------------------- Pallas kernels ------------------------------ #
def _mm_kernel(a_ref, b_ref, o_ref):
    # Single-shot: entire K is resident in the block -> one MXU matmul, one
    # lane-dense f32 store, no accumulation RMW.
    o_ref[...] = jnp.dot(a_ref[...], b_ref[...],
                         preferred_element_type=jnp.float32)


def _mm_acc_kernel(a_ref, b_ref, o_ref):
    # K-tiled fallback (only used when padded K > 2048): accumulate into the
    # resident f32 output block across the "arbitrary" K axis.
    @pl.when(pl.program_id(2) == 0)
    def _():
        o_ref[...] = jnp.zeros_like(o_ref)

    o_ref[...] += jnp.dot(a_ref[...], b_ref[...],
                          preferred_element_type=jnp.float32)


_K_COLLAPSE = 2048


def _pick_tk(kp):
    for t in (2048, 1024, 512, 256, 128):
        if kp % t == 0:
            return t
    return 128


def _pallas_matmul(a, b):
    """A @ B with bf16 operands / f32 accumulation.  Caller guarantees
    M >= 512 and N >= 128 (so the grid always has >= 2 parallel blocks)."""
    M, K = a.shape
    K2, N = b.shape
    assert K == K2

    TM = 512 if M >= 1024 else 256
    Mp = _round_up(M, TM)
    Np = _round_up(N, 128)
    TN = 256 if Np % 256 == 0 else 128
    Kp = _round_up(K, 128)

    a_bf = a.astype(jnp.bfloat16)
    b_bf = b.astype(jnp.bfloat16)
    if (Mp, Kp) != (M, K):
        a_bf = jnp.pad(a_bf, ((0, Mp - M), (0, Kp - K)))
    if (Kp, Np) != (K, N):
        b_bf = jnp.pad(b_bf, ((0, Kp - K), (0, Np - N)))

    if Kp <= _K_COLLAPSE:
        # 2-D grid, whole K resident per block: no accumulation pass.
        grid = (Mp // TM, Np // TN)
        out = pl.pallas_call(
            _mm_kernel,
            out_shape=jax.ShapeDtypeStruct((Mp, Np), jnp.float32),
            grid_spec=pltpu.PrefetchScalarGridSpec(
                num_scalar_prefetch=0,
                grid=grid,
                in_specs=[pl.BlockSpec((TM, Kp), lambda i, j: (i, 0)),
                          pl.BlockSpec((Kp, TN), lambda i, j: (0, j))],
                out_specs=pl.BlockSpec((TM, TN), lambda i, j: (i, j))),
            compiler_params=pltpu.CompilerParams(
                dimension_semantics=("parallel", "parallel")),
        )(a_bf, b_bf)
    else:
        TK = _pick_tk(Kp)
        grid = (Mp // TM, Np // TN, Kp // TK)
        out = pl.pallas_call(
            _mm_acc_kernel,
            out_shape=jax.ShapeDtypeStruct((Mp, Np), jnp.float32),
            grid_spec=pltpu.PrefetchScalarGridSpec(
                num_scalar_prefetch=0,
                grid=grid,
                in_specs=[pl.BlockSpec((TM, TK), lambda i, j, k: (i, k)),
                          pl.BlockSpec((TK, TN), lambda i, j, k: (k, j))],
                out_specs=pl.BlockSpec((TM, TN), lambda i, j, k: (i, j))),
            compiler_params=pltpu.CompilerParams(
                dimension_semantics=("parallel", "parallel", "arbitrary")),
        )(a_bf, b_bf)

    if (Mp, Np) != (M, N):
        out = out[:M, :N]          # fuses with consumer under the outer jit
    return out


# --------------------------- conv / norm / pool ---------------------------- #
def conv2d(x, w, stride=1, padding=0, bias=None):
    """x: NHWC float32, w: (kh, kw, Cin, Cout)."""
    N, H, W, C = x.shape
    kh, kw, Cin, Cout = w.shape
    assert C == Cin, f"channel mismatch: x has {C}, weight expects {Cin}"
    Ho = (H + 2 * padding - kh) // stride + 1
    Wo = (W + 2 * padding - kw) // stride + 1
    M = N * Ho * Wo
    K = kh * kw * Cin

    # Pallas only where it pays off: wide output, enough rows for >= 2
    # parallel output blocks, and enough MACs to amortize the launch.
    use_pallas = (Cout >= 128) and (M >= 512) and (M * K * Cout >= 16_000_000)

    if not use_pallas:
        if kh == 1 and kw == 1 and stride == 1 and padding == 0:
            out = jnp.dot(x.reshape(M, Cin).astype(jnp.bfloat16),
                          w.reshape(Cin, Cout).astype(jnp.bfloat16),
                          preferred_element_type=jnp.float32
                          ).reshape(N, Ho, Wo, Cout)
        else:
            # XLA conv avoids materializing the kh*kw im2col patch in HBM.
            out = lax.conv_general_dilated(
                x.astype(jnp.bfloat16), w.astype(jnp.bfloat16),
                window_strides=(stride, stride),
                padding=[(padding, padding), (padding, padding)],
                dimension_numbers=("NHWC", "HWIO", "NHWC"),
                preferred_element_type=jnp.float32)
    else:
        if kh == 1 and kw == 1 and stride == 1 and padding == 0:
            a = x.reshape(M, Cin)
        else:
            # TODO(synk): im2col patch is still materialized before the matmul;
            # a fused gather (taps on the K grid axis via index_map) would cut
            # HBM traffic further for large-resolution decoder convs.
            xp = jnp.pad(x, ((0, 0), (padding, padding),
                             (padding, padding), (0, 0)))
            cols = []
            for i in range(kh):
                for j in range(kw):
                    cols.append(xp[:, i:i + stride * (Ho - 1) + 1:stride,
                                   j:j + stride * (Wo - 1) + 1:stride, :])
            a = jnp.concatenate(cols, axis=-1).reshape(M, K)
        out = _pallas_matmul(a, w.reshape(K, Cout)).reshape(N, Ho, Wo, Cout)

    if bias is not None:
        out = out + bias
    return out


def bn(x, eps=1e-5):
    # BatchNorm2d, training mode, gamma=1, beta=0 (constant init), biased var.
    mean = jnp.mean(x, axis=(0, 1, 2), keepdims=True)
    var = jnp.mean(jnp.square(x - mean), axis=(0, 1, 2), keepdims=True)
    return (x - mean) * jax.lax.rsqrt(var + eps)


def relu(x):
    return jnp.maximum(x, 0.0)


def maxpool_3x3_s2_p1(x):
    N, H, W, C = x.shape
    xp = jnp.pad(x, ((0, 0), (1, 1), (1, 1), (0, 0)),
                 constant_values=-jnp.inf)
    Ho = (H + 2 - 3) // 2 + 1
    Wo = (W + 2 - 3) // 2 + 1
    out = None
    for i in range(3):
        for j in range(3):
            s = xp[:, i:i + 2 * (Ho - 1) + 1:2, j:j + 2 * (Wo - 1) + 1:2, :]
            out = s if out is None else jnp.maximum(out, s)
    return out


def avgpool_2x2(x):
    N, H, W, C = x.shape
    return x.reshape(N, H // 2, 2, W // 2, 2, C).mean(axis=(2, 4))


def upsample2_bilinear(x):
    # TODO(synk): _UpBlock source unavailable; assumes nn.Upsample(scale=2,
    # mode='bilinear') with half-pixel (align_corners=False) sampling.
    N, H, W, C = x.shape
    return jax.image.resize(x, (N, 2 * H, 2 * W, C), method="bilinear")


# ------------------------------- parameters -------------------------------- #
class KeyGen:
    def __init__(self, seed=0):
        self.key = jax.random.PRNGKey(seed)
        self.i = 0

    def __call__(self):
        self.i += 1
        return jax.random.fold_in(self.key, self.i)


def conv_param(kg, kh, kw, cin, cout, bias=False):
    std = math.sqrt(2.0 / (cin * kh * kw))  # kaiming_normal_, fan_in, relu gain
    p = {"w": jax.random.normal(kg(), (kh, kw, cin, cout), jnp.float32) * std}
    if bias:
        p["b"] = jnp.zeros((cout,), jnp.float32)
    return p


def build_params(n_channels, n_classes, t_classes, seed=0):
    kg = KeyGen(seed)
    growth, bn_size = 32, 4
    block_config = [6, 12, 24, 16]
    ninit = 64
    P = {}

    def dense_block(nin, n_layers):
        return [{"conv1": conv_param(kg, 1, 1, nin + i * growth, bn_size * growth),
                 "conv2": conv_param(kg, 3, 3, bn_size * growth, growth)}
                for i in range(n_layers)]

    # source-stream encoder
    P["s_inc"] = {"conv0": conv_param(kg, 7, 7, n_channels, ninit)}
    nf = ninit
    for bi, nl in enumerate(block_config, 1):
        P[f"s_db{bi}"] = dense_block(nf, nl)
        nf = nf + nl * growth
        P[f"s_tr{bi}"] = {"conv": conv_param(kg, 1, 1, nf, nf // 2)}
        nf //= 2

    # UNet decoder (_UpBlock = bilinear up + concat + DoubleConv)
    inc_, outc_ = nf * 2, nf  # 1024, 512
    for ui in (4, 3, 2, 1):
        P[f"s_up{ui}"] = {"conv1": conv_param(kg, 3, 3, inc_, outc_),
                          "conv2": conv_param(kg, 3, 3, outc_, outc_)}
        inc_, outc_ = outc_ // 2 + outc_, outc_ // 2
    P["s_outc"] = conv_param(kg, 1, 1, 64, n_classes, bias=True)

    # target-stream encoder
    P["t_inc"] = {"conv0": conv_param(kg, 7, 7, 3, ninit)}
    nf = ninit * 2
    t_trans_out = [ninit * 2, ninit * 4, ninit * 8]
    for bi, nl in enumerate(block_config, 1):
        P[f"t_db{bi}"] = dense_block(nf, nl)
        nf_after = nf + nl * growth
        if bi < 4:
            P[f"t_tr{bi}"] = {"conv": conv_param(kg, 1, 1, nf_after,
                                                 t_trans_out[bi - 1])}
            nf = t_trans_out[bi - 1] * 2  # after concat with shared-encoder skip
        else:
            P["t_tr4"] = {"conv": conv_param(kg, 1, 1, nf_after, nf_after // 3)}
            nf = nf_after // 3
    P["t_classifier"] = conv_param(kg, 1, 1, nf * 2, t_classes, bias=True)
    return P


# ------------------------------- sub-forwards ------------------------------ #
def inc_fwd(x, p):
    h = conv2d(x, p["conv0"]["w"], stride=2, padding=3)
    h = relu(bn(h))
    return maxpool_3x3_s2_p1(h)


def dense_block_fwd(x, layers):
    for lp in layers:
        h = conv2d(relu(bn(x)), lp["conv1"]["w"])
        h = conv2d(relu(bn(h)), lp["conv2"]["w"], padding=1)
        x = jnp.concatenate([x, h], axis=-1)
    return x


def transition_fwd(x, p):
    h = conv2d(relu(bn(x)), p["conv"]["w"])
    return avgpool_2x2(h)


def upblock_fwd(x1, x2, p):
    x1 = upsample2_bilinear(x1)
    x = jnp.concatenate([x2, x1], axis=-1)
    h = relu(bn(conv2d(x, p["conv1"]["w"], padding=1)))
    h = relu(bn(conv2d(h, p["conv2"]["w"], padding=1)))
    return h


def outconv_fwd(x, p):
    return conv2d(x, p["w"], bias=p["b"])


# --------------------------------- forward --------------------------------- #
def _dense_unet_forward(params, x_s_nchw, x_t_nchw):
    x_s = jnp.transpose(x_s_nchw, (0, 2, 3, 1)).astype(jnp.float32)
    x_t = jnp.transpose(x_t_nchw, (0, 2, 3, 1)).astype(jnp.float32)

    def s_encoder(x):
        x1 = inc_fwd(x, params["s_inc"])
        x2 = transition_fwd(dense_block_fwd(x1, params["s_db1"]), params["s_tr1"])
        x3 = transition_fwd(dense_block_fwd(x2, params["s_db2"]), params["s_tr2"])
        x4 = transition_fwd(dense_block_fwd(x3, params["s_db3"]), params["s_tr3"])
        x5 = transition_fwd(dense_block_fwd(x4, params["s_db4"]), params["s_tr4"])
        return x1, x2, x3, x4, x5

    # segmentation branch on x_s
    x1_s, x2_s, x3_s, x4_s, x5_s = s_encoder(x_s)
    xd = upblock_fwd(x5_s, x4_s, params["s_up4"])
    xd = upblock_fwd(xd, x3_s, params["s_up3"])
    xd = upblock_fwd(xd, x2_s, params["s_up2"])
    xd = upblock_fwd(xd, x1_s, params["s_up1"])
    logits_s = outconv_fwd(xd, params["s_outc"])

    # shared encoder applied to x_t (requires n_channels == 3, as in reference)
    x1_ts, x2_ts, x3_ts, x4_ts, x5_ts = s_encoder(x_t)

    # target branch
    x1_t = inc_fwd(x_t, params["t_inc"])
    x1_t = jnp.concatenate([x1_t, x1_ts], axis=-1)
    x2_t = transition_fwd(dense_block_fwd(x1_t, params["t_db1"]), params["t_tr1"])
    x2_t = jnp.concatenate([x2_t, x2_ts], axis=-1)
    x3_t = transition_fwd(dense_block_fwd(x2_t, params["t_db2"]), params["t_tr2"])
    x3_t = jnp.concatenate([x3_t, x3_ts], axis=-1)
    x4_t = transition_fwd(dense_block_fwd(x3_t, params["t_db3"]), params["t_tr3"])
    x4_t = jnp.concatenate([x4_t, x4_ts], axis=-1)
    x5_t = transition_fwd(dense_block_fwd(x4_t, params["t_db4"]), params["t_tr4"])

    x5_t_f = jnp.concatenate([x5_t, x5_ts], axis=-1)
    feat = bn(x5_t_f)                                   # t_norm_5
    feat = jnp.mean(feat, axis=(1, 2), keepdims=True)   # AdaptiveAvgPool2d((1,1))
    logits_t = conv2d(feat, params["t_classifier"]["w"],
                      bias=params["t_classifier"]["b"])
    logits_t = logits_t[:, 0, 0, :]                     # squeeze(-1).squeeze(-1)

    # return in PyTorch NCHW convention
    logits_s = jnp.transpose(logits_s, (0, 3, 1, 2))
    x5_s_out = jnp.transpose(x5_s, (0, 3, 1, 2))
    x5_t_out = jnp.transpose(x5_t, (0, 3, 1, 2))
    return logits_s, logits_t, x5_s_out, x5_t_out


# Whole-graph jit: XLA fuses the im2col / pad / cast / slice / bn / relu glue
# around the pallas_calls instead of dispatching them eagerly one by one.
dense_unet_forward = jax.jit(_dense_unet_forward)


# ----------------------------------- main ----------------------------------- #
if __name__ == "__main__":
    # n_channels must be 3: the reference forward applies the shared s_inc
    # encoder to x_t which always has 3 channels.
    n_channels, n_classes, num_classes, t_classes = 3, 2, 2, 5
    params = build_params(n_channels, n_classes, t_classes, seed=0)

    key = jax.random.PRNGKey(0)
    k1, k2 = jax.random.split(key)
    # spatial 64 so that the /64 bottleneck is a clean 1x1
    x_s = jax.random.normal(k1, (2, n_channels, 64, 64), jnp.float32)
    x_t = jax.random.normal(k2, (2, 3, 64, 64), jnp.float32)

    logits_s, logits_t, x5_s, x5_t = dense_unet_forward(params, x_s, x_t)
    jax.block_until_ready(logits_s)
    jax.block_until_ready(logits_t)
    jax.block_until_ready(x5_s)
    jax.block_until_ready(x5_t)

    assert logits_s.shape == (2, n_classes, 16, 16)
    assert logits_t.shape == (2, t_classes)
    assert x5_s.shape == (2, 512, 1, 1)
    assert x5_t.shape == (2, 512, 1, 1)
    print("KERNEL_OK")
</pallas_src>

<mosaic_0001>
module attributes {stable_mosaic.version = 11 : i64} {
  func.func @_mm_kernel(%arg0: i32, %arg1: i32, %arg2: memref<256x256xbf16, #tpu.memory_space<vmem>>, %arg3: memref<256x128xbf16, #tpu.memory_space<vmem>>, %arg4: memref<256x128xf32, #tpu.memory_space<vmem>>) attributes {dimension_semantics = [#tpu.dimension_semantics<parallel>, #tpu.dimension_semantics<parallel>], iteration_bounds = array<i64: 2, 1>, scalar_prefetch = 0 : i64, scratch_operands = 0 : i64, tpu.core_type = #tpu.core_type<tc>, window_params = [{transform_indices = @transform_0, window_bounds = array<i64: 256, 256>}, {transform_indices = @transform_1, window_bounds = array<i64: 256, 128>}, {transform_indices = @transform_2, window_bounds = array<i64: 256, 128>}]} {
    %c0 = arith.constant 0 : index
    %c0_0 = arith.constant 0 : index
    %0 = vector.load %arg2[%c0, %c0_0] : memref<256x256xbf16, #tpu.memory_space<vmem>>, vector<256x256xbf16>
    %c0_1 = arith.constant 0 : index
    %c0_2 = arith.constant 0 : index
    %1 = vector.load %arg3[%c0_1, %c0_2] : memref<256x128xbf16, #tpu.memory_space<vmem>>, vector<256x128xbf16>
    %cst = arith.constant dense<0.000000e+00> : vector<256x128xf32>
    %2 = tpu.matmul %0, %1, %cst {dimension_numbers = #tpu.dot_dimension_numbers<[1], [0], [0], [1], [0, 0, 1, 1], [], []>} : vector<256x256xbf16>, vector<256x128xbf16>, vector<256x128xf32> -> vector<256x128xf32>
    %c0_3 = arith.constant 0 : index
    %c0_4 = arith.constant 0 : index
    %3 = vector.load %arg4[%c0_3, %c0_4] : memref<256x128xf32, #tpu.memory_space<vmem>>, vector<256x128xf32>
    tpu.vector_store %arg4[%c0_3, %c0_4], %2 {strides = array<i32>} : memref<256x128xf32, #tpu.memory_space<vmem>>, vector<256x128xf32>,
    return
  }
  func.func @transform_0(%arg0: i32, %arg1: i32) -> (i32, i32) {
    %c0_i32 = arith.constant 0 : i32
    %c0_i32_0 = arith.constant 0 : i32
    return %arg0, %c0_i32 : i32, i32
  }
  func.func @transform_1(%arg0: i32, %arg1: i32) -> (i32, i32) {
    %c0_i32 = arith.constant 0 : i32
    %c0_i32_0 = arith.constant 0 : i32
    return %c0_i32, %arg1 : i32, i32
  }
  func.func @transform_2(%arg0: i32, %arg1: i32) -> (i32, i32) {
    %c0_i32 = arith.constant 0 : i32
    return %arg0, %arg1 : i32, i32
  }
}

module attributes {stable_mosaic.version = 11 : i64} {
  func.func @_mm_kernel(%arg0: i32, %arg1: i32, %arg2: memref<256x384xbf16, #tpu.memory_space<vmem>>, %arg3: memref<384x128xbf16, #tpu.memory_space<vmem>>, %arg4: memref<256x128xf32, #tpu.memory_space<vmem>>) attributes {dimension_semantics = [#tpu.dimension_semantics<parallel>, #tpu.dimension_semantics<parallel>], iteration_bounds = array<i64: 2, 1>, scalar_prefetch = 0 : i64, scratch_operands = 0 : i64, tpu.core_type = #tpu.core_type<tc>, window_params = [{transform_indices = @transform_0, window_bounds = array<i64: 256, 384>}, {transform_indices = @transform_1, window_bounds = array<i64: 384, 128>}, {transform_indices = @transform_2, window_bounds = array<i64: 256, 128>}]} {
    %c0 = arith.constant 0 : index
    %c0_0 = arith.constant 0 : index
    %0 = vector.load %arg2[%c0, %c0_0] : memref<256x384xbf16, #tpu.memory_space<vmem>>, vector<256x384xbf16>
    %c0_1 = arith.constant 0 : index
    %c0_2 = arith.constant 0 : index
    %1 = vector.load %arg3[%c0_1, %c0_2] : memref<384x128xbf16, #tpu.memory_space<vmem>>, vector<384x128xbf16>
    %cst = arith.constant dense<0.000000e+00> : vector<256x128xf32>
    %2 = tpu.matmul %0, %1, %cst {dimension_numbers = #tpu.dot_dimension_numbers<[1], [0], [0], [1], [0, 0, 1, 1], [], []>} : vector<256x384xbf16>, vector<384x128xbf16>, vector<256x128xf32> -> vector<256x128xf32>
    %c0_3 = arith.constant 0 : index
    %c0_4 = arith.constant 0 : index
    %3 = vector.load %arg4[%c0_3, %c0_4] : memref<256x128xf32, #tpu.memory_space<vmem>>, vector<256x128xf32>
    tpu.vector_store %arg4[%c0_3, %c0_4], %2 {strides = array<i32>} : memref<256x128xf32, #tpu.memory_space<vmem>>, vector<256x128xf32>,
    return
  }
  func.func @transform_0(%arg0: i32, %arg1: i32) -> (i32, i32) {
    %c0_i32 = arith.constant 0 : i32
    %c0_i32_0 = arith.constant 0 : i32
    return %arg0, %c0_i32 : i32, i32
  }
  func.func @transform_1(%arg0: i32, %arg1: i32) -> (i32, i32) {
    %c0_i32 = arith.constant 0 : i32
    %c0_i32_0 = arith.constant 0 : i32
    return %c0_i32, %arg1 : i32, i32
  }
  func.func @transform_2(%arg0: i32, %arg1: i32) -> (i32, i32) {
    %c0_i32 = arith.constant 0 : i32
    return %arg0, %arg1 : i32, i32
  }
}

</mosaic_0001>

<bundles_post_ra>
// kernel: _dense_unet_forward.7
= control target key start
LH: loop header
LB: loop body
LE: loop exit
PB: predicated region body
PF: predicated region fallthrough
CT: control target
= control target key end

     0   :  { %s1108_s9 = smov 0   ;;  %s1110_s10 = smov 0   ;;  %s1264_s0 = inlined_call_operand.vmem [shape: bf16[512,256], index: 0, kind: input, shape index: {}]   ;;  %s1265_s1 = inlined_call_operand.vmem [shape: bf16[256,128], index: 1, kind: input, shape index: {}]   ;;  %s1266_s2 = inlined_call_operand.vmem [shape: f32[512,128], index: 2, kind: output, shape index: {}]  }
   0x1   :  { %s1112_s11 = smov 0  }
   0x2 LB: > { %s24_s12 = sadd.s32 1, %s1087_s10  ;;  %p796_p0 = scmp.ge.s32.totalorder %s1091_s11, 1  ;;  %s1091_s11 = sphi %s1112_s11, %s12_s11   ;;  %s1087_s10 = sphi %s1110_s10, %s1268_s10   ;;  %s1083_s9 = sphi %s1108_s9, %s1267_s9  }
   0x3   : > { %p26_p1 = scmp.ge.s32.totalorder %s24_s12, 2  ;;  %p137_p2 = scmp.lt.s32.totalorder %s1091_s11, 3 }
   0x5   : > { %s1270_s12 = smov (%p26_p1, %s24_s12), 0  ;;  %p138_p3 = pnand %p796_p0, %p137_p2 }
   0x6   : > { %v1005_v0 = vld [vmem:[%s1265_s1 + $0x40] sm:$0xff] (!%p138_p3)   ;;  %s797_s15 = sshll.u32 (!%p138_p3), %s1083_s9, 5  ;;  %v1007_v2 = vld [vmem:[%s1265_s1 + $0x48] sm:$0xff] (!%p138_p3)   ;;  %v1009_v4 = vld [vmem:[%s1265_s1 + $0x50] sm:$0xff] (!%p138_p3)  }
   0x7   : > { %141 = sbr.rel (%p138_p3) target bundleno = 313 (0x139), region = 28  ;;  %v1006_v1 = vld [vmem:[%s1265_s1] sm:$0xff] (!%p138_p3)   ;;  %853 = vmatprep.subr.bf16.mxu0 (!%p138_p3), %v1005_v0  ;;  %965 = vmatprep.subr.bf16.mxu1 (!%p138_p3), %v1005_v0  ;;  %v1008_v3 = vld [vmem:[%s1265_s1 + $0x8] sm:$0xff] (!%p138_p3)   ;;  %p168_p4 = scmp.lt.s32.totalorder (!%p138_p3), %s797_s15, 63  ;;  %v1010_v5 = vld [vmem:[%s1265_s1 + $0x10] sm:$0xff] (!%p138_p3)  }
   0x8   : > { %854 = vmatpush3.bf16.msra.mxu0 (!%p138_p3), %v1006_v1  ;;  %973 = vmatpush3.bf16.msra.mxu1 (!%p138_p3), %v1006_v1  ;;  %v1011_v6 = vld [vmem:[%s1265_s1 + $0x58] sm:$0xff] (!%p138_p3)   ;;  %v1013_v8 = vld [vmem:[%s1265_s1 + $0x60] sm:$0xff] (!%p138_p3)   ;;  %v1015_v10 = vld [vmem:[%s1265_s1 + $0x68] sm:$0xff] (!%p138_p3)  }
   0x9   : > { %855 = vmatprep.subr.bf16.mxu0 (!%p138_p3), %v1007_v2  ;;  %966 = vmatprep.subr.bf16.mxu1 (!%p138_p3), %v1007_v2  ;;  %v1012_v7 = vld [vmem:[%s1265_s1 + $0x18] sm:$0xff] (!%p138_p3)   ;;  %v1014_v9 = vld [vmem:[%s1265_s1 + $0x20] sm:$0xff] (!%p138_p3)   ;;  %v1016_v13 = vld [vmem:[%s1265_s1 + $0x28] sm:$0xff] (!%p138_p3)  }
   0xa   : > { %v1017_v14 = vld [vmem:[%s1265_s1 + $0x70] sm:$0xff] (!%p138_p3)   ;;  %v1019_v16 = vld [vmem:[%s1265_s1 + $0x78] sm:$0xff] (!%p138_p3)  }
   0xb   : > { %v1018_v15 = vld [vmem:[%s1265_s1 + $0x30] sm:$0xff] (!%p138_p3)   ;;  %v1020_v17 = vld [vmem:[%s1265_s1 + $0x38] sm:$0xff] (!%p138_p3)  }
   0xc   : > { %856 = vmatpush3.bf16.msra.mxu0 (!%p138_p3), %v1008_v3  ;;  %974 = vmatpush3.bf16.msra.mxu1 (!%p138_p3), %v1008_v3 }
   0xd   : > { %857 = vmatprep.subr.bf16.mxu0 (!%p138_p3), %v1009_v4  ;;  %967 = vmatprep.subr.bf16.mxu1 (!%p138_p3), %v1009_v4 }
   0xe   : > { %s1272_s15 = smov (!%p168_p4, %s797_s15), 63 }
   0xf   : > { %s852_s30 = sshll.u32 %s1272_s15, 3 }
  0x10   : > { %858 = vmatpush3.bf16.msra.mxu0 %v1010_v5  ;;  %975 = vmatpush3.bf16.msra.mxu1 %v1010_v5  ;;  %s1161_s7 = scalar_lea.vmem %s1264_s0, %s852_s30  ;;  %s1221_s28 = scalar_lea.vmem %s1266_s2, %s852_s30 }
  0x11   : > { %859 = vmatprep.subr.bf16.mxu0 %v1011_v6  ;;  %968 = vmatprep.subr.bf16.mxu1 %v1011_v6  ;;  %v1023_v11 = vld [vmem:[%s1161_s7 + $0x4] ss:$8 sps:$4 sm:$0xff]   ;;  %v1021_v18 = vld [vmem:[%s1161_s7] ss:$8 sps:$4 sm:$0xff]   ;;  %v1027_v20 = vld [vmem:[%s1161_s7 + $0x14] ss:$8 sps:$4 sm:$0xff]  }
  0x12   : > { %v1026_v12 = vld [vmem:[%s1161_s7 + $0x84] ss:$8 sps:$4 sm:$0xff]   ;;  %540 = vmatprep.mubr.bf16.mxu0 %v1023_v11  ;;  %v1024_v19 = vld [vmem:[%s1161_s7 + $0x80] ss:$8 sps:$4 sm:$0xff]   ;;  %v1029_v21 = vld [vmem:[%s1161_s7 + $0x94] ss:$8 sps:$4 sm:$0xff]  }
  0x13   : > { %604 = vmatprep.mubr.bf16.mxu1 %v1026_v12  ;;  %v1031_v22 = vld [vmem:[%s1161_s7 + $0x10] ss:$8 sps:$4 sm:$0xff]   ;;  %v1033_v24 = vld [vmem:[%s1161_s7 + $0x24] ss:$8 sps:$4 sm:$0xff]   ;;  %v1037_v26 = vld [vmem:[%s1161_s7 + $0x20] ss:$8 sps:$4 sm:$0xff]  }
  0x14   : > { %860 = vmatpush3.bf16.msra.mxu0 %v1012_v7  ;;  %976 = vmatpush3.bf16.msra.mxu1 %v1012_v7  ;;  %v1032_v23 = vld [vmem:[%s1161_s7 + $0x90] ss:$8 sps:$4 sm:$0xff]   ;;  %v1035_v25 = vld [vmem:[%s1161_s7 + $0xa4] ss:$8 sps:$4 sm:$0xff]   ;;  %v1038_v27 = vld [vmem:[%s1161_s7 + $0xa0] ss:$8 sps:$4 sm:$0xff]  }
  0x15   : > { %861 = vmatprep.subr.bf16.mxu0 %v1013_v8  ;;  %969 = vmatprep.subr.bf16.mxu1 %v1013_v8  ;;  %v1039_v28 = vld [vmem:[%s1161_s7 + $0x34] ss:$8 sps:$4 sm:$0xff]   ;;  %v1043_v30 = vld [vmem:[%s1161_s7 + $0x30] ss:$8 sps:$4 sm:$0xff]   ;;  %v1045_v32 = vld [vmem:[%s1161_s7 + $0x44] ss:$8 sps:$4 sm:$0xff]  }
  0x16   : > { %v1041_v29 = vld [vmem:[%s1161_s7 + $0xb4] ss:$8 sps:$4 sm:$0xff]   ;;  %v1044_v31 = vld [vmem:[%s1161_s7 + $0xb0] ss:$8 sps:$4 sm:$0xff]   ;;  %v1047_v33 = vld [vmem:[%s1161_s7 + $0xc4] ss:$8 sps:$4 sm:$0xff]  }
  0x17   : > { %v1049_v34 = vld [vmem:[%s1161_s7 + $0x40] ss:$8 sps:$4 sm:$0xff]   ;;  %v1051_v36 = vld [vmem:[%s1161_s7 + $0x54] ss:$8 sps:$4 sm:$0xff]   ;;  %v1055_v38 = vld [vmem:[%s1161_s7 + $0x50] ss:$8 sps:$4 sm:$0xff]  }
  0x18   : > { %862 = vmatpush3.bf16.msra.mxu0 %v1014_v9  ;;  %977 = vmatpush3.bf16.msra.mxu1 %v1014_v9  ;;  %v1050_v35 = vld [vmem:[%s1161_s7 + $0xc0] ss:$8 sps:$4 sm:$0xff]   ;;  %v1053_v37 = vld [vmem:[%s1161_s7 + $0xd4] ss:$8 sps:$4 sm:$0xff]   ;;  %v1056_v39 = vld [vmem:[%s1161_s7 + $0xd0] ss:$8 sps:$4 sm:$0xff]  }
  0x19   : > { %863 = vmatprep.subr.bf16.mxu0 %v1015_v10  ;;  %970 = vmatprep.subr.bf16.mxu1 %v1015_v10  ;;  %v1057_v40 = vld [vmem:[%s1161_s7 + $0x64] ss:$8 sps:$4 sm:$0xff]   ;;  %v1061_v42 = vld [vmem:[%s1161_s7 + $0x60] ss:$8 sps:$4 sm:$0xff]   ;;  %v1063_v44 = vld [vmem:[%s1161_s7 + $0x74] ss:$8 sps:$4 sm:$0xff]  }
  0x1a   : > { %v1059_v41 = vld [vmem:[%s1161_s7 + $0xe4] ss:$8 sps:$4 sm:$0xff]   ;;  %v1062_v43 = vld [vmem:[%s1161_s7 + $0xe0] ss:$8 sps:$4 sm:$0xff]   ;;  %v1065_v45 = vld [vmem:[%s1161_s7 + $0xf4] ss:$8 sps:$4 sm:$0xff]  }
  0x1b   : > { %v1067_v46 = vld [vmem:[%s1161_s7 + $0x70] ss:$8 sps:$4 sm:$0xff]  }
  0x1c   : > { %864 = vmatpush3.bf16.msra.mxu0 %v1016_v13  ;;  %978 = vmatpush3.bf16.msra.mxu1 %v1016_v13  ;;  %v1068_v47 = vld [vmem:[%s1161_s7 + $0xf0] ss:$8 sps:$4 sm:$0xff]  }
  0x1d   : > { %865 = vmatprep.subr.bf16.mxu0 %v1017_v14  ;;  %971 = vmatprep.subr.bf16.mxu1 %v1017_v14 }
  0x20   : > { %866 = vmatpush3.bf16.msra.mxu0 %v1018_v15  ;;  %979 = vmatpush3.bf16.msra.mxu1 %v1018_v15 }
  0x21   : > { %867 = vmatprep.subr.bf16.mxu0 %v1019_v16  ;;  %972 = vmatprep.subr.bf16.mxu1 %v1019_v16 }
  0x24   : > { %868 = vmatpush3.bf16.msra.mxu0 %v1020_v17  ;;  %980 = vmatpush3.bf16.msra.mxu1 %v1020_v17 }
  0x27   : > { %541 = vmatmul.mubr.bf16.vlgmr.msra.gmra.mrb[0].mxu0 %v1021_v18  ;;  %605 = vmatmul.mubr.bf16.vlgmr.msra.gmra.mrb[0].mxu1 %v1024_v19 }
  0x28   : > { %548 = vmatprep.mubr.bf16.mxu0 %v1027_v20  ;;  %612 = vmatprep.mubr.bf16.mxu1 %v1029_v21 }
  0x2f   : > { %549 = vmatmul.mubr.bf16.gmra.mrb[4].mxu0 %v1031_v22  ;;  %613 = vmatmul.mubr.bf16.gmra.mrb[4].mxu1 %v1032_v23 }
  0x30   : > { %556 = vmatprep.mubr.bf16.mxu0 %v1033_v24  ;;  %620 = vmatprep.mubr.bf16.mxu1 %v1035_v25 }
  0x37   : > { %557 = vmatmul.mubr.bf16.gmra.mrb[8].mxu0 %v1037_v26  ;;  %621 = vmatmul.mubr.bf16.gmra.mrb[8].mxu1 %v1038_v27 }
  0x38   : > { %564 = vmatprep.mubr.bf16.mxu0 %v1039_v28  ;;  %628 = vmatprep.mubr.bf16.mxu1 %v1041_v29 }
  0x3f   : > { %565 = vmatmul.mubr.bf16.gmra.mrb[12].mxu0 %v1043_v30  ;;  %629 = vmatmul.mubr.bf16.gmra.mrb[12].mxu1 %v1044_v31 }
  0x40   : > { %572 = vmatprep.mubr.bf16.mxu0 %v1045_v32  ;;  %636 = vmatprep.mubr.bf16.mxu1 %v1047_v33 }
  0x47   : > { %573 = vmatmul.mubr.bf16.gmra.mrb[16].mxu0 %v1049_v34  ;;  %637 = vmatmul.mubr.bf16.gmra.mrb[16].mxu1 %v1050_v35 }
  0x48   : > { %580 = vmatprep.mubr.bf16.mxu0 %v1051_v36  ;;  %644 = vmatprep.mubr.bf16.mxu1 %v1053_v37 }
  0x4f   : > { %581 = vmatmul.mubr.bf16.gmra.mrb[20].mxu0 %v1055_v38  ;;  %645 = vmatmul.mubr.bf16.gmra.mrb[20].mxu1 %v1056_v39 }
  0x50   : > { %588 = vmatprep.mubr.bf16.mxu0 %v1057_v40  ;;  %652 = vmatprep.mubr.bf16.mxu1 %v1059_v41 }
  0x57   : > { %589 = vmatmul.mubr.bf16.gmra.mrb[24].mxu0 %v1061_v42  ;;  %653 = vmatmul.mubr.bf16.gmra.mrb[24].mxu1 %v1062_v43 }
  0x58   : > { %596 = vmatprep.mubr.bf16.mxu0 %v1063_v44  ;;  %660 = vmatprep.mubr.bf16.mxu1 %v1065_v45 }
  0x5f   : > { %597 = vmatmul.mubr.bf16.gmra.mrb[28].mxu0 %v1067_v46  ;;  %661 = vmatmul.mubr.bf16.gmra.mrb[28].mxu1 %v1068_v47 }
  0xfa   : > { %v869_v48 = vpop.f32.mrb[0].mxu0  ;;  %v917_v49 = vpop.f32.mrb[0].mxu1 }
  0xfb   : > { %v870_v50 = vpop.f32.mrb[1].mxu0  ;;  %v918_v51 = vpop.f32.mrb[1].mxu1 }
  0xfc   : > { %v871_v52 = vadd.f32 %v870_v50, %v869_v48  ;;  %v919_v53 = vadd.f32 %v918_v51, %v917_v49  ;;  %v872_v54 = vpop.f32.mrb[2].mxu0  ;;  %v920_v55 = vpop.f32.mrb[2].mxu1 }
  0xfd   : > { %v873_v56 = vpop.f32.mrb[3].mxu0  ;;  %v921_v57 = vpop.f32.mrb[3].mxu1 }
  0xfe   : > { %669 = vst [vmem:[%s1221_s28] sm:$0xff] %v871_v52  ;;  %685 = vst [vmem:[%s1221_s28 + $0x80] sm:$0xff] %v919_v53  ;;  %v874_v58 = vadd.f32 %v873_v56, %v872_v54  ;;  %v922_v59 = vadd.f32 %v921_v57, %v920_v55 }
 0x100   : > { %670 = vst [vmem:[%s1221_s28 + $0x8] sm:$0xff] %v874_v58  ;;  %686 = vst [vmem:[%s1221_s28 + $0x88] sm:$0xff] %v922_v59 }
 0x102   : > { %v875_v60 = vpop.f32.mrb[4].mxu0  ;;  %v923_v61 = vpop.f32.mrb[4].mxu1 }
 0x103   : > { %v876_v62 = vpop.f32.mrb[5].mxu0  ;;  %v924_v63 = vpop.f32.mrb[5].mxu1 }
 0x104   : > { %v877_v0 = vadd.f32 %v876_v62, %v875_v60  ;;  %v925_v1 = vadd.f32 %v924_v63, %v923_v61  ;;  %v878_v2 = vpop.f32.mrb[6].mxu0  ;;  %v926_v3 = vpop.f32.mrb[6].mxu1 }
 0x105   : > { %v879_v4 = vpop.f32.mrb[7].mxu0  ;;  %v927_v5 = vpop.f32.mrb[7].mxu1 }
 0x106   : > { %671 = vst [vmem:[%s1221_s28 + $0x10] sm:$0xff] %v877_v0  ;;  %687 = vst [vmem:[%s1221_s28 + $0x90] sm:$0xff] %v925_v1  ;;  %v880_v6 = vadd.f32 %v879_v4, %v878_v2  ;;  %v928_v7 = vadd.f32 %v927_v5, %v926_v3 }
 0x108   : > { %672 = vst [vmem:[%s1221_s28 + $0x18] sm:$0xff] %v880_v6  ;;  %688 = vst [vmem:[%s1221_s28 + $0x98] sm:$0xff] %v928_v7 }
 0x10a   : > { %v881_v8 = vpop.f32.mrb[8].mxu0  ;;  %v929_v9 = vpop.f32.mrb[8].mxu1 }
 0x10b   : > { %v882_v10 = vpop.f32.mrb[9].mxu0  ;;  %v930_v11 = vpop.f32.mrb[9].mxu1 }
 0x10c   : > { %v883_v12 = vadd.f32 %v882_v10, %v881_v8  ;;  %v931_v13 = vadd.f32 %v930_v11, %v929_v9  ;;  %v884_v14 = vpop.f32.mrb[10].mxu0  ;;  %v932_v15 = vpop.f32.mrb[10].mxu1 }
 0x10d   : > { %v885_v16 = vpop.f32.mrb[11].mxu0  ;;  %v933_v17 = vpop.f32.mrb[11].mxu1 }
 0x10e   : > { %673 = vst [vmem:[%s1221_s28 + $0x20] sm:$0xff] %v883_v12  ;;  %689 = vst [vmem:[%s1221_s28 + $0xa0] sm:$0xff] %v931_v13  ;;  %v886_v18 = vadd.f32 %v885_v16, %v884_v14  ;;  %v934_v19 = vadd.f32 %v933_v17, %v932_v15 }
 0x110   : > { %674 = vst [vmem:[%s1221_s28 + $0x28] sm:$0xff] %v886_v18  ;;  %690 = vst [vmem:[%s1221_s28 + $0xa8] sm:$0xff] %v934_v19 }
 0x112   : > { %v887_v20 = vpop.f32.mrb[12].mxu0  ;;  %v935_v21 = vpop.f32.mrb[12].mxu1 }
 0x113   : > { %v888_v22 = vpop.f32.mrb[13].mxu0  ;;  %v936_v23 = vpop.f32.mrb[13].mxu1 }
 0x114   : > { %v889_v24 = vadd.f32 %v888_v22, %v887_v20  ;;  %v937_v25 = vadd.f32 %v936_v23, %v935_v21  ;;  %v890_v26 = vpop.f32.mrb[14].mxu0  ;;  %v938_v27 = vpop.f32.mrb[14].mxu1 }
 0x115   : > { %v891_v28 = vpop.f32.mrb[15].mxu0  ;;  %v939_v29 = vpop.f32.mrb[15].mxu1 }
 0x116   : > { %675 = vst [vmem:[%s1221_s28 + $0x30] sm:$0xff] %v889_v24  ;;  %691 = vst [vmem:[%s1221_s28 + $0xb0] sm:$0xff] %v937_v25  ;;  %v892_v30 = vadd.f32 %v891_v28, %v890_v26  ;;  %v940_v31 = vadd.f32 %v939_v29, %v938_v27 }
 0x118   : > { %676 = vst [vmem:[%s1221_s28 + $0x38] sm:$0xff] %v892_v30  ;;  %692 = vst [vmem:[%s1221_s28 + $0xb8] sm:$0xff] %v940_v31 }
 0x11a   : > { %v893_v32 = vpop.f32.mrb[16].mxu0  ;;  %v941_v33 = vpop.f32.mrb[16].mxu1 }
 0x11b   : > { %v894_v34 = vpop.f32.mrb[17].mxu0  ;;  %v942_v35 = vpop.f32.mrb[17].mxu1 }
 0x11c   : > { %v895_v36 = vadd.f32 %v894_v34, %v893_v32  ;;  %v943_v37 = vadd.f32 %v942_v35, %v941_v33  ;;  %v896_v38 = vpop.f32.mrb[18].mxu0  ;;  %v944_v39 = vpop.f32.mrb[18].mxu1 }
 0x11d   : > { %v897_v40 = vpop.f32.mrb[19].mxu0  ;;  %v945_v41 = vpop.f32.mrb[19].mxu1 }
 0x11e   : > { %677 = vst [vmem:[%s1221_s28 + $0x40] sm:$0xff] %v895_v36  ;;  %693 = vst [vmem:[%s1221_s28 + $0xc0] sm:$0xff] %v943_v37  ;;  %v898_v42 = vadd.f32 %v897_v40, %v896_v38  ;;  %v946_v43 = vadd.f32 %v945_v41, %v944_v39 }
 0x120   : > { %678 = vst [vmem:[%s1221_s28 + $0x48] sm:$0xff] %v898_v42  ;;  %694 = vst [vmem:[%s1221_s28 + $0xc8] sm:$0xff] %v946_v43 }
 0x122   : > { %v899_v44 = vpop.f32.mrb[20].mxu0  ;;  %v947_v45 = vpop.f32.mrb[20].mxu1 }
 0x123   : > { %v900_v46 = vpop.f32.mrb[21].mxu0  ;;  %v948_v47 = vpop.f32.mrb[21].mxu1 }
 0x124   : > { %v901_v48 = vadd.f32 %v900_v46, %v899_v44  ;;  %v949_v49 = vadd.f32 %v948_v47, %v947_v45  ;;  %v902_v50 = vpop.f32.mrb[22].mxu0  ;;  %v950_v51 = vpop.f32.mrb[22].mxu1 }
 0x125   : > { %v903_v52 = vpop.f32.mrb[23].mxu0  ;;  %v951_v53 = vpop.f32.mrb[23].mxu1 }
 0x126   : > { %679 = vst [vmem:[%s1221_s28 + $0x50] sm:$0xff] %v901_v48  ;;  %695 = vst [vmem:[%s1221_s28 + $0xd0] sm:$0xff] %v949_v49  ;;  %v904_v54 = vadd.f32 %v903_v52, %v902_v50  ;;  %v952_v55 = vadd.f32 %v951_v53, %v950_v51 }
 0x128   : > { %680 = vst [vmem:[%s1221_s28 + $0x58] sm:$0xff] %v904_v54  ;;  %696 = vst [vmem:[%s1221_s28 + $0xd8] sm:$0xff] %v952_v55 }
 0x12a   : > { %v905_v56 = vpop.f32.mrb[24].mxu0  ;;  %v953_v57 = vpop.f32.mrb[24].mxu1 }
 0x12b   : > { %v906_v58 = vpop.f32.mrb[25].mxu0  ;;  %v954_v59 = vpop.f32.mrb[25].mxu1 }
 0x12c   : > { %v907_v60 = vadd.f32 %v906_v58, %v905_v56  ;;  %v955_v61 = vadd.f32 %v954_v59, %v953_v57  ;;  %v908_v62 = vpop.f32.mrb[26].mxu0  ;;  %v956_v63 = vpop.f32.mrb[26].mxu1 }
 0x12d   : > { %v909_v0 = vpop.f32.mrb[27].mxu0  ;;  %v957_v1 = vpop.f32.mrb[27].mxu1 }
 0x12e   : > { %681 = vst [vmem:[%s1221_s28 + $0x60] sm:$0xff] %v907_v60  ;;  %697 = vst [vmem:[%s1221_s28 + $0xe0] sm:$0xff] %v955_v61  ;;  %v910_v2 = vadd.f32 %v909_v0, %v908_v62  ;;  %v958_v3 = vadd.f32 %v957_v1, %v956_v63 }
 0x130   : > { %682 = vst [vmem:[%s1221_s28 + $0x68] sm:$0xff] %v910_v2  ;;  %698 = vst [vmem:[%s1221_s28 + $0xe8] sm:$0xff] %v958_v3 }
 0x132   : > { %v911_v4 = vpop.f32.mrb[28].mxu0  ;;  %v959_v5 = vpop.f32.mrb[28].mxu1 }
 0x133   : > { %v912_v6 = vpop.f32.mrb[29].mxu0  ;;  %v960_v7 = vpop.f32.mrb[29].mxu1 }
 0x134   : > { %v913_v8 = vadd.f32 %v912_v6, %v911_v4  ;;  %v961_v9 = vadd.f32 %v960_v7, %v959_v5  ;;  %v914_v10 = vpop.f32.mrb[30].mxu0  ;;  %v962_v11 = vpop.f32.mrb[30].mxu1 }
 0x135   : > { %v915_v12 = vpop.f32.mrb[31].mxu0  ;;  %v963_v13 = vpop.f32.mrb[31].mxu1 }
 0x136   : > { %683 = vst [vmem:[%s1221_s28 + $0x70] sm:$0xff] %v913_v8  ;;  %699 = vst [vmem:[%s1221_s28 + $0xf0] sm:$0xff] %v961_v9  ;;  %v916_v14 = vadd.f32 %v915_v12, %v914_v10  ;;  %v964_v15 = vadd.f32 %v963_v13, %v962_v11 }
 0x138   : > { %684 = vst [vmem:[%s1221_s28 + $0x78] sm:$0xff] %v916_v14  ;;  %700 = vst [vmem:[%s1221_s28 + $0xf8] sm:$0xff] %v964_v15 }
 0x139 PF: > { %s12_s11 = sadd.s32 1, %s1091_s11   ;;  %s1267_s9 = smov %s1087_s10 }
 0x13a   : > { %p9_p5 = scmp.ge.s32.totalorder %s12_s11, 4   ;;  %s1268_s10 = smov %s1270_s12 }
 0x13c   :  { %11 = sbr.rel (!%p9_p5) target bundleno = 2 (0x2), region = 61 }

// kernel: _dense_unet_forward.8
= control target key start
LH: loop header
LB: loop body
LE: loop exit
PB: predicated region body
PF: predicated region fallthrough
CT: control target
= control target key end

     0   :  { %s1580_s9 = smov 0   ;;  %s1582_s10 = smov 0   ;;  %s1797_s0 = inlined_call_operand.vmem [shape: bf16[512,384], index: 0, kind: input, shape index: {}]   ;;  %s1798_s1 = inlined_call_operand.vmem [shape: bf16[384,128], index: 1, kind: input, shape index: {}]   ;;  %s1799_s2 = inlined_call_operand.vmem [shape: f32[512,128], index: 2, kind: output, shape index: {}]  }
   0x1   :  { %s1584_s11 = smov 0  }
   0x2 LB: > { %s24_s12 = sadd.s32 1, %s1559_s10  ;;  %p1149_p0 = scmp.ge.s32.totalorder %s1563_s11, 1  ;;  %s1563_s11 = sphi %s1584_s11, %s12_s11   ;;  %s1559_s10 = sphi %s1582_s10, %s1801_s10   ;;  %s1555_s9 = sphi %s1580_s9, %s1800_s9  }
   0x3   : > { %p26_p1 = scmp.ge.s32.totalorder %s24_s12, 2  ;;  %p137_p2 = scmp.lt.s32.totalorder %s1563_s11, 3 }
   0x5   : > { %s1803_s12 = smov (%p26_p1, %s24_s12), 0  ;;  %p138_p3 = pnand %p1149_p0, %p137_p2 }
   0x6   : > { %v1453_v0 = vld [vmem:[%s1798_s1 + $0x40] sm:$0xff] (!%p138_p3)   ;;  %s1150_s15 = sshll.u32 (!%p138_p3), %s1555_s9, 5  ;;  %v1455_v2 = vld [vmem:[%s1798_s1 + $0x48] sm:$0xff] (!%p138_p3)   ;;  %v1457_v4 = vld [vmem:[%s1798_s1 + $0x50] sm:$0xff] (!%p138_p3)  }
   0x7   : > { %141 = sbr.rel (%p138_p3) target bundleno = 347 (0x15b), region = 28  ;;  %v1454_v1 = vld [vmem:[%s1798_s1] sm:$0xff] (!%p138_p3)   ;;  %1228 = vmatprep.subr.bf16.mxu0 (!%p138_p3), %v1453_v0  ;;  %1412 = vmatprep.subr.bf16.mxu1 (!%p138_p3), %v1453_v0  ;;  %p168_p4 = scmp.lt.s32.totalorder (!%p138_p3), %s1150_s15, 63  ;;  %v1456_v3 = vld [vmem:[%s1798_s1 + $0x8] sm:$0xff] (!%p138_p3)   ;;  %v1458_v5 = vld [vmem:[%s1798_s1 + $0x10] sm:$0xff] (!%p138_p3)  }
   0x8   : > { %1229 = vmatpush3.bf16.msra.mxu0 (!%p138_p3), %v1454_v1  ;;  %1420 = vmatpush3.bf16.msra.mxu1 (!%p138_p3), %v1454_v1  ;;  %v1459_v6 = vld [vmem:[%s1798_s1 + $0x58] sm:$0xff] (!%p138_p3)   ;;  %v1461_v8 = vld [vmem:[%s1798_s1 + $0x60] sm:$0xff] (!%p138_p3)   ;;  %v1463_v10 = vld [vmem:[%s1798_s1 + $0x68] sm:$0xff] (!%p138_p3)  }
   0x9   : > { %1230 = vmatprep.subr.bf16.mxu0 (!%p138_p3), %v1455_v2  ;;  %1413 = vmatprep.subr.bf16.mxu1 (!%p138_p3), %v1455_v2  ;;  %v1460_v7 = vld [vmem:[%s1798_s1 + $0x18] sm:$0xff] (!%p138_p3)   ;;  %v1462_v9 = vld [vmem:[%s1798_s1 + $0x20] sm:$0xff] (!%p138_p3)   ;;  %v1464_v13 = vld [vmem:[%s1798_s1 + $0x28] sm:$0xff] (!%p138_p3)  }
   0xa   : > { %v1465_v14 = vld [vmem:[%s1798_s1 + $0x70] sm:$0xff] (!%p138_p3)   ;;  %v1467_v16 = vld [vmem:[%s1798_s1 + $0x78] sm:$0xff] (!%p138_p3)   ;;  %v1475_v18 = vld [vmem:[%s1798_s1 + $0x80] sm:$0xff] (!%p138_p3)  }
   0xb   : > { %v1466_v15 = vld [vmem:[%s1798_s1 + $0x30] sm:$0xff] (!%p138_p3)   ;;  %v1468_v17 = vld [vmem:[%s1798_s1 + $0x38] sm:$0xff] (!%p138_p3)   ;;  %v1476_v22 = vld [vmem:[%s1798_s1 + $0x88] sm:$0xff] (!%p138_p3)  }
   0xc   : > { %1231 = vmatpush3.bf16.msra.mxu0 (!%p138_p3), %v1456_v3  ;;  %1421 = vmatpush3.bf16.msra.mxu1 (!%p138_p3), %v1456_v3  ;;  %v1483_v25 = vld [vmem:[%s1798_s1 + $0x90] sm:$0xff] (!%p138_p3)   ;;  %v1484_v27 = vld [vmem:[%s1798_s1 + $0x98] sm:$0xff] (!%p138_p3)   ;;  %v1491_v30 = vld [vmem:[%s1798_s1 + $0xa0] sm:$0xff] (!%p138_p3)  }
   0xd   : > { %1232 = vmatprep.subr.bf16.mxu0 (!%p138_p3), %v1457_v4  ;;  %1414 = vmatprep.subr.bf16.mxu1 (!%p138_p3), %v1457_v4  ;;  %v1492_v33 = vld [vmem:[%s1798_s1 + $0xa8] sm:$0xff] (!%p138_p3)   ;;  %v1499_v36 = vld [vmem:[%s1798_s1 + $0xb0] sm:$0xff] (!%p138_p3)   ;;  %v1500_v40 = vld [vmem:[%s1798_s1 + $0xb8] sm:$0xff] (!%p138_p3)  }
   0xe   : > { %s1805_s15 = smov (!%p168_p4, %s1150_s15), 63 }
   0xf   : > { %s1428_s28 = smul.u32 12, %s1805_s15 }
  0x10   : > { %1233 = vmatpush3.bf16.msra.mxu0 %v1458_v5  ;;  %1422 = vmatpush3.bf16.msra.mxu1 %v1458_v5 }
  0x11   : > { %1234 = vmatprep.subr.bf16.mxu0 %v1459_v6  ;;  %1415 = vmatprep.subr.bf16.mxu1 %v1459_v6  ;;  %s1631_s7 = scalar_lea.vmem %s1797_s0, %s1428_s28 }
  0x12   : > { %v1471_v11 = vld [vmem:[%s1631_s7 + $0x4] ss:$12 sps:$4 sm:$0xff]   ;;  %v1469_v19 = vld [vmem:[%s1631_s7] ss:$12 sps:$4 sm:$0xff]   ;;  %v1477_v21 = vld [vmem:[%s1631_s7 + $0x1c] ss:$12 sps:$4 sm:$0xff]  }
  0x13   : > { %v1474_v12 = vld [vmem:[%s1631_s7 + $0x124] ss:$12 sps:$4 sm:$0xff]   ;;  %732 = vmatprep.mubr.bf16.mxu0 %v1471_v11  ;;  %v1472_v20 = vld [vmem:[%s1631_s7 + $0x120] ss:$12 sps:$4 sm:$0xff]   ;;  %v1479_v23 = vld [vmem:[%s1631_s7 + $0x13c] ss:$12 sps:$4 sm:$0xff]  }
  0x14   : > { %1235 = vmatpush3.bf16.msra.mxu0 %v1460_v7  ;;  %1423 = vmatpush3.bf16.msra.mxu1 %v1460_v7  ;;  %v1481_v24 = vld [vmem:[%s1631_s7 + $0x18] ss:$12 sps:$4 sm:$0xff]   ;;  %v1485_v28 = vld [vmem:[%s1631_s7 + $0x34] ss:$12 sps:$4 sm:$0xff]   ;;  %v1489_v31 = vld [vmem:[%s1631_s7 + $0x30] ss:$12 sps:$4 sm:$0xff]  }
  0x15   : > { %1236 = vmatprep.subr.bf16.mxu0 %v1461_v8  ;;  %1416 = vmatprep.subr.bf16.mxu1 %v1461_v8  ;;  %v1482_v26 = vld [vmem:[%s1631_s7 + $0x138] ss:$12 sps:$4 sm:$0xff]   ;;  %v1487_v29 = vld [vmem:[%s1631_s7 + $0x154] ss:$12 sps:$4 sm:$0xff]   ;;  %v1490_v32 = vld [vmem:[%s1631_s7 + $0x150] ss:$12 sps:$4 sm:$0xff]  }
  0x16   : > { %828 = vmatprep.mubr.bf16.mxu1 %v1474_v12  ;;  %v1493_v34 = vld [vmem:[%s1631_s7 + $0x4c] ss:$12 sps:$4 sm:$0xff]   ;;  %v1497_v37 = vld [vmem:[%s1631_s7 + $0x48] ss:$12 sps:$4 sm:$0xff]   ;;  %v1501_v39 = vld [vmem:[%s1631_s7 + $0x64] ss:$12 sps:$4 sm:$0xff]  }
  0x17   : > { %v1495_v35 = vld [vmem:[%s1631_s7 + $0x16c] ss:$12 sps:$4 sm:$0xff]   ;;  %v1498_v38 = vld [vmem:[%s1631_s7 + $0x168] ss:$12 sps:$4 sm:$0xff]   ;;  %v1510_v47 = vld [vmem:[%s1631_s7 + $0x50] ss:$12 sps:$4 sm:$0xff]  }
  0x18   : > { %1237 = vmatpush3.bf16.msra.mxu0 %v1462_v9  ;;  %1424 = vmatpush3.bf16.msra.mxu1 %v1462_v9  ;;  %v1503_v41 = vld [vmem:[%s1631_s7 + $0x8] ss:$12 sps:$4 sm:$0xff]   ;;  %v1504_v42 = vld [vmem:[%s1631_s7 + $0x60] ss:$12 sps:$4 sm:$0xff]   ;;  %v1508_v45 = vld [vmem:[%s1631_s7 + $0x38] ss:$12 sps:$4 sm:$0xff]  }
  0x19   : > { %1238 = vmatprep.subr.bf16.mxu0 %v1463_v10  ;;  %1417 = vmatprep.subr.bf16.mxu1 %v1463_v10  ;;  %v1505_v43 = vld [vmem:[%s1631_s7 + $0x20] ss:$12 sps:$4 sm:$0xff]   ;;  %v1506_v44 = vld [vmem:[%s1631_s7 + $0x7c] ss:$12 sps:$4 sm:$0xff]   ;;  %v1509_v46 = vld [vmem:[%s1631_s7 + $0x78] ss:$12 sps:$4 sm:$0xff]  }
  0x1a   : > { %v1511_v48 = vld [vmem:[%s1631_s7 + $0x94] ss:$12 sps:$4 sm:$0xff]   ;;  %v1514_v50 = vld [vmem:[%s1631_s7 + $0x90] ss:$12 sps:$4 sm:$0xff]   ;;  %v1516_v52 = vld [vmem:[%s1631_s7 + $0xac] ss:$12 sps:$4 sm:$0xff]  }
  0x1b   : > { %v1513_v49 = vld [vmem:[%s1631_s7 + $0x68] ss:$12 sps:$4 sm:$0xff]   ;;  %v1515_v51 = vld [vmem:[%s1631_s7 + $0x80] ss:$12 sps:$4 sm:$0xff]   ;;  %v1518_v53 = vld [vmem:[%s1631_s7 + $0x98] ss:$12 sps:$4 sm:$0xff]  }
  0x1c   : > { %1239 = vmatpush3.bf16.msra.mxu0 %v1464_v13  ;;  %1425 = vmatpush3.bf16.msra.mxu1 %v1464_v13  ;;  %v1519_v54 = vld [vmem:[%s1631_s7 + $0xa8] ss:$12 sps:$4 sm:$0xff]   ;;  %v1520_v55 = vld [vmem:[%s1631_s7 + $0xb0] ss:$12 sps:$4 sm:$0xff]   ;;  %v1524_v58 = vld [vmem:[%s1631_s7 + $0xc0] ss:$12 sps:$4 sm:$0xff]  }
  0x1d   : > { %1240 = vmatprep.subr.bf16.mxu0 %v1465_v14  ;;  %1418 = vmatprep.subr.bf16.mxu1 %v1465_v14  ;;  %v1521_v56 = vld [vmem:[%s1631_s7 + $0xc4] ss:$12 sps:$4 sm:$0xff]   ;;  %v1523_v57 = vld [vmem:[%s1631_s7 + $0xc8] ss:$12 sps:$4 sm:$0xff]   ;;  %v1525_v59 = vld [vmem:[%s1631_s7 + $0xe0] ss:$12 sps:$4 sm:$0xff]  }
  0x1e   : > { %v1526_v60 = vld [vmem:[%s1631_s7 + $0xdc] ss:$12 sps:$4 sm:$0xff]   ;;  %v1528_v61 = vld [vmem:[%s1631_s7 + $0xf8] ss:$12 sps:$4 sm:$0xff]   ;;  %v1531_v0 = vld [vmem:[%s1631_s7 + $0xf4] ss:$12 sps:$4 sm:$0xff]  }
  0x1f   : > { %v1529_v62 = vld [vmem:[%s1631_s7 + $0xd8] ss:$12 sps:$4 sm:$0xff]   ;;  %v1530_v63 = vld [vmem:[%s1631_s7 + $0x110] ss:$12 sps:$4 sm:$0xff]   ;;  %v1533_v1 = vld [vmem:[%s1631_s7 + $0x128] ss:$12 sps:$4 sm:$0xff]  }
  0x20   : > { %1241 = vmatpush3.bf16.msra.mxu0 %v1466_v15  ;;  %1426 = vmatpush3.bf16.msra.mxu1 %v1466_v15  ;;  %v1534_v2 = vld [vmem:[%s1631_s7 + $0xf0] ss:$12 sps:$4 sm:$0xff]   ;;  %v1535_v3 = vld [vmem:[%s1631_s7 + $0x140] ss:$12 sps:$4 sm:$0xff]   ;;  %v1538_v5 = vld [vmem:[%s1631_s7 + $0x158] ss:$12 sps:$4 sm:$0xff]  }
  0x21   : > { %1242 = vmatprep.subr.bf16.mxu0 %v1467_v16  ;;  %1419 = vmatprep.subr.bf16.mxu1 %v1467_v16  ;;  %v1536_v4 = vld [vmem:[%s1631_s7 + $0x10c] ss:$12 sps:$4 sm:$0xff]   ;;  %v1539_v6 = vld [vmem:[%s1631_s7 + $0x108] ss:$12 sps:$4 sm:$0xff]   ;;  %v1540_v7 = vld [vmem:[%s1631_s7 + $0x170] ss:$12 sps:$4 sm:$0xff]  }
  0x22   : > { %s1153_s7 = sshll.u32 %s1805_s15, 3 }
  0x23   : > { %s1746_s21 = scalar_lea.vmem %s1799_s2, %s1153_s7 }
  0x24   : > { %1243 = vmatpush3.bf16.msra.mxu0 %v1468_v17  ;;  %1427 = vmatpush3.bf16.msra.mxu1 %v1468_v17 }
  0x25   : > { %1364 = vmatprep.subr.bf16.mxu1 %v1475_v18 }
  0x27   : > { %733 = vmatmul.mubr.bf16.vlgmr.msra.gmra.mrb[0].mxu0 %v1469_v19  ;;  %829 = vmatmul.mubr.bf16.vlgmr.msra.gmra.mrb[0].mxu1 %v1472_v20 }
  0x28   : > { %1365 = vmatpush3.bf16.msra.mxu1 %v1475_v18  ;;  %740 = vmatprep.mubr.bf16.mxu0 %v1477_v21 }
  0x29   : > { %1366 = vmatprep.subr.bf16.mxu1 %v1476_v22  ;;  %836 = vmatprep.mubr.bf16.mxu1 %v1479_v23 }
  0x2c   : > { %1367 = vmatpush3.bf16.msra.mxu1 %v1476_v22 }
  0x2d   : > { %1368 = vmatprep.subr.bf16.mxu1 %v1483_v25 }
  0x2f   : > { %741 = vmatmul.mubr.bf16.gmra.mrb[4].mxu0 %v1481_v24  ;;  %837 = vmatmul.mubr.bf16.gmra.mrb[4].mxu1 %v1482_v26 }
  0x30   : > { %1369 = vmatpush3.bf16.msra.mxu1 %v1483_v25  ;;  %748 = vmatprep.mubr.bf16.mxu0 %v1485_v28 }
  0x31   : > { %1370 = vmatprep.subr.bf16.mxu1 %v1484_v27  ;;  %844 = vmatprep.mubr.bf16.mxu1 %v1487_v29 }
  0x34   : > { %1371 = vmatpush3.bf16.msra.mxu1 %v1484_v27 }
  0x35   : > { %1372 = vmatprep.subr.bf16.mxu1 %v1491_v30 }
  0x37   : > { %749 = vmatmul.mubr.bf16.gmra.mrb[8].mxu0 %v1489_v31  ;;  %845 = vmatmul.mubr.bf16.gmra.mrb[8].mxu1 %v1490_v32 }
  0x38   : > { %1373 = vmatpush3.bf16.msra.mxu1 %v1491_v30  ;;  %756 = vmatprep.mubr.bf16.mxu0 %v1493_v34 }
  0x39   : > { %1374 = vmatprep.subr.bf16.mxu1 %v1492_v33  ;;  %852 = vmatprep.mubr.bf16.mxu1 %v1495_v35 }
  0x3c   : > { %1375 = vmatpush3.bf16.msra.mxu1 %v1492_v33 }
  0x3d   : > { %1376 = vmatprep.subr.bf16.mxu1 %v1499_v36 }
  0x3f   : > { %757 = vmatmul.mubr.bf16.gmra.mrb[12].mxu0 %v1497_v37  ;;  %853 = vmatmul.mubr.bf16.gmra.mrb[12].mxu1 %v1498_v38 }
  0x40   : > { %1377 = vmatpush3.bf16.msra.mxu1 %v1499_v36  ;;  %764 = vmatprep.mubr.bf16.mxu0 %v1501_v39 }
  0x41   : > { %1378 = vmatprep.subr.bf16.mxu1 %v1500_v40  ;;  %1380 = vmatprep.mubr.bf16.mxu1 %v1503_v41 }
  0x44   : > { %1379 = vmatpush3.bf16.msra.mxu1 %v1500_v40 }
  0x47   : > { %765 = vmatmul.mubr.bf16.gmra.mrb[16].mxu0 %v1504_v42  ;;  %1381 = vmatmul.mubr.bf16.vlgmr.msra.gmra.mrb[16].mxu1 %v1505_v43 }
  0x48   : > { %772 = vmatprep.mubr.bf16.mxu0 %v1506_v44  ;;  %1384 = vmatprep.mubr.bf16.mxu1 %v1508_v45 }
  0x4f   : > { %773 = vmatmul.mubr.bf16.gmra.mrb[20].mxu0 %v1509_v46  ;;  %1385 = vmatmul.mubr.bf16.gmra.mrb[20].mxu1 %v1510_v47 }
  0x50   : > { %780 = vmatprep.mubr.bf16.mxu0 %v1511_v48  ;;  %1388 = vmatprep.mubr.bf16.mxu1 %v1513_v49 }
  0x57   : > { %781 = vmatmul.mubr.bf16.gmra.mrb[24].mxu0 %v1514_v50  ;;  %1389 = vmatmul.mubr.bf16.gmra.mrb[24].mxu1 %v1515_v51 }
  0x58   : > { %788 = vmatprep.mubr.bf16.mxu0 %v1516_v52  ;;  %1392 = vmatprep.mubr.bf16.mxu1 %v1518_v53 }
  0x5f   : > { %789 = vmatmul.mubr.bf16.gmra.mrb[28].mxu0 %v1519_v54  ;;  %1393 = vmatmul.mubr.bf16.gmra.mrb[28].mxu1 %v1520_v55 }
  0x60   : > { %796 = vmatprep.mubr.bf16.mxu0 %v1521_v56  ;;  %1396 = vmatprep.mubr.bf16.mxu1 %v1523_v57 }
  0x67   : > { %797 = vmatmul.mubr.bf16.gmra.mrb[32].mxu0 %v1524_v58  ;;  %1397 = vmatmul.mubr.bf16.gmra.mrb[32].mxu1 %v1525_v59 }
  0x68   : > { %804 = vmatprep.mubr.bf16.mxu0 %v1526_v60  ;;  %1400 = vmatprep.mubr.bf16.mxu1 %v1528_v61 }
  0x6f   : > { %805 = vmatmul.mubr.bf16.gmra.mrb[36].mxu0 %v1529_v62  ;;  %1401 = vmatmul.mubr.bf16.gmra.mrb[36].mxu1 %v1530_v63 }
  0x70   : > { %812 = vmatprep.mubr.bf16.mxu0 %v1531_v0  ;;  %1404 = vmatprep.mubr.bf16.mxu1 %v1533_v1 }
  0x77   : > { %813 = vmatmul.mubr.bf16.gmra.mrb[40].mxu0 %v1534_v2  ;;  %1405 = vmatmul.mubr.bf16.gmra.mrb[40].mxu1 %v1535_v3 }
  0x78   : > { %820 = vmatprep.mubr.bf16.mxu0 %v1536_v4  ;;  %1408 = vmatprep.mubr.bf16.mxu1 %v1538_v5 }
  0x7f   : > { %821 = vmatmul.mubr.bf16.gmra.mrb[44].mxu0 %v1539_v6  ;;  %1409 = vmatmul.mubr.bf16.gmra.mrb[44].mxu1 %v1540_v7 }
  0xfa   : > { %v1244_v8 = vpop.f32.mrb[0].mxu0  ;;  %v1316_v9 = vpop.f32.mrb[0].mxu1 }
  0xfb   : > { %v1245_v10 = vpop.f32.mrb[1].mxu0  ;;  %v1317_v11 = vpop.f32.mrb[1].mxu1 }
  0xfc   : > { %v1246_v12 = vadd.f32 %v1245_v10, %v1244_v8  ;;  %v1726_v13 = vadd.f32 %v1317_v11, %v1316_v9  ;;  %v1247_v14 = vpop.f32.mrb[2].mxu0  ;;  %v1319_v15 = vpop.f32.mrb[2].mxu1 }
  0xfd   : > { %v1248_v16 = vpop.f32.mrb[3].mxu0  ;;  %v1320_v17 = vpop.f32.mrb[3].mxu1 }
  0xfe   : > { %v1249_v18 = vadd.f32 %v1248_v16, %v1247_v14  ;;  %v1728_v19 = vadd.f32 %v1320_v17, %v1319_v15 }
 0x102   : > { %v1250_v20 = vpop.f32.mrb[4].mxu0  ;;  %v1322_v21 = vpop.f32.mrb[4].mxu1 }
 0x103   : > { %v1251_v22 = vpop.f32.mrb[5].mxu0  ;;  %v1323_v23 = vpop.f32.mrb[5].mxu1 }
 0x104   : > { %v1252_v24 = vadd.f32 %v1251_v22, %v1250_v20  ;;  %v1730_v25 = vadd.f32 %v1323_v23, %v1322_v21  ;;  %v1253_v26 = vpop.f32.mrb[6].mxu0  ;;  %v1325_v27 = vpop.f32.mrb[6].mxu1 }
 0x105   : > { %v1254_v28 = vpop.f32.mrb[7].mxu0  ;;  %v1326_v29 = vpop.f32.mrb[7].mxu1 }
 0x106   : > { %v1255_v30 = vadd.f32 %v1254_v28, %v1253_v26  ;;  %v1732_v31 = vadd.f32 %v1326_v29, %v1325_v27 }
 0x10a   : > { %v1256_v32 = vpop.f32.mrb[8].mxu0  ;;  %v1328_v33 = vpop.f32.mrb[8].mxu1 }
 0x10b   : > { %v1257_v34 = vpop.f32.mrb[9].mxu0  ;;  %v1329_v35 = vpop.f32.mrb[9].mxu1 }
 0x10c   : > { %v1258_v36 = vadd.f32 %v1257_v34, %v1256_v32  ;;  %v1734_v37 = vadd.f32 %v1329_v35, %v1328_v33  ;;  %v1259_v38 = vpop.f32.mrb[10].mxu0  ;;  %v1331_v39 = vpop.f32.mrb[10].mxu1 }
 0x10d   : > { %v1260_v40 = vpop.f32.mrb[11].mxu0  ;;  %v1332_v41 = vpop.f32.mrb[11].mxu1 }
 0x10e   : > { %v1261_v42 = vadd.f32 %v1260_v40, %v1259_v38  ;;  %v1736_v43 = vadd.f32 %v1332_v41, %v1331_v39 }
 0x112   : > { %v1262_v44 = vpop.f32.mrb[12].mxu0  ;;  %v1334_v45 = vpop.f32.mrb[12].mxu1 }
 0x113   : > { %v1263_v46 = vpop.f32.mrb[13].mxu0  ;;  %v1335_v47 = vpop.f32.mrb[13].mxu1 }
 0x114   : > { %v1264_v48 = vadd.f32 %v1263_v46, %v1262_v44  ;;  %v1738_v49 = vadd.f32 %v1335_v47, %v1334_v45  ;;  %v1265_v50 = vpop.f32.mrb[14].mxu0  ;;  %v1337_v51 = vpop.f32.mrb[14].mxu1 }
 0x115   : > { %v1266_v52 = vpop.f32.mrb[15].mxu0  ;;  %v1338_v53 = vpop.f32.mrb[15].mxu1 }
 0x116   : > { %v1267_v54 = vadd.f32 %v1266_v52, %v1265_v50  ;;  %v1740_v55 = vadd.f32 %v1338_v53, %v1337_v51 }
 0x11a   : > { %v1268_v56 = vpop.f32.mrb[16].mxu0  ;;  %v1382_v57 = vpop.f32.mrb[16].mxu1 }
 0x11b   : > { %v904_v58 = vadd.f32 %v1382_v57, %v1252_v24  ;;  %v1269_v59 = vpop.f32.mrb[17].mxu0  ;;  %v895_v60 = vpop.f32.mrb[17].mxu1 }
 0x11c   : > { %v1270_v61 = vadd.f32 %v1269_v59, %v1268_v56  ;;  %v896_v62 = vadd.f32 %v1246_v12, %v895_v60  ;;  %v1271_v63 = vpop.f32.mrb[18].mxu0  ;;  %v1383_v0 = vpop.f32.mrb[18].mxu1 }
 0x11d   : > { %1024 = vst [vmem:[%s1746_s21 + $0x10] sm:$0xff] %v904_v58  ;;  %v907_v1 = vadd.f32 %v1383_v0, %v1255_v30  ;;  %v1272_v2 = vpop.f32.mrb[19].mxu0  ;;  %v898_v3 = vpop.f32.mrb[19].mxu1 }
 0x11e   : > { %1022 = vst [vmem:[%s1746_s21] sm:$0xff] %v896_v62  ;;  %v1273_v4 = vadd.f32 %v1272_v2, %v1271_v63  ;;  %v899_v5 = vadd.f32 %v1249_v18, %v898_v3 }
 0x11f   : > { %1025 = vst [vmem:[%s1746_s21 + $0x18] sm:$0xff] %v907_v1 }
 0x120   : > { %1023 = vst [vmem:[%s1746_s21 + $0x8] sm:$0xff] %v899_v5 }
 0x122   : > { %v1274_v6 = vpop.f32.mrb[20].mxu0  ;;  %v1386_v7 = vpop.f32.mrb[20].mxu1 }
 0x123   : > { %v920_v8 = vadd.f32 %v1386_v7, %v1264_v48  ;;  %v1275_v9 = vpop.f32.mrb[21].mxu0  ;;  %v911_v10 = vpop.f32.mrb[21].mxu1 }
 0x124   : > { %v1276_v11 = vadd.f32 %v1275_v9, %v1274_v6  ;;  %v912_v12 = vadd.f32 %v1258_v36, %v911_v10  ;;  %v1277_v14 = vpop.f32.mrb[22].mxu0  ;;  %v1387_v15 = vpop.f32.mrb[22].mxu1 }
 0x125   : > { %1028 = vst [vmem:[%s1746_s21 + $0x30] sm:$0xff] %v920_v8  ;;  %v923_v16 = vadd.f32 %v1387_v15, %v1267_v54  ;;  %v1278_v17 = vpop.f32.mrb[23].mxu0  ;;  %v914_v20 = vpop.f32.mrb[23].mxu1 }
 0x126   : > { %1026 = vst [vmem:[%s1746_s21 + $0x20] sm:$0xff] %v912_v12  ;;  %v1279_v18 = vadd.f32 %v1278_v17, %v1277_v14  ;;  %v915_v21 = vadd.f32 %v1261_v42, %v914_v20 }
 0x127   : > { %1029 = vst [vmem:[%s1746_s21 + $0x38] sm:$0xff] %v923_v16 }
 0x128   : > { %1027 = vst [vmem:[%s1746_s21 + $0x28] sm:$0xff] %v915_v21 }
 0x12a   : > { %v1280_v22 = vpop.f32.mrb[24].mxu0  ;;  %v1390_v23 = vpop.f32.mrb[24].mxu1 }
 0x12b   : > { %v936_v24 = vadd.f32 %v1390_v23, %v1276_v11  ;;  %v1281_v26 = vpop.f32.mrb[25].mxu0  ;;  %v927_v27 = vpop.f32.mrb[25].mxu1 }
 0x12c   : > { %v1282_v28 = vadd.f32 %v1281_v26, %v1280_v22  ;;  %v928_v29 = vadd.f32 %v1270_v61, %v927_v27  ;;  %v1283_v30 = vpop.f32.mrb[26].mxu0  ;;  %v1391_v32 = vpop.f32.mrb[26].mxu1 }
 0x12d   : > { %1032 = vst [vmem:[%s1746_s21 + $0x50] sm:$0xff] %v936_v24  ;;  %v939_v33 = vadd.f32 %v1391_v32, %v1279_v18  ;;  %v1284_v34 = vpop.f32.mrb[27].mxu0  ;;  %v930_v35 = vpop.f32.mrb[27].mxu1 }
 0x12e   : > { %1030 = vst [vmem:[%s1746_s21 + $0x40] sm:$0xff] %v928_v29  ;;  %v1285_v36 = vadd.f32 %v1284_v34, %v1283_v30  ;;  %v931_v38 = vadd.f32 %v1273_v4, %v930_v35 }
 0x12f   : > { %1033 = vst [vmem:[%s1746_s21 + $0x58] sm:$0xff] %v939_v33 }
 0x130   : > { %1031 = vst [vmem:[%s1746_s21 + $0x48] sm:$0xff] %v931_v38 }
 0x132   : > { %v1286_v39 = vpop.f32.mrb[28].mxu0  ;;  %v1394_v40 = vpop.f32.mrb[28].mxu1 }
 0x133   : > { %v1287_v41 = vpop.f32.mrb[29].mxu0  ;;  %v943_v42 = vpop.f32.mrb[29].mxu1 }
 0x134   : > { %v1288_v44 = vadd.f32 %v1287_v41, %v1286_v39  ;;  %v944_v45 = vadd.f32 %v1282_v28, %v943_v42  ;;  %v1289_v46 = vpop.f32.mrb[30].mxu0  ;;  %v1395_v47 = vpop.f32.mrb[30].mxu1 }
 0x135   : > { %v1290_v48 = vpop.f32.mrb[31].mxu0  ;;  %v946_v50 = vpop.f32.mrb[31].mxu1 }
 0x136   : > { %v952_v51 = vadd.f32 %v1394_v40, %v1288_v44  ;;  %1034 = vst [vmem:[%s1746_s21 + $0x60] sm:$0xff] %v944_v45  ;;  %v1291_v52 = vadd.f32 %v1290_v48, %v1289_v46  ;;  %v947_v53 = vadd.f32 %v1285_v36, %v946_v50 }
 0x138   : > { %1036 = vst [vmem:[%s1746_s21 + $0x70] sm:$0xff] %v952_v51  ;;  %v955_v54 = vadd.f32 %v1395_v47, %v1291_v52  ;;  %1035 = vst [vmem:[%s1746_s21 + $0x68] sm:$0xff] %v947_v53 }
 0x13a   : > { %1037 = vst [vmem:[%s1746_s21 + $0x78] sm:$0xff] %v955_v54  ;;  %v1292_v56 = vpop.f32.mrb[32].mxu0  ;;  %v1398_v57 = vpop.f32.mrb[32].mxu1 }
 0x13b   : > { %v1293_v58 = vpop.f32.mrb[33].mxu0  ;;  %v959_v59 = vpop.f32.mrb[33].mxu1 }
 0x13c   : > { %v1294_v60 = vadd.f32 %v1293_v58, %v1292_v56  ;;  %v1295_v61 = vpop.f32.mrb[34].mxu0  ;;  %v1399_v62 = vpop.f32.mrb[34].mxu1 }
 0x13d   : > { %v1296_v63 = vpop.f32.mrb[35].mxu0  ;;  %v962_v0 = vpop.f32.mrb[35].mxu1 }
 0x13e   : > { %v960_v1 = vadd.f32 %v1294_v60, %v959_v59  ;;  %v1297_v2 = vadd.f32 %v1296_v63, %v1295_v61 }
 0x140   : > { %1038 = vst [vmem:[%s1746_s21 + $0x80] sm:$0xff] %v960_v1  ;;  %v963_v3 = vadd.f32 %v1297_v2, %v962_v0 }
 0x142   : > { %1039 = vst [vmem:[%s1746_s21 + $0x88] sm:$0xff] %v963_v3  ;;  %v1298_v4 = vpop.f32.mrb[36].mxu0  ;;  %v1402_v5 = vpop.f32.mrb[36].mxu1 }
 0x143   : > { %v1299_v6 = vpop.f32.mrb[37].mxu0  ;;  %v975_v7 = vpop.f32.mrb[37].mxu1 }
 0x144   : > { %v1300_v8 = vadd.f32 %v1299_v6, %v1298_v4  ;;  %v1301_v9 = vpop.f32.mrb[38].mxu0  ;;  %v1403_v10 = vpop.f32.mrb[38].mxu1 }
 0x145   : > { %v1302_v11 = vpop.f32.mrb[39].mxu0  ;;  %v978_v12 = vpop.f32.mrb[39].mxu1 }
 0x146   : > { %v968_v14 = vadd.f32 %v1398_v57, %v1300_v8  ;;  %v1303_v15 = vadd.f32 %v1302_v11, %v1301_v9 }
 0x148   : > { %1040 = vst [vmem:[%s1746_s21 + $0x90] sm:$0xff] %v968_v14  ;;  %v971_v16 = vadd.f32 %v1399_v62, %v1303_v15 }
 0x14a   : > { %1041 = vst [vmem:[%s1746_s21 + $0x98] sm:$0xff] %v971_v16  ;;  %v1304_v17 = vpop.f32.mrb[40].mxu0  ;;  %v1406_v20 = vpop.f32.mrb[40].mxu1 }
 0x14b   : > { %v1000_v18 = vadd.f32 %v1406_v20, %v1730_v25  ;;  %v1305_v21 = vpop.f32.mrb[41].mxu0  ;;  %v991_v22 = vpop.f32.mrb[41].mxu1 }
 0x14c   : > { %v1306_v23 = vadd.f32 %v1305_v21, %v1304_v17  ;;  %v992_v24 = vadd.f32 %v1726_v13, %v991_v22  ;;  %v1307_v26 = vpop.f32.mrb[42].mxu0  ;;  %v1407_v27 = vpop.f32.mrb[42].mxu1 }
 0x14d   : > { %1048 = vst [vmem:[%s1746_s21 + $0xd0] sm:$0xff] %v1000_v18  ;;  %v1003_v28 = vadd.f32 %v1407_v27, %v1732_v31  ;;  %v1308_v29 = vpop.f32.mrb[43].mxu0  ;;  %v994_v30 = vpop.f32.mrb[43].mxu1 }
 0x14e   : > { %v976_v32 = vadd.f32 %v1306_v23, %v975_v7  ;;  %1046 = vst [vmem:[%s1746_s21 + $0xc0] sm:$0xff] %v992_v24  ;;  %v1309_v33 = vadd.f32 %v1308_v29, %v1307_v26  ;;  %v995_v25 = vadd.f32 %v1728_v19, %v994_v30 }
 0x14f   : > { %1049 = vst [vmem:[%s1746_s21 + $0xd8] sm:$0xff] %v1003_v28 }
 0x150   : > { %1042 = vst [vmem:[%s1746_s21 + $0xa0] sm:$0xff] %v976_v32  ;;  %v979_v34 = vadd.f32 %v1309_v33, %v978_v12  ;;  %1047 = vst [vmem:[%s1746_s21 + $0xc8] sm:$0xff] %v995_v25 }
 0x152   : > { %1043 = vst [vmem:[%s1746_s21 + $0xa8] sm:$0xff] %v979_v34  ;;  %v1310_v13 = vpop.f32.mrb[44].mxu0  ;;  %v1410_v35 = vpop.f32.mrb[44].mxu1 }
 0x153   : > { %v1016_v36 = vadd.f32 %v1410_v35, %v1738_v49  ;;  %v1311_v31 = vpop.f32.mrb[45].mxu0  ;;  %v1007_v38 = vpop.f32.mrb[45].mxu1 }
 0x154   : > { %v1312_v39 = vadd.f32 %v1311_v31, %v1310_v13  ;;  %v1008_v40 = vadd.f32 %v1734_v37, %v1007_v38  ;;  %v1313_v19 = vpop.f32.mrb[46].mxu0  ;;  %v1411_v41 = vpop.f32.mrb[46].mxu1 }
 0x155   : > { %1052 = vst [vmem:[%s1746_s21 + $0xf0] sm:$0xff] %v1016_v36  ;;  %v1019_v42 = vadd.f32 %v1411_v41, %v1740_v55  ;;  %v1314_v44 = vpop.f32.mrb[47].mxu0  ;;  %v1010_v45 = vpop.f32.mrb[47].mxu1 }
 0x156   : > { %v984_v46 = vadd.f32 %v1402_v5, %v1312_v39  ;;  %1050 = vst [vmem:[%s1746_s21 + $0xe0] sm:$0xff] %v1008_v40  ;;  %v1315_v47 = vadd.f32 %v1314_v44, %v1313_v19  ;;  %v1011_v49 = vadd.f32 %v1736_v43, %v1010_v45 }
 0x157   : > { %1053 = vst [vmem:[%s1746_s21 + $0xf8] sm:$0xff] %v1019_v42 }
 0x158   : > { %1044 = vst [vmem:[%s1746_s21 + $0xb0] sm:$0xff] %v984_v46  ;;  %v987_v48 = vadd.f32 %v1403_v10, %v1315_v47  ;;  %1051 = vst [vmem:[%s1746_s21 + $0xe8] sm:$0xff] %v1011_v49 }
 0x15a   : > { %1045 = vst [vmem:[%s1746_s21 + $0xb8] sm:$0xff] %v987_v48 }
 0x15b PF: > { %s12_s11 = sadd.s32 1, %s1563_s11   ;;  %s1800_s9 = smov %s1559_s10 }
 0x15c   : > { %p9_p5 = scmp.ge.s32.totalorder %s12_s11, 4   ;;  %s1801_s10 = smov %s1803_s12 }
 0x15e   :  { %11 = sbr.rel (!%p9_p5) target bundleno = 2 (0x2), region = 61 }

// kernel: reverse.18
= control target key start
LH: loop header
LB: loop body
LE: loop exit
PB: predicated region body
PF: predicated region fallthrough
CT: control target
= control target key end

     0   :  { %s440_s0 = inlined_call_operand.vmem [shape: bf16[3,3,128,32], index: 0, kind: input, shape index: {}]   ;;  %s441_s1 = inlined_call_operand.vmem [shape: bf16[3,3,128,32], index: 1, kind: output, shape index: {}]  }
   0x1   :  { %v252_v0 = vld [vmem:[%s440_s0 + $0x80] sm:$0xff]   ;;  %v253_v1 = vld [vmem:[%s440_s0 + $0x50] sm:$0xff]   ;;  %v286_v9 = vld [vmem:[%s440_s0 + $0x88] sm:$0xff]  }
   0x2   :  { %v255_v2 = vld [vmem:[%s440_s0 + $0x20] sm:$0xff]   ;;  %7 = vst [vmem:[%s441_s1] sm:$0xff] %v252_v0   ;;  %254 = vst [vmem:[%s441_s1 + $0x30] sm:$0xff] %v253_v1   ;;  %v257_v3 = vld [vmem:[%s440_s0 + $0x70] sm:$0xff]  }
   0x3   :  { %256 = vst [vmem:[%s441_s1 + $0x60] sm:$0xff] %v255_v2   ;;  %v259_v4 = vld [vmem:[%s440_s0 + $0x40] sm:$0xff]   ;;  %v261_v5 = vld [vmem:[%s440_s0 + $0x10] sm:$0xff]   ;;  %258 = vst [vmem:[%s441_s1 + $0x10] sm:$0xff] %v257_v3  }
   0x4   :  { %260 = vst [vmem:[%s441_s1 + $0x40] sm:$0xff] %v259_v4   ;;  %262 = vst [vmem:[%s441_s1 + $0x70] sm:$0xff] %v261_v5   ;;  %v263_v6 = vld [vmem:[%s440_s0 + $0x60] sm:$0xff]   ;;  %v265_v7 = vld [vmem:[%s440_s0 + $0x30] sm:$0xff]  }
   0x5   :  { %v57_v8 = vld [vmem:[%s440_s0] sm:$0xff]   ;;  %264 = vst [vmem:[%s441_s1 + $0x20] sm:$0xff] %v263_v6   ;;  %266 = vst [vmem:[%s441_s1 + $0x50] sm:$0xff] %v265_v7   ;;  %v288_v10 = vld [vmem:[%s440_s0 + $0x58] sm:$0xff]  }
   0x6   :  { %267 = vst [vmem:[%s441_s1 + $0x80] sm:$0xff] %v57_v8   ;;  %v290_v11 = vld [vmem:[%s440_s0 + $0x28] sm:$0xff]   ;;  %287 = vst [vmem:[%s441_s1 + $0x8] sm:$0xff] %v286_v9   ;;  %v292_v12 = vld [vmem:[%s440_s0 + $0x78] sm:$0xff]  }
   0x7   :  { %289 = vst [vmem:[%s441_s1 + $0x38] sm:$0xff] %v288_v10   ;;  %291 = vst [vmem:[%s441_s1 + $0x68] sm:$0xff] %v290_v11   ;;  %v294_v13 = vld [vmem:[%s440_s0 + $0x48] sm:$0xff]   ;;  %v296_v14 = vld [vmem:[%s440_s0 + $0x18] sm:$0xff]  }
   0x8   :  { %293 = vst [vmem:[%s441_s1 + $0x18] sm:$0xff] %v292_v12   ;;  %295 = vst [vmem:[%s441_s1 + $0x48] sm:$0xff] %v294_v13   ;;  %v298_v15 = vld [vmem:[%s440_s0 + $0x68] sm:$0xff]   ;;  %v300_v16 = vld [vmem:[%s440_s0 + $0x38] sm:$0xff]  }
   0x9   :  { %297 = vst [vmem:[%s441_s1 + $0x78] sm:$0xff] %v296_v14   ;;  %v302_v17 = vld [vmem:[%s440_s0 + $0x8] sm:$0xff]   ;;  %299 = vst [vmem:[%s441_s1 + $0x28] sm:$0xff] %v298_v15  }
   0xa   :  { %301 = vst [vmem:[%s441_s1 + $0x58] sm:$0xff] %v300_v16   ;;  %303 = vst [vmem:[%s441_s1 + $0x88] sm:$0xff] %v302_v17  }

// kernel: reverse.16
= control target key start
LH: loop header
LB: loop body
LE: loop exit
PB: predicated region body
PF: predicated region fallthrough
CT: control target
= control target key end

     0   :  { %s13622_s6 = smov 0   ;;  %s13624_s7 = smov 0   ;;  %s14811_s0 = inlined_call_operand.vmem [shape: bf16[3,3,1024,512], index: 0, kind: input, shape index: {}]   ;;  %s14812_s1 = inlined_call_operand.vmem [shape: bf16[3,3,1024,512], index: 1, kind: output, shape index: {}]  }
   0x1   :  { %s13626_s8 = smov 0  }
   0x2 LB: > { %s25_s9 = sadd.s32 1, %s13606_s7  ;;  %p10098_p0 = scmp.ge.s32.totalorder %s13610_s8, 1  ;;  %s13610_s8 = sphi %s13626_s8, %s7_s8   ;;  %s13606_s7 = sphi %s13624_s7, %s14814_s7   ;;  %s13602_s6 = sphi %s13622_s6, %s14813_s6  }
   0x3   : > { %p27_p1 = scmp.ge.s32.totalorder %s25_s9, 4  ;;  %p77_p2 = scmp.lt.s32.totalorder %s13610_s8, 5 }
   0x5   : > { %s14816_s9 = smov (%p27_p1, %s25_s9), 0  ;;  %p78_p3 = pnand %p10098_p0, %p77_p2 }
   0x6   : > { %s10099_s10 = sshll.u32 (!%p78_p3), %s13602_s6, 5 }
   0x7   : > { %81 = sbr.rel (%p78_p3) target bundleno = 306 (0x132), region = 20  ;;  %p139_p4 = scmp.lt.s32.totalorder (!%p78_p3), %s10099_s10, 127 }
   0xe   : > { %s14818_s10 = smov (!%p139_p4, %s10099_s10), 127 }
   0xf   : > { %s12986_s11 = sshll.u32 %s14818_s10, 4 }
  0x10   : > { %s13643_s14 = scalar_lea.vmem %s14811_s0, %s12986_s11  ;;  %s13648_s17 = scalar_lea.vmem %s14812_s1, %s12986_s11 }
  0x11   : > { %v13012_v0 = vld [vmem:[%s13643_s14 + $0x4000] sm:$0xff]   ;;  %v13021_v9 = vld [vmem:[%s13643_s14 + $0x4010] sm:$0xff]  }
  0x12   : > { %v13013_v1 = vld [vmem:[%s13643_s14 + $0x2800] sm:$0xff]   ;;  %10395 = vst [vmem:[%s13648_s17] sm:$0xff] %v13012_v0  ;;  %v13022_v10 = vld [vmem:[%s13643_s14 + $0x2810] sm:$0xff]   ;;  %10431 = vst [vmem:[%s13648_s17 + $0x10] sm:$0xff] %v13021_v9 }
  0x13   : > { %v13014_v2 = vld [vmem:[%s13643_s14 + $0x1000] sm:$0xff]   ;;  %10399 = vst [vmem:[%s13648_s17 + $0x1800] sm:$0xff] %v13013_v1  ;;  %v13023_v11 = vld [vmem:[%s13643_s14 + $0x1010] sm:$0xff]   ;;  %10435 = vst [vmem:[%s13648_s17 + $0x1810] sm:$0xff] %v13022_v10 }
  0x14   : > { %v13015_v3 = vld [vmem:[%s13643_s14 + $0x3800] sm:$0xff]   ;;  %10403 = vst [vmem:[%s13648_s17 + $0x3000] sm:$0xff] %v13014_v2  ;;  %v13024_v12 = vld [vmem:[%s13643_s14 + $0x3810] sm:$0xff]   ;;  %10439 = vst [vmem:[%s13648_s17 + $0x3010] sm:$0xff] %v13023_v11 }
  0x15   : > { %v13016_v4 = vld [vmem:[%s13643_s14 + $0x2000] sm:$0xff]   ;;  %10407 = vst [vmem:[%s13648_s17 + $0x800] sm:$0xff] %v13015_v3  ;;  %v13025_v13 = vld [vmem:[%s13643_s14 + $0x2010] sm:$0xff]   ;;  %10443 = vst [vmem:[%s13648_s17 + $0x810] sm:$0xff] %v13024_v12 }
  0x16   : > { %v13017_v5 = vld [vmem:[%s13643_s14 + $0x800] sm:$0xff]   ;;  %10411 = vst [vmem:[%s13648_s17 + $0x2000] sm:$0xff] %v13016_v4  ;;  %v13026_v14 = vld [vmem:[%s13643_s14 + $0x810] sm:$0xff]   ;;  %10447 = vst [vmem:[%s13648_s17 + $0x2010] sm:$0xff] %v13025_v13 }
  0x17   : > { %v13018_v6 = vld [vmem:[%s13643_s14 + $0x3000] sm:$0xff]   ;;  %10415 = vst [vmem:[%s13648_s17 + $0x3800] sm:$0xff] %v13017_v5  ;;  %v13027_v15 = vld [vmem:[%s13643_s14 + $0x3010] sm:$0xff]   ;;  %10451 = vst [vmem:[%s13648_s17 + $0x3810] sm:$0xff] %v13026_v14 }
  0x18   : > { %v13019_v7 = vld [vmem:[%s13643_s14 + $0x1800] sm:$0xff]   ;;  %10419 = vst [vmem:[%s13648_s17 + $0x1000] sm:$0xff] %v13018_v6  ;;  %v13028_v16 = vld [vmem:[%s13643_s14 + $0x1810] sm:$0xff]   ;;  %10455 = vst [vmem:[%s13648_s17 + $0x1010] sm:$0xff] %v13027_v15 }
  0x19   : > { %v13020_v8 = vld [vmem:[%s13643_s14] sm:$0xff]   ;;  %10423 = vst [vmem:[%s13648_s17 + $0x2800] sm:$0xff] %v13019_v7  ;;  %v13029_v17 = vld [vmem:[%s13643_s14 + $0x10] sm:$0xff]   ;;  %10459 = vst [vmem:[%s13648_s17 + $0x2810] sm:$0xff] %v13028_v16 }
  0x1a   : > { %10427 = vst [vmem:[%s13648_s17 + $0x4000] sm:$0xff] %v13020_v8  ;;  %v13030_v18 = vld [vmem:[%s13643_s14 + $0x4020] sm:$0xff]   ;;  %10463 = vst [vmem:[%s13648_s17 + $0x4010] sm:$0xff] %v13029_v17  ;;  %v13039_v27 = vld [vmem:[%s13643_s14 + $0x4030] sm:$0xff]  }
  0x1b   : > { %v13031_v19 = vld [vmem:[%s13643_s14 + $0x2820] sm:$0xff]   ;;  %10467 = vst [vmem:[%s13648_s17 + $0x20] sm:$0xff] %v13030_v18  ;;  %v13040_v28 = vld [vmem:[%s13643_s14 + $0x2830] sm:$0xff]   ;;  %10503 = vst [vmem:[%s13648_s17 + $0x30] sm:$0xff] %v13039_v27 }
  0x1c   : > { %v13032_v20 = vld [vmem:[%s13643_s14 + $0x1020] sm:$0xff]   ;;  %10471 = vst [vmem:[%s13648_s17 + $0x1820] sm:$0xff] %v13031_v19  ;;  %v13041_v29 = vld [vmem:[%s13643_s14 + $0x1030] sm:$0xff]   ;;  %10507 = vst [vmem:[%s13648_s17 + $0x1830] sm:$0xff] %v13040_v28 }
  0x1d   : > { %v13033_v21 = vld [vmem:[%s13643_s14 + $0x3820] sm:$0xff]   ;;  %10475 = vst [vmem:[%s13648_s17 + $0x3020] sm:$0xff] %v13032_v20  ;;  %v13042_v30 = vld [vmem:[%s13643_s14 + $0x3830] sm:$0xff]   ;;  %10511 = vst [vmem:[%s13648_s17 + $0x3030] sm:$0xff] %v13041_v29 }
  0x1e   : > { %v13034_v22 = vld [vmem:[%s13643_s14 + $0x2020] sm:$0xff]   ;;  %10479 = vst [vmem:[%s13648_s17 + $0x820] sm:$0xff] %v13033_v21  ;;  %v13043_v31 = vld [vmem:[%s13643_s14 + $0x2030] sm:$0xff]   ;;  %10515 = vst [vmem:[%s13648_s17 + $0x830] sm:$0xff] %v13042_v30 }
  0x1f   : > { %v13035_v23 = vld [vmem:[%s13643_s14 + $0x820] sm:$0xff]   ;;  %10483 = vst [vmem:[%s13648_s17 + $0x2020] sm:$0xff] %v13034_v22  ;;  %v13044_v32 = vld [vmem:[%s13643_s14 + $0x830] sm:$0xff]   ;;  %10519 = vst [vmem:[%s13648_s17 + $0x2030] sm:$0xff] %v13043_v31 }
  0x20   : > { %v13036_v24 = vld [vmem:[%s13643_s14 + $0x3020] sm:$0xff]   ;;  %10487 = vst [vmem:[%s13648_s17 + $0x3820] sm:$0xff] %v13035_v23  ;;  %v13045_v33 = vld [vmem:[%s13643_s14 + $0x3030] sm:$0xff]   ;;  %10523 = vst [vmem:[%s13648_s17 + $0x3830] sm:$0xff] %v13044_v32 }
  0x21   : > { %v13037_v25 = vld [vmem:[%s13643_s14 + $0x1820] sm:$0xff]   ;;  %10491 = vst [vmem:[%s13648_s17 + $0x1020] sm:$0xff] %v13036_v24  ;;  %v13046_v34 = vld [vmem:[%s13643_s14 + $0x1830] sm:$0xff]   ;;  %10527 = vst [vmem:[%s13648_s17 + $0x1030] sm:$0xff] %v13045_v33 }
  0x22   : > { %v13038_v26 = vld [vmem:[%s13643_s14 + $0x20] sm:$0xff]   ;;  %10495 = vst [vmem:[%s13648_s17 + $0x2820] sm:$0xff] %v13037_v25  ;;  %v13047_v35 = vld [vmem:[%s13643_s14 + $0x30] sm:$0xff]   ;;  %10531 = vst [vmem:[%s13648_s17 + $0x2830] sm:$0xff] %v13046_v34 }
  0x23   : > { %10499 = vst [vmem:[%s13648_s17 + $0x4020] sm:$0xff] %v13038_v26  ;;  %v13048_v36 = vld [vmem:[%s13643_s14 + $0x4040] sm:$0xff]   ;;  %10535 = vst [vmem:[%s13648_s17 + $0x4030] sm:$0xff] %v13047_v35  ;;  %v13057_v45 = vld [vmem:[%s13643_s14 + $0x4050] sm:$0xff]  }
  0x24   : > { %v13049_v37 = vld [vmem:[%s13643_s14 + $0x2840] sm:$0xff]   ;;  %10539 = vst [vmem:[%s13648_s17 + $0x40] sm:$0xff] %v13048_v36  ;;  %v13058_v46 = vld [vmem:[%s13643_s14 + $0x2850] sm:$0xff]   ;;  %10575 = vst [vmem:[%s13648_s17 + $0x50] sm:$0xff] %v13057_v45 }
  0x25   : > { %v13050_v38 = vld [vmem:[%s13643_s14 + $0x1040] sm:$0xff]   ;;  %10543 = vst [vmem:[%s13648_s17 + $0x1840] sm:$0xff] %v13049_v37  ;;  %v13059_v47 = vld [vmem:[%s13643_s14 + $0x1050] sm:$0xff]   ;;  %10579 = vst [vmem:[%s13648_s17 + $0x1850] sm:$0xff] %v13058_v46 }
  0x26   : > { %v13051_v39 = vld [vmem:[%s13643_s14 + $0x3840] sm:$0xff]   ;;  %10547 = vst [vmem:[%s13648_s17 + $0x3040] sm:$0xff] %v13050_v38  ;;  %v13060_v48 = vld [vmem:[%s13643_s14 + $0x3850] sm:$0xff]   ;;  %10583 = vst [vmem:[%s13648_s17 + $0x3050] sm:$0xff] %v13059_v47 }
  0x27   : > { %v13052_v40 = vld [vmem:[%s13643_s14 + $0x2040] sm:$0xff]   ;;  %10551 = vst [vmem:[%s13648_s17 + $0x840] sm:$0xff] %v13051_v39  ;;  %v13061_v49 = vld [vmem:[%s13643_s14 + $0x2050] sm:$0xff]   ;;  %10587 = vst [vmem:[%s13648_s17 + $0x850] sm:$0xff] %v13060_v48 }
  0x28   : > { %v13053_v41 = vld [vmem:[%s13643_s14 + $0x840] sm:$0xff]   ;;  %10555 = vst [vmem:[%s13648_s17 + $0x2040] sm:$0xff] %v13052_v40  ;;  %v13062_v50 = vld [vmem:[%s13643_s14 + $0x850] sm:$0xff]   ;;  %10591 = vst [vmem:[%s13648_s17 + $0x2050] sm:$0xff] %v13061_v49 }
  0x29   : > { %v13054_v42 = vld [vmem:[%s13643_s14 + $0x3040] sm:$0xff]   ;;  %10559 = vst [vmem:[%s13648_s17 + $0x3840] sm:$0xff] %v13053_v41  ;;  %v13063_v51 = vld [vmem:[%s13643_s14 + $0x3050] sm:$0xff]   ;;  %10595 = vst [vmem:[%s13648_s17 + $0x3850] sm:$0xff] %v13062_v50 }
  0x2a   : > { %v13055_v43 = vld [vmem:[%s13643_s14 + $0x1840] sm:$0xff]   ;;  %10563 = vst [vmem:[%s13648_s17 + $0x1040] sm:$0xff] %v13054_v42  ;;  %v13064_v52 = vld [vmem:[%s13643_s14 + $0x1850] sm:$0xff]   ;;  %10599 = vst [vmem:[%s13648_s17 + $0x1050] sm:$0xff] %v13063_v51 }
  0x2b   : > { %v13056_v44 = vld [vmem:[%s13643_s14 + $0x40] sm:$0xff]   ;;  %10567 = vst [vmem:[%s13648_s17 + $0x2840] sm:$0xff] %v13055_v43  ;;  %v13065_v53 = vld [vmem:[%s13643_s14 + $0x50] sm:$0xff]   ;;  %10603 = vst [vmem:[%s13648_s17 + $0x2850] sm:$0xff] %v13064_v52 }
  0x2c   : > { %10571 = vst [vmem:[%s13648_s17 + $0x4040] sm:$0xff] %v13056_v44  ;;  %v13066_v54 = vld [vmem:[%s13643_s14 + $0x4060] sm:$0xff]   ;;  %10607 = vst [vmem:[%s13648_s17 + $0x4050] sm:$0xff] %v13065_v53  ;;  %v13075_v63 = vld [vmem:[%s13643_s14 + $0x4070] sm:$0xff]  }
  0x2d   : > { %v13067_v55 = vld [vmem:[%s13643_s14 + $0x2860] sm:$0xff]   ;;  %10611 = vst [vmem:[%s13648_s17 + $0x60] sm:$0xff] %v13066_v54  ;;  %v13076_v0 = vld [vmem:[%s13643_s14 + $0x2870] sm:$0xff]   ;;  %10647 = vst [vmem:[%s13648_s17 + $0x70] sm:$0xff] %v13075_v63 }
  0x2e   : > { %v13068_v56 = vld [vmem:[%s13643_s14 + $0x1060] sm:$0xff]   ;;  %10615 = vst [vmem:[%s13648_s17 + $0x1860] sm:$0xff] %v13067_v55  ;;  %v13077_v1 = vld [vmem:[%s13643_s14 + $0x1070] sm:$0xff]   ;;  %10651 = vst [vmem:[%s13648_s17 + $0x1870] sm:$0xff] %v13076_v0 }
  0x2f   : > { %v13069_v57 = vld [vmem:[%s13643_s14 + $0x3860] sm:$0xff]   ;;  %10619 = vst [vmem:[%s13648_s17 + $0x3060] sm:$0xff] %v13068_v56  ;;  %v13078_v2 = vld [vmem:[%s13643_s14 + $0x3870] sm:$0xff]   ;;  %10655 = vst [vmem:[%s13648_s17 + $0x3070] sm:$0xff] %v13077_v1 }
  0x30   : > { %v13070_v58 = vld [vmem:[%s13643_s14 + $0x2060] sm:$0xff]   ;;  %10623 = vst [vmem:[%s13648_s17 + $0x860] sm:$0xff] %v13069_v57  ;;  %v13079_v3 = vld [vmem:[%s13643_s14 + $0x2070] sm:$0xff]   ;;  %10659 = vst [vmem:[%s13648_s17 + $0x870] sm:$0xff] %v13078_v2 }
  0x31   : > { %v13071_v59 = vld [vmem:[%s13643_s14 + $0x860] sm:$0xff]   ;;  %10627 = vst [vmem:[%s13648_s17 + $0x2060] sm:$0xff] %v13070_v58  ;;  %v13080_v4 = vld [vmem:[%s13643_s14 + $0x870] sm:$0xff]   ;;  %10663 = vst [vmem:[%s13648_s17 + $0x2070] sm:$0xff] %v13079_v3 }
  0x32   : > { %v13072_v60 = vld [vmem:[%s13643_s14 + $0x3060] sm:$0xff]   ;;  %10631 = vst [vmem:[%s13648_s17 + $0x3860] sm:$0xff] %v13071_v59  ;;  %v13081_v5 = vld [vmem:[%s13643_s14 + $0x3070] sm:$0xff]   ;;  %10667 = vst [vmem:[%s13648_s17 + $0x3870] sm:$0xff] %v13080_v4 }
  0x33   : > { %v13073_v61 = vld [vmem:[%s13643_s14 + $0x1860] sm:$0xff]   ;;  %10635 = vst [vmem:[%s13648_s17 + $0x1060] sm:$0xff] %v13072_v60  ;;  %v13082_v6 = vld [vmem:[%s13643_s14 + $0x1870] sm:$0xff]   ;;  %10671 = vst [vmem:[%s13648_s17 + $0x1070] sm:$0xff] %v13081_v5 }
  0x34   : > { %v13074_v62 = vld [vmem:[%s13643_s14 + $0x60] sm:$0xff]   ;;  %10639 = vst [vmem:[%s13648_s17 + $0x2860] sm:$0xff] %v13073_v61  ;;  %v13083_v7 = vld [vmem:[%s13643_s14 + $0x70] sm:$0xff]   ;;  %10675 = vst [vmem:[%s13648_s17 + $0x2870] sm:$0xff] %v13082_v6 }
  0x35   : > { %10643 = vst [vmem:[%s13648_s17 + $0x4060] sm:$0xff] %v13074_v62  ;;  %v13084_v8 = vld [vmem:[%s13643_s14 + $0x4080] sm:$0xff]   ;;  %10679 = vst [vmem:[%s13648_s17 + $0x4070] sm:$0xff] %v13083_v7  ;;  %v13093_v17 = vld [vmem:[%s13643_s14 + $0x4090] sm:$0xff]  }
  0x36   : > { %v13085_v9 = vld [vmem:[%s13643_s14 + $0x2880] sm:$0xff]   ;;  %10683 = vst [vmem:[%s13648_s17 + $0x80] sm:$0xff] %v13084_v8  ;;  %v13094_v18 = vld [vmem:[%s13643_s14 + $0x2890] sm:$0xff]   ;;  %10719 = vst [vmem:[%s13648_s17 + $0x90] sm:$0xff] %v13093_v17 }
  0x37   : > { %v13086_v10 = vld [vmem:[%s13643_s14 + $0x1080] sm:$0xff]   ;;  %10687 = vst [vmem:[%s13648_s17 + $0x1880] sm:$0xff] %v13085_v9  ;;  %v13095_v19 = vld [vmem:[%s13643_s14 + $0x1090] sm:$0xff]   ;;  %10723 = vst [vmem:[%s13648_s17 + $0x1890] sm:$0xff] %v13094_v18 }
  0x38   : > { %v13087_v11 = vld [vmem:[%s13643_s14 + $0x3880] sm:$0xff]   ;;  %10691 = vst [vmem:[%s13648_s17 + $0x3080] sm:$0xff] %v13086_v10  ;;  %v13096_v20 = vld [vmem:[%s13643_s14 + $0x3890] sm:$0xff]   ;;  %10727 = vst [vmem:[%s13648_s17 + $0x3090] sm:$0xff] %v13095_v19 }
  0x39   : > { %v13088_v12 = vld [vmem:[%s13643_s14 + $0x2080] sm:$0xff]   ;;  %10695 = vst [vmem:[%s13648_s17 + $0x880] sm:$0xff] %v13087_v11  ;;  %v13097_v21 = vld [vmem:[%s13643_s14 + $0x2090] sm:$0xff]   ;;  %10731 = vst [vmem:[%s13648_s17 + $0x890] sm:$0xff] %v13096_v20 }
  0x3a   : > { %v13089_v13 = vld [vmem:[%s13643_s14 + $0x880] sm:$0xff]   ;;  %10699 = vst [vmem:[%s13648_s17 + $0x2080] sm:$0xff] %v13088_v12  ;;  %v13098_v22 = vld [vmem:[%s13643_s14 + $0x890] sm:$0xff]   ;;  %10735 = vst [vmem:[%s13648_s17 + $0x2090] sm:$0xff] %v13097_v21 }
  0x3b   : > { %v13090_v14 = vld [vmem:[%s13643_s14 + $0x3080] sm:$0xff]   ;;  %10703 = vst [vmem:[%s13648_s17 + $0x3880] sm:$0xff] %v13089_v13  ;;  %v13099_v23 = vld [vmem:[%s13643_s14 + $0x3090] sm:$0xff]   ;;  %10739 = vst [vmem:[%s13648_s17 + $0x3890] sm:$0xff] %v13098_v22 }
  0x3c   : > { %v13091_v15 = vld [vmem:[%s13643_s14 + $0x1880] sm:$0xff]   ;;  %10707 = vst [vmem:[%s13648_s17 + $0x1080] sm:$0xff] %v13090_v14  ;;  %v13100_v24 = vld [vmem:[%s13643_s14 + $0x1890] sm:$0xff]   ;;  %10743 = vst [vmem:[%s13648_s17 + $0x1090] sm:$0xff] %v13099_v23 }
  0x3d   : > { %v13092_v16 = vld [vmem:[%s13643_s14 + $0x80] sm:$0xff]   ;;  %10711 = vst [vmem:[%s13648_s17 + $0x2880] sm:$0xff] %v13091_v15  ;;  %v13101_v25 = vld [vmem:[%s13643_s14 + $0x90] sm:$0xff]   ;;  %10747 = vst [vmem:[%s13648_s17 + $0x2890] sm:$0xff] %v13100_v24 }
  0x3e   : > { %10715 = vst [vmem:[%s13648_s17 + $0x4080] sm:$0xff] %v13092_v16  ;;  %v13102_v26 = vld [vmem:[%s13643_s14 + $0x40a0] sm:$0xff]   ;;  %10751 = vst [vmem:[%s13648_s17 + $0x4090] sm:$0xff] %v13101_v25  ;;  %v13111_v35 = vld [vmem:[%s13643_s14 + $0x40b0] sm:$0xff]  }
  0x3f   : > { %v13103_v27 = vld [vmem:[%s13643_s14 + $0x28a0] sm:$0xff]   ;;  %10755 = vst [vmem:[%s13648_s17 + $0xa0] sm:$0xff] %v13102_v26  ;;  %v13112_v36 = vld [vmem:[%s13643_s14 + $0x28b0] sm:$0xff]   ;;  %10791 = vst [vmem:[%s13648_s17 + $0xb0] sm:$0xff] %v13111_v35 }
  0x40   : > { %v13104_v28 = vld [vmem:[%s13643_s14 + $0x10a0] sm:$0xff]   ;;  %10759 = vst [vmem:[%s13648_s17 + $0x18a0] sm:$0xff] %v13103_v27  ;;  %v13113_v37 = vld [vmem:[%s13643_s14 + $0x10b0] sm:$0xff]   ;;  %10795 = vst [vmem:[%s13648_s17 + $0x18b0] sm:$0xff] %v13112_v36 }
  0x41   : > { %v13105_v29 = vld [vmem:[%s13643_s14 + $0x38a0] sm:$0xff]   ;;  %10763 = vst [vmem:[%s13648_s17 + $0x30a0] sm:$0xff] %v13104_v28  ;;  %v13114_v38 = vld [vmem:[%s13643_s14 + $0x38b0] sm:$0xff]   ;;  %10799 = vst [vmem:[%s13648_s17 + $0x30b0] sm:$0xff] %v13113_v37 }
  0x42   : > { %v13106_v30 = vld [vmem:[%s13643_s14 + $0x20a0] sm:$0xff]   ;;  %10767 = vst [vmem:[%s13648_s17 + $0x8a0] sm:$0xff] %v13105_v29  ;;  %v13115_v39 = vld [vmem:[%s13643_s14 + $0x20b0] sm:$0xff]   ;;  %10803 = vst [vmem:[%s13648_s17 + $0x8b0] sm:$0xff] %v13114_v38 }
  0x43   : > { %v13107_v31 = vld [vmem:[%s13643_s14 + $0x8a0] sm:$0xff]   ;;  %10771 = vst [vmem:[%s13648_s17 + $0x20a0] sm:$0xff] %v13106_v30  ;;  %v13116_v40 = vld [vmem:[%s13643_s14 + $0x8b0] sm:$0xff]   ;;  %10807 = vst [vmem:[%s13648_s17 + $0x20b0] sm:$0xff] %v13115_v39 }
  0x44   : > { %v13108_v32 = vld [vmem:[%s13643_s14 + $0x30a0] sm:$0xff]   ;;  %10775 = vst [vmem:[%s13648_s17 + $0x38a0] sm:$0xff] %v13107_v31  ;;  %v13117_v41 = vld [vmem:[%s13643_s14 + $0x30b0] sm:$0xff]   ;;  %10811 = vst [vmem:[%s13648_s17 + $0x38b0] sm:$0xff] %v13116_v40 }
  0x45   : > { %v13109_v33 = vld [vmem:[%s13643_s14 + $0x18a0] sm:$0xff]   ;;  %10779 = vst [vmem:[%s13648_s17 + $0x10a0] sm:$0xff] %v13108_v32  ;;  %v13118_v42 = vld [vmem:[%s13643_s14 + $0x18b0] sm:$0xff]   ;;  %10815 = vst [vmem:[%s13648_s17 + $0x10b0] sm:$0xff] %v13117_v41 }
  0x46   : > { %v13110_v34 = vld [vmem:[%s13643_s14 + $0xa0] sm:$0xff]   ;;  %10783 = vst [vmem:[%s13648_s17 + $0x28a0] sm:$0xff] %v13109_v33  ;;  %v13119_v43 = vld [vmem:[%s13643_s14 + $0xb0] sm:$0xff]   ;;  %10819 = vst [vmem:[%s13648_s17 + $0x28b0] sm:$0xff] %v13118_v42 }
  0x47   : > { %10787 = vst [vmem:[%s13648_s17 + $0x40a0] sm:$0xff] %v13110_v34  ;;  %v13120_v44 = vld [vmem:[%s13643_s14 + $0x40c0] sm:$0xff]   ;;  %10823 = vst [vmem:[%s13648_s17 + $0x40b0] sm:$0xff] %v13119_v43  ;;  %v13129_v53 = vld [vmem:[%s13643_s14 + $0x40d0] sm:$0xff]  }
  0x48   : > { %v13121_v45 = vld [vmem:[%s13643_s14 + $0x28c0] sm:$0xff]   ;;  %10827 = vst [vmem:[%s13648_s17 + $0xc0] sm:$0xff] %v13120_v44  ;;  %v13130_v54 = vld [vmem:[%s13643_s14 + $0x28d0] sm:$0xff]   ;;  %10863 = vst [vmem:[%s13648_s17 + $0xd0] sm:$0xff] %v13129_v53 }
  0x49   : > { %v13122_v46 = vld [vmem:[%s13643_s14 + $0x10c0] sm:$0xff]   ;;  %10831 = vst [vmem:[%s13648_s17 + $0x18c0] sm:$0xff] %v13121_v45  ;;  %v13131_v55 = vld [vmem:[%s13643_s14 + $0x10d0] sm:$0xff]   ;;  %10867 = vst [vmem:[%s13648_s17 + $0x18d0] sm:$0xff] %v13130_v54 }
  0x4a   : > { %v13123_v47 = vld [vmem:[%s13643_s14 + $0x38c0] sm:$0xff]   ;;  %10835 = vst [vmem:[%s13648_s17 + $0x30c0] sm:$0xff] %v13122_v46  ;;  %v13132_v56 = vld [vmem:[%s13643_s14 + $0x38d0] sm:$0xff]   ;;  %10871 = vst [vmem:[%s13648_s17 + $0x30d0] sm:$0xff] %v13131_v55 }
  0x4b   : > { %v13124_v48 = vld [vmem:[%s13643_s14 + $0x20c0] sm:$0xff]   ;;  %10839 = vst [vmem:[%s13648_s17 + $0x8c0] sm:$0xff] %v13123_v47  ;;  %v13133_v57 = vld [vmem:[%s13643_s14 + $0x20d0] sm:$0xff]   ;;  %10875 = vst [vmem:[%s13648_s17 + $0x8d0] sm:$0xff] %v13132_v56 }
  0x4c   : > { %v13125_v49 = vld [vmem:[%s13643_s14 + $0x8c0] sm:$0xff]   ;;  %10843 = vst [vmem:[%s13648_s17 + $0x20c0] sm:$0xff] %v13124_v48  ;;  %v13134_v58 = vld [vmem:[%s13643_s14 + $0x8d0] sm:$0xff]   ;;  %10879 = vst [vmem:[%s13648_s17 + $0x20d0] sm:$0xff] %v13133_v57 }
  0x4d   : > { %v13126_v50 = vld [vmem:[%s13643_s14 + $0x30c0] sm:$0xff]   ;;  %10847 = vst [vmem:[%s13648_s17 + $0x38c0] sm:$0xff] %v13125_v49  ;;  %v13135_v59 = vld [vmem:[%s13643_s14 + $0x30d0] sm:$0xff]   ;;  %10883 = vst [vmem:[%s13648_s17 + $0x38d0] sm:$0xff] %v13134_v58 }
  0x4e   : > { %v13127_v51 = vld [vmem:[%s13643_s14 + $0x18c0] sm:$0xff]   ;;  %10851 = vst [vmem:[%s13648_s17 + $0x10c0] sm:$0xff] %v13126_v50  ;;  %v13136_v60 = vld [vmem:[%s13643_s14 + $0x18d0] sm:$0xff]   ;;  %10887 = vst [vmem:[%s13648_s17 + $0x10d0] sm:$0xff] %v13135_v59 }
  0x4f   : > { %v13128_v52 = vld [vmem:[%s13643_s14 + $0xc0] sm:$0xff]   ;;  %10855 = vst [vmem:[%s13648_s17 + $0x28c0] sm:$0xff] %v13127_v51  ;;  %v13137_v61 = vld [vmem:[%s13643_s14 + $0xd0] sm:$0xff]   ;;  %10891 = vst [vmem:[%s13648_s17 + $0x28d0] sm:$0xff] %v13136_v60 }
  0x50   : > { %10859 = vst [vmem:[%s13648_s17 + $0x40c0] sm:$0xff] %v13128_v52  ;;  %v13138_v62 = vld [vmem:[%s13643_s14 + $0x40e0] sm:$0xff]   ;;  %10895 = vst [vmem:[%s13648_s17 + $0x40d0] sm:$0xff] %v13137_v61  ;;  %v13147_v7 = vld [vmem:[%s13643_s14 + $0x40f0] sm:$0xff]  }
  0x51   : > { %v13139_v63 = vld [vmem:[%s13643_s14 + $0x28e0] sm:$0xff]   ;;  %10899 = vst [vmem:[%s13648_s17 + $0xe0] sm:$0xff] %v13138_v62  ;;  %v13148_v8 = vld [vmem:[%s13643_s14 + $0x28f0] sm:$0xff]   ;;  %10935 = vst [vmem:[%s13648_s17 + $0xf0] sm:$0xff] %v13147_v7 }
  0x52   : > { %v13140_v0 = vld [vmem:[%s13643_s14 + $0x10e0] sm:$0xff]   ;;  %10903 = vst [vmem:[%s13648_s17 + $0x18e0] sm:$0xff] %v13139_v63  ;;  %v13149_v9 = vld [vmem:[%s13643_s14 + $0x10f0] sm:$0xff]   ;;  %10939 = vst [vmem:[%s13648_s17 + $0x18f0] sm:$0xff] %v13148_v8 }
  0x53   : > { %v13141_v1 = vld [vmem:[%s13643_s14 + $0x38e0] sm:$0xff]   ;;  %10907 = vst [vmem:[%s13648_s17 + $0x30e0] sm:$0xff] %v13140_v0  ;;  %v13150_v10 = vld [vmem:[%s13643_s14 + $0x38f0] sm:$0xff]   ;;  %10943 = vst [vmem:[%s13648_s17 + $0x30f0] sm:$0xff] %v13149_v9 }
  0x54   : > { %v13142_v2 = vld [vmem:[%s13643_s14 + $0x20e0] sm:$0xff]   ;;  %10911 = vst [vmem:[%s13648_s17 + $0x8e0] sm:$0xff] %v13141_v1  ;;  %v13151_v11 = vld [vmem:[%s13643_s14 + $0x20f0] sm:$0xff]   ;;  %10947 = vst [vmem:[%s13648_s17 + $0x8f0] sm:$0xff] %v13150_v10 }
  0x55   : > { %v13143_v3 = vld [vmem:[%s13643_s14 + $0x8e0] sm:$0xff]   ;;  %10915 = vst [vmem:[%s13648_s17 + $0x20e0] sm:$0xff] %v13142_v2  ;;  %v13152_v12 = vld [vmem:[%s13643_s14 + $0x8f0] sm:$0xff]   ;;  %10951 = vst [vmem:[%s13648_s17 + $0x20f0] sm:$0xff] %v13151_v11 }
  0x56   : > { %v13144_v4 = vld [vmem:[%s13643_s14 + $0x30e0] sm:$0xff]   ;;  %10919 = vst [vmem:[%s13648_s17 + $0x38e0] sm:$0xff] %v13143_v3  ;;  %v13153_v13 = vld [vmem:[%s13643_s14 + $0x30f0] sm:$0xff]   ;;  %10955 = vst [vmem:[%s13648_s17 + $0x38f0] sm:$0xff] %v13152_v12 }
  0x57   : > { %v13145_v5 = vld [vmem:[%s13643_s14 + $0x18e0] sm:$0xff]   ;;  %10923 = vst [vmem:[%s13648_s17 + $0x10e0] sm:$0xff] %v13144_v4  ;;  %v13154_v14 = vld [vmem:[%s13643_s14 + $0x18f0] sm:$0xff]   ;;  %10959 = vst [vmem:[%s13648_s17 + $0x10f0] sm:$0xff] %v13153_v13 }
  0x58   : > { %v13146_v6 = vld [vmem:[%s13643_s14 + $0xe0] sm:$0xff]   ;;  %10927 = vst [vmem:[%s13648_s17 + $0x28e0] sm:$0xff] %v13145_v5  ;;  %v13155_v15 = vld [vmem:[%s13643_s14 + $0xf0] sm:$0xff]   ;;  %10963 = vst [vmem:[%s13648_s17 + $0x28f0] sm:$0xff] %v13154_v14 }
  0x59   : > { %10931 = vst [vmem:[%s13648_s17 + $0x40e0] sm:$0xff] %v13146_v6  ;;  %v13156_v16 = vld [vmem:[%s13643_s14 + $0x4100] sm:$0xff]   ;;  %10967 = vst [vmem:[%s13648_s17 + $0x40f0] sm:$0xff] %v13155_v15  ;;  %v13165_v25 = vld [vmem:[%s13643_s14 + $0x4110] sm:$0xff]  }
  0x5a   : > { %v13157_v17 = vld [vmem:[%s13643_s14 + $0x2900] sm:$0xff]   ;;  %10971 = vst [vmem:[%s13648_s17 + $0x100] sm:$0xff] %v13156_v16  ;;  %v13166_v26 = vld [vmem:[%s13643_s14 + $0x2910] sm:$0xff]   ;;  %11007 = vst [vmem:[%s13648_s17 + $0x110] sm:$0xff] %v13165_v25 }
  0x5b   : > { %v13158_v18 = vld [vmem:[%s13643_s14 + $0x1100] sm:$0xff]   ;;  %10975 = vst [vmem:[%s13648_s17 + $0x1900] sm:$0xff] %v13157_v17  ;;  %v13167_v27 = vld [vmem:[%s13643_s14 + $0x1110] sm:$0xff]   ;;  %11011 = vst [vmem:[%s13648_s17 + $0x1910] sm:$0xff] %v13166_v26 }
  0x5c   : > { %v13159_v19 = vld [vmem:[%s13643_s14 + $0x3900] sm:$0xff]   ;;  %10979 = vst [vmem:[%s13648_s17 + $0x3100] sm:$0xff] %v13158_v18  ;;  %v13168_v28 = vld [vmem:[%s13643_s14 + $0x3910] sm:$0xff]   ;;  %11015 = vst [vmem:[%s13648_s17 + $0x3110] sm:$0xff] %v13167_v27 }
  0x5d   : > { %v13160_v20 = vld [vmem:[%s13643_s14 + $0x2100] sm:$0xff]   ;;  %10983 = vst [vmem:[%s13648_s17 + $0x900] sm:$0xff] %v13159_v19  ;;  %v13169_v29 = vld [vmem:[%s13643_s14 + $0x2110] sm:$0xff]   ;;  %11019 = vst [vmem:[%s13648_s17 + $0x910] sm:$0xff] %v13168_v28 }
  0x5e   : > { %v13161_v21 = vld [vmem:[%s13643_s14 + $0x900] sm:$0xff]   ;;  %10987 = vst [vmem:[%s13648_s17 + $0x2100] sm:$0xff] %v13160_v20  ;;  %v13170_v30 = vld [vmem:[%s13643_s14 + $0x910] sm:$0xff]   ;;  %11023 = vst [vmem:[%s13648_s17 + $0x2110] sm:$0xff] %v13169_v29 }
  0x5f   : > { %v13162_v22 = vld [vmem:[%s13643_s14 + $0x3100] sm:$0xff]   ;;  %10991 = vst [vmem:[%s13648_s17 + $0x3900] sm:$0xff] %v13161_v21  ;;  %v13171_v31 = vld [vmem:[%s13643_s14 + $0x3110] sm:$0xff]   ;;  %11027 = vst [vmem:[%s13648_s17 + $0x3910] sm:$0xff] %v13170_v30 }
  0x60   : > { %v13163_v23 = vld [vmem:[%s13643_s14 + $0x1900] sm:$0xff]   ;;  %10995 = vst [vmem:[%s13648_s17 + $0x1100] sm:$0xff] %v13162_v22  ;;  %v13172_v32 = vld [vmem:[%s13643_s14 + $0x1910] sm:$0xff]   ;;  %11031 = vst [vmem:[%s13648_s17 + $0x1110] sm:$0xff] %v13171_v31 }
  0x61   : > { %v13164_v24 = vld [vmem:[%s13643_s14 + $0x100] sm:$0xff]   ;;  %10999 = vst [vmem:[%s13648_s17 + $0x2900] sm:$0xff] %v13163_v23  ;;  %v13173_v33 = vld [vmem:[%s13643_s14 + $0x110] sm:$0xff]   ;;  %11035 = vst [vmem:[%s13648_s17 + $0x2910] sm:$0xff] %v13172_v32 }
  0x62   : > { %11003 = vst [vmem:[%s13648_s17 + $0x4100] sm:$0xff] %v13164_v24  ;;  %v13174_v34 = vld [vmem:[%s13643_s14 + $0x4120] sm:$0xff]   ;;  %11039 = vst [vmem:[%s13648_s17 + $0x4110] sm:$0xff] %v13173_v33  ;;  %v13183_v43 = vld [vmem:[%s13643_s14 + $0x4130] sm:$0xff]  }
  0x63   : > { %v13175_v35 = vld [vmem:[%s13643_s14 + $0x2920] sm:$0xff]   ;;  %11043 = vst [vmem:[%s13648_s17 + $0x120] sm:$0xff] %v13174_v34  ;;  %v13184_v44 = vld [vmem:[%s13643_s14 + $0x2930] sm:$0xff]   ;;  %11079 = vst [vmem:[%s13648_s17 + $0x130] sm:$0xff] %v13183_v43 }
  0x64   : > { %v13176_v36 = vld [vmem:[%s13643_s14 + $0x1120] sm:$0xff]   ;;  %11047 = vst [vmem:[%s13648_s17 + $0x1920] sm:$0xff] %v13175_v35  ;;  %v13185_v45 = vld [vmem:[%s13643_s14 + $0x1130] sm:$0xff]   ;;  %11083 = vst [vmem:[%s13648_s17 + $0x1930] sm:$0xff] %v13184_v44 }
  0x65   : > { %v13177_v37 = vld [vmem:[%s13643_s14 + $0x3920] sm:$0xff]   ;;  %11051 = vst [vmem:[%s13648_s17 + $0x3120] sm:$0xff] %v13176_v36  ;;  %v13186_v46 = vld [vmem:[%s13643_s14 + $0x3930] sm:$0xff]   ;;  %11087 = vst [vmem:[%s13648_s17 + $0x3130] sm:$0xff] %v13185_v45 }
  0x66   : > { %v13178_v38 = vld [vmem:[%s13643_s14 + $0x2120] sm:$0xff]   ;;  %11055 = vst [vmem:[%s13648_s17 + $0x920] sm:$0xff] %v13177_v37  ;;  %v13187_v47 = vld [vmem:[%s13643_s14 + $0x2130] sm:$0xff]   ;;  %11091 = vst [vmem:[%s13648_s17 + $0x930] sm:$0xff] %v13186_v46 }
  0x67   : > { %v13179_v39 = vld [vmem:[%s13643_s14 + $0x920] sm:$0xff]   ;;  %11059 = vst [vmem:[%s13648_s17 + $0x2120] sm:$0xff] %v13178_v38  ;;  %v13188_v48 = vld [vmem:[%s13643_s14 + $0x930] sm:$0xff]   ;;  %11095 = vst [vmem:[%s13648_s17 + $0x2130] sm:$0xff] %v13187_v47 }
  0x68   : > { %v13180_v40 = vld [vmem:[%s13643_s14 + $0x3120] sm:$0xff]   ;;  %11063 = vst [vmem:[%s13648_s17 + $0x3920] sm:$0xff] %v13179_v39  ;;  %v13189_v49 = vld [vmem:[%s13643_s14 + $0x3130] sm:$0xff]   ;;  %11099 = vst [vmem:[%s13648_s17 + $0x3930] sm:$0xff] %v13188_v48 }
  0x69   : > { %v13181_v41 = vld [vmem:[%s13643_s14 + $0x1920] sm:$0xff]   ;;  %11067 = vst [vmem:[%s13648_s17 + $0x1120] sm:$0xff] %v13180_v40  ;;  %v13190_v50 = vld [vmem:[%s13643_s14 + $0x1930] sm:$0xff]   ;;  %11103 = vst [vmem:[%s13648_s17 + $0x1130] sm:$0xff] %v13189_v49 }
  0x6a   : > { %v13182_v42 = vld [vmem:[%s13643_s14 + $0x120] sm:$0xff]   ;;  %11071 = vst [vmem:[%s13648_s17 + $0x2920] sm:$0xff] %v13181_v41  ;;  %v13191_v51 = vld [vmem:[%s13643_s14 + $0x130] sm:$0xff]   ;;  %11107 = vst [vmem:[%s13648_s17 + $0x2930] sm:$0xff] %v13190_v50 }
  0x6b   : > { %11075 = vst [vmem:[%s13648_s17 + $0x4120] sm:$0xff] %v13182_v42  ;;  %v13192_v52 = vld [vmem:[%s13643_s14 + $0x4140] sm:$0xff]   ;;  %11111 = vst [vmem:[%s13648_s17 + $0x4130] sm:$0xff] %v13191_v51  ;;  %v13201_v61 = vld [vmem:[%s13643_s14 + $0x4150] sm:$0xff]  }
  0x6c   : > { %v13193_v53 = vld [vmem:[%s13643_s14 + $0x2940] sm:$0xff]   ;;  %11115 = vst [vmem:[%s13648_s17 + $0x140] sm:$0xff] %v13192_v52  ;;  %v13202_v62 = vld [vmem:[%s13643_s14 + $0x2950] sm:$0xff]   ;;  %11151 = vst [vmem:[%s13648_s17 + $0x150] sm:$0xff] %v13201_v61 }
  0x6d   : > { %v13194_v54 = vld [vmem:[%s13643_s14 + $0x1140] sm:$0xff]   ;;  %11119 = vst [vmem:[%s13648_s17 + $0x1940] sm:$0xff] %v13193_v53  ;;  %v13203_v63 = vld [vmem:[%s13643_s14 + $0x1150] sm:$0xff]   ;;  %11155 = vst [vmem:[%s13648_s17 + $0x1950] sm:$0xff] %v13202_v62 }
  0x6e   : > { %v13195_v55 = vld [vmem:[%s13643_s14 + $0x3940] sm:$0xff]   ;;  %11123 = vst [vmem:[%s13648_s17 + $0x3140] sm:$0xff] %v13194_v54  ;;  %v13204_v0 = vld [vmem:[%s13643_s14 + $0x3950] sm:$0xff]   ;;  %11159 = vst [vmem:[%s13648_s17 + $0x3150] sm:$0xff] %v13203_v63 }
  0x6f   : > { %v13196_v56 = vld [vmem:[%s13643_s14 + $0x2140] sm:$0xff]   ;;  %11127 = vst [vmem:[%s13648_s17 + $0x940] sm:$0xff] %v13195_v55  ;;  %v13205_v1 = vld [vmem:[%s13643_s14 + $0x2150] sm:$0xff]   ;;  %11163 = vst [vmem:[%s13648_s17 + $0x950] sm:$0xff] %v13204_v0 }
  0x70   : > { %v13197_v57 = vld [vmem:[%s13643_s14 + $0x940] sm:$0xff]   ;;  %11131 = vst [vmem:[%s13648_s17 + $0x2140] sm:$0xff] %v13196_v56  ;;  %v13206_v2 = vld [vmem:[%s13643_s14 + $0x950] sm:$0xff]   ;;  %11167 = vst [vmem:[%s13648_s17 + $0x2150] sm:$0xff] %v13205_v1 }
  0x71   : > { %v13198_v58 = vld [vmem:[%s13643_s14 + $0x3140] sm:$0xff]   ;;  %11135 = vst [vmem:[%s13648_s17 + $0x3940] sm:$0xff] %v13197_v57  ;;  %v13207_v3 = vld [vmem:[%s13643_s14 + $0x3150] sm:$0xff]   ;;  %11171 = vst [vmem:[%s13648_s17 + $0x3950] sm:$0xff] %v13206_v2 }
  0x72   : > { %v13199_v59 = vld [vmem:[%s13643_s14 + $0x1940] sm:$0xff]   ;;  %11139 = vst [vmem:[%s13648_s17 + $0x1140] sm:$0xff] %v13198_v58  ;;  %v13208_v4 = vld [vmem:[%s13643_s14 + $0x1950] sm:$0xff]   ;;  %11175 = vst [vmem:[%s13648_s17 + $0x1150] sm:$0xff] %v13207_v3 }
  0x73   : > { %v13200_v60 = vld [vmem:[%s13643_s14 + $0x140] sm:$0xff]   ;;  %11143 = vst [vmem:[%s13648_s17 + $0x2940] sm:$0xff] %v13199_v59  ;;  %v13209_v5 = vld [vmem:[%s13643_s14 + $0x150] sm:$0xff]   ;;  %11179 = vst [vmem:[%s13648_s17 + $0x2950] sm:$0xff] %v13208_v4 }
  0x74   : > { %11147 = vst [vmem:[%s13648_s17 + $0x4140] sm:$0xff] %v13200_v60  ;;  %v13210_v6 = vld [vmem:[%s13643_s14 + $0x4160] sm:$0xff]   ;;  %11183 = vst [vmem:[%s13648_s17 + $0x4150] sm:$0xff] %v13209_v5  ;;  %v13219_v15 = vld [vmem:[%s13643_s14 + $0x4170] sm:$0xff]  }
  0x75   : > { %v13211_v7 = vld [vmem:[%s13643_s14 + $0x2960] sm:$0xff]   ;;  %11187 = vst [vmem:[%s13648_s17 + $0x160] sm:$0xff] %v13210_v6  ;;  %v13220_v16 = vld [vmem:[%s13643_s14 + $0x2970] sm:$0xff]   ;;  %11223 = vst [vmem:[%s13648_s17 + $0x170] sm:$0xff] %v13219_v15 }
  0x76   : > { %v13212_v8 = vld [vmem:[%s13643_s14 + $0x1160] sm:$0xff]   ;;  %11191 = vst [vmem:[%s13648_s17 + $0x1960] sm:$0xff] %v13211_v7  ;;  %v13221_v17 = vld [vmem:[%s13643_s14 + $0x1170] sm:$0xff]   ;;  %11227 = vst [vmem:[%s13648_s17 + $0x1970] sm:$0xff] %v13220_v16 }
  0x77   : > { %v13213_v9 = vld [vmem:[%s13643_s14 + $0x3960] sm:$0xff]   ;;  %11195 = vst [vmem:[%s13648_s17 + $0x3160] sm:$0xff] %v13212_v8  ;;  %v13222_v18 = vld [vmem:[%s13643_s14 + $0x3970] sm:$0xff]   ;;  %11231 = vst [vmem:[%s13648_s17 + $0x3170] sm:$0xff] %v13221_v17 }
  0x78   : > { %v13214_v10 = vld [vmem:[%s13643_s14 + $0x2160] sm:$0xff]   ;;  %11199 = vst [vmem:[%s13648_s17 + $0x960] sm:$0xff] %v13213_v9  ;;  %v13223_v19 = vld [vmem:[%s13643_s14 + $0x2170] sm:$0xff]   ;;  %11235 = vst [vmem:[%s13648_s17 + $0x970] sm:$0xff] %v13222_v18 }
  0x79   : > { %v13215_v11 = vld [vmem:[%s13643_s14 + $0x960] sm:$0xff]   ;;  %11203 = vst [vmem:[%s13648_s17 + $0x2160] sm:$0xff] %v13214_v10  ;;  %v13224_v20 = vld [vmem:[%s13643_s14 + $0x970] sm:$0xff]   ;;  %11239 = vst [vmem:[%s13648_s17 + $0x2170] sm:$0xff] %v13223_v19 }
  0x7a   : > { %v13216_v12 = vld [vmem:[%s13643_s14 + $0x3160] sm:$0xff]   ;;  %11207 = vst [vmem:[%s13648_s17 + $0x3960] sm:$0xff] %v13215_v11  ;;  %v13225_v21 = vld [vmem:[%s13643_s14 + $0x3170] sm:$0xff]   ;;  %11243 = vst [vmem:[%s13648_s17 + $0x3970] sm:$0xff] %v13224_v20 }
  0x7b   : > { %v13217_v13 = vld [vmem:[%s13643_s14 + $0x1960] sm:$0xff]   ;;  %11211 = vst [vmem:[%s13648_s17 + $0x1160] sm:$0xff] %v13216_v12  ;;  %v13226_v22 = vld [vmem:[%s13643_s14 + $0x1970] sm:$0xff]   ;;  %11247 = vst [vmem:[%s13648_s17 + $0x1170] sm:$0xff] %v13225_v21 }
  0x7c   : > { %v13218_v14 = vld [vmem:[%s13643_s14 + $0x160] sm:$0xff]   ;;  %11215 = vst [vmem:[%s13648_s17 + $0x2960] sm:$0xff] %v13217_v13  ;;  %v13227_v23 = vld [vmem:[%s13643_s14 + $0x170] sm:$0xff]   ;;  %11251 = vst [vmem:[%s13648_s17 + $0x2970] sm:$0xff] %v13226_v22 }
  0x7d   : > { %11219 = vst [vmem:[%s13648_s17 + $0x4160] sm:$0xff] %v13218_v14  ;;  %v13228_v24 = vld [vmem:[%s13643_s14 + $0x4180] sm:$0xff]   ;;  %11255 = vst [vmem:[%s13648_s17 + $0x4170] sm:$0xff] %v13227_v23  ;;  %v13237_v33 = vld [vmem:[%s13643_s14 + $0x4190] sm:$0xff]  }
  0x7e   : > { %v13229_v25 = vld [vmem:[%s13643_s14 + $0x2980] sm:$0xff]   ;;  %11259 = vst [vmem:[%s13648_s17 + $0x180] sm:$0xff] %v13228_v24  ;;  %v13238_v34 = vld [vmem:[%s13643_s14 + $0x2990] sm:$0xff]   ;;  %11295 = vst [vmem:[%s13648_s17 + $0x190] sm:$0xff] %v13237_v33 }
  0x7f   : > { %v13230_v26 = vld [vmem:[%s13643_s14 + $0x1180] sm:$0xff]   ;;  %11263 = vst [vmem:[%s13648_s17 + $0x1980] sm:$0xff] %v13229_v25  ;;  %v13239_v35 = vld [vmem:[%s13643_s14 + $0x1190] sm:$0xff]   ;;  %11299 = vst [vmem:[%s13648_s17 + $0x1990] sm:$0xff] %v13238_v34 }
  0x80   : > { %v13231_v27 = vld [vmem:[%s13643_s14 + $0x3980] sm:$0xff]   ;;  %11267 = vst [vmem:[%s13648_s17 + $0x3180] sm:$0xff] %v13230_v26  ;;  %v13240_v36 = vld [vmem:[%s13643_s14 + $0x3990] sm:$0xff]   ;;  %11303 = vst [vmem:[%s13648_s17 + $0x3190] sm:$0xff] %v13239_v35 }
  0x81   : > { %v13232_v28 = vld [vmem:[%s13643_s14 + $0x2180] sm:$0xff]   ;;  %11271 = vst [vmem:[%s13648_s17 + $0x980] sm:$0xff] %v13231_v27  ;;  %v13241_v37 = vld [vmem:[%s13643_s14 + $0x2190] sm:$0xff]   ;;  %11307 = vst [vmem:[%s13648_s17 + $0x990] sm:$0xff] %v13240_v36 }
  0x82   : > { %v13233_v29 = vld [vmem:[%s13643_s14 + $0x980] sm:$0xff]   ;;  %11275 = vst [vmem:[%s13648_s17 + $0x2180] sm:$0xff] %v13232_v28  ;;  %v13242_v38 = vld [vmem:[%s13643_s14 + $0x990] sm:$0xff]   ;;  %11311 = vst [vmem:[%s13648_s17 + $0x2190] sm:$0xff] %v13241_v37 }
  0x83   : > { %v13234_v30 = vld [vmem:[%s13643_s14 + $0x3180] sm:$0xff]   ;;  %11279 = vst [vmem:[%s13648_s17 + $0x3980] sm:$0xff] %v13233_v29  ;;  %v13243_v39 = vld [vmem:[%s13643_s14 + $0x3190] sm:$0xff]   ;;  %11315 = vst [vmem:[%s13648_s17 + $0x3990] sm:$0xff] %v13242_v38 }
  0x84   : > { %v13235_v31 = vld [vmem:[%s13643_s14 + $0x1980] sm:$0xff]   ;;  %11283 = vst [vmem:[%s13648_s17 + $0x1180] sm:$0xff] %v13234_v30  ;;  %v13244_v40 = vld [vmem:[%s13643_s14 + $0x1990] sm:$0xff]   ;;  %11319 = vst [vmem:[%s13648_s17 + $0x1190] sm:$0xff] %v13243_v39 }
  0x85   : > { %v13236_v32 = vld [vmem:[%s13643_s14 + $0x180] sm:$0xff]   ;;  %11287 = vst [vmem:[%s13648_s17 + $0x2980] sm:$0xff] %v13235_v31  ;;  %v13245_v41 = vld [vmem:[%s13643_s14 + $0x190] sm:$0xff]   ;;  %11323 = vst [vmem:[%s13648_s17 + $0x2990] sm:$0xff] %v13244_v40 }
  0x86   : > { %11291 = vst [vmem:[%s13648_s17 + $0x4180] sm:$0xff] %v13236_v32  ;;  %v13246_v42 = vld [vmem:[%s13643_s14 + $0x41a0] sm:$0xff]   ;;  %11327 = vst [vmem:[%s13648_s17 + $0x4190] sm:$0xff] %v13245_v41  ;;  %v13255_v51 = vld [vmem:[%s13643_s14 + $0x41b0] sm:$0xff]  }
  0x87   : > { %v13247_v43 = vld [vmem:[%s13643_s14 + $0x29a0] sm:$0xff]   ;;  %11331 = vst [vmem:[%s13648_s17 + $0x1a0] sm:$0xff] %v13246_v42  ;;  %v13256_v52 = vld [vmem:[%s13643_s14 + $0x29b0] sm:$0xff]   ;;  %11367 = vst [vmem:[%s13648_s17 + $0x1b0] sm:$0xff] %v13255_v51 }
  0x88   : > { %v13248_v44 = vld [vmem:[%s13643_s14 + $0x11a0] sm:$0xff]   ;;  %11335 = vst [vmem:[%s13648_s17 + $0x19a0] sm:$0xff] %v13247_v43  ;;  %v13257_v53 = vld [vmem:[%s13643_s14 + $0x11b0] sm:$0xff]   ;;  %11371 = vst [vmem:[%s13648_s17 + $0x19b0] sm:$0xff] %v13256_v52 }
  0x89   : > { %v13249_v45 = vld [vmem:[%s13643_s14 + $0x39a0] sm:$0xff]   ;;  %11339 = vst [vmem:[%s13648_s17 + $0x31a0] sm:$0xff] %v13248_v44  ;;  %v13258_v54 = vld [vmem:[%s13643_s14 + $0x39b0] sm:$0xff]   ;;  %11375 = vst [vmem:[%s13648_s17 + $0x31b0] sm:$0xff] %v13257_v53 }
  0x8a   : > { %v13250_v46 = vld [vmem:[%s13643_s14 + $0x21a0] sm:$0xff]   ;;  %11343 = vst [vmem:[%s13648_s17 + $0x9a0] sm:$0xff] %v13249_v45  ;;  %v13259_v55 = vld [vmem:[%s13643_s14 + $0x21b0] sm:$0xff]   ;;  %11379 = vst [vmem:[%s13648_s17 + $0x9b0] sm:$0xff] %v13258_v54 }
  0x8b   : > { %v13251_v47 = vld [vmem:[%s13643_s14 + $0x9a0] sm:$0xff]   ;;  %11347 = vst [vmem:[%s13648_s17 + $0x21a0] sm:$0xff] %v13250_v46  ;;  %v13260_v56 = vld [vmem:[%s13643_s14 + $0x9b0] sm:$0xff]   ;;  %11383 = vst [vmem:[%s13648_s17 + $0x21b0] sm:$0xff] %v13259_v55 }
  0x8c   : > { %v13252_v48 = vld [vmem:[%s13643_s14 + $0x31a0] sm:$0xff]   ;;  %11351 = vst [vmem:[%s13648_s17 + $0x39a0] sm:$0xff] %v13251_v47  ;;  %v13261_v57 = vld [vmem:[%s13643_s14 + $0x31b0] sm:$0xff]   ;;  %11387 = vst [vmem:[%s13648_s17 + $0x39b0] sm:$0xff] %v13260_v56 }
  0x8d   : > { %v13253_v49 = vld [vmem:[%s13643_s14 + $0x19a0] sm:$0xff]   ;;  %11355 = vst [vmem:[%s13648_s17 + $0x11a0] sm:$0xff] %v13252_v48  ;;  %v13262_v58 = vld [vmem:[%s13643_s14 + $0x19b0] sm:$0xff]   ;;  %11391 = vst [vmem:[%s13648_s17 + $0x11b0] sm:$0xff] %v13261_v57 }
  0x8e   : > { %v13254_v50 = vld [vmem:[%s13643_s14 + $0x1a0] sm:$0xff]   ;;  %11359 = vst [vmem:[%s13648_s17 + $0x29a0] sm:$0xff] %v13253_v49  ;;  %v13263_v59 = vld [vmem:[%s13643_s14 + $0x1b0] sm:$0xff]   ;;  %11395 = vst [vmem:[%s13648_s17 + $0x29b0] sm:$0xff] %v13262_v58 }
  0x8f   : > { %11363 = vst [vmem:[%s13648_s17 + $0x41a0] sm:$0xff] %v13254_v50  ;;  %v13264_v60 = vld [vmem:[%s13643_s14 + $0x41c0] sm:$0xff]   ;;  %11399 = vst [vmem:[%s13648_s17 + $0x41b0] sm:$0xff] %v13263_v59  ;;  %v13273_v5 = vld [vmem:[%s13643_s14 + $0x41d0] sm:$0xff]  }
  0x90   : > { %v13265_v61 = vld [vmem:[%s13643_s14 + $0x29c0] sm:$0xff]   ;;  %11403 = vst [vmem:[%s13648_s17 + $0x1c0] sm:$0xff] %v13264_v60  ;;  %v13274_v6 = vld [vmem:[%s13643_s14 + $0x29d0] sm:$0xff]   ;;  %11439 = vst [vmem:[%s13648_s17 + $0x1d0] sm:$0xff] %v13273_v5 }
  0x91   : > { %v13266_v62 = vld [vmem:[%s13643_s14 + $0x11c0] sm:$0xff]   ;;  %11407 = vst [vmem:[%s13648_s17 + $0x19c0] sm:$0xff] %v13265_v61  ;;  %v13275_v7 = vld [vmem:[%s13643_s14 + $0x11d0] sm:$0xff]   ;;  %11443 = vst [vmem:[%s13648_s17 + $0x19d0] sm:$0xff] %v13274_v6 }
  0x92   : > { %v13267_v63 = vld [vmem:[%s13643_s14 + $0x39c0] sm:$0xff]   ;;  %11411 = vst [vmem:[%s13648_s17 + $0x31c0] sm:$0xff] %v13266_v62  ;;  %v13276_v8 = vld [vmem:[%s13643_s14 + $0x39d0] sm:$0xff]   ;;  %11447 = vst [vmem:[%s13648_s17 + $0x31d0] sm:$0xff] %v13275_v7 }
  0x93   : > { %v13268_v0 = vld [vmem:[%s13643_s14 + $0x21c0] sm:$0xff]   ;;  %11415 = vst [vmem:[%s13648_s17 + $0x9c0] sm:$0xff] %v13267_v63  ;;  %v13277_v9 = vld [vmem:[%s13643_s14 + $0x21d0] sm:$0xff]   ;;  %11451 = vst [vmem:[%s13648_s17 + $0x9d0] sm:$0xff] %v13276_v8 }
  0x94   : > { %v13269_v1 = vld [vmem:[%s13643_s14 + $0x9c0] sm:$0xff]   ;;  %11419 = vst [vmem:[%s13648_s17 + $0x21c0] sm:$0xff] %v13268_v0  ;;  %v13278_v10 = vld [vmem:[%s13643_s14 + $0x9d0] sm:$0xff]   ;;  %11455 = vst [vmem:[%s13648_s17 + $0x21d0] sm:$0xff] %v13277_v9 }
  0x95   : > { %v13270_v2 = vld [vmem:[%s13643_s14 + $0x31c0] sm:$0xff]   ;;  %11423 = vst [vmem:[%s13648_s17 + $0x39c0] sm:$0xff] %v13269_v1  ;;  %v13279_v11 = vld [vmem:[%s13643_s14 + $0x31d0] sm:$0xff]   ;;  %11459 = vst [vmem:[%s13648_s17 + $0x39d0] sm:$0xff] %v13278_v10 }
  0x96   : > { %v13271_v3 = vld [vmem:[%s13643_s14 + $0x19c0] sm:$0xff]   ;;  %11427 = vst [vmem:[%s13648_s17 + $0x11c0] sm:$0xff] %v13270_v2  ;;  %v13280_v12 = vld [vmem:[%s13643_s14 + $0x19d0] sm:$0xff]   ;;  %11463 = vst [vmem:[%s13648_s17 + $0x11d0] sm:$0xff] %v13279_v11 }
  0x97   : > { %v13272_v4 = vld [vmem:[%s13643_s14 + $0x1c0] sm:$0xff]   ;;  %11431 = vst [vmem:[%s13648_s17 + $0x29c0] sm:$0xff] %v13271_v3  ;;  %v13281_v13 = vld [vmem:[%s13643_s14 + $0x1d0] sm:$0xff]   ;;  %11467 = vst [vmem:[%s13648_s17 + $0x29d0] sm:$0xff] %v13280_v12 }
  0x98   : > { %11435 = vst [vmem:[%s13648_s17 + $0x41c0] sm:$0xff] %v13272_v4  ;;  %v13282_v14 = vld [vmem:[%s13643_s14 + $0x41e0] sm:$0xff]   ;;  %11471 = vst [vmem:[%s13648_s17 + $0x41d0] sm:$0xff] %v13281_v13  ;;  %v13291_v23 = vld [vmem:[%s13643_s14 + $0x41f0] sm:$0xff]  }
  0x99   : > { %v13283_v15 = vld [vmem:[%s13643_s14 + $0x29e0] sm:$0xff]   ;;  %11475 = vst [vmem:[%s13648_s17 + $0x1e0] sm:$0xff] %v13282_v14  ;;  %v13292_v24 = vld [vmem:[%s13643_s14 + $0x29f0] sm:$0xff]   ;;  %11511 = vst [vmem:[%s13648_s17 + $0x1f0] sm:$0xff] %v13291_v23 }
  0x9a   : > { %v13284_v16 = vld [vmem:[%s13643_s14 + $0x11e0] sm:$0xff]   ;;  %11479 = vst [vmem:[%s13648_s17 + $0x19e0] sm:$0xff] %v13283_v15  ;;  %v13293_v25 = vld [vmem:[%s13643_s14 + $0x11f0] sm:$0xff]   ;;  %11515 = vst [vmem:[%s13648_s17 + $0x19f0] sm:$0xff] %v13292_v24 }
  0x9b   : > { %v13285_v17 = vld [vmem:[%s13643_s14 + $0x39e0] sm:$0xff]   ;;  %11483 = vst [vmem:[%s13648_s17 + $0x31e0] sm:$0xff] %v13284_v16  ;;  %v13294_v26 = vld [vmem:[%s13643_s14 + $0x39f0] sm:$0xff]   ;;  %11519 = vst [vmem:[%s13648_s17 + $0x31f0] sm:$0xff] %v13293_v25 }
  0x9c   : > { %v13286_v18 = vld [vmem:[%s13643_s14 + $0x21e0] sm:$0xff]   ;;  %11487 = vst [vmem:[%s13648_s17 + $0x9e0] sm:$0xff] %v13285_v17  ;;  %v13295_v27 = vld [vmem:[%s13643_s14 + $0x21f0] sm:$0xff]   ;;  %11523 = vst [vmem:[%s13648_s17 + $0x9f0] sm:$0xff] %v13294_v26 }
  0x9d   : > { %v13287_v19 = vld [vmem:[%s13643_s14 + $0x9e0] sm:$0xff]   ;;  %11491 = vst [vmem:[%s13648_s17 + $0x21e0] sm:$0xff] %v13286_v18  ;;  %v13296_v28 = vld [vmem:[%s13643_s14 + $0x9f0] sm:$0xff]   ;;  %11527 = vst [vmem:[%s13648_s17 + $0x21f0] sm:$0xff] %v13295_v27 }
  0x9e   : > { %v13288_v20 = vld [vmem:[%s13643_s14 + $0x31e0] sm:$0xff]   ;;  %11495 = vst [vmem:[%s13648_s17 + $0x39e0] sm:$0xff] %v13287_v19  ;;  %v13297_v29 = vld [vmem:[%s13643_s14 + $0x31f0] sm:$0xff]   ;;  %11531 = vst [vmem:[%s13648_s17 + $0x39f0] sm:$0xff] %v13296_v28 }
  0x9f   : > { %v13289_v21 = vld [vmem:[%s13643_s14 + $0x19e0] sm:$0xff]   ;;  %11499 = vst [vmem:[%s13648_s17 + $0x11e0] sm:$0xff] %v13288_v20  ;;  %v13298_v30 = vld [vmem:[%s13643_s14 + $0x19f0] sm:$0xff]   ;;  %11535 = vst [vmem:[%s13648_s17 + $0x11f0] sm:$0xff] %v13297_v29 }
  0xa0   : > { %v13290_v22 = vld [vmem:[%s13643_s14 + $0x1e0] sm:$0xff]   ;;  %11503 = vst [vmem:[%s13648_s17 + $0x29e0] sm:$0xff] %v13289_v21  ;;  %v13299_v31 = vld [vmem:[%s13643_s14 + $0x1f0] sm:$0xff]   ;;  %11539 = vst [vmem:[%s13648_s17 + $0x29f0] sm:$0xff] %v13298_v30 }
  0xa1   : > { %11507 = vst [vmem:[%s13648_s17 + $0x41e0] sm:$0xff] %v13290_v22  ;;  %11543 = vst [vmem:[%s13648_s17 + $0x41f0] sm:$0xff] %v13299_v31  ;;  %v13300_v32 = vld [vmem:[%s13643_s14 + $0x4008] sm:$0xff]   ;;  %v13309_v41 = vld [vmem:[%s13643_s14 + $0x4018] sm:$0xff]  }
  0xa2   : > { %v13301_v33 = vld [vmem:[%s13643_s14 + $0x2808] sm:$0xff]   ;;  %11835 = vst [vmem:[%s13648_s17 + $0x8] sm:$0xff] %v13300_v32  ;;  %v13310_v42 = vld [vmem:[%s13643_s14 + $0x2818] sm:$0xff]   ;;  %11871 = vst [vmem:[%s13648_s17 + $0x18] sm:$0xff] %v13309_v41 }
  0xa3   : > { %v13302_v34 = vld [vmem:[%s13643_s14 + $0x1008] sm:$0xff]   ;;  %11839 = vst [vmem:[%s13648_s17 + $0x1808] sm:$0xff] %v13301_v33  ;;  %v13311_v43 = vld [vmem:[%s13643_s14 + $0x1018] sm:$0xff]   ;;  %11875 = vst [vmem:[%s13648_s17 + $0x1818] sm:$0xff] %v13310_v42 }
  0xa4   : > { %v13303_v35 = vld [vmem:[%s13643_s14 + $0x3808] sm:$0xff]   ;;  %11843 = vst [vmem:[%s13648_s17 + $0x3008] sm:$0xff] %v13302_v34  ;;  %v13312_v44 = vld [vmem:[%s13643_s14 + $0x3818] sm:$0xff]   ;;  %11879 = vst [vmem:[%s13648_s17 + $0x3018] sm:$0xff] %v13311_v43 }
  0xa5   : > { %v13304_v36 = vld [vmem:[%s13643_s14 + $0x2008] sm:$0xff]   ;;  %11847 = vst [vmem:[%s13648_s17 + $0x808] sm:$0xff] %v13303_v35  ;;  %v13313_v45 = vld [vmem:[%s13643_s14 + $0x2018] sm:$0xff]   ;;  %11883 = vst [vmem:[%s13648_s17 + $0x818] sm:$0xff] %v13312_v44 }
  0xa6   : > { %v13305_v37 = vld [vmem:[%s13643_s14 + $0x808] sm:$0xff]   ;;  %11851 = vst [vmem:[%s13648_s17 + $0x2008] sm:$0xff] %v13304_v36  ;;  %v13314_v46 = vld [vmem:[%s13643_s14 + $0x818] sm:$0xff]   ;;  %11887 = vst [vmem:[%s13648_s17 + $0x2018] sm:$0xff] %v13313_v45 }
  0xa7   : > { %v13306_v38 = vld [vmem:[%s13643_s14 + $0x3008] sm:$0xff]   ;;  %11855 = vst [vmem:[%s13648_s17 + $0x3808] sm:$0xff] %v13305_v37  ;;  %v13315_v47 = vld [vmem:[%s13643_s14 + $0x3018] sm:$0xff]   ;;  %11891 = vst [vmem:[%s13648_s17 + $0x3818] sm:$0xff] %v13314_v46 }
  0xa8   : > { %v13307_v39 = vld [vmem:[%s13643_s14 + $0x1808] sm:$0xff]   ;;  %11859 = vst [vmem:[%s13648_s17 + $0x1008] sm:$0xff] %v13306_v38  ;;  %v13316_v48 = vld [vmem:[%s13643_s14 + $0x1818] sm:$0xff]   ;;  %11895 = vst [vmem:[%s13648_s17 + $0x1018] sm:$0xff] %v13315_v47 }
  0xa9   : > { %v13308_v40 = vld [vmem:[%s13643_s14 + $0x8] sm:$0xff]   ;;  %11863 = vst [vmem:[%s13648_s17 + $0x2808] sm:$0xff] %v13307_v39  ;;  %v13317_v49 = vld [vmem:[%s13643_s14 + $0x18] sm:$0xff]   ;;  %11899 = vst [vmem:[%s13648_s17 + $0x2818] sm:$0xff] %v13316_v48 }
  0xaa   : > { %11867 = vst [vmem:[%s13648_s17 + $0x4008] sm:$0xff] %v13308_v40  ;;  %v13318_v50 = vld [vmem:[%s13643_s14 + $0x4028] sm:$0xff]   ;;  %11903 = vst [vmem:[%s13648_s17 + $0x4018] sm:$0xff] %v13317_v49  ;;  %v13327_v59 = vld [vmem:[%s13643_s14 + $0x4038] sm:$0xff]  }
  0xab   : > { %v13319_v51 = vld [vmem:[%s13643_s14 + $0x2828] sm:$0xff]   ;;  %11907 = vst [vmem:[%s13648_s17 + $0x28] sm:$0xff] %v13318_v50  ;;  %v13328_v60 = vld [vmem:[%s13643_s14 + $0x2838] sm:$0xff]   ;;  %11943 = vst [vmem:[%s13648_s17 + $0x38] sm:$0xff] %v13327_v59 }
  0xac   : > { %v13320_v52 = vld [vmem:[%s13643_s14 + $0x1028] sm:$0xff]   ;;  %11911 = vst [vmem:[%s13648_s17 + $0x1828] sm:$0xff] %v13319_v51  ;;  %v13329_v61 = vld [vmem:[%s13643_s14 + $0x1038] sm:$0xff]   ;;  %11947 = vst [vmem:[%s13648_s17 + $0x1838] sm:$0xff] %v13328_v60 }
  0xad   : > { %v13321_v53 = vld [vmem:[%s13643_s14 + $0x3828] sm:$0xff]   ;;  %11915 = vst [vmem:[%s13648_s17 + $0x3028] sm:$0xff] %v13320_v52  ;;  %v13330_v62 = vld [vmem:[%s13643_s14 + $0x3838] sm:$0xff]   ;;  %11951 = vst [vmem:[%s13648_s17 + $0x3038] sm:$0xff] %v13329_v61 }
  0xae   : > { %v13322_v54 = vld [vmem:[%s13643_s14 + $0x2028] sm:$0xff]   ;;  %11919 = vst [vmem:[%s13648_s17 + $0x828] sm:$0xff] %v13321_v53  ;;  %v13331_v63 = vld [vmem:[%s13643_s14 + $0x2038] sm:$0xff]   ;;  %11955 = vst [vmem:[%s13648_s17 + $0x838] sm:$0xff] %v13330_v62 }
  0xaf   : > { %v13323_v55 = vld [vmem:[%s13643_s14 + $0x828] sm:$0xff]   ;;  %11923 = vst [vmem:[%s13648_s17 + $0x2028] sm:$0xff] %v13322_v54  ;;  %v13332_v0 = vld [vmem:[%s13643_s14 + $0x838] sm:$0xff]   ;;  %11959 = vst [vmem:[%s13648_s17 + $0x2038] sm:$0xff] %v13331_v63 }
  0xb0   : > { %v13324_v56 = vld [vmem:[%s13643_s14 + $0x3028] sm:$0xff]   ;;  %11927 = vst [vmem:[%s13648_s17 + $0x3828] sm:$0xff] %v13323_v55  ;;  %v13333_v1 = vld [vmem:[%s13643_s14 + $0x3038] sm:$0xff]   ;;  %11963 = vst [vmem:[%s13648_s17 + $0x3838] sm:$0xff] %v13332_v0 }
  0xb1   : > { %v13325_v57 = vld [vmem:[%s13643_s14 + $0x1828] sm:$0xff]   ;;  %11931 = vst [vmem:[%s13648_s17 + $0x1028] sm:$0xff] %v13324_v56  ;;  %v13334_v2 = vld [vmem:[%s13643_s14 + $0x1838] sm:$0xff]   ;;  %11967 = vst [vmem:[%s13648_s17 + $0x1038] sm:$0xff] %v13333_v1 }
  0xb2   : > { %v13326_v58 = vld [vmem:[%s13643_s14 + $0x28] sm:$0xff]   ;;  %11935 = vst [vmem:[%s13648_s17 + $0x2828] sm:$0xff] %v13325_v57  ;;  %v13335_v3 = vld [vmem:[%s13643_s14 + $0x38] sm:$0xff]   ;;  %11971 = vst [vmem:[%s13648_s17 + $0x2838] sm:$0xff] %v13334_v2 }
  0xb3   : > { %11939 = vst [vmem:[%s13648_s17 + $0x4028] sm:$0xff] %v13326_v58  ;;  %v13336_v4 = vld [vmem:[%s13643_s14 + $0x4048] sm:$0xff]   ;;  %11975 = vst [vmem:[%s13648_s17 + $0x4038] sm:$0xff] %v13335_v3  ;;  %v13345_v13 = vld [vmem:[%s13643_s14 + $0x4058] sm:$0xff]  }
  0xb4   : > { %v13337_v5 = vld [vmem:[%s13643_s14 + $0x2848] sm:$0xff]   ;;  %11979 = vst [vmem:[%s13648_s17 + $0x48] sm:$0xff] %v13336_v4  ;;  %v13346_v14 = vld [vmem:[%s13643_s14 + $0x2858] sm:$0xff]   ;;  %12015 = vst [vmem:[%s13648_s17 + $0x58] sm:$0xff] %v13345_v13 }
  0xb5   : > { %v13338_v6 = vld [vmem:[%s13643_s14 + $0x1048] sm:$0xff]   ;;  %11983 = vst [vmem:[%s13648_s17 + $0x1848] sm:$0xff] %v13337_v5  ;;  %v13347_v15 = vld [vmem:[%s13643_s14 + $0x1058] sm:$0xff]   ;;  %12019 = vst [vmem:[%s13648_s17 + $0x1858] sm:$0xff] %v13346_v14 }
  0xb6   : > { %v13339_v7 = vld [vmem:[%s13643_s14 + $0x3848] sm:$0xff]   ;;  %11987 = vst [vmem:[%s13648_s17 + $0x3048] sm:$0xff] %v13338_v6  ;;  %v13348_v16 = vld [vmem:[%s13643_s14 + $0x3858] sm:$0xff]   ;;  %12023 = vst [vmem:[%s13648_s17 + $0x3058] sm:$0xff] %v13347_v15 }
  0xb7   : > { %v13340_v8 = vld [vmem:[%s13643_s14 + $0x2048] sm:$0xff]   ;;  %11991 = vst [vmem:[%s13648_s17 + $0x848] sm:$0xff] %v13339_v7  ;;  %v13349_v17 = vld [vmem:[%s13643_s14 + $0x2058] sm:$0xff]   ;;  %12027 = vst [vmem:[%s13648_s17 + $0x858] sm:$0xff] %v13348_v16 }
  0xb8   : > { %v13341_v9 = vld [vmem:[%s13643_s14 + $0x848] sm:$0xff]   ;;  %11995 = vst [vmem:[%s13648_s17 + $0x2048] sm:$0xff] %v13340_v8  ;;  %v13350_v18 = vld [vmem:[%s13643_s14 + $0x858] sm:$0xff]   ;;  %12031 = vst [vmem:[%s13648_s17 + $0x2058] sm:$0xff] %v13349_v17 }
  0xb9   : > { %v13342_v10 = vld [vmem:[%s13643_s14 + $0x3048] sm:$0xff]   ;;  %11999 = vst [vmem:[%s13648_s17 + $0x3848] sm:$0xff] %v13341_v9  ;;  %v13351_v19 = vld [vmem:[%s13643_s14 + $0x3058] sm:$0xff]   ;;  %12035 = vst [vmem:[%s13648_s17 + $0x3858] sm:$0xff] %v13350_v18 }
  0xba   : > { %v13343_v11 = vld [vmem:[%s13643_s14 + $0x1848] sm:$0xff]   ;;  %12003 = vst [vmem:[%s13648_s17 + $0x1048] sm:$0xff] %v13342_v10  ;;  %v13352_v20 = vld [vmem:[%s13643_s14 + $0x1858] sm:$0xff]   ;;  %12039 = vst [vmem:[%s13648_s17 + $0x1058] sm:$0xff] %v13351_v19 }
  0xbb   : > { %v13344_v12 = vld [vmem:[%s13643_s14 + $0x48] sm:$0xff]   ;;  %12007 = vst [vmem:[%s13648_s17 + $0x2848] sm:$0xff] %v13343_v11  ;;  %v13353_v21 = vld [vmem:[%s13643_s14 + $0x58] sm:$0xff]   ;;  %12043 = vst [vmem:[%s13648_s17 + $0x2858] sm:$0xff] %v13352_v20 }
  0xbc   : > { %12011 = vst [vmem:[%s13648_s17 + $0x4048] sm:$0xff] %v13344_v12  ;;  %v13354_v22 = vld [vmem:[%s13643_s14 + $0x4068] sm:$0xff]   ;;  %12047 = vst [vmem:[%s13648_s17 + $0x4058] sm:$0xff] %v13353_v21  ;;  %v13363_v31 = vld [vmem:[%s13643_s14 + $0x4078] sm:$0xff]  }
  0xbd   : > { %v13355_v23 = vld [vmem:[%s13643_s14 + $0x2868] sm:$0xff]   ;;  %12051 = vst [vmem:[%s13648_s17 + $0x68] sm:$0xff] %v13354_v22  ;;  %v13364_v32 = vld [vmem:[%s13643_s14 + $0x2878] sm:$0xff]   ;;  %12087 = vst [vmem:[%s13648_s17 + $0x78] sm:$0xff] %v13363_v31 }
  0xbe   : > { %v13356_v24 = vld [vmem:[%s13643_s14 + $0x1068] sm:$0xff]   ;;  %12055 = vst [vmem:[%s13648_s17 + $0x1868] sm:$0xff] %v13355_v23  ;;  %v13365_v33 = vld [vmem:[%s13643_s14 + $0x1078] sm:$0xff]   ;;  %12091 = vst [vmem:[%s13648_s17 + $0x1878] sm:$0xff] %v13364_v32 }
  0xbf   : > { %v13357_v25 = vld [vmem:[%s13643_s14 + $0x3868] sm:$0xff]   ;;  %12059 = vst [vmem:[%s13648_s17 + $0x3068] sm:$0xff] %v13356_v24  ;;  %v13366_v34 = vld [vmem:[%s13643_s14 + $0x3878] sm:$0xff]   ;;  %12095 = vst [vmem:[%s13648_s17 + $0x3078] sm:$0xff] %v13365_v33 }
  0xc0   : > { %v13358_v26 = vld [vmem:[%s13643_s14 + $0x2068] sm:$0xff]   ;;  %12063 = vst [vmem:[%s13648_s17 + $0x868] sm:$0xff] %v13357_v25  ;;  %v13367_v35 = vld [vmem:[%s13643_s14 + $0x2078] sm:$0xff]   ;;  %12099 = vst [vmem:[%s13648_s17 + $0x878] sm:$0xff] %v13366_v34 }
  0xc1   : > { %v13359_v27 = vld [vmem:[%s13643_s14 + $0x868] sm:$0xff]   ;;  %12067 = vst [vmem:[%s13648_s17 + $0x2068] sm:$0xff] %v13358_v26  ;;  %v13368_v36 = vld [vmem:[%s13643_s14 + $0x878] sm:$0xff]   ;;  %12103 = vst [vmem:[%s13648_s17 + $0x2078] sm:$0xff] %v13367_v35 }
  0xc2   : > { %v13360_v28 = vld [vmem:[%s13643_s14 + $0x3068] sm:$0xff]   ;;  %12071 = vst [vmem:[%s13648_s17 + $0x3868] sm:$0xff] %v13359_v27  ;;  %v13369_v37 = vld [vmem:[%s13643_s14 + $0x3078] sm:$0xff]   ;;  %12107 = vst [vmem:[%s13648_s17 + $0x3878] sm:$0xff] %v13368_v36 }
  0xc3   : > { %v13361_v29 = vld [vmem:[%s13643_s14 + $0x1868] sm:$0xff]   ;;  %12075 = vst [vmem:[%s13648_s17 + $0x1068] sm:$0xff] %v13360_v28  ;;  %v13370_v38 = vld [vmem:[%s13643_s14 + $0x1878] sm:$0xff]   ;;  %12111 = vst [vmem:[%s13648_s17 + $0x1078] sm:$0xff] %v13369_v37 }
  0xc4   : > { %v13362_v30 = vld [vmem:[%s13643_s14 + $0x68] sm:$0xff]   ;;  %12079 = vst [vmem:[%s13648_s17 + $0x2868] sm:$0xff] %v13361_v29  ;;  %v13371_v39 = vld [vmem:[%s13643_s14 + $0x78] sm:$0xff]   ;;  %12115 = vst [vmem:[%s13648_s17 + $0x2878] sm:$0xff] %v13370_v38 }
  0xc5   : > { %12083 = vst [vmem:[%s13648_s17 + $0x4068] sm:$0xff] %v13362_v30  ;;  %v13372_v40 = vld [vmem:[%s13643_s14 + $0x4088] sm:$0xff]   ;;  %12119 = vst [vmem:[%s13648_s17 + $0x4078] sm:$0xff] %v13371_v39  ;;  %v13381_v49 = vld [vmem:[%s13643_s14 + $0x4098] sm:$0xff]  }
  0xc6   : > { %v13373_v41 = vld [vmem:[%s13643_s14 + $0x2888] sm:$0xff]   ;;  %12123 = vst [vmem:[%s13648_s17 + $0x88] sm:$0xff] %v13372_v40  ;;  %v13382_v50 = vld [vmem:[%s13643_s14 + $0x2898] sm:$0xff]   ;;  %12159 = vst [vmem:[%s13648_s17 + $0x98] sm:$0xff] %v13381_v49 }
  0xc7   : > { %v13374_v42 = vld [vmem:[%s13643_s14 + $0x1088] sm:$0xff]   ;;  %12127 = vst [vmem:[%s13648_s17 + $0x1888] sm:$0xff] %v13373_v41  ;;  %v13383_v51 = vld [vmem:[%s13643_s14 + $0x1098] sm:$0xff]   ;;  %12163 = vst [vmem:[%s13648_s17 + $0x1898] sm:$0xff] %v13382_v50 }
  0xc8   : > { %v13375_v43 = vld [vmem:[%s13643_s14 + $0x3888] sm:$0xff]   ;;  %12131 = vst [vmem:[%s13648_s17 + $0x3088] sm:$0xff] %v13374_v42  ;;  %v13384_v52 = vld [vmem:[%s13643_s14 + $0x3898] sm:$0xff]   ;;  %12167 = vst [vmem:[%s13648_s17 + $0x3098] sm:$0xff] %v13383_v51 }
  0xc9   : > { %v13376_v44 = vld [vmem:[%s13643_s14 + $0x2088] sm:$0xff]   ;;  %12135 = vst [vmem:[%s13648_s17 + $0x888] sm:$0xff] %v13375_v43  ;;  %v13385_v53 = vld [vmem:[%s13643_s14 + $0x2098] sm:$0xff]   ;;  %12171 = vst [vmem:[%s13648_s17 + $0x898] sm:$0xff] %v13384_v52 }
  0xca   : > { %v13377_v45 = vld [vmem:[%s13643_s14 + $0x888] sm:$0xff]   ;;  %12139 = vst [vmem:[%s13648_s17 + $0x2088] sm:$0xff] %v13376_v44  ;;  %v13386_v54 = vld [vmem:[%s13643_s14 + $0x898] sm:$0xff]   ;;  %12175 = vst [vmem:[%s13648_s17 + $0x2098] sm:$0xff] %v13385_v53 }
  0xcb   : > { %v13378_v46 = vld [vmem:[%s13643_s14 + $0x3088] sm:$0xff]   ;;  %12143 = vst [vmem:[%s13648_s17 + $0x3888] sm:$0xff] %v13377_v45  ;;  %v13387_v55 = vld [vmem:[%s13643_s14 + $0x3098] sm:$0xff]   ;;  %12179 = vst [vmem:[%s13648_s17 + $0x3898] sm:$0xff] %v13386_v54 }
  0xcc   : > { %v13379_v47 = vld [vmem:[%s13643_s14 + $0x1888] sm:$0xff]   ;;  %12147 = vst [vmem:[%s13648_s17 + $0x1088] sm:$0xff] %v13378_v46  ;;  %v13388_v56 = vld [vmem:[%s13643_s14 + $0x1898] sm:$0xff]   ;;  %12183 = vst [vmem:[%s13648_s17 + $0x1098] sm:$0xff] %v13387_v55 }
  0xcd   : > { %v13380_v48 = vld [vmem:[%s13643_s14 + $0x88] sm:$0xff]   ;;  %12151 = vst [vmem:[%s13648_s17 + $0x2888] sm:$0xff] %v13379_v47  ;;  %v13389_v57 = vld [vmem:[%s13643_s14 + $0x98] sm:$0xff]   ;;  %12187 = vst [vmem:[%s13648_s17 + $0x2898] sm:$0xff] %v13388_v56 }
  0xce   : > { %12155 = vst [vmem:[%s13648_s17 + $0x4088] sm:$0xff] %v13380_v48  ;;  %v13390_v58 = vld [vmem:[%s13643_s14 + $0x40a8] sm:$0xff]   ;;  %12191 = vst [vmem:[%s13648_s17 + $0x4098] sm:$0xff] %v13389_v57  ;;  %v13399_v3 = vld [vmem:[%s13643_s14 + $0x40b8] sm:$0xff]  }
  0xcf   : > { %v13391_v59 = vld [vmem:[%s13643_s14 + $0x28a8] sm:$0xff]   ;;  %12195 = vst [vmem:[%s13648_s17 + $0xa8] sm:$0xff] %v13390_v58  ;;  %v13400_v4 = vld [vmem:[%s13643_s14 + $0x28b8] sm:$0xff]   ;;  %12231 = vst [vmem:[%s13648_s17 + $0xb8] sm:$0xff] %v13399_v3 }
  0xd0   : > { %v13392_v60 = vld [vmem:[%s13643_s14 + $0x10a8] sm:$0xff]   ;;  %12199 = vst [vmem:[%s13648_s17 + $0x18a8] sm:$0xff] %v13391_v59  ;;  %v13401_v5 = vld [vmem:[%s13643_s14 + $0x10b8] sm:$0xff]   ;;  %12235 = vst [vmem:[%s13648_s17 + $0x18b8] sm:$0xff] %v13400_v4 }
  0xd1   : > { %v13393_v61 = vld [vmem:[%s13643_s14 + $0x38a8] sm:$0xff]   ;;  %12203 = vst [vmem:[%s13648_s17 + $0x30a8] sm:$0xff] %v13392_v60  ;;  %v13402_v6 = vld [vmem:[%s13643_s14 + $0x38b8] sm:$0xff]   ;;  %12239 = vst [vmem:[%s13648_s17 + $0x30b8] sm:$0xff] %v13401_v5 }
  0xd2   : > { %v13394_v62 = vld [vmem:[%s13643_s14 + $0x20a8] sm:$0xff]   ;;  %12207 = vst [vmem:[%s13648_s17 + $0x8a8] sm:$0xff] %v13393_v61  ;;  %v13403_v7 = vld [vmem:[%s13643_s14 + $0x20b8] sm:$0xff]   ;;  %12243 = vst [vmem:[%s13648_s17 + $0x8b8] sm:$0xff] %v13402_v6 }
  0xd3   : > { %v13395_v63 = vld [vmem:[%s13643_s14 + $0x8a8] sm:$0xff]   ;;  %12211 = vst [vmem:[%s13648_s17 + $0x20a8] sm:$0xff] %v13394_v62  ;;  %v13404_v8 = vld [vmem:[%s13643_s14 + $0x8b8] sm:$0xff]   ;;  %12247 = vst [vmem:[%s13648_s17 + $0x20b8] sm:$0xff] %v13403_v7 }
  0xd4   : > { %v13396_v0 = vld [vmem:[%s13643_s14 + $0x30a8] sm:$0xff]   ;;  %12215 = vst [vmem:[%s13648_s17 + $0x38a8] sm:$0xff] %v13395_v63  ;;  %v13405_v9 = vld [vmem:[%s13643_s14 + $0x30b8] sm:$0xff]   ;;  %12251 = vst [vmem:[%s13648_s17 + $0x38b8] sm:$0xff] %v13404_v8 }
  0xd5   : > { %v13397_v1 = vld [vmem:[%s13643_s14 + $0x18a8] sm:$0xff]   ;;  %12219 = vst [vmem:[%s13648_s17 + $0x10a8] sm:$0xff] %v13396_v0  ;;  %v13406_v10 = vld [vmem:[%s13643_s14 + $0x18b8] sm:$0xff]   ;;  %12255 = vst [vmem:[%s13648_s17 + $0x10b8] sm:$0xff] %v13405_v9 }
  0xd6   : > { %v13398_v2 = vld [vmem:[%s13643_s14 + $0xa8] sm:$0xff]   ;;  %12223 = vst [vmem:[%s13648_s17 + $0x28a8] sm:$0xff] %v13397_v1  ;;  %v13407_v11 = vld [vmem:[%s13643_s14 + $0xb8] sm:$0xff]   ;;  %12259 = vst [vmem:[%s13648_s17 + $0x28b8] sm:$0xff] %v13406_v10 }
  0xd7   : > { %12227 = vst [vmem:[%s13648_s17 + $0x40a8] sm:$0xff] %v13398_v2  ;;  %v13408_v12 = vld [vmem:[%s13643_s14 + $0x40c8] sm:$0xff]   ;;  %12263 = vst [vmem:[%s13648_s17 + $0x40b8] sm:$0xff] %v13407_v11  ;;  %v13417_v21 = vld [vmem:[%s13643_s14 + $0x40d8] sm:$0xff]  }
  0xd8   : > { %v13409_v13 = vld [vmem:[%s13643_s14 + $0x28c8] sm:$0xff]   ;;  %12267 = vst [vmem:[%s13648_s17 + $0xc8] sm:$0xff] %v13408_v12  ;;  %v13418_v22 = vld [vmem:[%s13643_s14 + $0x28d8] sm:$0xff]   ;;  %12303 = vst [vmem:[%s13648_s17 + $0xd8] sm:$0xff] %v13417_v21 }
  0xd9   : > { %v13410_v14 = vld [vmem:[%s13643_s14 + $0x10c8] sm:$0xff]   ;;  %12271 = vst [vmem:[%s13648_s17 + $0x18c8] sm:$0xff] %v13409_v13  ;;  %v13419_v23 = vld [vmem:[%s13643_s14 + $0x10d8] sm:$0xff]   ;;  %12307 = vst [vmem:[%s13648_s17 + $0x18d8] sm:$0xff] %v13418_v22 }
  0xda   : > { %v13411_v15 = vld [vmem:[%s13643_s14 + $0x38c8] sm:$0xff]   ;;  %12275 = vst [vmem:[%s13648_s17 + $0x30c8] sm:$0xff] %v13410_v14  ;;  %v13420_v24 = vld [vmem:[%s13643_s14 + $0x38d8] sm:$0xff]   ;;  %12311 = vst [vmem:[%s13648_s17 + $0x30d8] sm:$0xff] %v13419_v23 }
  0xdb   : > { %v13412_v16 = vld [vmem:[%s13643_s14 + $0x20c8] sm:$0xff]   ;;  %12279 = vst [vmem:[%s13648_s17 + $0x8c8] sm:$0xff] %v13411_v15  ;;  %v13421_v25 = vld [vmem:[%s13643_s14 + $0x20d8] sm:$0xff]   ;;  %12315 = vst [vmem:[%s13648_s17 + $0x8d8] sm:$0xff] %v13420_v24 }
  0xdc   : > { %v13413_v17 = vld [vmem:[%s13643_s14 + $0x8c8] sm:$0xff]   ;;  %12283 = vst [vmem:[%s13648_s17 + $0x20c8] sm:$0xff] %v13412_v16  ;;  %v13422_v26 = vld [vmem:[%s13643_s14 + $0x8d8] sm:$0xff]   ;;  %12319 = vst [vmem:[%s13648_s17 + $0x20d8] sm:$0xff] %v13421_v25 }
  0xdd   : > { %v13414_v18 = vld [vmem:[%s13643_s14 + $0x30c8] sm:$0xff]   ;;  %12287 = vst [vmem:[%s13648_s17 + $0x38c8] sm:$0xff] %v13413_v17  ;;  %v13423_v27 = vld [vmem:[%s13643_s14 + $0x30d8] sm:$0xff]   ;;  %12323 = vst [vmem:[%s13648_s17 + $0x38d8] sm:$0xff] %v13422_v26 }
  0xde   : > { %v13415_v19 = vld [vmem:[%s13643_s14 + $0x18c8] sm:$0xff]   ;;  %12291 = vst [vmem:[%s13648_s17 + $0x10c8] sm:$0xff] %v13414_v18  ;;  %v13424_v28 = vld [vmem:[%s13643_s14 + $0x18d8] sm:$0xff]   ;;  %12327 = vst [vmem:[%s13648_s17 + $0x10d8] sm:$0xff] %v13423_v27 }
  0xdf   : > { %v13416_v20 = vld [vmem:[%s13643_s14 + $0xc8] sm:$0xff]   ;;  %12295 = vst [vmem:[%s13648_s17 + $0x28c8] sm:$0xff] %v13415_v19  ;;  %v13425_v29 = vld [vmem:[%s13643_s14 + $0xd8] sm:$0xff]   ;;  %12331 = vst [vmem:[%s13648_s17 + $0x28d8] sm:$0xff] %v13424_v28 }
  0xe0   : > { %12299 = vst [vmem:[%s13648_s17 + $0x40c8] sm:$0xff] %v13416_v20  ;;  %v13426_v30 = vld [vmem:[%s13643_s14 + $0x40e8] sm:$0xff]   ;;  %12335 = vst [vmem:[%s13648_s17 + $0x40d8] sm:$0xff] %v13425_v29  ;;  %v13435_v39 = vld [vmem:[%s13643_s14 + $0x40f8] sm:$0xff]  }
  0xe1   : > { %v13427_v31 = vld [vmem:[%s13643_s14 + $0x28e8] sm:$0xff]   ;;  %12339 = vst [vmem:[%s13648_s17 + $0xe8] sm:$0xff] %v13426_v30  ;;  %v13436_v40 = vld [vmem:[%s13643_s14 + $0x28f8] sm:$0xff]   ;;  %12375 = vst [vmem:[%s13648_s17 + $0xf8] sm:$0xff] %v13435_v39 }
  0xe2   : > { %v13428_v32 = vld [vmem:[%s13643_s14 + $0x10e8] sm:$0xff]   ;;  %12343 = vst [vmem:[%s13648_s17 + $0x18e8] sm:$0xff] %v13427_v31  ;;  %v13437_v41 = vld [vmem:[%s13643_s14 + $0x10f8] sm:$0xff]   ;;  %12379 = vst [vmem:[%s13648_s17 + $0x18f8] sm:$0xff] %v13436_v40 }
  0xe3   : > { %v13429_v33 = vld [vmem:[%s13643_s14 + $0x38e8] sm:$0xff]   ;;  %12347 = vst [vmem:[%s13648_s17 + $0x30e8] sm:$0xff] %v13428_v32  ;;  %v13438_v42 = vld [vmem:[%s13643_s14 + $0x38f8] sm:$0xff]   ;;  %12383 = vst [vmem:[%s13648_s17 + $0x30f8] sm:$0xff] %v13437_v41 }
  0xe4   : > { %v13430_v34 = vld [vmem:[%s13643_s14 + $0x20e8] sm:$0xff]   ;;  %12351 = vst [vmem:[%s13648_s17 + $0x8e8] sm:$0xff] %v13429_v33  ;;  %v13439_v43 = vld [vmem:[%s13643_s14 + $0x20f8] sm:$0xff]   ;;  %12387 = vst [vmem:[%s13648_s17 + $0x8f8] sm:$0xff] %v13438_v42 }
  0xe5   : > { %v13431_v35 = vld [vmem:[%s13643_s14 + $0x8e8] sm:$0xff]   ;;  %12355 = vst [vmem:[%s13648_s17 + $0x20e8] sm:$0xff] %v13430_v34  ;;  %v13440_v44 = vld [vmem:[%s13643_s14 + $0x8f8] sm:$0xff]   ;;  %12391 = vst [vmem:[%s13648_s17 + $0x20f8] sm:$0xff] %v13439_v43 }
  0xe6   : > { %v13432_v36 = vld [vmem:[%s13643_s14 + $0x30e8] sm:$0xff]   ;;  %12359 = vst [vmem:[%s13648_s17 + $0x38e8] sm:$0xff] %v13431_v35  ;;  %v13441_v45 = vld [vmem:[%s13643_s14 + $0x30f8] sm:$0xff]   ;;  %12395 = vst [vmem:[%s13648_s17 + $0x38f8] sm:$0xff] %v13440_v44 }
  0xe7   : > { %v13433_v37 = vld [vmem:[%s13643_s14 + $0x18e8] sm:$0xff]   ;;  %12363 = vst [vmem:[%s13648_s17 + $0x10e8] sm:$0xff] %v13432_v36  ;;  %v13442_v46 = vld [vmem:[%s13643_s14 + $0x18f8] sm:$0xff]   ;;  %12399 = vst [vmem:[%s13648_s17 + $0x10f8] sm:$0xff] %v13441_v45 }
  0xe8   : > { %v13434_v38 = vld [vmem:[%s13643_s14 + $0xe8] sm:$0xff]   ;;  %12367 = vst [vmem:[%s13648_s17 + $0x28e8] sm:$0xff] %v13433_v37  ;;  %v13443_v47 = vld [vmem:[%s13643_s14 + $0xf8] sm:$0xff]   ;;  %12403 = vst [vmem:[%s13648_s17 + $0x28f8] sm:$0xff] %v13442_v46 }
  0xe9   : > { %12371 = vst [vmem:[%s13648_s17 + $0x40e8] sm:$0xff] %v13434_v38  ;;  %v13444_v48 = vld [vmem:[%s13643_s14 + $0x4108] sm:$0xff]   ;;  %12407 = vst [vmem:[%s13648_s17 + $0x40f8] sm:$0xff] %v13443_v47  ;;  %v13453_v57 = vld [vmem:[%s13643_s14 + $0x4118] sm:$0xff]  }
  0xea   : > { %v13445_v49 = vld [vmem:[%s13643_s14 + $0x2908] sm:$0xff]   ;;  %12411 = vst [vmem:[%s13648_s17 + $0x108] sm:$0xff] %v13444_v48  ;;  %v13454_v58 = vld [vmem:[%s13643_s14 + $0x2918] sm:$0xff]   ;;  %12447 = vst [vmem:[%s13648_s17 + $0x118] sm:$0xff] %v13453_v57 }
  0xeb   : > { %v13446_v50 = vld [vmem:[%s13643_s14 + $0x1108] sm:$0xff]   ;;  %12415 = vst [vmem:[%s13648_s17 + $0x1908] sm:$0xff] %v13445_v49  ;;  %v13455_v59 = vld [vmem:[%s13643_s14 + $0x1118] sm:$0xff]   ;;  %12451 = vst [vmem:[%s13648_s17 + $0x1918] sm:$0xff] %v13454_v58 }
  0xec   : > { %v13447_v51 = vld [vmem:[%s13643_s14 + $0x3908] sm:$0xff]   ;;  %12419 = vst [vmem:[%s13648_s17 + $0x3108] sm:$0xff] %v13446_v50  ;;  %v13456_v60 = vld [vmem:[%s13643_s14 + $0x3918] sm:$0xff]   ;;  %12455 = vst [vmem:[%s13648_s17 + $0x3118] sm:$0xff] %v13455_v59 }
  0xed   : > { %v13448_v52 = vld [vmem:[%s13643_s14 + $0x2108] sm:$0xff]   ;;  %12423 = vst [vmem:[%s13648_s17 + $0x908] sm:$0xff] %v13447_v51  ;;  %v13457_v61 = vld [vmem:[%s13643_s14 + $0x2118] sm:$0xff]   ;;  %12459 = vst [vmem:[%s13648_s17 + $0x918] sm:$0xff] %v13456_v60 }
  0xee   : > { %v13449_v53 = vld [vmem:[%s13643_s14 + $0x908] sm:$0xff]   ;;  %12427 = vst [vmem:[%s13648_s17 + $0x2108] sm:$0xff] %v13448_v52  ;;  %v13458_v62 = vld [vmem:[%s13643_s14 + $0x918] sm:$0xff]   ;;  %12463 = vst [vmem:[%s13648_s17 + $0x2118] sm:$0xff] %v13457_v61 }
  0xef   : > { %v13450_v54 = vld [vmem:[%s13643_s14 + $0x3108] sm:$0xff]   ;;  %12431 = vst [vmem:[%s13648_s17 + $0x3908] sm:$0xff] %v13449_v53  ;;  %v13459_v63 = vld [vmem:[%s13643_s14 + $0x3118] sm:$0xff]   ;;  %12467 = vst [vmem:[%s13648_s17 + $0x3918] sm:$0xff] %v13458_v62 }
  0xf0   : > { %v13451_v55 = vld [vmem:[%s13643_s14 + $0x1908] sm:$0xff]   ;;  %12435 = vst [vmem:[%s13648_s17 + $0x1108] sm:$0xff] %v13450_v54  ;;  %v13460_v0 = vld [vmem:[%s13643_s14 + $0x1918] sm:$0xff]   ;;  %12471 = vst [vmem:[%s13648_s17 + $0x1118] sm:$0xff] %v13459_v63 }
  0xf1   : > { %v13452_v56 = vld [vmem:[%s13643_s14 + $0x108] sm:$0xff]   ;;  %12439 = vst [vmem:[%s13648_s17 + $0x2908] sm:$0xff] %v13451_v55  ;;  %v13461_v1 = vld [vmem:[%s13643_s14 + $0x118] sm:$0xff]   ;;  %12475 = vst [vmem:[%s13648_s17 + $0x2918] sm:$0xff] %v13460_v0 }
  0xf2   : > { %12443 = vst [vmem:[%s13648_s17 + $0x4108] sm:$0xff] %v13452_v56  ;;  %v13462_v2 = vld [vmem:[%s13643_s14 + $0x4128] sm:$0xff]   ;;  %12479 = vst [vmem:[%s13648_s17 + $0x4118] sm:$0xff] %v13461_v1  ;;  %v13471_v11 = vld [vmem:[%s13643_s14 + $0x4138] sm:$0xff]  }
  0xf3   : > { %v13463_v3 = vld [vmem:[%s13643_s14 + $0x2928] sm:$0xff]   ;;  %12483 = vst [vmem:[%s13648_s17 + $0x128] sm:$0xff] %v13462_v2  ;;  %v13472_v12 = vld [vmem:[%s13643_s14 + $0x2938] sm:$0xff]   ;;  %12519 = vst [vmem:[%s13648_s17 + $0x138] sm:$0xff] %v13471_v11 }
  0xf4   : > { %v13464_v4 = vld [vmem:[%s13643_s14 + $0x1128] sm:$0xff]   ;;  %12487 = vst [vmem:[%s13648_s17 + $0x1928] sm:$0xff] %v13463_v3  ;;  %v13473_v13 = vld [vmem:[%s13643_s14 + $0x1138] sm:$0xff]   ;;  %12523 = vst [vmem:[%s13648_s17 + $0x1938] sm:$0xff] %v13472_v12 }
  0xf5   : > { %v13465_v5 = vld [vmem:[%s13643_s14 + $0x3928] sm:$0xff]   ;;  %12491 = vst [vmem:[%s13648_s17 + $0x3128] sm:$0xff] %v13464_v4  ;;  %v13474_v14 = vld [vmem:[%s13643_s14 + $0x3938] sm:$0xff]   ;;  %12527 = vst [vmem:[%s13648_s17 + $0x3138] sm:$0xff] %v13473_v13 }
  0xf6   : > { %v13466_v6 = vld [vmem:[%s13643_s14 + $0x2128] sm:$0xff]   ;;  %12495 = vst [vmem:[%s13648_s17 + $0x928] sm:$0xff] %v13465_v5  ;;  %v13475_v15 = vld [vmem:[%s13643_s14 + $0x2138] sm:$0xff]   ;;  %12531 = vst [vmem:[%s13648_s17 + $0x938] sm:$0xff] %v13474_v14 }
  0xf7   : > { %v13467_v7 = vld [vmem:[%s13643_s14 + $0x928] sm:$0xff]   ;;  %12499 = vst [vmem:[%s13648_s17 + $0x2128] sm:$0xff] %v13466_v6  ;;  %v13476_v16 = vld [vmem:[%s13643_s14 + $0x938] sm:$0xff]   ;;  %12535 = vst [vmem:[%s13648_s17 + $0x2138] sm:$0xff] %v13475_v15 }
  0xf8   : > { %v13468_v8 = vld [vmem:[%s13643_s14 + $0x3128] sm:$0xff]   ;;  %12503 = vst [vmem:[%s13648_s17 + $0x3928] sm:$0xff] %v13467_v7  ;;  %v13477_v17 = vld [vmem:[%s13643_s14 + $0x3138] sm:$0xff]   ;;  %12539 = vst [vmem:[%s13648_s17 + $0x3938] sm:$0xff] %v13476_v16 }
  0xf9   : > { %v13469_v9 = vld [vmem:[%s13643_s14 + $0x1928] sm:$0xff]   ;;  %12507 = vst [vmem:[%s13648_s17 + $0x1128] sm:$0xff] %v13468_v8  ;;  %v13478_v18 = vld [vmem:[%s13643_s14 + $0x1938] sm:$0xff]   ;;  %12543 = vst [vmem:[%s13648_s17 + $0x1138] sm:$0xff] %v13477_v17 }
  0xfa   : > { %v13470_v10 = vld [vmem:[%s13643_s14 + $0x128] sm:$0xff]   ;;  %12511 = vst [vmem:[%s13648_s17 + $0x2928] sm:$0xff] %v13469_v9  ;;  %v13479_v19 = vld [vmem:[%s13643_s14 + $0x138] sm:$0xff]   ;;  %12547 = vst [vmem:[%s13648_s17 + $0x2938] sm:$0xff] %v13478_v18 }
  0xfb   : > { %12515 = vst [vmem:[%s13648_s17 + $0x4128] sm:$0xff] %v13470_v10  ;;  %v13480_v20 = vld [vmem:[%s13643_s14 + $0x4148] sm:$0xff]   ;;  %12551 = vst [vmem:[%s13648_s17 + $0x4138] sm:$0xff] %v13479_v19  ;;  %v13489_v29 = vld [vmem:[%s13643_s14 + $0x4158] sm:$0xff]  }
  0xfc   : > { %v13481_v21 = vld [vmem:[%s13643_s14 + $0x2948] sm:$0xff]   ;;  %12555 = vst [vmem:[%s13648_s17 + $0x148] sm:$0xff] %v13480_v20  ;;  %v13490_v30 = vld [vmem:[%s13643_s14 + $0x2958] sm:$0xff]   ;;  %12591 = vst [vmem:[%s13648_s17 + $0x158] sm:$0xff] %v13489_v29 }
  0xfd   : > { %v13482_v22 = vld [vmem:[%s13643_s14 + $0x1148] sm:$0xff]   ;;  %12559 = vst [vmem:[%s13648_s17 + $0x1948] sm:$0xff] %v13481_v21  ;;  %v13491_v31 = vld [vmem:[%s13643_s14 + $0x1158] sm:$0xff]   ;;  %12595 = vst [vmem:[%s13648_s17 + $0x1958] sm:$0xff] %v13490_v30 }
  0xfe   : > { %v13483_v23 = vld [vmem:[%s13643_s14 + $0x3948] sm:$0xff]   ;;  %12563 = vst [vmem:[%s13648_s17 + $0x3148] sm:$0xff] %v13482_v22  ;;  %v13492_v32 = vld [vmem:[%s13643_s14 + $0x3958] sm:$0xff]   ;;  %12599 = vst [vmem:[%s13648_s17 + $0x3158] sm:$0xff] %v13491_v31 }
  0xff   : > { %v13484_v24 = vld [vmem:[%s13643_s14 + $0x2148] sm:$0xff]   ;;  %12567 = vst [vmem:[%s13648_s17 + $0x948] sm:$0xff] %v13483_v23  ;;  %v13493_v33 = vld [vmem:[%s13643_s14 + $0x2158] sm:$0xff]   ;;  %12603 = vst [vmem:[%s13648_s17 + $0x958] sm:$0xff] %v13492_v32 }
 0x100   : > { %v13485_v25 = vld [vmem:[%s13643_s14 + $0x948] sm:$0xff]   ;;  %12571 = vst [vmem:[%s13648_s17 + $0x2148] sm:$0xff] %v13484_v24  ;;  %v13494_v34 = vld [vmem:[%s13643_s14 + $0x958] sm:$0xff]   ;;  %12607 = vst [vmem:[%s13648_s17 + $0x2158] sm:$0xff] %v13493_v33 }
 0x101   : > { %v13486_v26 = vld [vmem:[%s13643_s14 + $0x3148] sm:$0xff]   ;;  %12575 = vst [vmem:[%s13648_s17 + $0x3948] sm:$0xff] %v13485_v25  ;;  %v13495_v35 = vld [vmem:[%s13643_s14 + $0x3158] sm:$0xff]   ;;  %12611 = vst [vmem:[%s13648_s17 + $0x3958] sm:$0xff] %v13494_v34 }
 0x102   : > { %v13487_v27 = vld [vmem:[%s13643_s14 + $0x1948] sm:$0xff]   ;;  %12579 = vst [vmem:[%s13648_s17 + $0x1148] sm:$0xff] %v13486_v26  ;;  %v13496_v36 = vld [vmem:[%s13643_s14 + $0x1958] sm:$0xff]   ;;  %12615 = vst [vmem:[%s13648_s17 + $0x1158] sm:$0xff] %v13495_v35 }
 0x103   : > { %v13488_v28 = vld [vmem:[%s13643_s14 + $0x148] sm:$0xff]   ;;  %12583 = vst [vmem:[%s13648_s17 + $0x2948] sm:$0xff] %v13487_v27  ;;  %v13497_v37 = vld [vmem:[%s13643_s14 + $0x158] sm:$0xff]   ;;  %12619 = vst [vmem:[%s13648_s17 + $0x2958] sm:$0xff] %v13496_v36 }
 0x104   : > { %12587 = vst [vmem:[%s13648_s17 + $0x4148] sm:$0xff] %v13488_v28  ;;  %v13498_v38 = vld [vmem:[%s13643_s14 + $0x4168] sm:$0xff]   ;;  %12623 = vst [vmem:[%s13648_s17 + $0x4158] sm:$0xff] %v13497_v37  ;;  %v13507_v47 = vld [vmem:[%s13643_s14 + $0x4178] sm:$0xff]  }
 0x105   : > { %v13499_v39 = vld [vmem:[%s13643_s14 + $0x2968] sm:$0xff]   ;;  %12627 = vst [vmem:[%s13648_s17 + $0x168] sm:$0xff] %v13498_v38  ;;  %v13508_v48 = vld [vmem:[%s13643_s14 + $0x2978] sm:$0xff]   ;;  %12663 = vst [vmem:[%s13648_s17 + $0x178] sm:$0xff] %v13507_v47 }
 0x106   : > { %v13500_v40 = vld [vmem:[%s13643_s14 + $0x1168] sm:$0xff]   ;;  %12631 = vst [vmem:[%s13648_s17 + $0x1968] sm:$0xff] %v13499_v39  ;;  %v13509_v49 = vld [vmem:[%s13643_s14 + $0x1178] sm:$0xff]   ;;  %12667 = vst [vmem:[%s13648_s17 + $0x1978] sm:$0xff] %v13508_v48 }
 0x107   : > { %v13501_v41 = vld [vmem:[%s13643_s14 + $0x3968] sm:$0xff]   ;;  %12635 = vst [vmem:[%s13648_s17 + $0x3168] sm:$0xff] %v13500_v40  ;;  %v13510_v50 = vld [vmem:[%s13643_s14 + $0x3978] sm:$0xff]   ;;  %12671 = vst [vmem:[%s13648_s17 + $0x3178] sm:$0xff] %v13509_v49 }
 0x108   : > { %v13502_v42 = vld [vmem:[%s13643_s14 + $0x2168] sm:$0xff]   ;;  %12639 = vst [vmem:[%s13648_s17 + $0x968] sm:$0xff] %v13501_v41  ;;  %v13511_v51 = vld [vmem:[%s13643_s14 + $0x2178] sm:$0xff]   ;;  %12675 = vst [vmem:[%s13648_s17 + $0x978] sm:$0xff] %v13510_v50 }
 0x109   : > { %v13503_v43 = vld [vmem:[%s13643_s14 + $0x968] sm:$0xff]   ;;  %12643 = vst [vmem:[%s13648_s17 + $0x2168] sm:$0xff] %v13502_v42  ;;  %v13512_v52 = vld [vmem:[%s13643_s14 + $0x978] sm:$0xff]   ;;  %12679 = vst [vmem:[%s13648_s17 + $0x2178] sm:$0xff] %v13511_v51 }
 0x10a   : > { %v13504_v44 = vld [vmem:[%s13643_s14 + $0x3168] sm:$0xff]   ;;  %12647 = vst [vmem:[%s13648_s17 + $0x3968] sm:$0xff] %v13503_v43  ;;  %v13513_v53 = vld [vmem:[%s13643_s14 + $0x3178] sm:$0xff]   ;;  %12683 = vst [vmem:[%s13648_s17 + $0x3978] sm:$0xff] %v13512_v52 }
 0x10b   : > { %v13505_v45 = vld [vmem:[%s13643_s14 + $0x1968] sm:$0xff]   ;;  %12651 = vst [vmem:[%s13648_s17 + $0x1168] sm:$0xff] %v13504_v44  ;;  %v13514_v54 = vld [vmem:[%s13643_s14 + $0x1978] sm:$0xff]   ;;  %12687 = vst [vmem:[%s13648_s17 + $0x1178] sm:$0xff] %v13513_v53 }
 0x10c   : > { %v13506_v46 = vld [vmem:[%s13643_s14 + $0x168] sm:$0xff]   ;;  %12655 = vst [vmem:[%s13648_s17 + $0x2968] sm:$0xff] %v13505_v45  ;;  %v13515_v55 = vld [vmem:[%s13643_s14 + $0x178] sm:$0xff]   ;;  %12691 = vst [vmem:[%s13648_s17 + $0x2978] sm:$0xff] %v13514_v54 }
 0x10d   : > { %12659 = vst [vmem:[%s13648_s17 + $0x4168] sm:$0xff] %v13506_v46  ;;  %v13516_v56 = vld [vmem:[%s13643_s14 + $0x4188] sm:$0xff]   ;;  %12695 = vst [vmem:[%s13648_s17 + $0x4178] sm:$0xff] %v13515_v55  ;;  %v13525_v1 = vld [vmem:[%s13643_s14 + $0x4198] sm:$0xff]  }
 0x10e   : > { %v13517_v57 = vld [vmem:[%s13643_s14 + $0x2988] sm:$0xff]   ;;  %12699 = vst [vmem:[%s13648_s17 + $0x188] sm:$0xff] %v13516_v56  ;;  %v13526_v2 = vld [vmem:[%s13643_s14 + $0x2998] sm:$0xff]   ;;  %12735 = vst [vmem:[%s13648_s17 + $0x198] sm:$0xff] %v13525_v1 }
 0x10f   : > { %v13518_v58 = vld [vmem:[%s13643_s14 + $0x1188] sm:$0xff]   ;;  %12703 = vst [vmem:[%s13648_s17 + $0x1988] sm:$0xff] %v13517_v57  ;;  %v13527_v3 = vld [vmem:[%s13643_s14 + $0x1198] sm:$0xff]   ;;  %12739 = vst [vmem:[%s13648_s17 + $0x1998] sm:$0xff] %v13526_v2 }
 0x110   : > { %v13519_v59 = vld [vmem:[%s13643_s14 + $0x3988] sm:$0xff]   ;;  %12707 = vst [vmem:[%s13648_s17 + $0x3188] sm:$0xff] %v13518_v58  ;;  %v13528_v4 = vld [vmem:[%s13643_s14 + $0x3998] sm:$0xff]   ;;  %12743 = vst [vmem:[%s13648_s17 + $0x3198] sm:$0xff] %v13527_v3 }
 0x111   : > { %v13520_v60 = vld [vmem:[%s13643_s14 + $0x2188] sm:$0xff]   ;;  %12711 = vst [vmem:[%s13648_s17 + $0x988] sm:$0xff] %v13519_v59  ;;  %v13529_v5 = vld [vmem:[%s13643_s14 + $0x2198] sm:$0xff]   ;;  %12747 = vst [vmem:[%s13648_s17 + $0x998] sm:$0xff] %v13528_v4 }
 0x112   : > { %v13521_v61 = vld [vmem:[%s13643_s14 + $0x988] sm:$0xff]   ;;  %12715 = vst [vmem:[%s13648_s17 + $0x2188] sm:$0xff] %v13520_v60  ;;  %v13530_v6 = vld [vmem:[%s13643_s14 + $0x998] sm:$0xff]   ;;  %12751 = vst [vmem:[%s13648_s17 + $0x2198] sm:$0xff] %v13529_v5 }
 0x113   : > { %v13522_v62 = vld [vmem:[%s13643_s14 + $0x3188] sm:$0xff]   ;;  %12719 = vst [vmem:[%s13648_s17 + $0x3988] sm:$0xff] %v13521_v61  ;;  %v13531_v7 = vld [vmem:[%s13643_s14 + $0x3198] sm:$0xff]   ;;  %12755 = vst [vmem:[%s13648_s17 + $0x3998] sm:$0xff] %v13530_v6 }
 0x114   : > { %v13523_v63 = vld [vmem:[%s13643_s14 + $0x1988] sm:$0xff]   ;;  %12723 = vst [vmem:[%s13648_s17 + $0x1188] sm:$0xff] %v13522_v62  ;;  %v13532_v8 = vld [vmem:[%s13643_s14 + $0x1998] sm:$0xff]   ;;  %12759 = vst [vmem:[%s13648_s17 + $0x1198] sm:$0xff] %v13531_v7 }
 0x115   : > { %v13524_v0 = vld [vmem:[%s13643_s14 + $0x188] sm:$0xff]   ;;  %12727 = vst [vmem:[%s13648_s17 + $0x2988] sm:$0xff] %v13523_v63  ;;  %v13533_v9 = vld [vmem:[%s13643_s14 + $0x198] sm:$0xff]   ;;  %12763 = vst [vmem:[%s13648_s17 + $0x2998] sm:$0xff] %v13532_v8 }
 0x116   : > { %12731 = vst [vmem:[%s13648_s17 + $0x4188] sm:$0xff] %v13524_v0  ;;  %v13534_v10 = vld [vmem:[%s13643_s14 + $0x41a8] sm:$0xff]   ;;  %12767 = vst [vmem:[%s13648_s17 + $0x4198] sm:$0xff] %v13533_v9  ;;  %v13543_v19 = vld [vmem:[%s13643_s14 + $0x41b8] sm:$0xff]  }
 0x117   : > { %v13535_v11 = vld [vmem:[%s13643_s14 + $0x29a8] sm:$0xff]   ;;  %12771 = vst [vmem:[%s13648_s17 + $0x1a8] sm:$0xff] %v13534_v10  ;;  %v13544_v20 = vld [vmem:[%s13643_s14 + $0x29b8] sm:$0xff]   ;;  %12807 = vst [vmem:[%s13648_s17 + $0x1b8] sm:$0xff] %v13543_v19 }
 0x118   : > { %v13536_v12 = vld [vmem:[%s13643_s14 + $0x11a8] sm:$0xff]   ;;  %12775 = vst [vmem:[%s13648_s17 + $0x19a8] sm:$0xff] %v13535_v11  ;;  %v13545_v21 = vld [vmem:[%s13643_s14 + $0x11b8] sm:$0xff]   ;;  %12811 = vst [vmem:[%s13648_s17 + $0x19b8] sm:$0xff] %v13544_v20 }
 0x119   : > { %v13537_v13 = vld [vmem:[%s13643_s14 + $0x39a8] sm:$0xff]   ;;  %12779 = vst [vmem:[%s13648_s17 + $0x31a8] sm:$0xff] %v13536_v12  ;;  %v13546_v22 = vld [vmem:[%s13643_s14 + $0x39b8] sm:$0xff]   ;;  %12815 = vst [vmem:[%s13648_s17 + $0x31b8] sm:$0xff] %v13545_v21 }
 0x11a   : > { %v13538_v14 = vld [vmem:[%s13643_s14 + $0x21a8] sm:$0xff]   ;;  %12783 = vst [vmem:[%s13648_s17 + $0x9a8] sm:$0xff] %v13537_v13  ;;  %v13547_v23 = vld [vmem:[%s13643_s14 + $0x21b8] sm:$0xff]   ;;  %12819 = vst [vmem:[%s13648_s17 + $0x9b8] sm:$0xff] %v13546_v22 }
 0x11b   : > { %v13539_v15 = vld [vmem:[%s13643_s14 + $0x9a8] sm:$0xff]   ;;  %12787 = vst [vmem:[%s13648_s17 + $0x21a8] sm:$0xff] %v13538_v14  ;;  %v13548_v24 = vld [vmem:[%s13643_s14 + $0x9b8] sm:$0xff]   ;;  %12823 = vst [vmem:[%s13648_s17 + $0x21b8] sm:$0xff] %v13547_v23 }
 0x11c   : > { %v13540_v16 = vld [vmem:[%s13643_s14 + $0x31a8] sm:$0xff]   ;;  %12791 = vst [vmem:[%s13648_s17 + $0x39a8] sm:$0xff] %v13539_v15  ;;  %v13549_v25 = vld [vmem:[%s13643_s14 + $0x31b8] sm:$0xff]   ;;  %12827 = vst [vmem:[%s13648_s17 + $0x39b8] sm:$0xff] %v13548_v24 }
 0x11d   : > { %v13541_v17 = vld [vmem:[%s13643_s14 + $0x19a8] sm:$0xff]   ;;  %12795 = vst [vmem:[%s13648_s17 + $0x11a8] sm:$0xff] %v13540_v16  ;;  %v13550_v26 = vld [vmem:[%s13643_s14 + $0x19b8] sm:$0xff]   ;;  %12831 = vst [vmem:[%s13648_s17 + $0x11b8] sm:$0xff] %v13549_v25 }
 0x11e   : > { %v13542_v18 = vld [vmem:[%s13643_s14 + $0x1a8] sm:$0xff]   ;;  %12799 = vst [vmem:[%s13648_s17 + $0x29a8] sm:$0xff] %v13541_v17  ;;  %v13551_v27 = vld [vmem:[%s13643_s14 + $0x1b8] sm:$0xff]   ;;  %12835 = vst [vmem:[%s13648_s17 + $0x29b8] sm:$0xff] %v13550_v26 }
 0x11f   : > { %12803 = vst [vmem:[%s13648_s17 + $0x41a8] sm:$0xff] %v13542_v18  ;;  %v13552_v28 = vld [vmem:[%s13643_s14 + $0x41c8] sm:$0xff]   ;;  %12839 = vst [vmem:[%s13648_s17 + $0x41b8] sm:$0xff] %v13551_v27  ;;  %v13561_v37 = vld [vmem:[%s13643_s14 + $0x41d8] sm:$0xff]  }
 0x120   : > { %v13553_v29 = vld [vmem:[%s13643_s14 + $0x29c8] sm:$0xff]   ;;  %12843 = vst [vmem:[%s13648_s17 + $0x1c8] sm:$0xff] %v13552_v28  ;;  %v13562_v38 = vld [vmem:[%s13643_s14 + $0x29d8] sm:$0xff]   ;;  %12879 = vst [vmem:[%s13648_s17 + $0x1d8] sm:$0xff] %v13561_v37 }
 0x121   : > { %v13554_v30 = vld [vmem:[%s13643_s14 + $0x11c8] sm:$0xff]   ;;  %12847 = vst [vmem:[%s13648_s17 + $0x19c8] sm:$0xff] %v13553_v29  ;;  %v13563_v39 = vld [vmem:[%s13643_s14 + $0x11d8] sm:$0xff]   ;;  %12883 = vst [vmem:[%s13648_s17 + $0x19d8] sm:$0xff] %v13562_v38 }
 0x122   : > { %v13555_v31 = vld [vmem:[%s13643_s14 + $0x39c8] sm:$0xff]   ;;  %12851 = vst [vmem:[%s13648_s17 + $0x31c8] sm:$0xff] %v13554_v30  ;;  %v13564_v40 = vld [vmem:[%s13643_s14 + $0x39d8] sm:$0xff]   ;;  %12887 = vst [vmem:[%s13648_s17 + $0x31d8] sm:$0xff] %v13563_v39 }
 0x123   : > { %v13556_v32 = vld [vmem:[%s13643_s14 + $0x21c8] sm:$0xff]   ;;  %12855 = vst [vmem:[%s13648_s17 + $0x9c8] sm:$0xff] %v13555_v31  ;;  %v13565_v41 = vld [vmem:[%s13643_s14 + $0x21d8] sm:$0xff]   ;;  %12891 = vst [vmem:[%s13648_s17 + $0x9d8] sm:$0xff] %v13564_v40 }
 0x124   : > { %v13557_v33 = vld [vmem:[%s13643_s14 + $0x9c8] sm:$0xff]   ;;  %12859 = vst [vmem:[%s13648_s17 + $0x21c8] sm:$0xff] %v13556_v32  ;;  %v13566_v42 = vld [vmem:[%s13643_s14 + $0x9d8] sm:$0xff]   ;;  %12895 = vst [vmem:[%s13648_s17 + $0x21d8] sm:$0xff] %v13565_v41 }
 0x125   : > { %v13558_v34 = vld [vmem:[%s13643_s14 + $0x31c8] sm:$0xff]   ;;  %12863 = vst [vmem:[%s13648_s17 + $0x39c8] sm:$0xff] %v13557_v33  ;;  %v13567_v43 = vld [vmem:[%s13643_s14 + $0x31d8] sm:$0xff]   ;;  %12899 = vst [vmem:[%s13648_s17 + $0x39d8] sm:$0xff] %v13566_v42 }
 0x126   : > { %v13559_v35 = vld [vmem:[%s13643_s14 + $0x19c8] sm:$0xff]   ;;  %12867 = vst [vmem:[%s13648_s17 + $0x11c8] sm:$0xff] %v13558_v34  ;;  %v13568_v44 = vld [vmem:[%s13643_s14 + $0x19d8] sm:$0xff]   ;;  %12903 = vst [vmem:[%s13648_s17 + $0x11d8] sm:$0xff] %v13567_v43 }
 0x127   : > { %v13560_v36 = vld [vmem:[%s13643_s14 + $0x1c8] sm:$0xff]   ;;  %12871 = vst [vmem:[%s13648_s17 + $0x29c8] sm:$0xff] %v13559_v35  ;;  %v13569_v45 = vld [vmem:[%s13643_s14 + $0x1d8] sm:$0xff]   ;;  %12907 = vst [vmem:[%s13648_s17 + $0x29d8] sm:$0xff] %v13568_v44 }
 0x128   : > { %12875 = vst [vmem:[%s13648_s17 + $0x41c8] sm:$0xff] %v13560_v36  ;;  %v13570_v46 = vld [vmem:[%s13643_s14 + $0x41e8] sm:$0xff]   ;;  %12911 = vst [vmem:[%s13648_s17 + $0x41d8] sm:$0xff] %v13569_v45  ;;  %v13579_v55 = vld [vmem:[%s13643_s14 + $0x41f8] sm:$0xff]  }
 0x129   : > { %v13571_v47 = vld [vmem:[%s13643_s14 + $0x29e8] sm:$0xff]   ;;  %12915 = vst [vmem:[%s13648_s17 + $0x1e8] sm:$0xff] %v13570_v46  ;;  %v13580_v56 = vld [vmem:[%s13643_s14 + $0x29f8] sm:$0xff]   ;;  %12951 = vst [vmem:[%s13648_s17 + $0x1f8] sm:$0xff] %v13579_v55 }
 0x12a   : > { %v13572_v48 = vld [vmem:[%s13643_s14 + $0x11e8] sm:$0xff]   ;;  %12919 = vst [vmem:[%s13648_s17 + $0x19e8] sm:$0xff] %v13571_v47  ;;  %v13581_v57 = vld [vmem:[%s13643_s14 + $0x11f8] sm:$0xff]   ;;  %12955 = vst [vmem:[%s13648_s17 + $0x19f8] sm:$0xff] %v13580_v56 }
 0x12b   : > { %v13573_v49 = vld [vmem:[%s13643_s14 + $0x39e8] sm:$0xff]   ;;  %12923 = vst [vmem:[%s13648_s17 + $0x31e8] sm:$0xff] %v13572_v48  ;;  %v13582_v58 = vld [vmem:[%s13643_s14 + $0x39f8] sm:$0xff]   ;;  %12959 = vst [vmem:[%s13648_s17 + $0x31f8] sm:$0xff] %v13581_v57 }
 0x12c   : > { %v13574_v50 = vld [vmem:[%s13643_s14 + $0x21e8] sm:$0xff]   ;;  %12927 = vst [vmem:[%s13648_s17 + $0x9e8] sm:$0xff] %v13573_v49  ;;  %v13583_v59 = vld [vmem:[%s13643_s14 + $0x21f8] sm:$0xff]   ;;  %12963 = vst [vmem:[%s13648_s17 + $0x9f8] sm:$0xff] %v13582_v58 }
 0x12d   : > { %v13575_v51 = vld [vmem:[%s13643_s14 + $0x9e8] sm:$0xff]   ;;  %12931 = vst [vmem:[%s13648_s17 + $0x21e8] sm:$0xff] %v13574_v50  ;;  %v13584_v60 = vld [vmem:[%s13643_s14 + $0x9f8] sm:$0xff]   ;;  %12967 = vst [vmem:[%s13648_s17 + $0x21f8] sm:$0xff] %v13583_v59 }
 0x12e   : > { %v13576_v52 = vld [vmem:[%s13643_s14 + $0x31e8] sm:$0xff]   ;;  %12935 = vst [vmem:[%s13648_s17 + $0x39e8] sm:$0xff] %v13575_v51  ;;  %v13585_v61 = vld [vmem:[%s13643_s14 + $0x31f8] sm:$0xff]   ;;  %12971 = vst [vmem:[%s13648_s17 + $0x39f8] sm:$0xff] %v13584_v60 }
 0x12f   : > { %v13577_v53 = vld [vmem:[%s13643_s14 + $0x19e8] sm:$0xff]   ;;  %12939 = vst [vmem:[%s13648_s17 + $0x11e8] sm:$0xff] %v13576_v52  ;;  %v13586_v62 = vld [vmem:[%s13643_s14 + $0x19f8] sm:$0xff]   ;;  %12975 = vst [vmem:[%s13648_s17 + $0x11f8] sm:$0xff] %v13585_v61 }
 0x130   : > { %v13578_v54 = vld [vmem:[%s13643_s14 + $0x1e8] sm:$0xff]   ;;  %12943 = vst [vmem:[%s13648_s17 + $0x29e8] sm:$0xff] %v13577_v53  ;;  %v13587_v63 = vld [vmem:[%s13643_s14 + $0x1f8] sm:$0xff]   ;;  %12979 = vst [vmem:[%s13648_s17 + $0x29f8] sm:$0xff] %v13586_v62 }
 0x131   : > { %12947 = vst [vmem:[%s13648_s17 + $0x41e8] sm:$0xff] %v13578_v54  ;;  %12983 = vst [vmem:[%s13648_s17 + $0x41f8] sm:$0xff] %v13587_v63 }
 0x132 PF: > { %s7_s8 = sadd.s32 1, %s13610_s8   ;;  %s14813_s6 = smov %s13606_s7 }
 0x133   : > { %p4_p5 = scmp.ge.s32.totalorder %s7_s8, 6   ;;  %s14814_s7 = smov %s14816_s9 }
 0x135   :  { %6 = sbr.rel (!%p4_p5) target bundleno = 2 (0x2), region = 2919 }

// kernel: reverse.17
= control target key start
LH: loop header
LB: loop body
LE: loop exit
PB: predicated region body
PF: predicated region fallthrough
CT: control target
= control target key end

     0   :  { %s33417_s0 = inlined_call_operand.vmem [shape: bf16[3,3,512,512], index: 0, kind: input, shape index: {}]   ;;  %s33418_s1 = inlined_call_operand.vmem [shape: bf16[3,3,512,512], index: 1, kind: output, shape index: {}]  }
   0x1   :  { %v25343_v0 = vld [vmem:[%s33417_s0 + $0x2000] sm:$0xff]   ;;  %v25352_v9 = vld [vmem:[%s33417_s0 + $0x2010] sm:$0xff]  }
   0x2   :  { %v25344_v1 = vld [vmem:[%s33417_s0 + $0x1400] sm:$0xff]   ;;  %20162 = vst [vmem:[%s33418_s1] sm:$0xff] %v25343_v0  ;;  %v25353_v10 = vld [vmem:[%s33417_s0 + $0x1410] sm:$0xff]   ;;  %20198 = vst [vmem:[%s33418_s1 + $0x10] sm:$0xff] %v25352_v9 }
   0x3   :  { %v25345_v2 = vld [vmem:[%s33417_s0 + $0x800] sm:$0xff]   ;;  %20166 = vst [vmem:[%s33418_s1 + $0xc00] sm:$0xff] %v25344_v1  ;;  %v25354_v11 = vld [vmem:[%s33417_s0 + $0x810] sm:$0xff]   ;;  %20202 = vst [vmem:[%s33418_s1 + $0xc10] sm:$0xff] %v25353_v10 }
   0x4   :  { %v25346_v3 = vld [vmem:[%s33417_s0 + $0x1c00] sm:$0xff]   ;;  %20170 = vst [vmem:[%s33418_s1 + $0x1800] sm:$0xff] %v25345_v2  ;;  %v25355_v12 = vld [vmem:[%s33417_s0 + $0x1c10] sm:$0xff]   ;;  %20206 = vst [vmem:[%s33418_s1 + $0x1810] sm:$0xff] %v25354_v11 }
   0x5   :  { %v25347_v4 = vld [vmem:[%s33417_s0 + $0x1000] sm:$0xff]   ;;  %20174 = vst [vmem:[%s33418_s1 + $0x400] sm:$0xff] %v25346_v3  ;;  %v25356_v13 = vld [vmem:[%s33417_s0 + $0x1010] sm:$0xff]   ;;  %20210 = vst [vmem:[%s33418_s1 + $0x410] sm:$0xff] %v25355_v12 }
   0x6   :  { %v25348_v5 = vld [vmem:[%s33417_s0 + $0x400] sm:$0xff]   ;;  %20178 = vst [vmem:[%s33418_s1 + $0x1000] sm:$0xff] %v25347_v4  ;;  %v25357_v14 = vld [vmem:[%s33417_s0 + $0x410] sm:$0xff]   ;;  %20214 = vst [vmem:[%s33418_s1 + $0x1010] sm:$0xff] %v25356_v13 }
   0x7   :  { %v25349_v6 = vld [vmem:[%s33417_s0 + $0x1800] sm:$0xff]   ;;  %20182 = vst [vmem:[%s33418_s1 + $0x1c00] sm:$0xff] %v25348_v5  ;;  %v25358_v15 = vld [vmem:[%s33417_s0 + $0x1810] sm:$0xff]   ;;  %20218 = vst [vmem:[%s33418_s1 + $0x1c10] sm:$0xff] %v25357_v14 }
   0x8   :  { %v25350_v7 = vld [vmem:[%s33417_s0 + $0xc00] sm:$0xff]   ;;  %20186 = vst [vmem:[%s33418_s1 + $0x800] sm:$0xff] %v25349_v6  ;;  %v25359_v16 = vld [vmem:[%s33417_s0 + $0xc10] sm:$0xff]   ;;  %20222 = vst [vmem:[%s33418_s1 + $0x810] sm:$0xff] %v25358_v15 }
   0x9   :  { %v25351_v8 = vld [vmem:[%s33417_s0] sm:$0xff]   ;;  %20190 = vst [vmem:[%s33418_s1 + $0x1400] sm:$0xff] %v25350_v7  ;;  %v25360_v17 = vld [vmem:[%s33417_s0 + $0x10] sm:$0xff]   ;;  %20226 = vst [vmem:[%s33418_s1 + $0x1410] sm:$0xff] %v25359_v16 }
   0xa   :  { %20194 = vst [vmem:[%s33418_s1 + $0x2000] sm:$0xff] %v25351_v8  ;;  %v25361_v18 = vld [vmem:[%s33417_s0 + $0x2020] sm:$0xff]   ;;  %20230 = vst [vmem:[%s33418_s1 + $0x2010] sm:$0xff] %v25360_v17  ;;  %v25370_v27 = vld [vmem:[%s33417_s0 + $0x2030] sm:$0xff]  }
   0xb   :  { %v25362_v19 = vld [vmem:[%s33417_s0 + $0x1420] sm:$0xff]   ;;  %20234 = vst [vmem:[%s33418_s1 + $0x20] sm:$0xff] %v25361_v18  ;;  %v25371_v28 = vld [vmem:[%s33417_s0 + $0x1430] sm:$0xff]   ;;  %20270 = vst [vmem:[%s33418_s1 + $0x30] sm:$0xff] %v25370_v27 }
   0xc   :  { %v25363_v20 = vld [vmem:[%s33417_s0 + $0x820] sm:$0xff]   ;;  %20238 = vst [vmem:[%s33418_s1 + $0xc20] sm:$0xff] %v25362_v19  ;;  %v25372_v29 = vld [vmem:[%s33417_s0 + $0x830] sm:$0xff]   ;;  %20274 = vst [vmem:[%s33418_s1 + $0xc30] sm:$0xff] %v25371_v28 }
   0xd   :  { %v25364_v21 = vld [vmem:[%s33417_s0 + $0x1c20] sm:$0xff]   ;;  %20242 = vst [vmem:[%s33418_s1 + $0x1820] sm:$0xff] %v25363_v20  ;;  %v25373_v30 = vld [vmem:[%s33417_s0 + $0x1c30] sm:$0xff]   ;;  %20278 = vst [vmem:[%s33418_s1 + $0x1830] sm:$0xff] %v25372_v29 }
   0xe   :  { %v25365_v22 = vld [vmem:[%s33417_s0 + $0x1020] sm:$0xff]   ;;  %20246 = vst [vmem:[%s33418_s1 + $0x420] sm:$0xff] %v25364_v21  ;;  %v25374_v31 = vld [vmem:[%s33417_s0 + $0x1030] sm:$0xff]   ;;  %20282 = vst [vmem:[%s33418_s1 + $0x430] sm:$0xff] %v25373_v30 }
   0xf   :  { %v25366_v23 = vld [vmem:[%s33417_s0 + $0x420] sm:$0xff]   ;;  %20250 = vst [vmem:[%s33418_s1 + $0x1020] sm:$0xff] %v25365_v22  ;;  %v25375_v32 = vld [vmem:[%s33417_s0 + $0x430] sm:$0xff]   ;;  %20286 = vst [vmem:[%s33418_s1 + $0x1030] sm:$0xff] %v25374_v31 }
  0x10   :  { %v25367_v24 = vld [vmem:[%s33417_s0 + $0x1820] sm:$0xff]   ;;  %20254 = vst [vmem:[%s33418_s1 + $0x1c20] sm:$0xff] %v25366_v23  ;;  %v25376_v33 = vld [vmem:[%s33417_s0 + $0x1830] sm:$0xff]   ;;  %20290 = vst [vmem:[%s33418_s1 + $0x1c30] sm:$0xff] %v25375_v32 }
  0x11   :  { %v25368_v25 = vld [vmem:[%s33417_s0 + $0xc20] sm:$0xff]   ;;  %20258 = vst [vmem:[%s33418_s1 + $0x820] sm:$0xff] %v25367_v24  ;;  %v25377_v34 = vld [vmem:[%s33417_s0 + $0xc30] sm:$0xff]   ;;  %20294 = vst [vmem:[%s33418_s1 + $0x830] sm:$0xff] %v25376_v33 }
  0x12   :  { %v25369_v26 = vld [vmem:[%s33417_s0 + $0x20] sm:$0xff]   ;;  %20262 = vst [vmem:[%s33418_s1 + $0x1420] sm:$0xff] %v25368_v25  ;;  %v25378_v35 = vld [vmem:[%s33417_s0 + $0x30] sm:$0xff]   ;;  %20298 = vst [vmem:[%s33418_s1 + $0x1430] sm:$0xff] %v25377_v34 }
  0x13   :  { %20266 = vst [vmem:[%s33418_s1 + $0x2020] sm:$0xff] %v25369_v26  ;;  %v25379_v36 = vld [vmem:[%s33417_s0 + $0x2040] sm:$0xff]   ;;  %20302 = vst [vmem:[%s33418_s1 + $0x2030] sm:$0xff] %v25378_v35  ;;  %v25388_v45 = vld [vmem:[%s33417_s0 + $0x2050] sm:$0xff]  }
  0x14   :  { %v25380_v37 = vld [vmem:[%s33417_s0 + $0x1440] sm:$0xff]   ;;  %20306 = vst [vmem:[%s33418_s1 + $0x40] sm:$0xff] %v25379_v36  ;;  %v25389_v46 = vld [vmem:[%s33417_s0 + $0x1450] sm:$0xff]   ;;  %20342 = vst [vmem:[%s33418_s1 + $0x50] sm:$0xff] %v25388_v45 }
  0x15   :  { %v25381_v38 = vld [vmem:[%s33417_s0 + $0x840] sm:$0xff]   ;;  %20310 = vst [vmem:[%s33418_s1 + $0xc40] sm:$0xff] %v25380_v37  ;;  %v25390_v47 = vld [vmem:[%s33417_s0 + $0x850] sm:$0xff]   ;;  %20346 = vst [vmem:[%s33418_s1 + $0xc50] sm:$0xff] %v25389_v46 }
  0x16   :  { %v25382_v39 = vld [vmem:[%s33417_s0 + $0x1c40] sm:$0xff]   ;;  %20314 = vst [vmem:[%s33418_s1 + $0x1840] sm:$0xff] %v25381_v38  ;;  %v25391_v48 = vld [vmem:[%s33417_s0 + $0x1c50] sm:$0xff]   ;;  %20350 = vst [vmem:[%s33418_s1 + $0x1850] sm:$0xff] %v25390_v47 }
  0x17   :  { %v25383_v40 = vld [vmem:[%s33417_s0 + $0x1040] sm:$0xff]   ;;  %20318 = vst [vmem:[%s33418_s1 + $0x440] sm:$0xff] %v25382_v39  ;;  %v25392_v49 = vld [vmem:[%s33417_s0 + $0x1050] sm:$0xff]   ;;  %20354 = vst [vmem:[%s33418_s1 + $0x450] sm:$0xff] %v25391_v48 }
  0x18   :  { %v25384_v41 = vld [vmem:[%s33417_s0 + $0x440] sm:$0xff]   ;;  %20322 = vst [vmem:[%s33418_s1 + $0x1040] sm:$0xff] %v25383_v40  ;;  %v25393_v50 = vld [vmem:[%s33417_s0 + $0x450] sm:$0xff]   ;;  %20358 = vst [vmem:[%s33418_s1 + $0x1050] sm:$0xff] %v25392_v49 }
  0x19   :  { %v25385_v42 = vld [vmem:[%s33417_s0 + $0x1840] sm:$0xff]   ;;  %20326 = vst [vmem:[%s33418_s1 + $0x1c40] sm:$0xff] %v25384_v41  ;;  %v25394_v51 = vld [vmem:[%s33417_s0 + $0x1850] sm:$0xff]   ;;  %20362 = vst [vmem:[%s33418_s1 + $0x1c50] sm:$0xff] %v25393_v50 }
  0x1a   :  { %v25386_v43 = vld [vmem:[%s33417_s0 + $0xc40] sm:$0xff]   ;;  %20330 = vst [vmem:[%s33418_s1 + $0x840] sm:$0xff] %v25385_v42  ;;  %v25395_v52 = vld [vmem:[%s33417_s0 + $0xc50] sm:$0xff]   ;;  %20366 = vst [vmem:[%s33418_s1 + $0x850] sm:$0xff] %v25394_v51 }
  0x1b   :  { %v25387_v44 = vld [vmem:[%s33417_s0 + $0x40] sm:$0xff]   ;;  %20334 = vst [vmem:[%s33418_s1 + $0x1440] sm:$0xff] %v25386_v43  ;;  %v25396_v53 = vld [vmem:[%s33417_s0 + $0x50] sm:$0xff]   ;;  %20370 = vst [vmem:[%s33418_s1 + $0x1450] sm:$0xff] %v25395_v52 }
  0x1c   :  { %20338 = vst [vmem:[%s33418_s1 + $0x2040] sm:$0xff] %v25387_v44  ;;  %v25397_v54 = vld [vmem:[%s33417_s0 + $0x2060] sm:$0xff]   ;;  %20374 = vst [vmem:[%s33418_s1 + $0x2050] sm:$0xff] %v25396_v53  ;;  %v25406_v63 = vld [vmem:[%s33417_s0 + $0x2070] sm:$0xff]  }
  0x1d   :  { %v25398_v55 = vld [vmem:[%s33417_s0 + $0x1460] sm:$0xff]   ;;  %20378 = vst [vmem:[%s33418_s1 + $0x60] sm:$0xff] %v25397_v54  ;;  %v25407_v0 = vld [vmem:[%s33417_s0 + $0x1470] sm:$0xff]   ;;  %20414 = vst [vmem:[%s33418_s1 + $0x70] sm:$0xff] %v25406_v63 }
  0x1e   :  { %v25399_v56 = vld [vmem:[%s33417_s0 + $0x860] sm:$0xff]   ;;  %20382 = vst [vmem:[%s33418_s1 + $0xc60] sm:$0xff] %v25398_v55  ;;  %v25408_v1 = vld [vmem:[%s33417_s0 + $0x870] sm:$0xff]   ;;  %20418 = vst [vmem:[%s33418_s1 + $0xc70] sm:$0xff] %v25407_v0 }
  0x1f   :  { %v25400_v57 = vld [vmem:[%s33417_s0 + $0x1c60] sm:$0xff]   ;;  %20386 = vst [vmem:[%s33418_s1 + $0x1860] sm:$0xff] %v25399_v56  ;;  %v25409_v2 = vld [vmem:[%s33417_s0 + $0x1c70] sm:$0xff]   ;;  %20422 = vst [vmem:[%s33418_s1 + $0x1870] sm:$0xff] %v25408_v1 }
  0x20   :  { %v25401_v58 = vld [vmem:[%s33417_s0 + $0x1060] sm:$0xff]   ;;  %20390 = vst [vmem:[%s33418_s1 + $0x460] sm:$0xff] %v25400_v57  ;;  %v25410_v3 = vld [vmem:[%s33417_s0 + $0x1070] sm:$0xff]   ;;  %20426 = vst [vmem:[%s33418_s1 + $0x470] sm:$0xff] %v25409_v2 }
  0x21   :  { %v25402_v59 = vld [vmem:[%s33417_s0 + $0x460] sm:$0xff]   ;;  %20394 = vst [vmem:[%s33418_s1 + $0x1060] sm:$0xff] %v25401_v58  ;;  %v25411_v4 = vld [vmem:[%s33417_s0 + $0x470] sm:$0xff]   ;;  %20430 = vst [vmem:[%s33418_s1 + $0x1070] sm:$0xff] %v25410_v3 }
  0x22   :  { %v25403_v60 = vld [vmem:[%s33417_s0 + $0x1860] sm:$0xff]   ;;  %20398 = vst [vmem:[%s33418_s1 + $0x1c60] sm:$0xff] %v25402_v59  ;;  %v25412_v5 = vld [vmem:[%s33417_s0 + $0x1870] sm:$0xff]   ;;  %20434 = vst [vmem:[%s33418_s1 + $0x1c70] sm:$0xff] %v25411_v4 }
  0x23   :  { %v25404_v61 = vld [vmem:[%s33417_s0 + $0xc60] sm:$0xff]   ;;  %20402 = vst [vmem:[%s33418_s1 + $0x860] sm:$0xff] %v25403_v60  ;;  %v25413_v6 = vld [vmem:[%s33417_s0 + $0xc70] sm:$0xff]   ;;  %20438 = vst [vmem:[%s33418_s1 + $0x870] sm:$0xff] %v25412_v5 }
  0x24   :  { %v25405_v62 = vld [vmem:[%s33417_s0 + $0x60] sm:$0xff]   ;;  %20406 = vst [vmem:[%s33418_s1 + $0x1460] sm:$0xff] %v25404_v61  ;;  %v25414_v7 = vld [vmem:[%s33417_s0 + $0x70] sm:$0xff]   ;;  %20442 = vst [vmem:[%s33418_s1 + $0x1470] sm:$0xff] %v25413_v6 }
  0x25   :  { %20410 = vst [vmem:[%s33418_s1 + $0x2060] sm:$0xff] %v25405_v62  ;;  %v25415_v8 = vld [vmem:[%s33417_s0 + $0x2080] sm:$0xff]   ;;  %20446 = vst [vmem:[%s33418_s1 + $0x2070] sm:$0xff] %v25414_v7  ;;  %v25424_v17 = vld [vmem:[%s33417_s0 + $0x2090] sm:$0xff]  }
  0x26   :  { %v25416_v9 = vld [vmem:[%s33417_s0 + $0x1480] sm:$0xff]   ;;  %20450 = vst [vmem:[%s33418_s1 + $0x80] sm:$0xff] %v25415_v8  ;;  %v25425_v18 = vld [vmem:[%s33417_s0 + $0x1490] sm:$0xff]   ;;  %20486 = vst [vmem:[%s33418_s1 + $0x90] sm:$0xff] %v25424_v17 }
  0x27   :  { %v25417_v10 = vld [vmem:[%s33417_s0 + $0x880] sm:$0xff]   ;;  %20454 = vst [vmem:[%s33418_s1 + $0xc80] sm:$0xff] %v25416_v9  ;;  %v25426_v19 = vld [vmem:[%s33417_s0 + $0x890] sm:$0xff]   ;;  %20490 = vst [vmem:[%s33418_s1 + $0xc90] sm:$0xff] %v25425_v18 }
  0x28   :  { %v25418_v11 = vld [vmem:[%s33417_s0 + $0x1c80] sm:$0xff]   ;;  %20458 = vst [vmem:[%s33418_s1 + $0x1880] sm:$0xff] %v25417_v10  ;;  %v25427_v20 = vld [vmem:[%s33417_s0 + $0x1c90] sm:$0xff]   ;;  %20494 = vst [vmem:[%s33418_s1 + $0x1890] sm:$0xff] %v25426_v19 }
  0x29   :  { %v25419_v12 = vld [vmem:[%s33417_s0 + $0x1080] sm:$0xff]   ;;  %20462 = vst [vmem:[%s33418_s1 + $0x480] sm:$0xff] %v25418_v11  ;;  %v25428_v21 = vld [vmem:[%s33417_s0 + $0x1090] sm:$0xff]   ;;  %20498 = vst [vmem:[%s33418_s1 + $0x490] sm:$0xff] %v25427_v20 }
  0x2a   :  { %v25420_v13 = vld [vmem:[%s33417_s0 + $0x480] sm:$0xff]   ;;  %20466 = vst [vmem:[%s33418_s1 + $0x1080] sm:$0xff] %v25419_v12  ;;  %v25429_v22 = vld [vmem:[%s33417_s0 + $0x490] sm:$0xff]   ;;  %20502 = vst [vmem:[%s33418_s1 + $0x1090] sm:$0xff] %v25428_v21 }
  0x2b   :  { %v25421_v14 = vld [vmem:[%s33417_s0 + $0x1880] sm:$0xff]   ;;  %20470 = vst [vmem:[%s33418_s1 + $0x1c80] sm:$0xff] %v25420_v13  ;;  %v25430_v23 = vld [vmem:[%s33417_s0 + $0x1890] sm:$0xff]   ;;  %20506 = vst [vmem:[%s33418_s1 + $0x1c90] sm:$0xff] %v25429_v22 }
  0x2c   :  { %v25422_v15 = vld [vmem:[%s33417_s0 + $0xc80] sm:$0xff]   ;;  %20474 = vst [vmem:[%s33418_s1 + $0x880] sm:$0xff] %v25421_v14  ;;  %v25431_v24 = vld [vmem:[%s33417_s0 + $0xc90] sm:$0xff]   ;;  %20510 = vst [vmem:[%s33418_s1 + $0x890] sm:$0xff] %v25430_v23 }
  0x2d   :  { %v25423_v16 = vld [vmem:[%s33417_s0 + $0x80] sm:$0xff]   ;;  %20478 = vst [vmem:[%s33418_s1 + $0x1480] sm:$0xff] %v25422_v15  ;;  %v25432_v25 = vld [vmem:[%s33417_s0 + $0x90] sm:$0xff]   ;;  %20514 = vst [vmem:[%s33418_s1 + $0x1490] sm:$0xff] %v25431_v24 }
  0x2e   :  { %20482 = vst [vmem:[%s33418_s1 + $0x2080] sm:$0xff] %v25423_v16  ;;  %v25433_v26 = vld [vmem:[%s33417_s0 + $0x20a0] sm:$0xff]   ;;  %20518 = vst [vmem:[%s33418_s1 + $0x2090] sm:$0xff] %v25432_v25  ;;  %v25442_v35 = vld [vmem:[%s33417_s0 + $0x20b0] sm:$0xff]  }
  0x2f   :  { %v25434_v27 = vld [vmem:[%s33417_s0 + $0x14a0] sm:$0xff]   ;;  %20522 = vst [vmem:[%s33418_s1 + $0xa0] sm:$0xff] %v25433_v26  ;;  %v25443_v36 = vld [vmem:[%s33417_s0 + $0x14b0] sm:$0xff]   ;;  %20558 = vst [vmem:[%s33418_s1 + $0xb0] sm:$0xff] %v25442_v35 }
  0x30   :  { %v25435_v28 = vld [vmem:[%s33417_s0 + $0x8a0] sm:$0xff]   ;;  %20526 = vst [vmem:[%s33418_s1 + $0xca0] sm:$0xff] %v25434_v27  ;;  %v25444_v37 = vld [vmem:[%s33417_s0 + $0x8b0] sm:$0xff]   ;;  %20562 = vst [vmem:[%s33418_s1 + $0xcb0] sm:$0xff] %v25443_v36 }
  0x31   :  { %v25436_v29 = vld [vmem:[%s33417_s0 + $0x1ca0] sm:$0xff]   ;;  %20530 = vst [vmem:[%s33418_s1 + $0x18a0] sm:$0xff] %v25435_v28  ;;  %v25445_v38 = vld [vmem:[%s33417_s0 + $0x1cb0] sm:$0xff]   ;;  %20566 = vst [vmem:[%s33418_s1 + $0x18b0] sm:$0xff] %v25444_v37 }
  0x32   :  { %v25437_v30 = vld [vmem:[%s33417_s0 + $0x10a0] sm:$0xff]   ;;  %20534 = vst [vmem:[%s33418_s1 + $0x4a0] sm:$0xff] %v25436_v29  ;;  %v25446_v39 = vld [vmem:[%s33417_s0 + $0x10b0] sm:$0xff]   ;;  %20570 = vst [vmem:[%s33418_s1 + $0x4b0] sm:$0xff] %v25445_v38 }
  0x33   :  { %v25438_v31 = vld [vmem:[%s33417_s0 + $0x4a0] sm:$0xff]   ;;  %20538 = vst [vmem:[%s33418_s1 + $0x10a0] sm:$0xff] %v25437_v30  ;;  %v25447_v40 = vld [vmem:[%s33417_s0 + $0x4b0] sm:$0xff]   ;;  %20574 = vst [vmem:[%s33418_s1 + $0x10b0] sm:$0xff] %v25446_v39 }
  0x34   :  { %v25439_v32 = vld [vmem:[%s33417_s0 + $0x18a0] sm:$0xff]   ;;  %20542 = vst [vmem:[%s33418_s1 + $0x1ca0] sm:$0xff] %v25438_v31  ;;  %v25448_v41 = vld [vmem:[%s33417_s0 + $0x18b0] sm:$0xff]   ;;  %20578 = vst [vmem:[%s33418_s1 + $0x1cb0] sm:$0xff] %v25447_v40 }
  0x35   :  { %v25440_v33 = vld [vmem:[%s33417_s0 + $0xca0] sm:$0xff]   ;;  %20546 = vst [vmem:[%s33418_s1 + $0x8a0] sm:$0xff] %v25439_v32  ;;  %v25449_v42 = vld [vmem:[%s33417_s0 + $0xcb0] sm:$0xff]   ;;  %20582 = vst [vmem:[%s33418_s1 + $0x8b0] sm:$0xff] %v25448_v41 }
  0x36   :  { %v25441_v34 = vld [vmem:[%s33417_s0 + $0xa0] sm:$0xff]   ;;  %20550 = vst [vmem:[%s33418_s1 + $0x14a0] sm:$0xff] %v25440_v33  ;;  %v25450_v43 = vld [vmem:[%s33417_s0 + $0xb0] sm:$0xff]   ;;  %20586 = vst [vmem:[%s33418_s1 + $0x14b0] sm:$0xff] %v25449_v42 }
  0x37   :  { %20554 = vst [vmem:[%s33418_s1 + $0x20a0] sm:$0xff] %v25441_v34  ;;  %v25451_v44 = vld [vmem:[%s33417_s0 + $0x20c0] sm:$0xff]   ;;  %20590 = vst [vmem:[%s33418_s1 + $0x20b0] sm:$0xff] %v25450_v43  ;;  %v25460_v53 = vld [vmem:[%s33417_s0 + $0x20d0] sm:$0xff]  }
  0x38   :  { %v25452_v45 = vld [vmem:[%s33417_s0 + $0x14c0] sm:$0xff]   ;;  %20594 = vst [vmem:[%s33418_s1 + $0xc0] sm:$0xff] %v25451_v44  ;;  %v25461_v54 = vld [vmem:[%s33417_s0 + $0x14d0] sm:$0xff]   ;;  %20630 = vst [vmem:[%s33418_s1 + $0xd0] sm:$0xff] %v25460_v53 }
  0x39   :  { %v25453_v46 = vld [vmem:[%s33417_s0 + $0x8c0] sm:$0xff]   ;;  %20598 = vst [vmem:[%s33418_s1 + $0xcc0] sm:$0xff] %v25452_v45  ;;  %v25462_v55 = vld [vmem:[%s33417_s0 + $0x8d0] sm:$0xff]   ;;  %20634 = vst [vmem:[%s33418_s1 + $0xcd0] sm:$0xff] %v25461_v54 }
  0x3a   :  { %v25454_v47 = vld [vmem:[%s33417_s0 + $0x1cc0] sm:$0xff]   ;;  %20602 = vst [vmem:[%s33418_s1 + $0x18c0] sm:$0xff] %v25453_v46  ;;  %v25463_v56 = vld [vmem:[%s33417_s0 + $0x1cd0] sm:$0xff]   ;;  %20638 = vst [vmem:[%s33418_s1 + $0x18d0] sm:$0xff] %v25462_v55 }
  0x3b   :  { %v25455_v48 = vld [vmem:[%s33417_s0 + $0x10c0] sm:$0xff]   ;;  %20606 = vst [vmem:[%s33418_s1 + $0x4c0] sm:$0xff] %v25454_v47  ;;  %v25464_v57 = vld [vmem:[%s33417_s0 + $0x10d0] sm:$0xff]   ;;  %20642 = vst [vmem:[%s33418_s1 + $0x4d0] sm:$0xff] %v25463_v56 }
  0x3c   :  { %v25456_v49 = vld [vmem:[%s33417_s0 + $0x4c0] sm:$0xff]   ;;  %20610 = vst [vmem:[%s33418_s1 + $0x10c0] sm:$0xff] %v25455_v48  ;;  %v25465_v58 = vld [vmem:[%s33417_s0 + $0x4d0] sm:$0xff]   ;;  %20646 = vst [vmem:[%s33418_s1 + $0x10d0] sm:$0xff] %v25464_v57 }
  0x3d   :  { %v25457_v50 = vld [vmem:[%s33417_s0 + $0x18c0] sm:$0xff]   ;;  %20614 = vst [vmem:[%s33418_s1 + $0x1cc0] sm:$0xff] %v25456_v49  ;;  %v25466_v59 = vld [vmem:[%s33417_s0 + $0x18d0] sm:$0xff]   ;;  %20650 = vst [vmem:[%s33418_s1 + $0x1cd0] sm:$0xff] %v25465_v58 }
  0x3e   :  { %v25458_v51 = vld [vmem:[%s33417_s0 + $0xcc0] sm:$0xff]   ;;  %20618 = vst [vmem:[%s33418_s1 + $0x8c0] sm:$0xff] %v25457_v50  ;;  %v25467_v60 = vld [vmem:[%s33417_s0 + $0xcd0] sm:$0xff]   ;;  %20654 = vst [vmem:[%s33418_s1 + $0x8d0] sm:$0xff] %v25466_v59 }
  0x3f   :  { %v25459_v52 = vld [vmem:[%s33417_s0 + $0xc0] sm:$0xff]   ;;  %20622 = vst [vmem:[%s33418_s1 + $0x14c0] sm:$0xff] %v25458_v51  ;;  %v25468_v61 = vld [vmem:[%s33417_s0 + $0xd0] sm:$0xff]   ;;  %20658 = vst [vmem:[%s33418_s1 + $0x14d0] sm:$0xff] %v25467_v60 }
  0x40   :  { %20626 = vst [vmem:[%s33418_s1 + $0x20c0] sm:$0xff] %v25459_v52  ;;  %v25469_v62 = vld [vmem:[%s33417_s0 + $0x20e0] sm:$0xff]   ;;  %20662 = vst [vmem:[%s33418_s1 + $0x20d0] sm:$0xff] %v25468_v61  ;;  %v25478_v7 = vld [vmem:[%s33417_s0 + $0x20f0] sm:$0xff]  }
  0x41   :  { %v25470_v63 = vld [vmem:[%s33417_s0 + $0x14e0] sm:$0xff]   ;;  %20666 = vst [vmem:[%s33418_s1 + $0xe0] sm:$0xff] %v25469_v62  ;;  %v25479_v8 = vld [vmem:[%s33417_s0 + $0x14f0] sm:$0xff]   ;;  %20702 = vst [vmem:[%s33418_s1 + $0xf0] sm:$0xff] %v25478_v7 }
  0x42   :  { %v25471_v0 = vld [vmem:[%s33417_s0 + $0x8e0] sm:$0xff]   ;;  %20670 = vst [vmem:[%s33418_s1 + $0xce0] sm:$0xff] %v25470_v63  ;;  %v25480_v9 = vld [vmem:[%s33417_s0 + $0x8f0] sm:$0xff]   ;;  %20706 = vst [vmem:[%s33418_s1 + $0xcf0] sm:$0xff] %v25479_v8 }
  0x43   :  { %v25472_v1 = vld [vmem:[%s33417_s0 + $0x1ce0] sm:$0xff]   ;;  %20674 = vst [vmem:[%s33418_s1 + $0x18e0] sm:$0xff] %v25471_v0  ;;  %v25481_v10 = vld [vmem:[%s33417_s0 + $0x1cf0] sm:$0xff]   ;;  %20710 = vst [vmem:[%s33418_s1 + $0x18f0] sm:$0xff] %v25480_v9 }
  0x44   :  { %v25473_v2 = vld [vmem:[%s33417_s0 + $0x10e0] sm:$0xff]   ;;  %20678 = vst [vmem:[%s33418_s1 + $0x4e0] sm:$0xff] %v25472_v1  ;;  %v25482_v11 = vld [vmem:[%s33417_s0 + $0x10f0] sm:$0xff]   ;;  %20714 = vst [vmem:[%s33418_s1 + $0x4f0] sm:$0xff] %v25481_v10 }
  0x45   :  { %v25474_v3 = vld [vmem:[%s33417_s0 + $0x4e0] sm:$0xff]   ;;  %20682 = vst [vmem:[%s33418_s1 + $0x10e0] sm:$0xff] %v25473_v2  ;;  %v25483_v12 = vld [vmem:[%s33417_s0 + $0x4f0] sm:$0xff]   ;;  %20718 = vst [vmem:[%s33418_s1 + $0x10f0] sm:$0xff] %v25482_v11 }
  0x46   :  { %v25475_v4 = vld [vmem:[%s33417_s0 + $0x18e0] sm:$0xff]   ;;  %20686 = vst [vmem:[%s33418_s1 + $0x1ce0] sm:$0xff] %v25474_v3  ;;  %v25484_v13 = vld [vmem:[%s33417_s0 + $0x18f0] sm:$0xff]   ;;  %20722 = vst [vmem:[%s33418_s1 + $0x1cf0] sm:$0xff] %v25483_v12 }
  0x47   :  { %v25476_v5 = vld [vmem:[%s33417_s0 + $0xce0] sm:$0xff]   ;;  %20690 = vst [vmem:[%s33418_s1 + $0x8e0] sm:$0xff] %v25475_v4  ;;  %v25485_v14 = vld [vmem:[%s33417_s0 + $0xcf0] sm:$0xff]   ;;  %20726 = vst [vmem:[%s33418_s1 + $0x8f0] sm:$0xff] %v25484_v13 }
  0x48   :  { %v25477_v6 = vld [vmem:[%s33417_s0 + $0xe0] sm:$0xff]   ;;  %20694 = vst [vmem:[%s33418_s1 + $0x14e0] sm:$0xff] %v25476_v5  ;;  %v25486_v15 = vld [vmem:[%s33417_s0 + $0xf0] sm:$0xff]   ;;  %20730 = vst [vmem:[%s33418_s1 + $0x14f0] sm:$0xff] %v25485_v14 }
  0x49   :  { %20698 = vst [vmem:[%s33418_s1 + $0x20e0] sm:$0xff] %v25477_v6  ;;  %v25487_v16 = vld [vmem:[%s33417_s0 + $0x2100] sm:$0xff]   ;;  %20734 = vst [vmem:[%s33418_s1 + $0x20f0] sm:$0xff] %v25486_v15  ;;  %v25496_v25 = vld [vmem:[%s33417_s0 + $0x2110] sm:$0xff]  }
  0x4a   :  { %v25488_v17 = vld [vmem:[%s33417_s0 + $0x1500] sm:$0xff]   ;;  %20738 = vst [vmem:[%s33418_s1 + $0x100] sm:$0xff] %v25487_v16  ;;  %v25497_v26 = vld [vmem:[%s33417_s0 + $0x1510] sm:$0xff]   ;;  %20774 = vst [vmem:[%s33418_s1 + $0x110] sm:$0xff] %v25496_v25 }
  0x4b   :  { %v25489_v18 = vld [vmem:[%s33417_s0 + $0x900] sm:$0xff]   ;;  %20742 = vst [vmem:[%s33418_s1 + $0xd00] sm:$0xff] %v25488_v17  ;;  %v25498_v27 = vld [vmem:[%s33417_s0 + $0x910] sm:$0xff]   ;;  %20778 = vst [vmem:[%s33418_s1 + $0xd10] sm:$0xff] %v25497_v26 }
  0x4c   :  { %v25490_v19 = vld [vmem:[%s33417_s0 + $0x1d00] sm:$0xff]   ;;  %20746 = vst [vmem:[%s33418_s1 + $0x1900] sm:$0xff] %v25489_v18  ;;  %v25499_v28 = vld [vmem:[%s33417_s0 + $0x1d10] sm:$0xff]   ;;  %20782 = vst [vmem:[%s33418_s1 + $0x1910] sm:$0xff] %v25498_v27 }
  0x4d   :  { %v25491_v20 = vld [vmem:[%s33417_s0 + $0x1100] sm:$0xff]   ;;  %20750 = vst [vmem:[%s33418_s1 + $0x500] sm:$0xff] %v25490_v19  ;;  %v25500_v29 = vld [vmem:[%s33417_s0 + $0x1110] sm:$0xff]   ;;  %20786 = vst [vmem:[%s33418_s1 + $0x510] sm:$0xff] %v25499_v28 }
  0x4e   :  { %v25492_v21 = vld [vmem:[%s33417_s0 + $0x500] sm:$0xff]   ;;  %20754 = vst [vmem:[%s33418_s1 + $0x1100] sm:$0xff] %v25491_v20  ;;  %v25501_v30 = vld [vmem:[%s33417_s0 + $0x510] sm:$0xff]   ;;  %20790 = vst [vmem:[%s33418_s1 + $0x1110] sm:$0xff] %v25500_v29 }
  0x4f   :  { %v25493_v22 = vld [vmem:[%s33417_s0 + $0x1900] sm:$0xff]   ;;  %20758 = vst [vmem:[%s33418_s1 + $0x1d00] sm:$0xff] %v25492_v21  ;;  %v25502_v31 = vld [vmem:[%s33417_s0 + $0x1910] sm:$0xff]   ;;  %20794 = vst [vmem:[%s33418_s1 + $0x1d10] sm:$0xff] %v25501_v30 }
  0x50   :  { %v25494_v23 = vld [vmem:[%s33417_s0 + $0xd00] sm:$0xff]   ;;  %20762 = vst [vmem:[%s33418_s1 + $0x900] sm:$0xff] %v25493_v22  ;;  %v25503_v32 = vld [vmem:[%s33417_s0 + $0xd10] sm:$0xff]   ;;  %20798 = vst [vmem:[%s33418_s1 + $0x910] sm:$0xff] %v25502_v31 }
  0x51   :  { %v25495_v24 = vld [vmem:[%s33417_s0 + $0x100] sm:$0xff]   ;;  %20766 = vst [vmem:[%s33418_s1 + $0x1500] sm:$0xff] %v25494_v23  ;;  %v25504_v33 = vld [vmem:[%s33417_s0 + $0x110] sm:$0xff]   ;;  %20802 = vst [vmem:[%s33418_s1 + $0x1510] sm:$0xff] %v25503_v32 }
  0x52   :  { %20770 = vst [vmem:[%s33418_s1 + $0x2100] sm:$0xff] %v25495_v24  ;;  %v25505_v34 = vld [vmem:[%s33417_s0 + $0x2120] sm:$0xff]   ;;  %20806 = vst [vmem:[%s33418_s1 + $0x2110] sm:$0xff] %v25504_v33  ;;  %v25514_v43 = vld [vmem:[%s33417_s0 + $0x2130] sm:$0xff]  }
  0x53   :  { %v25506_v35 = vld [vmem:[%s33417_s0 + $0x1520] sm:$0xff]   ;;  %20810 = vst [vmem:[%s33418_s1 + $0x120] sm:$0xff] %v25505_v34  ;;  %v25515_v44 = vld [vmem:[%s33417_s0 + $0x1530] sm:$0xff]   ;;  %20846 = vst [vmem:[%s33418_s1 + $0x130] sm:$0xff] %v25514_v43 }
  0x54   :  { %v25507_v36 = vld [vmem:[%s33417_s0 + $0x920] sm:$0xff]   ;;  %20814 = vst [vmem:[%s33418_s1 + $0xd20] sm:$0xff] %v25506_v35  ;;  %v25516_v45 = vld [vmem:[%s33417_s0 + $0x930] sm:$0xff]   ;;  %20850 = vst [vmem:[%s33418_s1 + $0xd30] sm:$0xff] %v25515_v44 }
  0x55   :  { %v25508_v37 = vld [vmem:[%s33417_s0 + $0x1d20] sm:$0xff]   ;;  %20818 = vst [vmem:[%s33418_s1 + $0x1920] sm:$0xff] %v25507_v36  ;;  %v25517_v46 = vld [vmem:[%s33417_s0 + $0x1d30] sm:$0xff]   ;;  %20854 = vst [vmem:[%s33418_s1 + $0x1930] sm:$0xff] %v25516_v45 }
  0x56   :  { %v25509_v38 = vld [vmem:[%s33417_s0 + $0x1120] sm:$0xff]   ;;  %20822 = vst [vmem:[%s33418_s1 + $0x520] sm:$0xff] %v25508_v37  ;;  %v25518_v47 = vld [vmem:[%s33417_s0 + $0x1130] sm:$0xff]   ;;  %20858 = vst [vmem:[%s33418_s1 + $0x530] sm:$0xff] %v25517_v46 }
  0x57   :  { %v25510_v39 = vld [vmem:[%s33417_s0 + $0x520] sm:$0xff]   ;;  %20826 = vst [vmem:[%s33418_s1 + $0x1120] sm:$0xff] %v25509_v38  ;;  %v25519_v48 = vld [vmem:[%s33417_s0 + $0x530] sm:$0xff]   ;;  %20862 = vst [vmem:[%s33418_s1 + $0x1130] sm:$0xff] %v25518_v47 }
  0x58   :  { %v25511_v40 = vld [vmem:[%s33417_s0 + $0x1920] sm:$0xff]   ;;  %20830 = vst [vmem:[%s33418_s1 + $0x1d20] sm:$0xff] %v25510_v39  ;;  %v25520_v49 = vld [vmem:[%s33417_s0 + $0x1930] sm:$0xff]   ;;  %20866 = vst [vmem:[%s33418_s1 + $0x1d30] sm:$0xff] %v25519_v48 }
  0x59   :  { %v25512_v41 = vld [vmem:[%s33417_s0 + $0xd20] sm:$0xff]   ;;  %20834 = vst [vmem:[%s33418_s1 + $0x920] sm:$0xff] %v25511_v40  ;;  %v25521_v50 = vld [vmem:[%s33417_s0 + $0xd30] sm:$0xff]   ;;  %20870 = vst [vmem:[%s33418_s1 + $0x930] sm:$0xff] %v25520_v49 }
  0x5a   :  { %v25513_v42 = vld [vmem:[%s33417_s0 + $0x120] sm:$0xff]   ;;  %20838 = vst [vmem:[%s33418_s1 + $0x1520] sm:$0xff] %v25512_v41  ;;  %v25522_v51 = vld [vmem:[%s33417_s0 + $0x130] sm:$0xff]   ;;  %20874 = vst [vmem:[%s33418_s1 + $0x1530] sm:$0xff] %v25521_v50 }
  0x5b   :  { %20842 = vst [vmem:[%s33418_s1 + $0x2120] sm:$0xff] %v25513_v42  ;;  %v25523_v52 = vld [vmem:[%s33417_s0 + $0x2140] sm:$0xff]   ;;  %20878 = vst [vmem:[%s33418_s1 + $0x2130] sm:$0xff] %v25522_v51  ;;  %v25532_v61 = vld [vmem:[%s33417_s0 + $0x2150] sm:$0xff]  }
  0x5c   :  { %v25524_v53 = vld [vmem:[%s33417_s0 + $0x1540] sm:$0xff]   ;;  %20882 = vst [vmem:[%s33418_s1 + $0x140] sm:$0xff] %v25523_v52  ;;  %v25533_v62 = vld [vmem:[%s33417_s0 + $0x1550] sm:$0xff]   ;;  %20918 = vst [vmem:[%s33418_s1 + $0x150] sm:$0xff] %v25532_v61 }
  0x5d   :  { %v25525_v54 = vld [vmem:[%s33417_s0 + $0x940] sm:$0xff]   ;;  %20886 = vst [vmem:[%s33418_s1 + $0xd40] sm:$0xff] %v25524_v53  ;;  %v25534_v63 = vld [vmem:[%s33417_s0 + $0x950] sm:$0xff]   ;;  %20922 = vst [vmem:[%s33418_s1 + $0xd50] sm:$0xff] %v25533_v62 }
  0x5e   :  { %v25526_v55 = vld [vmem:[%s33417_s0 + $0x1d40] sm:$0xff]   ;;  %20890 = vst [vmem:[%s33418_s1 + $0x1940] sm:$0xff] %v25525_v54  ;;  %v25535_v0 = vld [vmem:[%s33417_s0 + $0x1d50] sm:$0xff]   ;;  %20926 = vst [vmem:[%s33418_s1 + $0x1950] sm:$0xff] %v25534_v63 }
  0x5f   :  { %v25527_v56 = vld [vmem:[%s33417_s0 + $0x1140] sm:$0xff]   ;;  %20894 = vst [vmem:[%s33418_s1 + $0x540] sm:$0xff] %v25526_v55  ;;  %v25536_v1 = vld [vmem:[%s33417_s0 + $0x1150] sm:$0xff]   ;;  %20930 = vst [vmem:[%s33418_s1 + $0x550] sm:$0xff] %v25535_v0 }
  0x60   :  { %v25528_v57 = vld [vmem:[%s33417_s0 + $0x540] sm:$0xff]   ;;  %20898 = vst [vmem:[%s33418_s1 + $0x1140] sm:$0xff] %v25527_v56  ;;  %v25537_v2 = vld [vmem:[%s33417_s0 + $0x550] sm:$0xff]   ;;  %20934 = vst [vmem:[%s33418_s1 + $0x1150] sm:$0xff] %v25536_v1 }
  0x61   :  { %v25529_v58 = vld [vmem:[%s33417_s0 + $0x1940] sm:$0xff]   ;;  %20902 = vst [vmem:[%s33418_s1 + $0x1d40] sm:$0xff] %v25528_v57  ;;  %v25538_v3 = vld [vmem:[%s33417_s0 + $0x1950] sm:$0xff]   ;;  %20938 = vst [vmem:[%s33418_s1 + $0x1d50] sm:$0xff] %v25537_v2 }
  0x62   :  { %v25530_v59 = vld [vmem:[%s33417_s0 + $0xd40] sm:$0xff]   ;;  %20906 = vst [vmem:[%s33418_s1 + $0x940] sm:$0xff] %v25529_v58  ;;  %v25539_v4 = vld [vmem:[%s33417_s0 + $0xd50] sm:$0xff]   ;;  %20942 = vst [vmem:[%s33418_s1 + $0x950] sm:$0xff] %v25538_v3 }
  0x63   :  { %v25531_v60 = vld [vmem:[%s33417_s0 + $0x140] sm:$0xff]   ;;  %20910 = vst [vmem:[%s33418_s1 + $0x1540] sm:$0xff] %v25530_v59  ;;  %v25540_v5 = vld [vmem:[%s33417_s0 + $0x150] sm:$0xff]   ;;  %20946 = vst [vmem:[%s33418_s1 + $0x1550] sm:$0xff] %v25539_v4 }
  0x64   :  { %20914 = vst [vmem:[%s33418_s1 + $0x2140] sm:$0xff] %v25531_v60  ;;  %v25541_v6 = vld [vmem:[%s33417_s0 + $0x2160] sm:$0xff]   ;;  %20950 = vst [vmem:[%s33418_s1 + $0x2150] sm:$0xff] %v25540_v5  ;;  %v25550_v15 = vld [vmem:[%s33417_s0 + $0x2170] sm:$0xff]  }
  0x65   :  { %v25542_v7 = vld [vmem:[%s33417_s0 + $0x1560] sm:$0xff]   ;;  %20954 = vst [vmem:[%s33418_s1 + $0x160] sm:$0xff] %v25541_v6  ;;  %v25551_v16 = vld [vmem:[%s33417_s0 + $0x1570] sm:$0xff]   ;;  %20990 = vst [vmem:[%s33418_s1 + $0x170] sm:$0xff] %v25550_v15 }
  0x66   :  { %v25543_v8 = vld [vmem:[%s33417_s0 + $0x960] sm:$0xff]   ;;  %20958 = vst [vmem:[%s33418_s1 + $0xd60] sm:$0xff] %v25542_v7  ;;  %v25552_v17 = vld [vmem:[%s33417_s0 + $0x970] sm:$0xff]   ;;  %20994 = vst [vmem:[%s33418_s1 + $0xd70] sm:$0xff] %v25551_v16 }
  0x67   :  { %v25544_v9 = vld [vmem:[%s33417_s0 + $0x1d60] sm:$0xff]   ;;  %20962 = vst [vmem:[%s33418_s1 + $0x1960] sm:$0xff] %v25543_v8  ;;  %v25553_v18 = vld [vmem:[%s33417_s0 + $0x1d70] sm:$0xff]   ;;  %20998 = vst [vmem:[%s33418_s1 + $0x1970] sm:$0xff] %v25552_v17 }
  0x68   :  { %v25545_v10 = vld [vmem:[%s33417_s0 + $0x1160] sm:$0xff]   ;;  %20966 = vst [vmem:[%s33418_s1 + $0x560] sm:$0xff] %v25544_v9  ;;  %v25554_v19 = vld [vmem:[%s33417_s0 + $0x1170] sm:$0xff]   ;;  %21002 = vst [vmem:[%s33418_s1 + $0x570] sm:$0xff] %v25553_v18 }
  0x69   :  { %v25546_v11 = vld [vmem:[%s33417_s0 + $0x560] sm:$0xff]   ;;  %20970 = vst [vmem:[%s33418_s1 + $0x1160] sm:$0xff] %v25545_v10  ;;  %v25555_v20 = vld [vmem:[%s33417_s0 + $0x570] sm:$0xff]   ;;  %21006 = vst [vmem:[%s33418_s1 + $0x1170] sm:$0xff] %v25554_v19 }
  0x6a   :  { %v25547_v12 = vld [vmem:[%s33417_s0 + $0x1960] sm:$0xff]   ;;  %20974 = vst [vmem:[%s33418_s1 + $0x1d60] sm:$0xff] %v25546_v11  ;;  %v25556_v21 = vld [vmem:[%s33417_s0 + $0x1970] sm:$0xff]   ;;  %21010 = vst [vmem:[%s33418_s1 + $0x1d70] sm:$0xff] %v25555_v20 }
  0x6b   :  { %v25548_v13 = vld [vmem:[%s33417_s0 + $0xd60] sm:$0xff]   ;;  %20978 = vst [vmem:[%s33418_s1 + $0x960] sm:$0xff] %v25547_v12  ;;  %v25557_v22 = vld [vmem:[%s33417_s0 + $0xd70] sm:$0xff]   ;;  %21014 = vst [vmem:[%s33418_s1 + $0x970] sm:$0xff] %v25556_v21 }
  0x6c   :  { %v25549_v14 = vld [vmem:[%s33417_s0 + $0x160] sm:$0xff]   ;;  %20982 = vst [vmem:[%s33418_s1 + $0x1560] sm:$0xff] %v25548_v13  ;;  %v25558_v23 = vld [vmem:[%s33417_s0 + $0x170] sm:$0xff]   ;;  %21018 = vst [vmem:[%s33418_s1 + $0x1570] sm:$0xff] %v25557_v22 }
  0x6d   :  { %20986 = vst [vmem:[%s33418_s1 + $0x2160] sm:$0xff] %v25549_v14  ;;  %v25559_v24 = vld [vmem:[%s33417_s0 + $0x2180] sm:$0xff]   ;;  %21022 = vst [vmem:[%s33418_s1 + $0x2170] sm:$0xff] %v25558_v23  ;;  %v25568_v33 = vld [vmem:[%s33417_s0 + $0x2190] sm:$0xff]  }
  0x6e   :  { %v25560_v25 = vld [vmem:[%s33417_s0 + $0x1580] sm:$0xff]   ;;  %21026 = vst [vmem:[%s33418_s1 + $0x180] sm:$0xff] %v25559_v24  ;;  %v25569_v34 = vld [vmem:[%s33417_s0 + $0x1590] sm:$0xff]   ;;  %21062 = vst [vmem:[%s33418_s1 + $0x190] sm:$0xff] %v25568_v33 }
  0x6f   :  { %v25561_v26 = vld [vmem:[%s33417_s0 + $0x980] sm:$0xff]   ;;  %21030 = vst [vmem:[%s33418_s1 + $0xd80] sm:$0xff] %v25560_v25  ;;  %v25570_v35 = vld [vmem:[%s33417_s0 + $0x990] sm:$0xff]   ;;  %21066 = vst [vmem:[%s33418_s1 + $0xd90] sm:$0xff] %v25569_v34 }
  0x70   :  { %v25562_v27 = vld [vmem:[%s33417_s0 + $0x1d80] sm:$0xff]   ;;  %21034 = vst [vmem:[%s33418_s1 + $0x1980] sm:$0xff] %v25561_v26  ;;  %v25571_v36 = vld [vmem:[%s33417_s0 + $0x1d90] sm:$0xff]   ;;  %21070 = vst [vmem:[%s33418_s1 + $0x1990] sm:$0xff] %v25570_v35 }
  0x71   :  { %v25563_v28 = vld [vmem:[%s33417_s0 + $0x1180] sm:$0xff]   ;;  %21038 = vst [vmem:[%s33418_s1 + $0x580] sm:$0xff] %v25562_v27  ;;  %v25572_v37 = vld [vmem:[%s33417_s0 + $0x1190] sm:$0xff]   ;;  %21074 = vst [vmem:[%s33418_s1 + $0x590] sm:$0xff] %v25571_v36 }
  0x72   :  { %v25564_v29 = vld [vmem:[%s33417_s0 + $0x580] sm:$0xff]   ;;  %21042 = vst [vmem:[%s33418_s1 + $0x1180] sm:$0xff] %v25563_v28  ;;  %v25573_v38 = vld [vmem:[%s33417_s0 + $0x590] sm:$0xff]   ;;  %21078 = vst [vmem:[%s33418_s1 + $0x1190] sm:$0xff] %v25572_v37 }
  0x73   :  { %v25565_v30 = vld [vmem:[%s33417_s0 + $0x1980] sm:$0xff]   ;;  %21046 = vst [vmem:[%s33418_s1 + $0x1d80] sm:$0xff] %v25564_v29  ;;  %v25574_v39 = vld [vmem:[%s33417_s0 + $0x1990] sm:$0xff]   ;;  %21082 = vst [vmem:[%s33418_s1 + $0x1d90] sm:$0xff] %v25573_v38 }
  0x74   :  { %v25566_v31 = vld [vmem:[%s33417_s0 + $0xd80] sm:$0xff]   ;;  %21050 = vst [vmem:[%s33418_s1 + $0x980] sm:$0xff] %v25565_v30  ;;  %v25575_v40 = vld [vmem:[%s33417_s0 + $0xd90] sm:$0xff]   ;;  %21086 = vst [vmem:[%s33418_s1 + $0x990] sm:$0xff] %v25574_v39 }
  0x75   :  { %v25567_v32 = vld [vmem:[%s33417_s0 + $0x180] sm:$0xff]   ;;  %21054 = vst [vmem:[%s33418_s1 + $0x1580] sm:$0xff] %v25566_v31  ;;  %v25576_v41 = vld [vmem:[%s33417_s0 + $0x190] sm:$0xff]   ;;  %21090 = vst [vmem:[%s33418_s1 + $0x1590] sm:$0xff] %v25575_v40 }
  0x76   :  { %21058 = vst [vmem:[%s33418_s1 + $0x2180] sm:$0xff] %v25567_v32  ;;  %v25577_v42 = vld [vmem:[%s33417_s0 + $0x21a0] sm:$0xff]   ;;  %21094 = vst [vmem:[%s33418_s1 + $0x2190] sm:$0xff] %v25576_v41  ;;  %v25586_v51 = vld [vmem:[%s33417_s0 + $0x21b0] sm:$0xff]  }
  0x77   :  { %v25578_v43 = vld [vmem:[%s33417_s0 + $0x15a0] sm:$0xff]   ;;  %21098 = vst [vmem:[%s33418_s1 + $0x1a0] sm:$0xff] %v25577_v42  ;;  %v25587_v52 = vld [vmem:[%s33417_s0 + $0x15b0] sm:$0xff]   ;;  %21134 = vst [vmem:[%s33418_s1 + $0x1b0] sm:$0xff] %v25586_v51 }
  0x78   :  { %v25579_v44 = vld [vmem:[%s33417_s0 + $0x9a0] sm:$0xff]   ;;  %21102 = vst [vmem:[%s33418_s1 + $0xda0] sm:$0xff] %v25578_v43  ;;  %v25588_v53 = vld [vmem:[%s33417_s0 + $0x9b0] sm:$0xff]   ;;  %21138 = vst [vmem:[%s33418_s1 + $0xdb0] sm:$0xff] %v25587_v52 }
  0x79   :  { %v25580_v45 = vld [vmem:[%s33417_s0 + $0x1da0] sm:$0xff]   ;;  %21106 = vst [vmem:[%s33418_s1 + $0x19a0] sm:$0xff] %v25579_v44  ;;  %v25589_v54 = vld [vmem:[%s33417_s0 + $0x1db0] sm:$0xff]   ;;  %21142 = vst [vmem:[%s33418_s1 + $0x19b0] sm:$0xff] %v25588_v53 }
  0x7a   :  { %v25581_v46 = vld [vmem:[%s33417_s0 + $0x11a0] sm:$0xff]   ;;  %21110 = vst [vmem:[%s33418_s1 + $0x5a0] sm:$0xff] %v25580_v45  ;;  %v25590_v55 = vld [vmem:[%s33417_s0 + $0x11b0] sm:$0xff]   ;;  %21146 = vst [vmem:[%s33418_s1 + $0x5b0] sm:$0xff] %v25589_v54 }
  0x7b   :  { %v25582_v47 = vld [vmem:[%s33417_s0 + $0x5a0] sm:$0xff]   ;;  %21114 = vst [vmem:[%s33418_s1 + $0x11a0] sm:$0xff] %v25581_v46  ;;  %v25591_v56 = vld [vmem:[%s33417_s0 + $0x5b0] sm:$0xff]   ;;  %21150 = vst [vmem:[%s33418_s1 + $0x11b0] sm:$0xff] %v25590_v55 }
  0x7c   :  { %v25583_v48 = vld [vmem:[%s33417_s0 + $0x19a0] sm:$0xff]   ;;  %21118 = vst [vmem:[%s33418_s1 + $0x1da0] sm:$0xff] %v25582_v47  ;;  %v25592_v57 = vld [vmem:[%s33417_s0 + $0x19b0] sm:$0xff]   ;;  %21154 = vst [vmem:[%s33418_s1 + $0x1db0] sm:$0xff] %v25591_v56 }
  0x7d   :  { %v25584_v49 = vld [vmem:[%s33417_s0 + $0xda0] sm:$0xff]   ;;  %21122 = vst [vmem:[%s33418_s1 + $0x9a0] sm:$0xff] %v25583_v48  ;;  %v25593_v58 = vld [vmem:[%s33417_s0 + $0xdb0] sm:$0xff]   ;;  %21158 = vst [vmem:[%s33418_s1 + $0x9b0] sm:$0xff] %v25592_v57 }
  0x7e   :  { %v25585_v50 = vld [vmem:[%s33417_s0 + $0x1a0] sm:$0xff]   ;;  %21126 = vst [vmem:[%s33418_s1 + $0x15a0] sm:$0xff] %v25584_v49  ;;  %v25594_v59 = vld [vmem:[%s33417_s0 + $0x1b0] sm:$0xff]   ;;  %21162 = vst [vmem:[%s33418_s1 + $0x15b0] sm:$0xff] %v25593_v58 }
  0x7f   :  { %21130 = vst [vmem:[%s33418_s1 + $0x21a0] sm:$0xff] %v25585_v50  ;;  %v25595_v60 = vld [vmem:[%s33417_s0 + $0x21c0] sm:$0xff]   ;;  %21166 = vst [vmem:[%s33418_s1 + $0x21b0] sm:$0xff] %v25594_v59  ;;  %v25604_v5 = vld [vmem:[%s33417_s0 + $0x21d0] sm:$0xff]  }
  0x80   :  { %v25596_v61 = vld [vmem:[%s33417_s0 + $0x15c0] sm:$0xff]   ;;  %21170 = vst [vmem:[%s33418_s1 + $0x1c0] sm:$0xff] %v25595_v60  ;;  %v25605_v6 = vld [vmem:[%s33417_s0 + $0x15d0] sm:$0xff]   ;;  %21206 = vst [vmem:[%s33418_s1 + $0x1d0] sm:$0xff] %v25604_v5 }
  0x81   :  { %v25597_v62 = vld [vmem:[%s33417_s0 + $0x9c0] sm:$0xff]   ;;  %21174 = vst [vmem:[%s33418_s1 + $0xdc0] sm:$0xff] %v25596_v61  ;;  %v25606_v7 = vld [vmem:[%s33417_s0 + $0x9d0] sm:$0xff]   ;;  %21210 = vst [vmem:[%s33418_s1 + $0xdd0] sm:$0xff] %v25605_v6 }
  0x82   :  { %v25598_v63 = vld [vmem:[%s33417_s0 + $0x1dc0] sm:$0xff]   ;;  %21178 = vst [vmem:[%s33418_s1 + $0x19c0] sm:$0xff] %v25597_v62  ;;  %v25607_v8 = vld [vmem:[%s33417_s0 + $0x1dd0] sm:$0xff]   ;;  %21214 = vst [vmem:[%s33418_s1 + $0x19d0] sm:$0xff] %v25606_v7 }
  0x83   :  { %v25599_v0 = vld [vmem:[%s33417_s0 + $0x11c0] sm:$0xff]   ;;  %21182 = vst [vmem:[%s33418_s1 + $0x5c0] sm:$0xff] %v25598_v63  ;;  %v25608_v9 = vld [vmem:[%s33417_s0 + $0x11d0] sm:$0xff]   ;;  %21218 = vst [vmem:[%s33418_s1 + $0x5d0] sm:$0xff] %v25607_v8 }
  0x84   :  { %v25600_v1 = vld [vmem:[%s33417_s0 + $0x5c0] sm:$0xff]   ;;  %21186 = vst [vmem:[%s33418_s1 + $0x11c0] sm:$0xff] %v25599_v0  ;;  %v25609_v10 = vld [vmem:[%s33417_s0 + $0x5d0] sm:$0xff]   ;;  %21222 = vst [vmem:[%s33418_s1 + $0x11d0] sm:$0xff] %v25608_v9 }
  0x85   :  { %v25601_v2 = vld [vmem:[%s33417_s0 + $0x19c0] sm:$0xff]   ;;  %21190 = vst [vmem:[%s33418_s1 + $0x1dc0] sm:$0xff] %v25600_v1  ;;  %v25610_v11 = vld [vmem:[%s33417_s0 + $0x19d0] sm:$0xff]   ;;  %21226 = vst [vmem:[%s33418_s1 + $0x1dd0] sm:$0xff] %v25609_v10 }
  0x86   :  { %v25602_v3 = vld [vmem:[%s33417_s0 + $0xdc0] sm:$0xff]   ;;  %21194 = vst [vmem:[%s33418_s1 + $0x9c0] sm:$0xff] %v25601_v2  ;;  %v25611_v12 = vld [vmem:[%s33417_s0 + $0xdd0] sm:$0xff]   ;;  %21230 = vst [vmem:[%s33418_s1 + $0x9d0] sm:$0xff] %v25610_v11 }
  0x87   :  { %v25603_v4 = vld [vmem:[%s33417_s0 + $0x1c0] sm:$0xff]   ;;  %21198 = vst [vmem:[%s33418_s1 + $0x15c0] sm:$0xff] %v25602_v3  ;;  %v25612_v13 = vld [vmem:[%s33417_s0 + $0x1d0] sm:$0xff]   ;;  %21234 = vst [vmem:[%s33418_s1 + $0x15d0] sm:$0xff] %v25611_v12 }
  0x88   :  { %21202 = vst [vmem:[%s33418_s1 + $0x21c0] sm:$0xff] %v25603_v4  ;;  %v25613_v14 = vld [vmem:[%s33417_s0 + $0x21e0] sm:$0xff]   ;;  %21238 = vst [vmem:[%s33418_s1 + $0x21d0] sm:$0xff] %v25612_v13  ;;  %v25622_v23 = vld [vmem:[%s33417_s0 + $0x21f0] sm:$0xff]  }
  0x89   :  { %v25614_v15 = vld [vmem:[%s33417_s0 + $0x15e0] sm:$0xff]   ;;  %21242 = vst [vmem:[%s33418_s1 + $0x1e0] sm:$0xff] %v25613_v14  ;;  %v25623_v24 = vld [vmem:[%s33417_s0 + $0x15f0] sm:$0xff]   ;;  %21278 = vst [vmem:[%s33418_s1 + $0x1f0] sm:$0xff] %v25622_v23 }
  0x8a   :  { %v25615_v16 = vld [vmem:[%s33417_s0 + $0x9e0] sm:$0xff]   ;;  %21246 = vst [vmem:[%s33418_s1 + $0xde0] sm:$0xff] %v25614_v15  ;;  %v25624_v25 = vld [vmem:[%s33417_s0 + $0x9f0] sm:$0xff]   ;;  %21282 = vst [vmem:[%s33418_s1 + $0xdf0] sm:$0xff] %v25623_v24 }
  0x8b   :  { %v25616_v17 = vld [vmem:[%s33417_s0 + $0x1de0] sm:$0xff]   ;;  %21250 = vst [vmem:[%s33418_s1 + $0x19e0] sm:$0xff] %v25615_v16  ;;  %v25625_v26 = vld [vmem:[%s33417_s0 + $0x1df0] sm:$0xff]   ;;  %21286 = vst [vmem:[%s33418_s1 + $0x19f0] sm:$0xff] %v25624_v25 }
  0x8c   :  { %v25617_v18 = vld [vmem:[%s33417_s0 + $0x11e0] sm:$0xff]   ;;  %21254 = vst [vmem:[%s33418_s1 + $0x5e0] sm:$0xff] %v25616_v17  ;;  %v25626_v27 = vld [vmem:[%s33417_s0 + $0x11f0] sm:$0xff]   ;;  %21290 = vst [vmem:[%s33418_s1 + $0x5f0] sm:$0xff] %v25625_v26 }
  0x8d   :  { %v25618_v19 = vld [vmem:[%s33417_s0 + $0x5e0] sm:$0xff]   ;;  %21258 = vst [vmem:[%s33418_s1 + $0x11e0] sm:$0xff] %v25617_v18  ;;  %v25627_v28 = vld [vmem:[%s33417_s0 + $0x5f0] sm:$0xff]   ;;  %21294 = vst [vmem:[%s33418_s1 + $0x11f0] sm:$0xff] %v25626_v27 }
  0x8e   :  { %v25619_v20 = vld [vmem:[%s33417_s0 + $0x19e0] sm:$0xff]   ;;  %21262 = vst [vmem:[%s33418_s1 + $0x1de0] sm:$0xff] %v25618_v19  ;;  %v25628_v29 = vld [vmem:[%s33417_s0 + $0x19f0] sm:$0xff]   ;;  %21298 = vst [vmem:[%s33418_s1 + $0x1df0] sm:$0xff] %v25627_v28 }
  0x8f   :  { %v25620_v21 = vld [vmem:[%s33417_s0 + $0xde0] sm:$0xff]   ;;  %21266 = vst [vmem:[%s33418_s1 + $0x9e0] sm:$0xff] %v25619_v20  ;;  %v25629_v30 = vld [vmem:[%s33417_s0 + $0xdf0] sm:$0xff]   ;;  %21302 = vst [vmem:[%s33418_s1 + $0x9f0] sm:$0xff] %v25628_v29 }
  0x90   :  { %v25621_v22 = vld [vmem:[%s33417_s0 + $0x1e0] sm:$0xff]   ;;  %21270 = vst [vmem:[%s33418_s1 + $0x15e0] sm:$0xff] %v25620_v21  ;;  %v25630_v31 = vld [vmem:[%s33417_s0 + $0x1f0] sm:$0xff]   ;;  %21306 = vst [vmem:[%s33418_s1 + $0x15f0] sm:$0xff] %v25629_v30 }
  0x91   :  { %21274 = vst [vmem:[%s33418_s1 + $0x21e0] sm:$0xff] %v25621_v22  ;;  %v25631_v32 = vld [vmem:[%s33417_s0 + $0x2200] sm:$0xff]   ;;  %21310 = vst [vmem:[%s33418_s1 + $0x21f0] sm:$0xff] %v25630_v31  ;;  %v25640_v41 = vld [vmem:[%s33417_s0 + $0x2210] sm:$0xff]  }
  0x92   :  { %v25632_v33 = vld [vmem:[%s33417_s0 + $0x1600] sm:$0xff]   ;;  %21314 = vst [vmem:[%s33418_s1 + $0x200] sm:$0xff] %v25631_v32  ;;  %v25641_v42 = vld [vmem:[%s33417_s0 + $0x1610] sm:$0xff]   ;;  %21350 = vst [vmem:[%s33418_s1 + $0x210] sm:$0xff] %v25640_v41 }
  0x93   :  { %v25633_v34 = vld [vmem:[%s33417_s0 + $0xa00] sm:$0xff]   ;;  %21318 = vst [vmem:[%s33418_s1 + $0xe00] sm:$0xff] %v25632_v33  ;;  %v25642_v43 = vld [vmem:[%s33417_s0 + $0xa10] sm:$0xff]   ;;  %21354 = vst [vmem:[%s33418_s1 + $0xe10] sm:$0xff] %v25641_v42 }
  0x94   :  { %v25634_v35 = vld [vmem:[%s33417_s0 + $0x1e00] sm:$0xff]   ;;  %21322 = vst [vmem:[%s33418_s1 + $0x1a00] sm:$0xff] %v25633_v34  ;;  %v25643_v44 = vld [vmem:[%s33417_s0 + $0x1e10] sm:$0xff]   ;;  %21358 = vst [vmem:[%s33418_s1 + $0x1a10] sm:$0xff] %v25642_v43 }
  0x95   :  { %v25635_v36 = vld [vmem:[%s33417_s0 + $0x1200] sm:$0xff]   ;;  %21326 = vst [vmem:[%s33418_s1 + $0x600] sm:$0xff] %v25634_v35  ;;  %v25644_v45 = vld [vmem:[%s33417_s0 + $0x1210] sm:$0xff]   ;;  %21362 = vst [vmem:[%s33418_s1 + $0x610] sm:$0xff] %v25643_v44 }
  0x96   :  { %v25636_v37 = vld [vmem:[%s33417_s0 + $0x600] sm:$0xff]   ;;  %21330 = vst [vmem:[%s33418_s1 + $0x1200] sm:$0xff] %v25635_v36  ;;  %v25645_v46 = vld [vmem:[%s33417_s0 + $0x610] sm:$0xff]   ;;  %21366 = vst [vmem:[%s33418_s1 + $0x1210] sm:$0xff] %v25644_v45 }
  0x97   :  { %v25637_v38 = vld [vmem:[%s33417_s0 + $0x1a00] sm:$0xff]   ;;  %21334 = vst [vmem:[%s33418_s1 + $0x1e00] sm:$0xff] %v25636_v37  ;;  %v25646_v47 = vld [vmem:[%s33417_s0 + $0x1a10] sm:$0xff]   ;;  %21370 = vst [vmem:[%s33418_s1 + $0x1e10] sm:$0xff] %v25645_v46 }
  0x98   :  { %v25638_v39 = vld [vmem:[%s33417_s0 + $0xe00] sm:$0xff]   ;;  %21338 = vst [vmem:[%s33418_s1 + $0xa00] sm:$0xff] %v25637_v38  ;;  %v25647_v48 = vld [vmem:[%s33417_s0 + $0xe10] sm:$0xff]   ;;  %21374 = vst [vmem:[%s33418_s1 + $0xa10] sm:$0xff] %v25646_v47 }
  0x99   :  { %v25639_v40 = vld [vmem:[%s33417_s0 + $0x200] sm:$0xff]   ;;  %21342 = vst [vmem:[%s33418_s1 + $0x1600] sm:$0xff] %v25638_v39  ;;  %v25648_v49 = vld [vmem:[%s33417_s0 + $0x210] sm:$0xff]   ;;  %21378 = vst [vmem:[%s33418_s1 + $0x1610] sm:$0xff] %v25647_v48 }
  0x9a   :  { %21346 = vst [vmem:[%s33418_s1 + $0x2200] sm:$0xff] %v25639_v40  ;;  %v25649_v50 = vld [vmem:[%s33417_s0 + $0x2220] sm:$0xff]   ;;  %21382 = vst [vmem:[%s33418_s1 + $0x2210] sm:$0xff] %v25648_v49  ;;  %v25658_v59 = vld [vmem:[%s33417_s0 + $0x2230] sm:$0xff]  }
  0x9b   :  { %v25650_v51 = vld [vmem:[%s33417_s0 + $0x1620] sm:$0xff]   ;;  %21386 = vst [vmem:[%s33418_s1 + $0x220] sm:$0xff] %v25649_v50  ;;  %v25659_v60 = vld [vmem:[%s33417_s0 + $0x1630] sm:$0xff]   ;;  %21422 = vst [vmem:[%s33418_s1 + $0x230] sm:$0xff] %v25658_v59 }
  0x9c   :  { %v25651_v52 = vld [vmem:[%s33417_s0 + $0xa20] sm:$0xff]   ;;  %21390 = vst [vmem:[%s33418_s1 + $0xe20] sm:$0xff] %v25650_v51  ;;  %v25660_v61 = vld [vmem:[%s33417_s0 + $0xa30] sm:$0xff]   ;;  %21426 = vst [vmem:[%s33418_s1 + $0xe30] sm:$0xff] %v25659_v60 }
  0x9d   :  { %v25652_v53 = vld [vmem:[%s33417_s0 + $0x1e20] sm:$0xff]   ;;  %21394 = vst [vmem:[%s33418_s1 + $0x1a20] sm:$0xff] %v25651_v52  ;;  %v25661_v62 = vld [vmem:[%s33417_s0 + $0x1e30] sm:$0xff]   ;;  %21430 = vst [vmem:[%s33418_s1 + $0x1a30] sm:$0xff] %v25660_v61 }
  0x9e   :  { %v25653_v54 = vld [vmem:[%s33417_s0 + $0x1220] sm:$0xff]   ;;  %21398 = vst [vmem:[%s33418_s1 + $0x620] sm:$0xff] %v25652_v53  ;;  %v25662_v63 = vld [vmem:[%s33417_s0 + $0x1230] sm:$0xff]   ;;  %21434 = vst [vmem:[%s33418_s1 + $0x630] sm:$0xff] %v25661_v62 }
  0x9f   :  { %v25654_v55 = vld [vmem:[%s33417_s0 + $0x620] sm:$0xff]   ;;  %21402 = vst [vmem:[%s33418_s1 + $0x1220] sm:$0xff] %v25653_v54  ;;  %v25663_v0 = vld [vmem:[%s33417_s0 + $0x630] sm:$0xff]   ;;  %21438 = vst [vmem:[%s33418_s1 + $0x1230] sm:$0xff] %v25662_v63 }
  0xa0   :  { %v25655_v56 = vld [vmem:[%s33417_s0 + $0x1a20] sm:$0xff]   ;;  %21406 = vst [vmem:[%s33418_s1 + $0x1e20] sm:$0xff] %v25654_v55  ;;  %v25664_v1 = vld [vmem:[%s33417_s0 + $0x1a30] sm:$0xff]   ;;  %21442 = vst [vmem:[%s33418_s1 + $0x1e30] sm:$0xff] %v25663_v0 }
  0xa1   :  { %v25656_v57 = vld [vmem:[%s33417_s0 + $0xe20] sm:$0xff]   ;;  %21410 = vst [vmem:[%s33418_s1 + $0xa20] sm:$0xff] %v25655_v56  ;;  %v25665_v2 = vld [vmem:[%s33417_s0 + $0xe30] sm:$0xff]   ;;  %21446 = vst [vmem:[%s33418_s1 + $0xa30] sm:$0xff] %v25664_v1 }
  0xa2   :  { %v25657_v58 = vld [vmem:[%s33417_s0 + $0x220] sm:$0xff]   ;;  %21414 = vst [vmem:[%s33418_s1 + $0x1620] sm:$0xff] %v25656_v57  ;;  %v25666_v3 = vld [vmem:[%s33417_s0 + $0x230] sm:$0xff]   ;;  %21450 = vst [vmem:[%s33418_s1 + $0x1630] sm:$0xff] %v25665_v2 }
  0xa3   :  { %21418 = vst [vmem:[%s33418_s1 + $0x2220] sm:$0xff] %v25657_v58  ;;  %v25667_v4 = vld [vmem:[%s33417_s0 + $0x2240] sm:$0xff]   ;;  %21454 = vst [vmem:[%s33418_s1 + $0x2230] sm:$0xff] %v25666_v3  ;;  %v25676_v13 = vld [vmem:[%s33417_s0 + $0x2250] sm:$0xff]  }
  0xa4   :  { %v25668_v5 = vld [vmem:[%s33417_s0 + $0x1640] sm:$0xff]   ;;  %21458 = vst [vmem:[%s33418_s1 + $0x240] sm:$0xff] %v25667_v4  ;;  %v25677_v14 = vld [vmem:[%s33417_s0 + $0x1650] sm:$0xff]   ;;  %21494 = vst [vmem:[%s33418_s1 + $0x250] sm:$0xff] %v25676_v13 }
  0xa5   :  { %v25669_v6 = vld [vmem:[%s33417_s0 + $0xa40] sm:$0xff]   ;;  %21462 = vst [vmem:[%s33418_s1 + $0xe40] sm:$0xff] %v25668_v5  ;;  %v25678_v15 = vld [vmem:[%s33417_s0 + $0xa50] sm:$0xff]   ;;  %21498 = vst [vmem:[%s33418_s1 + $0xe50] sm:$0xff] %v25677_v14 }
  0xa6   :  { %v25670_v7 = vld [vmem:[%s33417_s0 + $0x1e40] sm:$0xff]   ;;  %21466 = vst [vmem:[%s33418_s1 + $0x1a40] sm:$0xff] %v25669_v6  ;;  %v25679_v16 = vld [vmem:[%s33417_s0 + $0x1e50] sm:$0xff]   ;;  %21502 = vst [vmem:[%s33418_s1 + $0x1a50] sm:$0xff] %v25678_v15 }
  0xa7   :  { %v25671_v8 = vld [vmem:[%s33417_s0 + $0x1240] sm:$0xff]   ;;  %21470 = vst [vmem:[%s33418_s1 + $0x640] sm:$0xff] %v25670_v7  ;;  %v25680_v17 = vld [vmem:[%s33417_s0 + $0x1250] sm:$0xff]   ;;  %21506 = vst [vmem:[%s33418_s1 + $0x650] sm:$0xff] %v25679_v16 }
  0xa8   :  { %v25672_v9 = vld [vmem:[%s33417_s0 + $0x640] sm:$0xff]   ;;  %21474 = vst [vmem:[%s33418_s1 + $0x1240] sm:$0xff] %v25671_v8  ;;  %v25681_v18 = vld [vmem:[%s33417_s0 + $0x650] sm:$0xff]   ;;  %21510 = vst [vmem:[%s33418_s1 + $0x1250] sm:$0xff] %v25680_v17 }
  0xa9   :  { %v25673_v10 = vld [vmem:[%s33417_s0 + $0x1a40] sm:$0xff]   ;;  %21478 = vst [vmem:[%s33418_s1 + $0x1e40] sm:$0xff] %v25672_v9  ;;  %v25682_v19 = vld [vmem:[%s33417_s0 + $0x1a50] sm:$0xff]   ;;  %21514 = vst [vmem:[%s33418_s1 + $0x1e50] sm:$0xff] %v25681_v18 }
  0xaa   :  { %v25674_v11 = vld [vmem:[%s33417_s0 + $0xe40] sm:$0xff]   ;;  %21482 = vst [vmem:[%s33418_s1 + $0xa40] sm:$0xff] %v25673_v10  ;;  %v25683_v20 = vld [vmem:[%s33417_s0 + $0xe50] sm:$0xff]   ;;  %21518 = vst [vmem:[%s33418_s1 + $0xa50] sm:$0xff] %v25682_v19 }
  0xab   :  { %v25675_v12 = vld [vmem:[%s33417_s0 + $0x240] sm:$0xff]   ;;  %21486 = vst [vmem:[%s33418_s1 + $0x1640] sm:$0xff] %v25674_v11  ;;  %v25684_v21 = vld [vmem:[%s33417_s0 + $0x250] sm:$0xff]   ;;  %21522 = vst [vmem:[%s33418_s1 + $0x1650] sm:$0xff] %v25683_v20 }
  0xac   :  { %21490 = vst [vmem:[%s33418_s1 + $0x2240] sm:$0xff] %v25675_v12  ;;  %v25685_v22 = vld [vmem:[%s33417_s0 + $0x2260] sm:$0xff]   ;;  %21526 = vst [vmem:[%s33418_s1 + $0x2250] sm:$0xff] %v25684_v21  ;;  %v25694_v31 = vld [vmem:[%s33417_s0 + $0x2270] sm:$0xff]  }
  0xad   :  { %v25686_v23 = vld [vmem:[%s33417_s0 + $0x1660] sm:$0xff]   ;;  %21530 = vst [vmem:[%s33418_s1 + $0x260] sm:$0xff] %v25685_v22  ;;  %v25695_v32 = vld [vmem:[%s33417_s0 + $0x1670] sm:$0xff]   ;;  %21566 = vst [vmem:[%s33418_s1 + $0x270] sm:$0xff] %v25694_v31 }
  0xae   :  { %v25687_v24 = vld [vmem:[%s33417_s0 + $0xa60] sm:$0xff]   ;;  %21534 = vst [vmem:[%s33418_s1 + $0xe60] sm:$0xff] %v25686_v23  ;;  %v25696_v33 = vld [vmem:[%s33417_s0 + $0xa70] sm:$0xff]   ;;  %21570 = vst [vmem:[%s33418_s1 + $0xe70] sm:$0xff] %v25695_v32 }
  0xaf   :  { %v25688_v25 = vld [vmem:[%s33417_s0 + $0x1e60] sm:$0xff]   ;;  %21538 = vst [vmem:[%s33418_s1 + $0x1a60] sm:$0xff] %v25687_v24  ;;  %v25697_v34 = vld [vmem:[%s33417_s0 + $0x1e70] sm:$0xff]   ;;  %21574 = vst [vmem:[%s33418_s1 + $0x1a70] sm:$0xff] %v25696_v33 }
  0xb0   :  { %v25689_v26 = vld [vmem:[%s33417_s0 + $0x1260] sm:$0xff]   ;;  %21542 = vst [vmem:[%s33418_s1 + $0x660] sm:$0xff] %v25688_v25  ;;  %v25698_v35 = vld [vmem:[%s33417_s0 + $0x1270] sm:$0xff]   ;;  %21578 = vst [vmem:[%s33418_s1 + $0x670] sm:$0xff] %v25697_v34 }
  0xb1   :  { %v25690_v27 = vld [vmem:[%s33417_s0 + $0x660] sm:$0xff]   ;;  %21546 = vst [vmem:[%s33418_s1 + $0x1260] sm:$0xff] %v25689_v26  ;;  %v25699_v36 = vld [vmem:[%s33417_s0 + $0x670] sm:$0xff]   ;;  %21582 = vst [vmem:[%s33418_s1 + $0x1270] sm:$0xff] %v25698_v35 }
  0xb2   :  { %v25691_v28 = vld [vmem:[%s33417_s0 + $0x1a60] sm:$0xff]   ;;  %21550 = vst [vmem:[%s33418_s1 + $0x1e60] sm:$0xff] %v25690_v27  ;;  %v25700_v37 = vld [vmem:[%s33417_s0 + $0x1a70] sm:$0xff]   ;;  %21586 = vst [vmem:[%s33418_s1 + $0x1e70] sm:$0xff] %v25699_v36 }
  0xb3   :  { %v25692_v29 = vld [vmem:[%s33417_s0 + $0xe60] sm:$0xff]   ;;  %21554 = vst [vmem:[%s33418_s1 + $0xa60] sm:$0xff] %v25691_v28  ;;  %v25701_v38 = vld [vmem:[%s33417_s0 + $0xe70] sm:$0xff]   ;;  %21590 = vst [vmem:[%s33418_s1 + $0xa70] sm:$0xff] %v25700_v37 }
  0xb4   :  { %v25693_v30 = vld [vmem:[%s33417_s0 + $0x260] sm:$0xff]   ;;  %21558 = vst [vmem:[%s33418_s1 + $0x1660] sm:$0xff] %v25692_v29  ;;  %v25702_v39 = vld [vmem:[%s33417_s0 + $0x270] sm:$0xff]   ;;  %21594 = vst [vmem:[%s33418_s1 + $0x1670] sm:$0xff] %v25701_v38 }
  0xb5   :  { %21562 = vst [vmem:[%s33418_s1 + $0x2260] sm:$0xff] %v25693_v30  ;;  %v25703_v40 = vld [vmem:[%s33417_s0 + $0x2280] sm:$0xff]   ;;  %21598 = vst [vmem:[%s33418_s1 + $0x2270] sm:$0xff] %v25702_v39  ;;  %v25712_v49 = vld [vmem:[%s33417_s0 + $0x2290] sm:$0xff]  }
  0xb6   :  { %v25704_v41 = vld [vmem:[%s33417_s0 + $0x1680] sm:$0xff]   ;;  %21602 = vst [vmem:[%s33418_s1 + $0x280] sm:$0xff] %v25703_v40  ;;  %v25713_v50 = vld [vmem:[%s33417_s0 + $0x1690] sm:$0xff]   ;;  %21638 = vst [vmem:[%s33418_s1 + $0x290] sm:$0xff] %v25712_v49 }
  0xb7   :  { %v25705_v42 = vld [vmem:[%s33417_s0 + $0xa80] sm:$0xff]   ;;  %21606 = vst [vmem:[%s33418_s1 + $0xe80] sm:$0xff] %v25704_v41  ;;  %v25714_v51 = vld [vmem:[%s33417_s0 + $0xa90] sm:$0xff]   ;;  %21642 = vst [vmem:[%s33418_s1 + $0xe90] sm:$0xff] %v25713_v50 }
  0xb8   :  { %v25706_v43 = vld [vmem:[%s33417_s0 + $0x1e80] sm:$0xff]   ;;  %21610 = vst [vmem:[%s33418_s1 + $0x1a80] sm:$0xff] %v25705_v42  ;;  %v25715_v52 = vld [vmem:[%s33417_s0 + $0x1e90] sm:$0xff]   ;;  %21646 = vst [vmem:[%s33418_s1 + $0x1a90] sm:$0xff] %v25714_v51 }
  0xb9   :  { %v25707_v44 = vld [vmem:[%s33417_s0 + $0x1280] sm:$0xff]   ;;  %21614 = vst [vmem:[%s33418_s1 + $0x680] sm:$0xff] %v25706_v43  ;;  %v25716_v53 = vld [vmem:[%s33417_s0 + $0x1290] sm:$0xff]   ;;  %21650 = vst [vmem:[%s33418_s1 + $0x690] sm:$0xff] %v25715_v52 }
  0xba   :  { %v25708_v45 = vld [vmem:[%s33417_s0 + $0x680] sm:$0xff]   ;;  %21618 = vst [vmem:[%s33418_s1 + $0x1280] sm:$0xff] %v25707_v44  ;;  %v25717_v54 = vld [vmem:[%s33417_s0 + $0x690] sm:$0xff]   ;;  %21654 = vst [vmem:[%s33418_s1 + $0x1290] sm:$0xff] %v25716_v53 }
  0xbb   :  { %v25709_v46 = vld [vmem:[%s33417_s0 + $0x1a80] sm:$0xff]   ;;  %21622 = vst [vmem:[%s33418_s1 + $0x1e80] sm:$0xff] %v25708_v45  ;;  %v25718_v55 = vld [vmem:[%s33417_s0 + $0x1a90] sm:$0xff]   ;;  %21658 = vst [vmem:[%s33418_s1 + $0x1e90] sm:$0xff] %v25717_v54 }
  0xbc   :  { %v25710_v47 = vld [vmem:[%s33417_s0 + $0xe80] sm:$0xff]   ;;  %21626 = vst [vmem:[%s33418_s1 + $0xa80] sm:$0xff] %v25709_v46  ;;  %v25719_v56 = vld [vmem:[%s33417_s0 + $0xe90] sm:$0xff]   ;;  %21662 = vst [vmem:[%s33418_s1 + $0xa90] sm:$0xff] %v25718_v55 }
  0xbd   :  { %v25711_v48 = vld [vmem:[%s33417_s0 + $0x280] sm:$0xff]   ;;  %21630 = vst [vmem:[%s33418_s1 + $0x1680] sm:$0xff] %v25710_v47  ;;  %v25720_v57 = vld [vmem:[%s33417_s0 + $0x290] sm:$0xff]   ;;  %21666 = vst [vmem:[%s33418_s1 + $0x1690] sm:$0xff] %v25719_v56 }
  0xbe   :  { %21634 = vst [vmem:[%s33418_s1 + $0x2280] sm:$0xff] %v25711_v48  ;;  %v25721_v58 = vld [vmem:[%s33417_s0 + $0x22a0] sm:$0xff]   ;;  %21670 = vst [vmem:[%s33418_s1 + $0x2290] sm:$0xff] %v25720_v57  ;;  %v25730_v3 = vld [vmem:[%s33417_s0 + $0x22b0] sm:$0xff]  }
  0xbf   :  { %v25722_v59 = vld [vmem:[%s33417_s0 + $0x16a0] sm:$0xff]   ;;  %21674 = vst [vmem:[%s33418_s1 + $0x2a0] sm:$0xff] %v25721_v58  ;;  %v25731_v4 = vld [vmem:[%s33417_s0 + $0x16b0] sm:$0xff]   ;;  %21710 = vst [vmem:[%s33418_s1 + $0x2b0] sm:$0xff] %v25730_v3 }
  0xc0   :  { %v25723_v60 = vld [vmem:[%s33417_s0 + $0xaa0] sm:$0xff]   ;;  %21678 = vst [vmem:[%s33418_s1 + $0xea0] sm:$0xff] %v25722_v59  ;;  %v25732_v5 = vld [vmem:[%s33417_s0 + $0xab0] sm:$0xff]   ;;  %21714 = vst [vmem:[%s33418_s1 + $0xeb0] sm:$0xff] %v25731_v4 }
  0xc1   :  { %v25724_v61 = vld [vmem:[%s33417_s0 + $0x1ea0] sm:$0xff]   ;;  %21682 = vst [vmem:[%s33418_s1 + $0x1aa0] sm:$0xff] %v25723_v60  ;;  %v25733_v6 = vld [vmem:[%s33417_s0 + $0x1eb0] sm:$0xff]   ;;  %21718 = vst [vmem:[%s33418_s1 + $0x1ab0] sm:$0xff] %v25732_v5 }
  0xc2   :  { %v25725_v62 = vld [vmem:[%s33417_s0 + $0x12a0] sm:$0xff]   ;;  %21686 = vst [vmem:[%s33418_s1 + $0x6a0] sm:$0xff] %v25724_v61  ;;  %v25734_v7 = vld [vmem:[%s33417_s0 + $0x12b0] sm:$0xff]   ;;  %21722 = vst [vmem:[%s33418_s1 + $0x6b0] sm:$0xff] %v25733_v6 }
  0xc3   :  { %v25726_v63 = vld [vmem:[%s33417_s0 + $0x6a0] sm:$0xff]   ;;  %21690 = vst [vmem:[%s33418_s1 + $0x12a0] sm:$0xff] %v25725_v62  ;;  %v25735_v8 = vld [vmem:[%s33417_s0 + $0x6b0] sm:$0xff]   ;;  %21726 = vst [vmem:[%s33418_s1 + $0x12b0] sm:$0xff] %v25734_v7 }
  0xc4   :  { %v25727_v0 = vld [vmem:[%s33417_s0 + $0x1aa0] sm:$0xff]   ;;  %21694 = vst [vmem:[%s33418_s1 + $0x1ea0] sm:$0xff] %v25726_v63  ;;  %v25736_v9 = vld [vmem:[%s33417_s0 + $0x1ab0] sm:$0xff]   ;;  %21730 = vst [vmem:[%s33418_s1 + $0x1eb0] sm:$0xff] %v25735_v8 }
  0xc5   :  { %v25728_v1 = vld [vmem:[%s33417_s0 + $0xea0] sm:$0xff]   ;;  %21698 = vst [vmem:[%s33418_s1 + $0xaa0] sm:$0xff] %v25727_v0  ;;  %v25737_v10 = vld [vmem:[%s33417_s0 + $0xeb0] sm:$0xff]   ;;  %21734 = vst [vmem:[%s33418_s1 + $0xab0] sm:$0xff] %v25736_v9 }
  0xc6   :  { %v25729_v2 = vld [vmem:[%s33417_s0 + $0x2a0] sm:$0xff]   ;;  %21702 = vst [vmem:[%s33418_s1 + $0x16a0] sm:$0xff] %v25728_v1  ;;  %v25738_v11 = vld [vmem:[%s33417_s0 + $0x2b0] sm:$0xff]   ;;  %21738 = vst [vmem:[%s33418_s1 + $0x16b0] sm:$0xff] %v25737_v10 }
  0xc7   :  { %21706 = vst [vmem:[%s33418_s1 + $0x22a0] sm:$0xff] %v25729_v2  ;;  %v25739_v12 = vld [vmem:[%s33417_s0 + $0x22c0] sm:$0xff]   ;;  %21742 = vst [vmem:[%s33418_s1 + $0x22b0] sm:$0xff] %v25738_v11  ;;  %v25748_v21 = vld [vmem:[%s33417_s0 + $0x22d0] sm:$0xff]  }
  0xc8   :  { %v25740_v13 = vld [vmem:[%s33417_s0 + $0x16c0] sm:$0xff]   ;;  %21746 = vst [vmem:[%s33418_s1 + $0x2c0] sm:$0xff] %v25739_v12  ;;  %v25749_v22 = vld [vmem:[%s33417_s0 + $0x16d0] sm:$0xff]   ;;  %21782 = vst [vmem:[%s33418_s1 + $0x2d0] sm:$0xff] %v25748_v21 }
  0xc9   :  { %v25741_v14 = vld [vmem:[%s33417_s0 + $0xac0] sm:$0xff]   ;;  %21750 = vst [vmem:[%s33418_s1 + $0xec0] sm:$0xff] %v25740_v13  ;;  %v25750_v23 = vld [vmem:[%s33417_s0 + $0xad0] sm:$0xff]   ;;  %21786 = vst [vmem:[%s33418_s1 + $0xed0] sm:$0xff] %v25749_v22 }
  0xca   :  { %v25742_v15 = vld [vmem:[%s33417_s0 + $0x1ec0] sm:$0xff]   ;;  %21754 = vst [vmem:[%s33418_s1 + $0x1ac0] sm:$0xff] %v25741_v14  ;;  %v25751_v24 = vld [vmem:[%s33417_s0 + $0x1ed0] sm:$0xff]   ;;  %21790 = vst [vmem:[%s33418_s1 + $0x1ad0] sm:$0xff] %v25750_v23 }
  0xcb   :  { %v25743_v16 = vld [vmem:[%s33417_s0 + $0x12c0] sm:$0xff]   ;;  %21758 = vst [vmem:[%s33418_s1 + $0x6c0] sm:$0xff] %v25742_v15  ;;  %v25752_v25 = vld [vmem:[%s33417_s0 + $0x12d0] sm:$0xff]   ;;  %21794 = vst [vmem:[%s33418_s1 + $0x6d0] sm:$0xff] %v25751_v24 }
  0xcc   :  { %v25744_v17 = vld [vmem:[%s33417_s0 + $0x6c0] sm:$0xff]   ;;  %21762 = vst [vmem:[%s33418_s1 + $0x12c0] sm:$0xff] %v25743_v16  ;;  %v25753_v26 = vld [vmem:[%s33417_s0 + $0x6d0] sm:$0xff]   ;;  %21798 = vst [vmem:[%s33418_s1 + $0x12d0] sm:$0xff] %v25752_v25 }
  0xcd   :  { %v25745_v18 = vld [vmem:[%s33417_s0 + $0x1ac0] sm:$0xff]   ;;  %21766 = vst [vmem:[%s33418_s1 + $0x1ec0] sm:$0xff] %v25744_v17  ;;  %v25754_v27 = vld [vmem:[%s33417_s0 + $0x1ad0] sm:$0xff]   ;;  %21802 = vst [vmem:[%s33418_s1 + $0x1ed0] sm:$0xff] %v25753_v26 }
  0xce   :  { %v25746_v19 = vld [vmem:[%s33417_s0 + $0xec0] sm:$0xff]   ;;  %21770 = vst [vmem:[%s33418_s1 + $0xac0] sm:$0xff] %v25745_v18  ;;  %v25755_v28 = vld [vmem:[%s33417_s0 + $0xed0] sm:$0xff]   ;;  %21806 = vst [vmem:[%s33418_s1 + $0xad0] sm:$0xff] %v25754_v27 }
  0xcf   :  { %v25747_v20 = vld [vmem:[%s33417_s0 + $0x2c0] sm:$0xff]   ;;  %21774 = vst [vmem:[%s33418_s1 + $0x16c0] sm:$0xff] %v25746_v19  ;;  %v25756_v29 = vld [vmem:[%s33417_s0 + $0x2d0] sm:$0xff]   ;;  %21810 = vst [vmem:[%s33418_s1 + $0x16d0] sm:$0xff] %v25755_v28 }
  0xd0   :  { %21778 = vst [vmem:[%s33418_s1 + $0x22c0] sm:$0xff] %v25747_v20  ;;  %v25757_v30 = vld [vmem:[%s33417_s0 + $0x22e0] sm:$0xff]   ;;  %21814 = vst [vmem:[%s33418_s1 + $0x22d0] sm:$0xff] %v25756_v29  ;;  %v25766_v39 = vld [vmem:[%s33417_s0 + $0x22f0] sm:$0xff]  }
  0xd1   :  { %v25758_v31 = vld [vmem:[%s33417_s0 + $0x16e0] sm:$0xff]   ;;  %21818 = vst [vmem:[%s33418_s1 + $0x2e0] sm:$0xff] %v25757_v30  ;;  %v25767_v40 = vld [vmem:[%s33417_s0 + $0x16f0] sm:$0xff]   ;;  %21854 = vst [vmem:[%s33418_s1 + $0x2f0] sm:$0xff] %v25766_v39 }
  0xd2   :  { %v25759_v32 = vld [vmem:[%s33417_s0 + $0xae0] sm:$0xff]   ;;  %21822 = vst [vmem:[%s33418_s1 + $0xee0] sm:$0xff] %v25758_v31  ;;  %v25768_v41 = vld [vmem:[%s33417_s0 + $0xaf0] sm:$0xff]   ;;  %21858 = vst [vmem:[%s33418_s1 + $0xef0] sm:$0xff] %v25767_v40 }
  0xd3   :  { %v25760_v33 = vld [vmem:[%s33417_s0 + $0x1ee0] sm:$0xff]   ;;  %21826 = vst [vmem:[%s33418_s1 + $0x1ae0] sm:$0xff] %v25759_v32  ;;  %v25769_v42 = vld [vmem:[%s33417_s0 + $0x1ef0] sm:$0xff]   ;;  %21862 = vst [vmem:[%s33418_s1 + $0x1af0] sm:$0xff] %v25768_v41 }
  0xd4   :  { %v25761_v34 = vld [vmem:[%s33417_s0 + $0x12e0] sm:$0xff]   ;;  %21830 = vst [vmem:[%s33418_s1 + $0x6e0] sm:$0xff] %v25760_v33  ;;  %v25770_v43 = vld [vmem:[%s33417_s0 + $0x12f0] sm:$0xff]   ;;  %21866 = vst [vmem:[%s33418_s1 + $0x6f0] sm:$0xff] %v25769_v42 }
  0xd5   :  { %v25762_v35 = vld [vmem:[%s33417_s0 + $0x6e0] sm:$0xff]   ;;  %21834 = vst [vmem:[%s33418_s1 + $0x12e0] sm:$0xff] %v25761_v34  ;;  %v25771_v44 = vld [vmem:[%s33417_s0 + $0x6f0] sm:$0xff]   ;;  %21870 = vst [vmem:[%s33418_s1 + $0x12f0] sm:$0xff] %v25770_v43 }
  0xd6   :  { %v25763_v36 = vld [vmem:[%s33417_s0 + $0x1ae0] sm:$0xff]   ;;  %21838 = vst [vmem:[%s33418_s1 + $0x1ee0] sm:$0xff] %v25762_v35  ;;  %v25772_v45 = vld [vmem:[%s33417_s0 + $0x1af0] sm:$0xff]   ;;  %21874 = vst [vmem:[%s33418_s1 + $0x1ef0] sm:$0xff] %v25771_v44 }
  0xd7   :  { %v25764_v37 = vld [vmem:[%s33417_s0 + $0xee0] sm:$0xff]   ;;  %21842 = vst [vmem:[%s33418_s1 + $0xae0] sm:$0xff] %v25763_v36  ;;  %v25773_v46 = vld [vmem:[%s33417_s0 + $0xef0] sm:$0xff]   ;;  %21878 = vst [vmem:[%s33418_s1 + $0xaf0] sm:$0xff] %v25772_v45 }
  0xd8   :  { %v25765_v38 = vld [vmem:[%s33417_s0 + $0x2e0] sm:$0xff]   ;;  %21846 = vst [vmem:[%s33418_s1 + $0x16e0] sm:$0xff] %v25764_v37  ;;  %v25774_v47 = vld [vmem:[%s33417_s0 + $0x2f0] sm:$0xff]   ;;  %21882 = vst [vmem:[%s33418_s1 + $0x16f0] sm:$0xff] %v25773_v46 }
  0xd9   :  { %21850 = vst [vmem:[%s33418_s1 + $0x22e0] sm:$0xff] %v25765_v38  ;;  %v25775_v48 = vld [vmem:[%s33417_s0 + $0x2300] sm:$0xff]   ;;  %21886 = vst [vmem:[%s33418_s1 + $0x22f0] sm:$0xff] %v25774_v47  ;;  %v25784_v57 = vld [vmem:[%s33417_s0 + $0x2310] sm:$0xff]  }
  0xda   :  { %v25776_v49 = vld [vmem:[%s33417_s0 + $0x1700] sm:$0xff]   ;;  %21890 = vst [vmem:[%s33418_s1 + $0x300] sm:$0xff] %v25775_v48  ;;  %v25785_v58 = vld [vmem:[%s33417_s0 + $0x1710] sm:$0xff]   ;;  %21926 = vst [vmem:[%s33418_s1 + $0x310] sm:$0xff] %v25784_v57 }
  0xdb   :  { %v25777_v50 = vld [vmem:[%s33417_s0 + $0xb00] sm:$0xff]   ;;  %21894 = vst [vmem:[%s33418_s1 + $0xf00] sm:$0xff] %v25776_v49  ;;  %v25786_v59 = vld [vmem:[%s33417_s0 + $0xb10] sm:$0xff]   ;;  %21930 = vst [vmem:[%s33418_s1 + $0xf10] sm:$0xff] %v25785_v58 }
  0xdc   :  { %v25778_v51 = vld [vmem:[%s33417_s0 + $0x1f00] sm:$0xff]   ;;  %21898 = vst [vmem:[%s33418_s1 + $0x1b00] sm:$0xff] %v25777_v50  ;;  %v25787_v60 = vld [vmem:[%s33417_s0 + $0x1f10] sm:$0xff]   ;;  %21934 = vst [vmem:[%s33418_s1 + $0x1b10] sm:$0xff] %v25786_v59 }
  0xdd   :  { %v25779_v52 = vld [vmem:[%s33417_s0 + $0x1300] sm:$0xff]   ;;  %21902 = vst [vmem:[%s33418_s1 + $0x700] sm:$0xff] %v25778_v51  ;;  %v25788_v61 = vld [vmem:[%s33417_s0 + $0x1310] sm:$0xff]   ;;  %21938 = vst [vmem:[%s33418_s1 + $0x710] sm:$0xff] %v25787_v60 }
  0xde   :  { %v25780_v53 = vld [vmem:[%s33417_s0 + $0x700] sm:$0xff]   ;;  %21906 = vst [vmem:[%s33418_s1 + $0x1300] sm:$0xff] %v25779_v52  ;;  %v25789_v62 = vld [vmem:[%s33417_s0 + $0x710] sm:$0xff]   ;;  %21942 = vst [vmem:[%s33418_s1 + $0x1310] sm:$0xff] %v25788_v61 }
  0xdf   :  { %v25781_v54 = vld [vmem:[%s33417_s0 + $0x1b00] sm:$0xff]   ;;  %21910 = vst [vmem:[%s33418_s1 + $0x1f00] sm:$0xff] %v25780_v53  ;;  %v25790_v63 = vld [vmem:[%s33417_s0 + $0x1b10] sm:$0xff]   ;;  %21946 = vst [vmem:[%s33418_s1 + $0x1f10] sm:$0xff] %v25789_v62 }
  0xe0   :  { %v25782_v55 = vld [vmem:[%s33417_s0 + $0xf00] sm:$0xff]   ;;  %21914 = vst [vmem:[%s33418_s1 + $0xb00] sm:$0xff] %v25781_v54  ;;  %v25791_v0 = vld [vmem:[%s33417_s0 + $0xf10] sm:$0xff]   ;;  %21950 = vst [vmem:[%s33418_s1 + $0xb10] sm:$0xff] %v25790_v63 }
  0xe1   :  { %v25783_v56 = vld [vmem:[%s33417_s0 + $0x300] sm:$0xff]   ;;  %21918 = vst [vmem:[%s33418_s1 + $0x1700] sm:$0xff] %v25782_v55  ;;  %v25792_v1 = vld [vmem:[%s33417_s0 + $0x310] sm:$0xff]   ;;  %21954 = vst [vmem:[%s33418_s1 + $0x1710] sm:$0xff] %v25791_v0 }
  0xe2   :  { %21922 = vst [vmem:[%s33418_s1 + $0x2300] sm:$0xff] %v25783_v56  ;;  %v25793_v2 = vld [vmem:[%s33417_s0 + $0x2320] sm:$0xff]   ;;  %21958 = vst [vmem:[%s33418_s1 + $0x2310] sm:$0xff] %v25792_v1  ;;  %v25802_v11 = vld [vmem:[%s33417_s0 + $0x2330] sm:$0xff]  }
  0xe3   :  { %v25794_v3 = vld [vmem:[%s33417_s0 + $0x1720] sm:$0xff]   ;;  %21962 = vst [vmem:[%s33418_s1 + $0x320] sm:$0xff] %v25793_v2  ;;  %v25803_v12 = vld [vmem:[%s33417_s0 + $0x1730] sm:$0xff]   ;;  %21998 = vst [vmem:[%s33418_s1 + $0x330] sm:$0xff] %v25802_v11 }
  0xe4   :  { %v25795_v4 = vld [vmem:[%s33417_s0 + $0xb20] sm:$0xff]   ;;  %21966 = vst [vmem:[%s33418_s1 + $0xf20] sm:$0xff] %v25794_v3  ;;  %v25804_v13 = vld [vmem:[%s33417_s0 + $0xb30] sm:$0xff]   ;;  %22002 = vst [vmem:[%s33418_s1 + $0xf30] sm:$0xff] %v25803_v12 }
  0xe5   :  { %v25796_v5 = vld [vmem:[%s33417_s0 + $0x1f20] sm:$0xff]   ;;  %21970 = vst [vmem:[%s33418_s1 + $0x1b20] sm:$0xff] %v25795_v4  ;;  %v25805_v14 = vld [vmem:[%s33417_s0 + $0x1f30] sm:$0xff]   ;;  %22006 = vst [vmem:[%s33418_s1 + $0x1b30] sm:$0xff] %v25804_v13 }
  0xe6   :  { %v25797_v6 = vld [vmem:[%s33417_s0 + $0x1320] sm:$0xff]   ;;  %21974 = vst [vmem:[%s33418_s1 + $0x720] sm:$0xff] %v25796_v5  ;;  %v25806_v15 = vld [vmem:[%s33417_s0 + $0x1330] sm:$0xff]   ;;  %22010 = vst [vmem:[%s33418_s1 + $0x730] sm:$0xff] %v25805_v14 }
  0xe7   :  { %v25798_v7 = vld [vmem:[%s33417_s0 + $0x720] sm:$0xff]   ;;  %21978 = vst [vmem:[%s33418_s1 + $0x1320] sm:$0xff] %v25797_v6  ;;  %v25807_v16 = vld [vmem:[%s33417_s0 + $0x730] sm:$0xff]   ;;  %22014 = vst [vmem:[%s33418_s1 + $0x1330] sm:$0xff] %v25806_v15 }
  0xe8   :  { %v25799_v8 = vld [vmem:[%s33417_s0 + $0x1b20] sm:$0xff]   ;;  %21982 = vst [vmem:[%s33418_s1 + $0x1f20] sm:$0xff] %v25798_v7  ;;  %v25808_v17 = vld [vmem:[%s33417_s0 + $0x1b30] sm:$0xff]   ;;  %22018 = vst [vmem:[%s33418_s1 + $0x1f30] sm:$0xff] %v25807_v16 }
  0xe9   :  { %v25800_v9 = vld [vmem:[%s33417_s0 + $0xf20] sm:$0xff]   ;;  %21986 = vst [vmem:[%s33418_s1 + $0xb20] sm:$0xff] %v25799_v8  ;;  %v25809_v18 = vld [vmem:[%s33417_s0 + $0xf30] sm:$0xff]   ;;  %22022 = vst [vmem:[%s33418_s1 + $0xb30] sm:$0xff] %v25808_v17 }
  0xea   :  { %v25801_v10 = vld [vmem:[%s33417_s0 + $0x320] sm:$0xff]   ;;  %21990 = vst [vmem:[%s33418_s1 + $0x1720] sm:$0xff] %v25800_v9  ;;  %v25810_v19 = vld [vmem:[%s33417_s0 + $0x330] sm:$0xff]   ;;  %22026 = vst [vmem:[%s33418_s1 + $0x1730] sm:$0xff] %v25809_v18 }
  0xeb   :  { %21994 = vst [vmem:[%s33418_s1 + $0x2320] sm:$0xff] %v25801_v10  ;;  %v25811_v20 = vld [vmem:[%s33417_s0 + $0x2340] sm:$0xff]   ;;  %22030 = vst [vmem:[%s33418_s1 + $0x2330] sm:$0xff] %v25810_v19  ;;  %v25820_v29 = vld [vmem:[%s33417_s0 + $0x2350] sm:$0xff]  }
  0xec   :  { %v25812_v21 = vld [vmem:[%s33417_s0 + $0x1740] sm:$0xff]   ;;  %22034 = vst [vmem:[%s33418_s1 + $0x340] sm:$0xff] %v25811_v20  ;;  %v25821_v30 = vld [vmem:[%s33417_s0 + $0x1750] sm:$0xff]   ;;  %22070 = vst [vmem:[%s33418_s1 + $0x350] sm:$0xff] %v25820_v29 }
  0xed   :  { %v25813_v22 = vld [vmem:[%s33417_s0 + $0xb40] sm:$0xff]   ;;  %22038 = vst [vmem:[%s33418_s1 + $0xf40] sm:$0xff] %v25812_v21  ;;  %v25822_v31 = vld [vmem:[%s33417_s0 + $0xb50] sm:$0xff]   ;;  %22074 = vst [vmem:[%s33418_s1 + $0xf50] sm:$0xff] %v25821_v30 }
  0xee   :  { %v25814_v23 = vld [vmem:[%s33417_s0 + $0x1f40] sm:$0xff]   ;;  %22042 = vst [vmem:[%s33418_s1 + $0x1b40] sm:$0xff] %v25813_v22  ;;  %v25823_v32 = vld [vmem:[%s33417_s0 + $0x1f50] sm:$0xff]   ;;  %22078 = vst [vmem:[%s33418_s1 + $0x1b50] sm:$0xff] %v25822_v31 }
  0xef   :  { %v25815_v24 = vld [vmem:[%s33417_s0 + $0x1340] sm:$0xff]   ;;  %22046 = vst [vmem:[%s33418_s1 + $0x740] sm:$0xff] %v25814_v23  ;;  %v25824_v33 = vld [vmem:[%s33417_s0 + $0x1350] sm:$0xff]   ;;  %22082 = vst [vmem:[%s33418_s1 + $0x750] sm:$0xff] %v25823_v32 }
  0xf0   :  { %v25816_v25 = vld [vmem:[%s33417_s0 + $0x740] sm:$0xff]   ;;  %22050 = vst [vmem:[%s33418_s1 + $0x1340] sm:$0xff] %v25815_v24  ;;  %v25825_v34 = vld [vmem:[%s33417_s0 + $0x750] sm:$0xff]   ;;  %22086 = vst [vmem:[%s33418_s1 + $0x1350] sm:$0xff] %v25824_v33 }
  0xf1   :  { %v25817_v26 = vld [vmem:[%s33417_s0 + $0x1b40] sm:$0xff]   ;;  %22054 = vst [vmem:[%s33418_s1 + $0x1f40] sm:$0xff] %v25816_v25  ;;  %v25826_v35 = vld [vmem:[%s33417_s0 + $0x1b50] sm:$0xff]   ;;  %22090 = vst [vmem:[%s33418_s1 + $0x1f50] sm:$0xff] %v25825_v34 }
  0xf2   :  { %v25818_v27 = vld [vmem:[%s33417_s0 + $0xf40] sm:$0xff]   ;;  %22058 = vst [vmem:[%s33418_s1 + $0xb40] sm:$0xff] %v25817_v26  ;;  %v25827_v36 = vld [vmem:[%s33417_s0 + $0xf50] sm:$0xff]   ;;  %22094 = vst [vmem:[%s33418_s1 + $0xb50] sm:$0xff] %v25826_v35 }
  0xf3   :  { %v25819_v28 = vld [vmem:[%s33417_s0 + $0x340] sm:$0xff]   ;;  %22062 = vst [vmem:[%s33418_s1 + $0x1740] sm:$0xff] %v25818_v27  ;;  %v25828_v37 = vld [vmem:[%s33417_s0 + $0x350] sm:$0xff]   ;;  %22098 = vst [vmem:[%s33418_s1 + $0x1750] sm:$0xff] %v25827_v36 }
  0xf4   :  { %22066 = vst [vmem:[%s33418_s1 + $0x2340] sm:$0xff] %v25819_v28  ;;  %v25829_v38 = vld [vmem:[%s33417_s0 + $0x2360] sm:$0xff]   ;;  %22102 = vst [vmem:[%s33418_s1 + $0x2350] sm:$0xff] %v25828_v37  ;;  %v25838_v47 = vld [vmem:[%s33417_s0 + $0x2370] sm:$0xff]  }
  0xf5   :  { %v25830_v39 = vld [vmem:[%s33417_s0 + $0x1760] sm:$0xff]   ;;  %22106 = vst [vmem:[%s33418_s1 + $0x360] sm:$0xff] %v25829_v38  ;;  %v25839_v48 = vld [vmem:[%s33417_s0 + $0x1770] sm:$0xff]   ;;  %22142 = vst [vmem:[%s33418_s1 + $0x370] sm:$0xff] %v25838_v47 }
  0xf6   :  { %v25831_v40 = vld [vmem:[%s33417_s0 + $0xb60] sm:$0xff]   ;;  %22110 = vst [vmem:[%s33418_s1 + $0xf60] sm:$0xff] %v25830_v39  ;;  %v25840_v49 = vld [vmem:[%s33417_s0 + $0xb70] sm:$0xff]   ;;  %22146 = vst [vmem:[%s33418_s1 + $0xf70] sm:$0xff] %v25839_v48 }
  0xf7   :  { %v25832_v41 = vld [vmem:[%s33417_s0 + $0x1f60] sm:$0xff]   ;;  %22114 = vst [vmem:[%s33418_s1 + $0x1b60] sm:$0xff] %v25831_v40  ;;  %v25841_v50 = vld [vmem:[%s33417_s0 + $0x1f70] sm:$0xff]   ;;  %22150 = vst [vmem:[%s33418_s1 + $0x1b70] sm:$0xff] %v25840_v49 }
  0xf8   :  { %v25833_v42 = vld [vmem:[%s33417_s0 + $0x1360] sm:$0xff]   ;;  %22118 = vst [vmem:[%s33418_s1 + $0x760] sm:$0xff] %v25832_v41  ;;  %v25842_v51 = vld [vmem:[%s33417_s0 + $0x1370] sm:$0xff]   ;;  %22154 = vst [vmem:[%s33418_s1 + $0x770] sm:$0xff] %v25841_v50 }
  0xf9   :  { %v25834_v43 = vld [vmem:[%s33417_s0 + $0x760] sm:$0xff]   ;;  %22122 = vst [vmem:[%s33418_s1 + $0x1360] sm:$0xff] %v25833_v42  ;;  %v25843_v52 = vld [vmem:[%s33417_s0 + $0x770] sm:$0xff]   ;;  %22158 = vst [vmem:[%s33418_s1 + $0x1370] sm:$0xff] %v25842_v51 }
  0xfa   :  { %v25835_v44 = vld [vmem:[%s33417_s0 + $0x1b60] sm:$0xff]   ;;  %22126 = vst [vmem:[%s33418_s1 + $0x1f60] sm:$0xff] %v25834_v43  ;;  %v25844_v53 = vld [vmem:[%s33417_s0 + $0x1b70] sm:$0xff]   ;;  %22162 = vst [vmem:[%s33418_s1 + $0x1f70] sm:$0xff] %v25843_v52 }
  0xfb   :  { %v25836_v45 = vld [vmem:[%s33417_s0 + $0xf60] sm:$0xff]   ;;  %22130 = vst [vmem:[%s33418_s1 + $0xb60] sm:$0xff] %v25835_v44  ;;  %v25845_v54 = vld [vmem:[%s33417_s0 + $0xf70] sm:$0xff]   ;;  %22166 = vst [vmem:[%s33418_s1 + $0xb70] sm:$0xff] %v25844_v53 }
  0xfc   :  { %v25837_v46 = vld [vmem:[%s33417_s0 + $0x360] sm:$0xff]   ;;  %22134 = vst [vmem:[%s33418_s1 + $0x1760] sm:$0xff] %v25836_v45  ;;  %v25846_v55 = vld [vmem:[%s33417_s0 + $0x370] sm:$0xff]   ;;  %22170 = vst [vmem:[%s33418_s1 + $0x1770] sm:$0xff] %v25845_v54 }
  0xfd   :  { %22138 = vst [vmem:[%s33418_s1 + $0x2360] sm:$0xff] %v25837_v46  ;;  %v25847_v56 = vld [vmem:[%s33417_s0 + $0x2380] sm:$0xff]   ;;  %22174 = vst [vmem:[%s33418_s1 + $0x2370] sm:$0xff] %v25846_v55  ;;  %v25856_v1 = vld [vmem:[%s33417_s0 + $0x2390] sm:$0xff]  }
  0xfe   :  { %v25848_v57 = vld [vmem:[%s33417_s0 + $0x1780] sm:$0xff]   ;;  %22178 = vst [vmem:[%s33418_s1 + $0x380] sm:$0xff] %v25847_v56  ;;  %v25857_v2 = vld [vmem:[%s33417_s0 + $0x1790] sm:$0xff]   ;;  %22214 = vst [vmem:[%s33418_s1 + $0x390] sm:$0xff] %v25856_v1 }
  0xff   :  { %v25849_v58 = vld [vmem:[%s33417_s0 + $0xb80] sm:$0xff]   ;;  %22182 = vst [vmem:[%s33418_s1 + $0xf80] sm:$0xff] %v25848_v57  ;;  %v25858_v3 = vld [vmem:[%s33417_s0 + $0xb90] sm:$0xff]   ;;  %22218 = vst [vmem:[%s33418_s1 + $0xf90] sm:$0xff] %v25857_v2 }
 0x100   :  { %v25850_v59 = vld [vmem:[%s33417_s0 + $0x1f80] sm:$0xff]   ;;  %22186 = vst [vmem:[%s33418_s1 + $0x1b80] sm:$0xff] %v25849_v58  ;;  %v25859_v4 = vld [vmem:[%s33417_s0 + $0x1f90] sm:$0xff]   ;;  %22222 = vst [vmem:[%s33418_s1 + $0x1b90] sm:$0xff] %v25858_v3 }
 0x101   :  { %v25851_v60 = vld [vmem:[%s33417_s0 + $0x1380] sm:$0xff]   ;;  %22190 = vst [vmem:[%s33418_s1 + $0x780] sm:$0xff] %v25850_v59  ;;  %v25860_v5 = vld [vmem:[%s33417_s0 + $0x1390] sm:$0xff]   ;;  %22226 = vst [vmem:[%s33418_s1 + $0x790] sm:$0xff] %v25859_v4 }
 0x102   :  { %v25852_v61 = vld [vmem:[%s33417_s0 + $0x780] sm:$0xff]   ;;  %22194 = vst [vmem:[%s33418_s1 + $0x1380] sm:$0xff] %v25851_v60  ;;  %v25861_v6 = vld [vmem:[%s33417_s0 + $0x790] sm:$0xff]   ;;  %22230 = vst [vmem:[%s33418_s1 + $0x1390] sm:$0xff] %v25860_v5 }
 0x103   :  { %v25853_v62 = vld [vmem:[%s33417_s0 + $0x1b80] sm:$0xff]   ;;  %22198 = vst [vmem:[%s33418_s1 + $0x1f80] sm:$0xff] %v25852_v61  ;;  %v25862_v7 = vld [vmem:[%s33417_s0 + $0x1b90] sm:$0xff]   ;;  %22234 = vst [vmem:[%s33418_s1 + $0x1f90] sm:$0xff] %v25861_v6 }
 0x104   :  { %v25854_v63 = vld [vmem:[%s33417_s0 + $0xf80] sm:$0xff]   ;;  %22202 = vst [vmem:[%s33418_s1 + $0xb80] sm:$0xff] %v25853_v62  ;;  %v25863_v8 = vld [vmem:[%s33417_s0 + $0xf90] sm:$0xff]   ;;  %22238 = vst [vmem:[%s33418_s1 + $0xb90] sm:$0xff] %v25862_v7 }
 0x105   :  { %v25855_v0 = vld [vmem:[%s33417_s0 + $0x380] sm:$0xff]   ;;  %22206 = vst [vmem:[%s33418_s1 + $0x1780] sm:$0xff] %v25854_v63  ;;  %v25864_v9 = vld [vmem:[%s33417_s0 + $0x390] sm:$0xff]   ;;  %22242 = vst [vmem:[%s33418_s1 + $0x1790] sm:$0xff] %v25863_v8 }
 0x106   :  { %22210 = vst [vmem:[%s33418_s1 + $0x2380] sm:$0xff] %v25855_v0  ;;  %v25865_v10 = vld [vmem:[%s33417_s0 + $0x23a0] sm:$0xff]   ;;  %22246 = vst [vmem:[%s33418_s1 + $0x2390] sm:$0xff] %v25864_v9  ;;  %v25874_v19 = vld [vmem:[%s33417_s0 + $0x23b0] sm:$0xff]  }
 0x107   :  { %v25866_v11 = vld [vmem:[%s33417_s0 + $0x17a0] sm:$0xff]   ;;  %22250 = vst [vmem:[%s33418_s1 + $0x3a0] sm:$0xff] %v25865_v10  ;;  %v25875_v20 = vld [vmem:[%s33417_s0 + $0x17b0] sm:$0xff]   ;;  %22286 = vst [vmem:[%s33418_s1 + $0x3b0] sm:$0xff] %v25874_v19 }
 0x108   :  { %v25867_v12 = vld [vmem:[%s33417_s0 + $0xba0] sm:$0xff]   ;;  %22254 = vst [vmem:[%s33418_s1 + $0xfa0] sm:$0xff] %v25866_v11  ;;  %v25876_v21 = vld [vmem:[%s33417_s0 + $0xbb0] sm:$0xff]   ;;  %22290 = vst [vmem:[%s33418_s1 + $0xfb0] sm:$0xff] %v25875_v20 }
 0x109   :  { %v25868_v13 = vld [vmem:[%s33417_s0 + $0x1fa0] sm:$0xff]   ;;  %22258 = vst [vmem:[%s33418_s1 + $0x1ba0] sm:$0xff] %v25867_v12  ;;  %v25877_v22 = vld [vmem:[%s33417_s0 + $0x1fb0] sm:$0xff]   ;;  %22294 = vst [vmem:[%s33418_s1 + $0x1bb0] sm:$0xff] %v25876_v21 }
 0x10a   :  { %v25869_v14 = vld [vmem:[%s33417_s0 + $0x13a0] sm:$0xff]   ;;  %22262 = vst [vmem:[%s33418_s1 + $0x7a0] sm:$0xff] %v25868_v13  ;;  %v25878_v23 = vld [vmem:[%s33417_s0 + $0x13b0] sm:$0xff]   ;;  %22298 = vst [vmem:[%s33418_s1 + $0x7b0] sm:$0xff] %v25877_v22 }
 0x10b   :  { %v25870_v15 = vld [vmem:[%s33417_s0 + $0x7a0] sm:$0xff]   ;;  %22266 = vst [vmem:[%s33418_s1 + $0x13a0] sm:$0xff] %v25869_v14  ;;  %v25879_v24 = vld [vmem:[%s33417_s0 + $0x7b0] sm:$0xff]   ;;  %22302 = vst [vmem:[%s33418_s1 + $0x13b0] sm:$0xff] %v25878_v23 }
 0x10c   :  { %v25871_v16 = vld [vmem:[%s33417_s0 + $0x1ba0] sm:$0xff]   ;;  %22270 = vst [vmem:[%s33418_s1 + $0x1fa0] sm:$0xff] %v25870_v15  ;;  %v25880_v25 = vld [vmem:[%s33417_s0 + $0x1bb0] sm:$0xff]   ;;  %22306 = vst [vmem:[%s33418_s1 + $0x1fb0] sm:$0xff] %v25879_v24 }
 0x10d   :  { %v25872_v17 = vld [vmem:[%s33417_s0 + $0xfa0] sm:$0xff]   ;;  %22274 = vst [vmem:[%s33418_s1 + $0xba0] sm:$0xff] %v25871_v16  ;;  %v25881_v26 = vld [vmem:[%s33417_s0 + $0xfb0] sm:$0xff]   ;;  %22310 = vst [vmem:[%s33418_s1 + $0xbb0] sm:$0xff] %v25880_v25 }
 0x10e   :  { %v25873_v18 = vld [vmem:[%s33417_s0 + $0x3a0] sm:$0xff]   ;;  %22278 = vst [vmem:[%s33418_s1 + $0x17a0] sm:$0xff] %v25872_v17  ;;  %v25882_v27 = vld [vmem:[%s33417_s0 + $0x3b0] sm:$0xff]   ;;  %22314 = vst [vmem:[%s33418_s1 + $0x17b0] sm:$0xff] %v25881_v26 }
 0x10f   :  { %22282 = vst [vmem:[%s33418_s1 + $0x23a0] sm:$0xff] %v25873_v18  ;;  %v25883_v28 = vld [vmem:[%s33417_s0 + $0x23c0] sm:$0xff]   ;;  %22318 = vst [vmem:[%s33418_s1 + $0x23b0] sm:$0xff] %v25882_v27  ;;  %v25892_v37 = vld [vmem:[%s33417_s0 + $0x23d0] sm:$0xff]  }
 0x110   :  { %v25884_v29 = vld [vmem:[%s33417_s0 + $0x17c0] sm:$0xff]   ;;  %22322 = vst [vmem:[%s33418_s1 + $0x3c0] sm:$0xff] %v25883_v28  ;;  %v25893_v38 = vld [vmem:[%s33417_s0 + $0x17d0] sm:$0xff]   ;;  %22358 = vst [vmem:[%s33418_s1 + $0x3d0] sm:$0xff] %v25892_v37 }
 0x111   :  { %v25885_v30 = vld [vmem:[%s33417_s0 + $0xbc0] sm:$0xff]   ;;  %22326 = vst [vmem:[%s33418_s1 + $0xfc0] sm:$0xff] %v25884_v29  ;;  %v25894_v39 = vld [vmem:[%s33417_s0 + $0xbd0] sm:$0xff]   ;;  %22362 = vst [vmem:[%s33418_s1 + $0xfd0] sm:$0xff] %v25893_v38 }
 0x112   :  { %v25886_v31 = vld [vmem:[%s33417_s0 + $0x1fc0] sm:$0xff]   ;;  %22330 = vst [vmem:[%s33418_s1 + $0x1bc0] sm:$0xff] %v25885_v30  ;;  %v25895_v40 = vld [vmem:[%s33417_s0 + $0x1fd0] sm:$0xff]   ;;  %22366 = vst [vmem:[%s33418_s1 + $0x1bd0] sm:$0xff] %v25894_v39 }
 0x113   :  { %v25887_v32 = vld [vmem:[%s33417_s0 + $0x13c0] sm:$0xff]   ;;  %22334 = vst [vmem:[%s33418_s1 + $0x7c0] sm:$0xff] %v25886_v31  ;;  %v25896_v41 = vld [vmem:[%s33417_s0 + $0x13d0] sm:$0xff]   ;;  %22370 = vst [vmem:[%s33418_s1 + $0x7d0] sm:$0xff] %v25895_v40 }
 0x114   :  { %v25888_v33 = vld [vmem:[%s33417_s0 + $0x7c0] sm:$0xff]   ;;  %22338 = vst [vmem:[%s33418_s1 + $0x13c0] sm:$0xff] %v25887_v32  ;;  %v25897_v42 = vld [vmem:[%s33417_s0 + $0x7d0] sm:$0xff]   ;;  %22374 = vst [vmem:[%s33418_s1 + $0x13d0] sm:$0xff] %v25896_v41 }
 0x115   :  { %v25889_v34 = vld [vmem:[%s33417_s0 + $0x1bc0] sm:$0xff]   ;;  %22342 = vst [vmem:[%s33418_s1 + $0x1fc0] sm:$0xff] %v25888_v33  ;;  %v25898_v43 = vld [vmem:[%s33417_s0 + $0x1bd0] sm:$0xff]   ;;  %22378 = vst [vmem:[%s33418_s1 + $0x1fd0] sm:$0xff] %v25897_v42 }
 0x116   :  { %v25890_v35 = vld [vmem:[%s33417_s0 + $0xfc0] sm:$0xff]   ;;  %22346 = vst [vmem:[%s33418_s1 + $0xbc0] sm:$0xff] %v25889_v34  ;;  %v25899_v44 = vld [vmem:[%s33417_s0 + $0xfd0] sm:$0xff]   ;;  %22382 = vst [vmem:[%s33418_s1 + $0xbd0] sm:$0xff] %v25898_v43 }
 0x117   :  { %v25891_v36 = vld [vmem:[%s33417_s0 + $0x3c0] sm:$0xff]   ;;  %22350 = vst [vmem:[%s33418_s1 + $0x17c0] sm:$0xff] %v25890_v35  ;;  %v25900_v45 = vld [vmem:[%s33417_s0 + $0x3d0] sm:$0xff]   ;;  %22386 = vst [vmem:[%s33418_s1 + $0x17d0] sm:$0xff] %v25899_v44 }
 0x118   :  { %22354 = vst [vmem:[%s33418_s1 + $0x23c0] sm:$0xff] %v25891_v36  ;;  %v25901_v46 = vld [vmem:[%s33417_s0 + $0x23e0] sm:$0xff]   ;;  %22390 = vst [vmem:[%s33418_s1 + $0x23d0] sm:$0xff] %v25900_v45  ;;  %v25910_v55 = vld [vmem:[%s33417_s0 + $0x23f0] sm:$0xff]  }
 0x119   :  { %v25902_v47 = vld [vmem:[%s33417_s0 + $0x17e0] sm:$0xff]   ;;  %22394 = vst [vmem:[%s33418_s1 + $0x3e0] sm:$0xff] %v25901_v46  ;;  %v25911_v56 = vld [vmem:[%s33417_s0 + $0x17f0] sm:$0xff]   ;;  %22430 = vst [vmem:[%s33418_s1 + $0x3f0] sm:$0xff] %v25910_v55 }
 0x11a   :  { %v25903_v48 = vld [vmem:[%s33417_s0 + $0xbe0] sm:$0xff]   ;;  %22398 = vst [vmem:[%s33418_s1 + $0xfe0] sm:$0xff] %v25902_v47  ;;  %v25912_v57 = vld [vmem:[%s33417_s0 + $0xbf0] sm:$0xff]   ;;  %22434 = vst [vmem:[%s33418_s1 + $0xff0] sm:$0xff] %v25911_v56 }
 0x11b   :  { %v25904_v49 = vld [vmem:[%s33417_s0 + $0x1fe0] sm:$0xff]   ;;  %22402 = vst [vmem:[%s33418_s1 + $0x1be0] sm:$0xff] %v25903_v48  ;;  %v25913_v58 = vld [vmem:[%s33417_s0 + $0x1ff0] sm:$0xff]   ;;  %22438 = vst [vmem:[%s33418_s1 + $0x1bf0] sm:$0xff] %v25912_v57 }
 0x11c   :  { %v25905_v50 = vld [vmem:[%s33417_s0 + $0x13e0] sm:$0xff]   ;;  %22406 = vst [vmem:[%s33418_s1 + $0x7e0] sm:$0xff] %v25904_v49  ;;  %v25914_v59 = vld [vmem:[%s33417_s0 + $0x13f0] sm:$0xff]   ;;  %22442 = vst [vmem:[%s33418_s1 + $0x7f0] sm:$0xff] %v25913_v58 }
 0x11d   :  { %v25906_v51 = vld [vmem:[%s33417_s0 + $0x7e0] sm:$0xff]   ;;  %22410 = vst [vmem:[%s33418_s1 + $0x13e0] sm:$0xff] %v25905_v50  ;;  %v25915_v60 = vld [vmem:[%s33417_s0 + $0x7f0] sm:$0xff]   ;;  %22446 = vst [vmem:[%s33418_s1 + $0x13f0] sm:$0xff] %v25914_v59 }
 0x11e   :  { %v25907_v52 = vld [vmem:[%s33417_s0 + $0x1be0] sm:$0xff]   ;;  %22414 = vst [vmem:[%s33418_s1 + $0x1fe0] sm:$0xff] %v25906_v51  ;;  %v25916_v61 = vld [vmem:[%s33417_s0 + $0x1bf0] sm:$0xff]   ;;  %22450 = vst [vmem:[%s33418_s1 + $0x1ff0] sm:$0xff] %v25915_v60 }
 0x11f   :  { %v25908_v53 = vld [vmem:[%s33417_s0 + $0xfe0] sm:$0xff]   ;;  %22418 = vst [vmem:[%s33418_s1 + $0xbe0] sm:$0xff] %v25907_v52  ;;  %v25917_v62 = vld [vmem:[%s33417_s0 + $0xff0] sm:$0xff]   ;;  %22454 = vst [vmem:[%s33418_s1 + $0xbf0] sm:$0xff] %v25916_v61 }
 0x120   :  { %v25909_v54 = vld [vmem:[%s33417_s0 + $0x3e0] sm:$0xff]   ;;  %22422 = vst [vmem:[%s33418_s1 + $0x17e0] sm:$0xff] %v25908_v53  ;;  %v25918_v63 = vld [vmem:[%s33417_s0 + $0x3f0] sm:$0xff]   ;;  %22458 = vst [vmem:[%s33418_s1 + $0x17f0] sm:$0xff] %v25917_v62 }
 0x121   :  { %22426 = vst [vmem:[%s33418_s1 + $0x23e0] sm:$0xff] %v25909_v54  ;;  %22462 = vst [vmem:[%s33418_s1 + $0x23f0] sm:$0xff] %v25918_v63  ;;  %v25919_v0 = vld [vmem:[%s33417_s0 + $0x2008] sm:$0xff]   ;;  %v25928_v9 = vld [vmem:[%s33417_s0 + $0x2018] sm:$0xff]  }
 0x122   :  { %v25920_v1 = vld [vmem:[%s33417_s0 + $0x1408] sm:$0xff]   ;;  %23042 = vst [vmem:[%s33418_s1 + $0x8] sm:$0xff] %v25919_v0  ;;  %v25929_v10 = vld [vmem:[%s33417_s0 + $0x1418] sm:$0xff]   ;;  %23078 = vst [vmem:[%s33418_s1 + $0x18] sm:$0xff] %v25928_v9 }
 0x123   :  { %v25921_v2 = vld [vmem:[%s33417_s0 + $0x808] sm:$0xff]   ;;  %23046 = vst [vmem:[%s33418_s1 + $0xc08] sm:$0xff] %v25920_v1  ;;  %v25930_v11 = vld [vmem:[%s33417_s0 + $0x818] sm:$0xff]   ;;  %23082 = vst [vmem:[%s33418_s1 + $0xc18] sm:$0xff] %v25929_v10 }
 0x124   :  { %v25922_v3 = vld [vmem:[%s33417_s0 + $0x1c08] sm:$0xff]   ;;  %23050 = vst [vmem:[%s33418_s1 + $0x1808] sm:$0xff] %v25921_v2  ;;  %v25931_v12 = vld [vmem:[%s33417_s0 + $0x1c18] sm:$0xff]   ;;  %23086 = vst [vmem:[%s33418_s1 + $0x1818] sm:$0xff] %v25930_v11 }
 0x125   :  { %v25923_v4 = vld [vmem:[%s33417_s0 + $0x1008] sm:$0xff]   ;;  %23054 = vst [vmem:[%s33418_s1 + $0x408] sm:$0xff] %v25922_v3  ;;  %v25932_v13 = vld [vmem:[%s33417_s0 + $0x1018] sm:$0xff]   ;;  %23090 = vst [vmem:[%s33418_s1 + $0x418] sm:$0xff] %v25931_v12 }
 0x126   :  { %v25924_v5 = vld [vmem:[%s33417_s0 + $0x408] sm:$0xff]   ;;  %23058 = vst [vmem:[%s33418_s1 + $0x1008] sm:$0xff] %v25923_v4  ;;  %v25933_v14 = vld [vmem:[%s33417_s0 + $0x418] sm:$0xff]   ;;  %23094 = vst [vmem:[%s33418_s1 + $0x1018] sm:$0xff] %v25932_v13 }
 0x127   :  { %v25925_v6 = vld [vmem:[%s33417_s0 + $0x1808] sm:$0xff]   ;;  %23062 = vst [vmem:[%s33418_s1 + $0x1c08] sm:$0xff] %v25924_v5  ;;  %v25934_v15 = vld [vmem:[%s33417_s0 + $0x1818] sm:$0xff]   ;;  %23098 = vst [vmem:[%s33418_s1 + $0x1c18] sm:$0xff] %v25933_v14 }
 0x128   :  { %v25926_v7 = vld [vmem:[%s33417_s0 + $0xc08] sm:$0xff]   ;;  %23066 = vst [vmem:[%s33418_s1 + $0x808] sm:$0xff] %v25925_v6  ;;  %v25935_v16 = vld [vmem:[%s33417_s0 + $0xc18] sm:$0xff]   ;;  %23102 = vst [vmem:[%s33418_s1 + $0x818] sm:$0xff] %v25934_v15 }
 0x129   :  { %v25927_v8 = vld [vmem:[%s33417_s0 + $0x8] sm:$0xff]   ;;  %23070 = vst [vmem:[%s33418_s1 + $0x1408] sm:$0xff] %v25926_v7  ;;  %v25936_v17 = vld [vmem:[%s33417_s0 + $0x18] sm:$0xff]   ;;  %23106 = vst [vmem:[%s33418_s1 + $0x1418] sm:$0xff] %v25935_v16 }
 0x12a   :  { %23074 = vst [vmem:[%s33418_s1 + $0x2008] sm:$0xff] %v25927_v8  ;;  %v25937_v18 = vld [vmem:[%s33417_s0 + $0x2028] sm:$0xff]   ;;  %23110 = vst [vmem:[%s33418_s1 + $0x2018] sm:$0xff] %v25936_v17  ;;  %v25946_v27 = vld [vmem:[%s33417_s0 + $0x2038] sm:$0xff]  }
 0x12b   :  { %v25938_v19 = vld [vmem:[%s33417_s0 + $0x1428] sm:$0xff]   ;;  %23114 = vst [vmem:[%s33418_s1 + $0x28] sm:$0xff] %v25937_v18  ;;  %v25947_v28 = vld [vmem:[%s33417_s0 + $0x1438] sm:$0xff]   ;;  %23150 = vst [vmem:[%s33418_s1 + $0x38] sm:$0xff] %v25946_v27 }
 0x12c   :  { %v25939_v20 = vld [vmem:[%s33417_s0 + $0x828] sm:$0xff]   ;;  %23118 = vst [vmem:[%s33418_s1 + $0xc28] sm:$0xff] %v25938_v19  ;;  %v25948_v29 = vld [vmem:[%s33417_s0 + $0x838] sm:$0xff]   ;;  %23154 = vst [vmem:[%s33418_s1 + $0xc38] sm:$0xff] %v25947_v28 }
 0x12d   :  { %v25940_v21 = vld [vmem:[%s33417_s0 + $0x1c28] sm:$0xff]   ;;  %23122 = vst [vmem:[%s33418_s1 + $0x1828] sm:$0xff] %v25939_v20  ;;  %v25949_v30 = vld [vmem:[%s33417_s0 + $0x1c38] sm:$0xff]   ;;  %23158 = vst [vmem:[%s33418_s1 + $0x1838] sm:$0xff] %v25948_v29 }
 0x12e   :  { %v25941_v22 = vld [vmem:[%s33417_s0 + $0x1028] sm:$0xff]   ;;  %23126 = vst [vmem:[%s33418_s1 + $0x428] sm:$0xff] %v25940_v21  ;;  %v25950_v31 = vld [vmem:[%s33417_s0 + $0x1038] sm:$0xff]   ;;  %23162 = vst [vmem:[%s33418_s1 + $0x438] sm:$0xff] %v25949_v30 }
 0x12f   :  { %v25942_v23 = vld [vmem:[%s33417_s0 + $0x428] sm:$0xff]   ;;  %23130 = vst [vmem:[%s33418_s1 + $0x1028] sm:$0xff] %v25941_v22  ;;  %v25951_v32 = vld [vmem:[%s33417_s0 + $0x438] sm:$0xff]   ;;  %23166 = vst [vmem:[%s33418_s1 + $0x1038] sm:$0xff] %v25950_v31 }
 0x130   :  { %v25943_v24 = vld [vmem:[%s33417_s0 + $0x1828] sm:$0xff]   ;;  %23134 = vst [vmem:[%s33418_s1 + $0x1c28] sm:$0xff] %v25942_v23  ;;  %v25952_v33 = vld [vmem:[%s33417_s0 + $0x1838] sm:$0xff]   ;;  %23170 = vst [vmem:[%s33418_s1 + $0x1c38] sm:$0xff] %v25951_v32 }
 0x131   :  { %v25944_v25 = vld [vmem:[%s33417_s0 + $0xc28] sm:$0xff]   ;;  %23138 = vst [vmem:[%s33418_s1 + $0x828] sm:$0xff] %v25943_v24  ;;  %v25953_v34 = vld [vmem:[%s33417_s0 + $0xc38] sm:$0xff]   ;;  %23174 = vst [vmem:[%s33418_s1 + $0x838] sm:$0xff] %v25952_v33 }
 0x132   :  { %v25945_v26 = vld [vmem:[%s33417_s0 + $0x28] sm:$0xff]   ;;  %23142 = vst [vmem:[%s33418_s1 + $0x1428] sm:$0xff] %v25944_v25  ;;  %v25954_v35 = vld [vmem:[%s33417_s0 + $0x38] sm:$0xff]   ;;  %23178 = vst [vmem:[%s33418_s1 + $0x1438] sm:$0xff] %v25953_v34 }
 0x133   :  { %23146 = vst [vmem:[%s33418_s1 + $0x2028] sm:$0xff] %v25945_v26  ;;  %v25955_v36 = vld [vmem:[%s33417_s0 + $0x2048] sm:$0xff]   ;;  %23182 = vst [vmem:[%s33418_s1 + $0x2038] sm:$0xff] %v25954_v35  ;;  %v25964_v45 = vld [vmem:[%s33417_s0 + $0x2058] sm:$0xff]  }
 0x134   :  { %v25956_v37 = vld [vmem:[%s33417_s0 + $0x1448] sm:$0xff]   ;;  %23186 = vst [vmem:[%s33418_s1 + $0x48] sm:$0xff] %v25955_v36  ;;  %v25965_v46 = vld [vmem:[%s33417_s0 + $0x1458] sm:$0xff]   ;;  %23222 = vst [vmem:[%s33418_s1 + $0x58] sm:$0xff] %v25964_v45 }
 0x135   :  { %v25957_v38 = vld [vmem:[%s33417_s0 + $0x848] sm:$0xff]   ;;  %23190 = vst [vmem:[%s33418_s1 + $0xc48] sm:$0xff] %v25956_v37  ;;  %v25966_v47 = vld [vmem:[%s33417_s0 + $0x858] sm:$0xff]   ;;  %23226 = vst [vmem:[%s33418_s1 + $0xc58] sm:$0xff] %v25965_v46 }
 0x136   :  { %v25958_v39 = vld [vmem:[%s33417_s0 + $0x1c48] sm:$0xff]   ;;  %23194 = vst [vmem:[%s33418_s1 + $0x1848] sm:$0xff] %v25957_v38  ;;  %v25967_v48 = vld [vmem:[%s33417_s0 + $0x1c58] sm:$0xff]   ;;  %23230 = vst [vmem:[%s33418_s1 + $0x1858] sm:$0xff] %v25966_v47 }
 0x137   :  { %v25959_v40 = vld [vmem:[%s33417_s0 + $0x1048] sm:$0xff]   ;;  %23198 = vst [vmem:[%s33418_s1 + $0x448] sm:$0xff] %v25958_v39  ;;  %v25968_v49 = vld [vmem:[%s33417_s0 + $0x1058] sm:$0xff]   ;;  %23234 = vst [vmem:[%s33418_s1 + $0x458] sm:$0xff] %v25967_v48 }
 0x138   :  { %v25960_v41 = vld [vmem:[%s33417_s0 + $0x448] sm:$0xff]   ;;  %23202 = vst [vmem:[%s33418_s1 + $0x1048] sm:$0xff] %v25959_v40  ;;  %v25969_v50 = vld [vmem:[%s33417_s0 + $0x458] sm:$0xff]   ;;  %23238 = vst [vmem:[%s33418_s1 + $0x1058] sm:$0xff] %v25968_v49 }
 0x139   :  { %v25961_v42 = vld [vmem:[%s33417_s0 + $0x1848] sm:$0xff]   ;;  %23206 = vst [vmem:[%s33418_s1 + $0x1c48] sm:$0xff] %v25960_v41  ;;  %v25970_v51 = vld [vmem:[%s33417_s0 + $0x1858] sm:$0xff]   ;;  %23242 = vst [vmem:[%s33418_s1 + $0x1c58] sm:$0xff] %v25969_v50 }
 0x13a   :  { %v25962_v43 = vld [vmem:[%s33417_s0 + $0xc48] sm:$0xff]   ;;  %23210 = vst [vmem:[%s33418_s1 + $0x848] sm:$0xff] %v25961_v42  ;;  %v25971_v52 = vld [vmem:[%s33417_s0 + $0xc58] sm:$0xff]   ;;  %23246 = vst [vmem:[%s33418_s1 + $0x858] sm:$0xff] %v25970_v51 }
 0x13b   :  { %v25963_v44 = vld [vmem:[%s33417_s0 + $0x48] sm:$0xff]   ;;  %23214 = vst [vmem:[%s33418_s1 + $0x1448] sm:$0xff] %v25962_v43  ;;  %v25972_v53 = vld [vmem:[%s33417_s0 + $0x58] sm:$0xff]   ;;  %23250 = vst [vmem:[%s33418_s1 + $0x1458] sm:$0xff] %v25971_v52 }
 0x13c   :  { %23218 = vst [vmem:[%s33418_s1 + $0x2048] sm:$0xff] %v25963_v44  ;;  %v25973_v54 = vld [vmem:[%s33417_s0 + $0x2068] sm:$0xff]   ;;  %23254 = vst [vmem:[%s33418_s1 + $0x2058] sm:$0xff] %v25972_v53  ;;  %v25982_v63 = vld [vmem:[%s33417_s0 + $0x2078] sm:$0xff]  }
 0x13d   :  { %v25974_v55 = vld [vmem:[%s33417_s0 + $0x1468] sm:$0xff]   ;;  %23258 = vst [vmem:[%s33418_s1 + $0x68] sm:$0xff] %v25973_v54  ;;  %v25983_v0 = vld [vmem:[%s33417_s0 + $0x1478] sm:$0xff]   ;;  %23294 = vst [vmem:[%s33418_s1 + $0x78] sm:$0xff] %v25982_v63 }
 0x13e   :  { %v25975_v56 = vld [vmem:[%s33417_s0 + $0x868] sm:$0xff]   ;;  %23262 = vst [vmem:[%s33418_s1 + $0xc68] sm:$0xff] %v25974_v55  ;;  %v25984_v1 = vld [vmem:[%s33417_s0 + $0x878] sm:$0xff]   ;;  %23298 = vst [vmem:[%s33418_s1 + $0xc78] sm:$0xff] %v25983_v0 }
 0x13f   :  { %v25976_v57 = vld [vmem:[%s33417_s0 + $0x1c68] sm:$0xff]   ;;  %23266 = vst [vmem:[%s33418_s1 + $0x1868] sm:$0xff] %v25975_v56  ;;  %v25985_v2 = vld [vmem:[%s33417_s0 + $0x1c78] sm:$0xff]   ;;  %23302 = vst [vmem:[%s33418_s1 + $0x1878] sm:$0xff] %v25984_v1 }
 0x140   :  { %v25977_v58 = vld [vmem:[%s33417_s0 + $0x1068] sm:$0xff]   ;;  %23270 = vst [vmem:[%s33418_s1 + $0x468] sm:$0xff] %v25976_v57  ;;  %v25986_v3 = vld [vmem:[%s33417_s0 + $0x1078] sm:$0xff]   ;;  %23306 = vst [vmem:[%s33418_s1 + $0x478] sm:$0xff] %v25985_v2 }
 0x141   :  { %v25978_v59 = vld [vmem:[%s33417_s0 + $0x468] sm:$0xff]   ;;  %23274 = vst [vmem:[%s33418_s1 + $0x1068] sm:$0xff] %v25977_v58  ;;  %v25987_v4 = vld [vmem:[%s33417_s0 + $0x478] sm:$0xff]   ;;  %23310 = vst [vmem:[%s33418_s1 + $0x1078] sm:$0xff] %v25986_v3 }
 0x142   :  { %v25979_v60 = vld [vmem:[%s33417_s0 + $0x1868] sm:$0xff]   ;;  %23278 = vst [vmem:[%s33418_s1 + $0x1c68] sm:$0xff] %v25978_v59  ;;  %v25988_v5 = vld [vmem:[%s33417_s0 + $0x1878] sm:$0xff]   ;;  %23314 = vst [vmem:[%s33418_s1 + $0x1c78] sm:$0xff] %v25987_v4 }
 0x143   :  { %v25980_v61 = vld [vmem:[%s33417_s0 + $0xc68] sm:$0xff]   ;;  %23282 = vst [vmem:[%s33418_s1 + $0x868] sm:$0xff] %v25979_v60  ;;  %v25989_v6 = vld [vmem:[%s33417_s0 + $0xc78] sm:$0xff]   ;;  %23318 = vst [vmem:[%s33418_s1 + $0x878] sm:$0xff] %v25988_v5 }
 0x144   :  { %v25981_v62 = vld [vmem:[%s33417_s0 + $0x68] sm:$0xff]   ;;  %23286 = vst [vmem:[%s33418_s1 + $0x1468] sm:$0xff] %v25980_v61  ;;  %v25990_v7 = vld [vmem:[%s33417_s0 + $0x78] sm:$0xff]   ;;  %23322 = vst [vmem:[%s33418_s1 + $0x1478] sm:$0xff] %v25989_v6 }
 0x145   :  { %23290 = vst [vmem:[%s33418_s1 + $0x2068] sm:$0xff] %v25981_v62  ;;  %v25991_v8 = vld [vmem:[%s33417_s0 + $0x2088] sm:$0xff]   ;;  %23326 = vst [vmem:[%s33418_s1 + $0x2078] sm:$0xff] %v25990_v7  ;;  %v26000_v17 = vld [vmem:[%s33417_s0 + $0x2098] sm:$0xff]  }
 0x146   :  { %v25992_v9 = vld [vmem:[%s33417_s0 + $0x1488] sm:$0xff]   ;;  %23330 = vst [vmem:[%s33418_s1 + $0x88] sm:$0xff] %v25991_v8  ;;  %v26001_v18 = vld [vmem:[%s33417_s0 + $0x1498] sm:$0xff]   ;;  %23366 = vst [vmem:[%s33418_s1 + $0x98] sm:$0xff] %v26000_v17 }
 0x147   :  { %v25993_v10 = vld [vmem:[%s33417_s0 + $0x888] sm:$0xff]   ;;  %23334 = vst [vmem:[%s33418_s1 + $0xc88] sm:$0xff] %v25992_v9  ;;  %v26002_v19 = vld [vmem:[%s33417_s0 + $0x898] sm:$0xff]   ;;  %23370 = vst [vmem:[%s33418_s1 + $0xc98] sm:$0xff] %v26001_v18 }
 0x148   :  { %v25994_v11 = vld [vmem:[%s33417_s0 + $0x1c88] sm:$0xff]   ;;  %23338 = vst [vmem:[%s33418_s1 + $0x1888] sm:$0xff] %v25993_v10  ;;  %v26003_v20 = vld [vmem:[%s33417_s0 + $0x1c98] sm:$0xff]   ;;  %23374 = vst [vmem:[%s33418_s1 + $0x1898] sm:$0xff] %v26002_v19 }
 0x149   :  { %v25995_v12 = vld [vmem:[%s33417_s0 + $0x1088] sm:$0xff]   ;;  %23342 = vst [vmem:[%s33418_s1 + $0x488] sm:$0xff] %v25994_v11  ;;  %v26004_v21 = vld [vmem:[%s33417_s0 + $0x1098] sm:$0xff]   ;;  %23378 = vst [vmem:[%s33418_s1 + $0x498] sm:$0xff] %v26003_v20 }
 0x14a   :  { %v25996_v13 = vld [vmem:[%s33417_s0 + $0x488] sm:$0xff]   ;;  %23346 = vst [vmem:[%s33418_s1 + $0x1088] sm:$0xff] %v25995_v12  ;;  %v26005_v22 = vld [vmem:[%s33417_s0 + $0x498] sm:$0xff]   ;;  %23382 = vst [vmem:[%s33418_s1 + $0x1098] sm:$0xff] %v26004_v21 }
 0x14b   :  { %v25997_v14 = vld [vmem:[%s33417_s0 + $0x1888] sm:$0xff]   ;;  %23350 = vst [vmem:[%s33418_s1 + $0x1c88] sm:$0xff] %v25996_v13  ;;  %v26006_v23 = vld [vmem:[%s33417_s0 + $0x1898] sm:$0xff]   ;;  %23386 = vst [vmem:[%s33418_s1 + $0x1c98] sm:$0xff] %v26005_v22 }
 0x14c   :  { %v25998_v15 = vld [vmem:[%s33417_s0 + $0xc88] sm:$0xff]   ;;  %23354 = vst [vmem:[%s33418_s1 + $0x888] sm:$0xff] %v25997_v14  ;;  %v26007_v24 = vld [vmem:[%s33417_s0 + $0xc98] sm:$0xff]   ;;  %23390 = vst [vmem:[%s33418_s1 + $0x898] sm:$0xff] %v26006_v23 }
 0x14d   :  { %v25999_v16 = vld [vmem:[%s33417_s0 + $0x88] sm:$0xff]   ;;  %23358 = vst [vmem:[%s33418_s1 + $0x1488] sm:$0xff] %v25998_v15  ;;  %v26008_v25 = vld [vmem:[%s33417_s0 + $0x98] sm:$0xff]   ;;  %23394 = vst [vmem:[%s33418_s1 + $0x1498] sm:$0xff] %v26007_v24 }
 0x14e   :  { %23362 = vst [vmem:[%s33418_s1 + $0x2088] sm:$0xff] %v25999_v16  ;;  %v26009_v26 = vld [vmem:[%s33417_s0 + $0x20a8] sm:$0xff]   ;;  %23398 = vst [vmem:[%s33418_s1 + $0x2098] sm:$0xff] %v26008_v25  ;;  %v26018_v35 = vld [vmem:[%s33417_s0 + $0x20b8] sm:$0xff]  }
 0x14f   :  { %v26010_v27 = vld [vmem:[%s33417_s0 + $0x14a8] sm:$0xff]   ;;  %23402 = vst [vmem:[%s33418_s1 + $0xa8] sm:$0xff] %v26009_v26  ;;  %v26019_v36 = vld [vmem:[%s33417_s0 + $0x14b8] sm:$0xff]   ;;  %23438 = vst [vmem:[%s33418_s1 + $0xb8] sm:$0xff] %v26018_v35 }
 0x150   :  { %v26011_v28 = vld [vmem:[%s33417_s0 + $0x8a8] sm:$0xff]   ;;  %23406 = vst [vmem:[%s33418_s1 + $0xca8] sm:$0xff] %v26010_v27  ;;  %v26020_v37 = vld [vmem:[%s33417_s0 + $0x8b8] sm:$0xff]   ;;  %23442 = vst [vmem:[%s33418_s1 + $0xcb8] sm:$0xff] %v26019_v36 }
 0x151   :  { %v26012_v29 = vld [vmem:[%s33417_s0 + $0x1ca8] sm:$0xff]   ;;  %23410 = vst [vmem:[%s33418_s1 + $0x18a8] sm:$0xff] %v26011_v28  ;;  %v26021_v38 = vld [vmem:[%s33417_s0 + $0x1cb8] sm:$0xff]   ;;  %23446 = vst [vmem:[%s33418_s1 + $0x18b8] sm:$0xff] %v26020_v37 }
 0x152   :  { %v26013_v30 = vld [vmem:[%s33417_s0 + $0x10a8] sm:$0xff]   ;;  %23414 = vst [vmem:[%s33418_s1 + $0x4a8] sm:$0xff] %v26012_v29  ;;  %v26022_v39 = vld [vmem:[%s33417_s0 + $0x10b8] sm:$0xff]   ;;  %23450 = vst [vmem:[%s33418_s1 + $0x4b8] sm:$0xff] %v26021_v38 }
 0x153   :  { %v26014_v31 = vld [vmem:[%s33417_s0 + $0x4a8] sm:$0xff]   ;;  %23418 = vst [vmem:[%s33418_s1 + $0x10a8] sm:$0xff] %v26013_v30  ;;  %v26023_v40 = vld [vmem:[%s33417_s0 + $0x4b8] sm:$0xff]   ;;  %23454 = vst [vmem:[%s33418_s1 + $0x10b8] sm:$0xff] %v26022_v39 }
 0x154   :  { %v26015_v32 = vld [vmem:[%s33417_s0 + $0x18a8] sm:$0xff]   ;;  %23422 = vst [vmem:[%s33418_s1 + $0x1ca8] sm:$0xff] %v26014_v31  ;;  %v26024_v41 = vld [vmem:[%s33417_s0 + $0x18b8] sm:$0xff]   ;;  %23458 = vst [vmem:[%s33418_s1 + $0x1cb8] sm:$0xff] %v26023_v40 }
 0x155   :  { %v26016_v33 = vld [vmem:[%s33417_s0 + $0xca8] sm:$0xff]   ;;  %23426 = vst [vmem:[%s33418_s1 + $0x8a8] sm:$0xff] %v26015_v32  ;;  %v26025_v42 = vld [vmem:[%s33417_s0 + $0xcb8] sm:$0xff]   ;;  %23462 = vst [vmem:[%s33418_s1 + $0x8b8] sm:$0xff] %v26024_v41 }
 0x156   :  { %v26017_v34 = vld [vmem:[%s33417_s0 + $0xa8] sm:$0xff]   ;;  %23430 = vst [vmem:[%s33418_s1 + $0x14a8] sm:$0xff] %v26016_v33  ;;  %v26026_v43 = vld [vmem:[%s33417_s0 + $0xb8] sm:$0xff]   ;;  %23466 = vst [vmem:[%s33418_s1 + $0x14b8] sm:$0xff] %v26025_v42 }
 0x157   :  { %23434 = vst [vmem:[%s33418_s1 + $0x20a8] sm:$0xff] %v26017_v34  ;;  %v26027_v44 = vld [vmem:[%s33417_s0 + $0x20c8] sm:$0xff]   ;;  %23470 = vst [vmem:[%s33418_s1 + $0x20b8] sm:$0xff] %v26026_v43  ;;  %v26036_v53 = vld [vmem:[%s33417_s0 + $0x20d8] sm:$0xff]  }
 0x158   :  { %v26028_v45 = vld [vmem:[%s33417_s0 + $0x14c8] sm:$0xff]   ;;  %23474 = vst [vmem:[%s33418_s1 + $0xc8] sm:$0xff] %v26027_v44  ;;  %v26037_v54 = vld [vmem:[%s33417_s0 + $0x14d8] sm:$0xff]   ;;  %23510 = vst [vmem:[%s33418_s1 + $0xd8] sm:$0xff] %v26036_v53 }
 0x159   :  { %v26029_v46 = vld [vmem:[%s33417_s0 + $0x8c8] sm:$0xff]   ;;  %23478 = vst [vmem:[%s33418_s1 + $0xcc8] sm:$0xff] %v26028_v45  ;;  %v26038_v55 = vld [vmem:[%s33417_s0 + $0x8d8] sm:$0xff]   ;;  %23514 = vst [vmem:[%s33418_s1 + $0xcd8] sm:$0xff] %v26037_v54 }
 0x15a   :  { %v26030_v47 = vld [vmem:[%s33417_s0 + $0x1cc8] sm:$0xff]   ;;  %23482 = vst [vmem:[%s33418_s1 + $0x18c8] sm:$0xff] %v26029_v46  ;;  %v26039_v56 = vld [vmem:[%s33417_s0 + $0x1cd8] sm:$0xff]   ;;  %23518 = vst [vmem:[%s33418_s1 + $0x18d8] sm:$0xff] %v26038_v55 }
 0x15b   :  { %v26031_v48 = vld [vmem:[%s33417_s0 + $0x10c8] sm:$0xff]   ;;  %23486 = vst [vmem:[%s33418_s1 + $0x4c8] sm:$0xff] %v26030_v47  ;;  %v26040_v57 = vld [vmem:[%s33417_s0 + $0x10d8] sm:$0xff]   ;;  %23522 = vst [vmem:[%s33418_s1 + $0x4d8] sm:$0xff] %v26039_v56 }
 0x15c   :  { %v26032_v49 = vld [vmem:[%s33417_s0 + $0x4c8] sm:$0xff]   ;;  %23490 = vst [vmem:[%s33418_s1 + $0x10c8] sm:$0xff] %v26031_v48  ;;  %v26041_v58 = vld [vmem:[%s33417_s0 + $0x4d8] sm:$0xff]   ;;  %23526 = vst [vmem:[%s33418_s1 + $0x10d8] sm:$0xff] %v26040_v57 }
 0x15d   :  { %v26033_v50 = vld [vmem:[%s33417_s0 + $0x18c8] sm:$0xff]   ;;  %23494 = vst [vmem:[%s33418_s1 + $0x1cc8] sm:$0xff] %v26032_v49  ;;  %v26042_v59 = vld [vmem:[%s33417_s0 + $0x18d8] sm:$0xff]   ;;  %23530 = vst [vmem:[%s33418_s1 + $0x1cd8] sm:$0xff] %v26041_v58 }
 0x15e   :  { %v26034_v51 = vld [vmem:[%s33417_s0 + $0xcc8] sm:$0xff]   ;;  %23498 = vst [vmem:[%s33418_s1 + $0x8c8] sm:$0xff] %v26033_v50  ;;  %v26043_v60 = vld [vmem:[%s33417_s0 + $0xcd8] sm:$0xff]   ;;  %23534 = vst [vmem:[%s33418_s1 + $0x8d8] sm:$0xff] %v26042_v59 }
 0x15f   :  { %v26035_v52 = vld [vmem:[%s33417_s0 + $0xc8] sm:$0xff]   ;;  %23502 = vst [vmem:[%s33418_s1 + $0x14c8] sm:$0xff] %v26034_v51  ;;  %v26044_v61 = vld [vmem:[%s33417_s0 + $0xd8] sm:$0xff]   ;;  %23538 = vst [vmem:[%s33418_s1 + $0x14d8] sm:$0xff] %v26043_v60 }
 0x160   :  { %23506 = vst [vmem:[%s33418_s1 + $0x20c8] sm:$0xff] %v26035_v52  ;;  %v26045_v62 = vld [vmem:[%s33417_s0 + $0x20e8] sm:$0xff]   ;;  %23542 = vst [vmem:[%s33418_s1 + $0x20d8] sm:$0xff] %v26044_v61  ;;  %v26054_v7 = vld [vmem:[%s33417_s0 + $0x20f8] sm:$0xff]  }
 0x161   :  { %v26046_v63 = vld [vmem:[%s33417_s0 + $0x14e8] sm:$0xff]   ;;  %23546 = vst [vmem:[%s33418_s1 + $0xe8] sm:$0xff] %v26045_v62  ;;  %v26055_v8 = vld [vmem:[%s33417_s0 + $0x14f8] sm:$0xff]   ;;  %23582 = vst [vmem:[%s33418_s1 + $0xf8] sm:$0xff] %v26054_v7 }
 0x162   :  { %v26047_v0 = vld [vmem:[%s33417_s0 + $0x8e8] sm:$0xff]   ;;  %23550 = vst [vmem:[%s33418_s1 + $0xce8] sm:$0xff] %v26046_v63  ;;  %v26056_v9 = vld [vmem:[%s33417_s0 + $0x8f8] sm:$0xff]   ;;  %23586 = vst [vmem:[%s33418_s1 + $0xcf8] sm:$0xff] %v26055_v8 }
 0x163   :  { %v26048_v1 = vld [vmem:[%s33417_s0 + $0x1ce8] sm:$0xff]   ;;  %23554 = vst [vmem:[%s33418_s1 + $0x18e8] sm:$0xff] %v26047_v0  ;;  %v26057_v10 = vld [vmem:[%s33417_s0 + $0x1cf8] sm:$0xff]   ;;  %23590 = vst [vmem:[%s33418_s1 + $0x18f8] sm:$0xff] %v26056_v9 }
 0x164   :  { %v26049_v2 = vld [vmem:[%s33417_s0 + $0x10e8] sm:$0xff]   ;;  %23558 = vst [vmem:[%s33418_s1 + $0x4e8] sm:$0xff] %v26048_v1  ;;  %v26058_v11 = vld [vmem:[%s33417_s0 + $0x10f8] sm:$0xff]   ;;  %23594 = vst [vmem:[%s33418_s1 + $0x4f8] sm:$0xff] %v26057_v10 }
 0x165   :  { %v26050_v3 = vld [vmem:[%s33417_s0 + $0x4e8] sm:$0xff]   ;;  %23562 = vst [vmem:[%s33418_s1 + $0x10e8] sm:$0xff] %v26049_v2  ;;  %v26059_v12 = vld [vmem:[%s33417_s0 + $0x4f8] sm:$0xff]   ;;  %23598 = vst [vmem:[%s33418_s1 + $0x10f8] sm:$0xff] %v26058_v11 }
 0x166   :  { %v26051_v4 = vld [vmem:[%s33417_s0 + $0x18e8] sm:$0xff]   ;;  %23566 = vst [vmem:[%s33418_s1 + $0x1ce8] sm:$0xff] %v26050_v3  ;;  %v26060_v13 = vld [vmem:[%s33417_s0 + $0x18f8] sm:$0xff]   ;;  %23602 = vst [vmem:[%s33418_s1 + $0x1cf8] sm:$0xff] %v26059_v12 }
 0x167   :  { %v26052_v5 = vld [vmem:[%s33417_s0 + $0xce8] sm:$0xff]   ;;  %23570 = vst [vmem:[%s33418_s1 + $0x8e8] sm:$0xff] %v26051_v4  ;;  %v26061_v14 = vld [vmem:[%s33417_s0 + $0xcf8] sm:$0xff]   ;;  %23606 = vst [vmem:[%s33418_s1 + $0x8f8] sm:$0xff] %v26060_v13 }
 0x168   :  { %v26053_v6 = vld [vmem:[%s33417_s0 + $0xe8] sm:$0xff]   ;;  %23574 = vst [vmem:[%s33418_s1 + $0x14e8] sm:$0xff] %v26052_v5  ;;  %v26062_v15 = vld [vmem:[%s33417_s0 + $0xf8] sm:$0xff]   ;;  %23610 = vst [vmem:[%s33418_s1 + $0x14f8] sm:$0xff] %v26061_v14 }
 0x169   :  { %23578 = vst [vmem:[%s33418_s1 + $0x20e8] sm:$0xff] %v26053_v6  ;;  %v26063_v16 = vld [vmem:[%s33417_s0 + $0x2108] sm:$0xff]   ;;  %23614 = vst [vmem:[%s33418_s1 + $0x20f8] sm:$0xff] %v26062_v15  ;;  %v26072_v25 = vld [vmem:[%s33417_s0 + $0x2118] sm:$0xff]  }
 0x16a   :  { %v26064_v17 = vld [vmem:[%s33417_s0 + $0x1508] sm:$0xff]   ;;  %23618 = vst [vmem:[%s33418_s1 + $0x108] sm:$0xff] %v26063_v16  ;;  %v26073_v26 = vld [vmem:[%s33417_s0 + $0x1518] sm:$0xff]   ;;  %23654 = vst [vmem:[%s33418_s1 + $0x118] sm:$0xff] %v26072_v25 }
 0x16b   :  { %v26065_v18 = vld [vmem:[%s33417_s0 + $0x908] sm:$0xff]   ;;  %23622 = vst [vmem:[%s33418_s1 + $0xd08] sm:$0xff] %v26064_v17  ;;  %v26074_v27 = vld [vmem:[%s33417_s0 + $0x918] sm:$0xff]   ;;  %23658 = vst [vmem:[%s33418_s1 + $0xd18] sm:$0xff] %v26073_v26 }
 0x16c   :  { %v26066_v19 = vld [vmem:[%s33417_s0 + $0x1d08] sm:$0xff]   ;;  %23626 = vst [vmem:[%s33418_s1 + $0x1908] sm:$0xff] %v26065_v18  ;;  %v26075_v28 = vld [vmem:[%s33417_s0 + $0x1d18] sm:$0xff]   ;;  %23662 = vst [vmem:[%s33418_s1 + $0x1918] sm:$0xff] %v26074_v27 }
 0x16d   :  { %v26067_v20 = vld [vmem:[%s33417_s0 + $0x1108] sm:$0xff]   ;;  %23630 = vst [vmem:[%s33418_s1 + $0x508] sm:$0xff] %v26066_v19  ;;  %v26076_v29 = vld [vmem:[%s33417_s0 + $0x1118] sm:$0xff]   ;;  %23666 = vst [vmem:[%s33418_s1 + $0x518] sm:$0xff] %v26075_v28 }
 0x16e   :  { %v26068_v21 = vld [vmem:[%s33417_s0 + $0x508] sm:$0xff]   ;;  %23634 = vst [vmem:[%s33418_s1 + $0x1108] sm:$0xff] %v26067_v20  ;;  %v26077_v30 = vld [vmem:[%s33417_s0 + $0x518] sm:$0xff]   ;;  %23670 = vst [vmem:[%s33418_s1 + $0x1118] sm:$0xff] %v26076_v29 }
 0x16f   :  { %v26069_v22 = vld [vmem:[%s33417_s0 + $0x1908] sm:$0xff]   ;;  %23638 = vst [vmem:[%s33418_s1 + $0x1d08] sm:$0xff] %v26068_v21  ;;  %v26078_v31 = vld [vmem:[%s33417_s0 + $0x1918] sm:$0xff]   ;;  %23674 = vst [vmem:[%s33418_s1 + $0x1d18] sm:$0xff] %v26077_v30 }
 0x170   :  { %v26070_v23 = vld [vmem:[%s33417_s0 + $0xd08] sm:$0xff]   ;;  %23642 = vst [vmem:[%s33418_s1 + $0x908] sm:$0xff] %v26069_v22  ;;  %v26079_v32 = vld [vmem:[%s33417_s0 + $0xd18] sm:$0xff]   ;;  %23678 = vst [vmem:[%s33418_s1 + $0x918] sm:$0xff] %v26078_v31 }
 0x171   :  { %v26071_v24 = vld [vmem:[%s33417_s0 + $0x108] sm:$0xff]   ;;  %23646 = vst [vmem:[%s33418_s1 + $0x1508] sm:$0xff] %v26070_v23  ;;  %v26080_v33 = vld [vmem:[%s33417_s0 + $0x118] sm:$0xff]   ;;  %23682 = vst [vmem:[%s33418_s1 + $0x1518] sm:$0xff] %v26079_v32 }
 0x172   :  { %23650 = vst [vmem:[%s33418_s1 + $0x2108] sm:$0xff] %v26071_v24  ;;  %v26081_v34 = vld [vmem:[%s33417_s0 + $0x2128] sm:$0xff]   ;;  %23686 = vst [vmem:[%s33418_s1 + $0x2118] sm:$0xff] %v26080_v33  ;;  %v26090_v43 = vld [vmem:[%s33417_s0 + $0x2138] sm:$0xff]  }
 0x173   :  { %v26082_v35 = vld [vmem:[%s33417_s0 + $0x1528] sm:$0xff]   ;;  %23690 = vst [vmem:[%s33418_s1 + $0x128] sm:$0xff] %v26081_v34  ;;  %v26091_v44 = vld [vmem:[%s33417_s0 + $0x1538] sm:$0xff]   ;;  %23726 = vst [vmem:[%s33418_s1 + $0x138] sm:$0xff] %v26090_v43 }
 0x174   :  { %v26083_v36 = vld [vmem:[%s33417_s0 + $0x928] sm:$0xff]   ;;  %23694 = vst [vmem:[%s33418_s1 + $0xd28] sm:$0xff] %v26082_v35  ;;  %v26092_v45 = vld [vmem:[%s33417_s0 + $0x938] sm:$0xff]   ;;  %23730 = vst [vmem:[%s33418_s1 + $0xd38] sm:$0xff] %v26091_v44 }
 0x175   :  { %v26084_v37 = vld [vmem:[%s33417_s0 + $0x1d28] sm:$0xff]   ;;  %23698 = vst [vmem:[%s33418_s1 + $0x1928] sm:$0xff] %v26083_v36  ;;  %v26093_v46 = vld [vmem:[%s33417_s0 + $0x1d38] sm:$0xff]   ;;  %23734 = vst [vmem:[%s33418_s1 + $0x1938] sm:$0xff] %v26092_v45 }
 0x176   :  { %v26085_v38 = vld [vmem:[%s33417_s0 + $0x1128] sm:$0xff]   ;;  %23702 = vst [vmem:[%s33418_s1 + $0x528] sm:$0xff] %v26084_v37  ;;  %v26094_v47 = vld [vmem:[%s33417_s0 + $0x1138] sm:$0xff]   ;;  %23738 = vst [vmem:[%s33418_s1 + $0x538] sm:$0xff] %v26093_v46 }
 0x177   :  { %v26086_v39 = vld [vmem:[%s33417_s0 + $0x528] sm:$0xff]   ;;  %23706 = vst [vmem:[%s33418_s1 + $0x1128] sm:$0xff] %v26085_v38  ;;  %v26095_v48 = vld [vmem:[%s33417_s0 + $0x538] sm:$0xff]   ;;  %23742 = vst [vmem:[%s33418_s1 + $0x1138] sm:$0xff] %v26094_v47 }
 0x178   :  { %v26087_v40 = vld [vmem:[%s33417_s0 + $0x1928] sm:$0xff]   ;;  %23710 = vst [vmem:[%s33418_s1 + $0x1d28] sm:$0xff] %v26086_v39  ;;  %v26096_v49 = vld [vmem:[%s33417_s0 + $0x1938] sm:$0xff]   ;;  %23746 = vst [vmem:[%s33418_s1 + $0x1d38] sm:$0xff] %v26095_v48 }
 0x179   :  { %v26088_v41 = vld [vmem:[%s33417_s0 + $0xd28] sm:$0xff]   ;;  %23714 = vst [vmem:[%s33418_s1 + $0x928] sm:$0xff] %v26087_v40  ;;  %v26097_v50 = vld [vmem:[%s33417_s0 + $0xd38] sm:$0xff]   ;;  %23750 = vst [vmem:[%s33418_s1 + $0x938] sm:$0xff] %v26096_v49 }
 0x17a   :  { %v26089_v42 = vld [vmem:[%s33417_s0 + $0x128] sm:$0xff]   ;;  %23718 = vst [vmem:[%s33418_s1 + $0x1528] sm:$0xff] %v26088_v41  ;;  %v26098_v51 = vld [vmem:[%s33417_s0 + $0x138] sm:$0xff]   ;;  %23754 = vst [vmem:[%s33418_s1 + $0x1538] sm:$0xff] %v26097_v50 }
 0x17b   :  { %23722 = vst [vmem:[%s33418_s1 + $0x2128] sm:$0xff] %v26089_v42  ;;  %v26099_v52 = vld [vmem:[%s33417_s0 + $0x2148] sm:$0xff]   ;;  %23758 = vst [vmem:[%s33418_s1 + $0x2138] sm:$0xff] %v26098_v51  ;;  %v26108_v61 = vld [vmem:[%s33417_s0 + $0x2158] sm:$0xff]  }
 0x17c   :  { %v26100_v53 = vld [vmem:[%s33417_s0 + $0x1548] sm:$0xff]   ;;  %23762 = vst [vmem:[%s33418_s1 + $0x148] sm:$0xff] %v26099_v52  ;;  %v26109_v62 = vld [vmem:[%s33417_s0 + $0x1558] sm:$0xff]   ;;  %23798 = vst [vmem:[%s33418_s1 + $0x158] sm:$0xff] %v26108_v61 }
 0x17d   :  { %v26101_v54 = vld [vmem:[%s33417_s0 + $0x948] sm:$0xff]   ;;  %23766 = vst [vmem:[%s33418_s1 + $0xd48] sm:$0xff] %v26100_v53  ;;  %v26110_v63 = vld [vmem:[%s33417_s0 + $0x958] sm:$0xff]   ;;  %23802 = vst [vmem:[%s33418_s1 + $0xd58] sm:$0xff] %v26109_v62 }
 0x17e   :  { %v26102_v55 = vld [vmem:[%s33417_s0 + $0x1d48] sm:$0xff]   ;;  %23770 = vst [vmem:[%s33418_s1 + $0x1948] sm:$0xff] %v26101_v54  ;;  %v26111_v0 = vld [vmem:[%s33417_s0 + $0x1d58] sm:$0xff]   ;;  %23806 = vst [vmem:[%s33418_s1 + $0x1958] sm:$0xff] %v26110_v63 }
 0x17f   :  { %v26103_v56 = vld [vmem:[%s33417_s0 + $0x1148] sm:$0xff]   ;;  %23774 = vst [vmem:[%s33418_s1 + $0x548] sm:$0xff] %v26102_v55  ;;  %v26112_v1 = vld [vmem:[%s33417_s0 + $0x1158] sm:$0xff]   ;;  %23810 = vst [vmem:[%s33418_s1 + $0x558] sm:$0xff] %v26111_v0 }
 0x180   :  { %v26104_v57 = vld [vmem:[%s33417_s0 + $0x548] sm:$0xff]   ;;  %23778 = vst [vmem:[%s33418_s1 + $0x1148] sm:$0xff] %v26103_v56  ;;  %v26113_v2 = vld [vmem:[%s33417_s0 + $0x558] sm:$0xff]   ;;  %23814 = vst [vmem:[%s33418_s1 + $0x1158] sm:$0xff] %v26112_v1 }
 0x181   :  { %v26105_v58 = vld [vmem:[%s33417_s0 + $0x1948] sm:$0xff]   ;;  %23782 = vst [vmem:[%s33418_s1 + $0x1d48] sm:$0xff] %v26104_v57  ;;  %v26114_v3 = vld [vmem:[%s33417_s0 + $0x1958] sm:$0xff]   ;;  %23818 = vst [vmem:[%s33418_s1 + $0x1d58] sm:$0xff] %v26113_v2 }
 0x182   :  { %v26106_v59 = vld [vmem:[%s33417_s0 + $0xd48] sm:$0xff]   ;;  %23786 = vst [vmem:[%s33418_s1 + $0x948] sm:$0xff] %v26105_v58  ;;  %v26115_v4 = vld [vmem:[%s33417_s0 + $0xd58] sm:$0xff]   ;;  %23822 = vst [vmem:[%s33418_s1 + $0x958] sm:$0xff] %v26114_v3 }
 0x183   :  { %v26107_v60 = vld [vmem:[%s33417_s0 + $0x148] sm:$0xff]   ;;  %23790 = vst [vmem:[%s33418_s1 + $0x1548] sm:$0xff] %v26106_v59  ;;  %v26116_v5 = vld [vmem:[%s33417_s0 + $0x158] sm:$0xff]   ;;  %23826 = vst [vmem:[%s33418_s1 + $0x1558] sm:$0xff] %v26115_v4 }
 0x184   :  { %23794 = vst [vmem:[%s33418_s1 + $0x2148] sm:$0xff] %v26107_v60  ;;  %v26117_v6 = vld [vmem:[%s33417_s0 + $0x2168] sm:$0xff]   ;;  %23830 = vst [vmem:[%s33418_s1 + $0x2158] sm:$0xff] %v26116_v5  ;;  %v26126_v15 = vld [vmem:[%s33417_s0 + $0x2178] sm:$0xff]  }
 0x185   :  { %v26118_v7 = vld [vmem:[%s33417_s0 + $0x1568] sm:$0xff]   ;;  %23834 = vst [vmem:[%s33418_s1 + $0x168] sm:$0xff] %v26117_v6  ;;  %v26127_v16 = vld [vmem:[%s33417_s0 + $0x1578] sm:$0xff]   ;;  %23870 = vst [vmem:[%s33418_s1 + $0x178] sm:$0xff] %v26126_v15 }
 0x186   :  { %v26119_v8 = vld [vmem:[%s33417_s0 + $0x968] sm:$0xff]   ;;  %23838 = vst [vmem:[%s33418_s1 + $0xd68] sm:$0xff] %v26118_v7  ;;  %v26128_v17 = vld [vmem:[%s33417_s0 + $0x978] sm:$0xff]   ;;  %23874 = vst [vmem:[%s33418_s1 + $0xd78] sm:$0xff] %v26127_v16 }
 0x187   :  { %v26120_v9 = vld [vmem:[%s33417_s0 + $0x1d68] sm:$0xff]   ;;  %23842 = vst [vmem:[%s33418_s1 + $0x1968] sm:$0xff] %v26119_v8  ;;  %v26129_v18 = vld [vmem:[%s33417_s0 + $0x1d78] sm:$0xff]   ;;  %23878 = vst [vmem:[%s33418_s1 + $0x1978] sm:$0xff] %v26128_v17 }
 0x188   :  { %v26121_v10 = vld [vmem:[%s33417_s0 + $0x1168] sm:$0xff]   ;;  %23846 = vst [vmem:[%s33418_s1 + $0x568] sm:$0xff] %v26120_v9  ;;  %v26130_v19 = vld [vmem:[%s33417_s0 + $0x1178] sm:$0xff]   ;;  %23882 = vst [vmem:[%s33418_s1 + $0x578] sm:$0xff] %v26129_v18 }
 0x189   :  { %v26122_v11 = vld [vmem:[%s33417_s0 + $0x568] sm:$0xff]   ;;  %23850 = vst [vmem:[%s33418_s1 + $0x1168] sm:$0xff] %v26121_v10  ;;  %v26131_v20 = vld [vmem:[%s33417_s0 + $0x578] sm:$0xff]   ;;  %23886 = vst [vmem:[%s33418_s1 + $0x1178] sm:$0xff] %v26130_v19 }
 0x18a   :  { %v26123_v12 = vld [vmem:[%s33417_s0 + $0x1968] sm:$0xff]   ;;  %23854 = vst [vmem:[%s33418_s1 + $0x1d68] sm:$0xff] %v26122_v11  ;;  %v26132_v21 = vld [vmem:[%s33417_s0 + $0x1978] sm:$0xff]   ;;  %23890 = vst [vmem:[%s33418_s1 + $0x1d78] sm:$0xff] %v26131_v20 }
 0x18b   :  { %v26124_v13 = vld [vmem:[%s33417_s0 + $0xd68] sm:$0xff]   ;;  %23858 = vst [vmem:[%s33418_s1 + $0x968] sm:$0xff] %v26123_v12  ;;  %v26133_v22 = vld [vmem:[%s33417_s0 + $0xd78] sm:$0xff]   ;;  %23894 = vst [vmem:[%s33418_s1 + $0x978] sm:$0xff] %v26132_v21 }
 0x18c   :  { %v26125_v14 = vld [vmem:[%s33417_s0 + $0x168] sm:$0xff]   ;;  %23862 = vst [vmem:[%s33418_s1 + $0x1568] sm:$0xff] %v26124_v13  ;;  %v26134_v23 = vld [vmem:[%s33417_s0 + $0x178] sm:$0xff]   ;;  %23898 = vst [vmem:[%s33418_s1 + $0x1578] sm:$0xff] %v26133_v22 }
 0x18d   :  { %23866 = vst [vmem:[%s33418_s1 + $0x2168] sm:$0xff] %v26125_v14  ;;  %v26135_v24 = vld [vmem:[%s33417_s0 + $0x2188] sm:$0xff]   ;;  %23902 = vst [vmem:[%s33418_s1 + $0x2178] sm:$0xff] %v26134_v23  ;;  %v26144_v33 = vld [vmem:[%s33417_s0 + $0x2198] sm:$0xff]  }
 0x18e   :  { %v26136_v25 = vld [vmem:[%s33417_s0 + $0x1588] sm:$0xff]   ;;  %23906 = vst [vmem:[%s33418_s1 + $0x188] sm:$0xff] %v26135_v24  ;;  %v26145_v34 = vld [vmem:[%s33417_s0 + $0x1598] sm:$0xff]   ;;  %23942 = vst [vmem:[%s33418_s1 + $0x198] sm:$0xff] %v26144_v33 }
 0x18f   :  { %v26137_v26 = vld [vmem:[%s33417_s0 + $0x988] sm:$0xff]   ;;  %23910 = vst [vmem:[%s33418_s1 + $0xd88] sm:$0xff] %v26136_v25  ;;  %v26146_v35 = vld [vmem:[%s33417_s0 + $0x998] sm:$0xff]   ;;  %23946 = vst [vmem:[%s33418_s1 + $0xd98] sm:$0xff] %v26145_v34 }
 0x190   :  { %v26138_v27 = vld [vmem:[%s33417_s0 + $0x1d88] sm:$0xff]   ;;  %23914 = vst [vmem:[%s33418_s1 + $0x1988] sm:$0xff] %v26137_v26  ;;  %v26147_v36 = vld [vmem:[%s33417_s0 + $0x1d98] sm:$0xff]   ;;  %23950 = vst [vmem:[%s33418_s1 + $0x1998] sm:$0xff] %v26146_v35 }
 0x191   :  { %v26139_v28 = vld [vmem:[%s33417_s0 + $0x1188] sm:$0xff]   ;;  %23918 = vst [vmem:[%s33418_s1 + $0x588] sm:$0xff] %v26138_v27  ;;  %v26148_v37 = vld [vmem:[%s33417_s0 + $0x1198] sm:$0xff]   ;;  %23954 = vst [vmem:[%s33418_s1 + $0x598] sm:$0xff] %v26147_v36 }
 0x192   :  { %v26140_v29 = vld [vmem:[%s33417_s0 + $0x588] sm:$0xff]   ;;  %23922 = vst [vmem:[%s33418_s1 + $0x1188] sm:$0xff] %v26139_v28  ;;  %v26149_v38 = vld [vmem:[%s33417_s0 + $0x598] sm:$0xff]   ;;  %23958 = vst [vmem:[%s33418_s1 + $0x1198] sm:$0xff] %v26148_v37 }
 0x193   :  { %v26141_v30 = vld [vmem:[%s33417_s0 + $0x1988] sm:$0xff]   ;;  %23926 = vst [vmem:[%s33418_s1 + $0x1d88] sm:$0xff] %v26140_v29  ;;  %v26150_v39 = vld [vmem:[%s33417_s0 + $0x1998] sm:$0xff]   ;;  %23962 = vst [vmem:[%s33418_s1 + $0x1d98] sm:$0xff] %v26149_v38 }
 0x194   :  { %v26142_v31 = vld [vmem:[%s33417_s0 + $0xd88] sm:$0xff]   ;;  %23930 = vst [vmem:[%s33418_s1 + $0x988] sm:$0xff] %v26141_v30  ;;  %v26151_v40 = vld [vmem:[%s33417_s0 + $0xd98] sm:$0xff]   ;;  %23966 = vst [vmem:[%s33418_s1 + $0x998] sm:$0xff] %v26150_v39 }
 0x195   :  { %v26143_v32 = vld [vmem:[%s33417_s0 + $0x188] sm:$0xff]   ;;  %23934 = vst [vmem:[%s33418_s1 + $0x1588] sm:$0xff] %v26142_v31  ;;  %v26152_v41 = vld [vmem:[%s33417_s0 + $0x198] sm:$0xff]   ;;  %23970 = vst [vmem:[%s33418_s1 + $0x1598] sm:$0xff] %v26151_v40 }
 0x196   :  { %23938 = vst [vmem:[%s33418_s1 + $0x2188] sm:$0xff] %v26143_v32  ;;  %v26153_v42 = vld [vmem:[%s33417_s0 + $0x21a8] sm:$0xff]   ;;  %23974 = vst [vmem:[%s33418_s1 + $0x2198] sm:$0xff] %v26152_v41  ;;  %v26162_v51 = vld [vmem:[%s33417_s0 + $0x21b8] sm:$0xff]  }
 0x197   :  { %v26154_v43 = vld [vmem:[%s33417_s0 + $0x15a8] sm:$0xff]   ;;  %23978 = vst [vmem:[%s33418_s1 + $0x1a8] sm:$0xff] %v26153_v42  ;;  %v26163_v52 = vld [vmem:[%s33417_s0 + $0x15b8] sm:$0xff]   ;;  %24014 = vst [vmem:[%s33418_s1 + $0x1b8] sm:$0xff] %v26162_v51 }
 0x198   :  { %v26155_v44 = vld [vmem:[%s33417_s0 + $0x9a8] sm:$0xff]   ;;  %23982 = vst [vmem:[%s33418_s1 + $0xda8] sm:$0xff] %v26154_v43  ;;  %v26164_v53 = vld [vmem:[%s33417_s0 + $0x9b8] sm:$0xff]   ;;  %24018 = vst [vmem:[%s33418_s1 + $0xdb8] sm:$0xff] %v26163_v52 }
 0x199   :  { %v26156_v45 = vld [vmem:[%s33417_s0 + $0x1da8] sm:$0xff]   ;;  %23986 = vst [vmem:[%s33418_s1 + $0x19a8] sm:$0xff] %v26155_v44  ;;  %v26165_v54 = vld [vmem:[%s33417_s0 + $0x1db8] sm:$0xff]   ;;  %24022 = vst [vmem:[%s33418_s1 + $0x19b8] sm:$0xff] %v26164_v53 }
 0x19a   :  { %v26157_v46 = vld [vmem:[%s33417_s0 + $0x11a8] sm:$0xff]   ;;  %23990 = vst [vmem:[%s33418_s1 + $0x5a8] sm:$0xff] %v26156_v45  ;;  %v26166_v55 = vld [vmem:[%s33417_s0 + $0x11b8] sm:$0xff]   ;;  %24026 = vst [vmem:[%s33418_s1 + $0x5b8] sm:$0xff] %v26165_v54 }
 0x19b   :  { %v26158_v47 = vld [vmem:[%s33417_s0 + $0x5a8] sm:$0xff]   ;;  %23994 = vst [vmem:[%s33418_s1 + $0x11a8] sm:$0xff] %v26157_v46  ;;  %v26167_v56 = vld [vmem:[%s33417_s0 + $0x5b8] sm:$0xff]   ;;  %24030 = vst [vmem:[%s33418_s1 + $0x11b8] sm:$0xff] %v26166_v55 }
 0x19c   :  { %v26159_v48 = vld [vmem:[%s33417_s0 + $0x19a8] sm:$0xff]   ;;  %23998 = vst [vmem:[%s33418_s1 + $0x1da8] sm:$0xff] %v26158_v47  ;;  %v26168_v57 = vld [vmem:[%s33417_s0 + $0x19b8] sm:$0xff]   ;;  %24034 = vst [vmem:[%s33418_s1 + $0x1db8] sm:$0xff] %v26167_v56 }
 0x19d   :  { %v26160_v49 = vld [vmem:[%s33417_s0 + $0xda8] sm:$0xff]   ;;  %24002 = vst [vmem:[%s33418_s1 + $0x9a8] sm:$0xff] %v26159_v48  ;;  %v26169_v58 = vld [vmem:[%s33417_s0 + $0xdb8] sm:$0xff]   ;;  %24038 = vst [vmem:[%s33418_s1 + $0x9b8] sm:$0xff] %v26168_v57 }
 0x19e   :  { %v26161_v50 = vld [vmem:[%s33417_s0 + $0x1a8] sm:$0xff]   ;;  %24006 = vst [vmem:[%s33418_s1 + $0x15a8] sm:$0xff] %v26160_v49  ;;  %v26170_v59 = vld [vmem:[%s33417_s0 + $0x1b8] sm:$0xff]   ;;  %24042 = vst [vmem:[%s33418_s1 + $0x15b8] sm:$0xff] %v26169_v58 }
 0x19f   :  { %24010 = vst [vmem:[%s33418_s1 + $0x21a8] sm:$0xff] %v26161_v50  ;;  %v26171_v60 = vld [vmem:[%s33417_s0 + $0x21c8] sm:$0xff]   ;;  %24046 = vst [vmem:[%s33418_s1 + $0x21b8] sm:$0xff] %v26170_v59  ;;  %v26180_v5 = vld [vmem:[%s33417_s0 + $0x21d8] sm:$0xff]  }
 0x1a0   :  { %v26172_v61 = vld [vmem:[%s33417_s0 + $0x15c8] sm:$0xff]   ;;  %24050 = vst [vmem:[%s33418_s1 + $0x1c8] sm:$0xff] %v26171_v60  ;;  %v26181_v6 = vld [vmem:[%s33417_s0 + $0x15d8] sm:$0xff]   ;;  %24086 = vst [vmem:[%s33418_s1 + $0x1d8] sm:$0xff] %v26180_v5 }
 0x1a1   :  { %v26173_v62 = vld [vmem:[%s33417_s0 + $0x9c8] sm:$0xff]   ;;  %24054 = vst [vmem:[%s33418_s1 + $0xdc8] sm:$0xff] %v26172_v61  ;;  %v26182_v7 = vld [vmem:[%s33417_s0 + $0x9d8] sm:$0xff]   ;;  %24090 = vst [vmem:[%s33418_s1 + $0xdd8] sm:$0xff] %v26181_v6 }
 0x1a2   :  { %v26174_v63 = vld [vmem:[%s33417_s0 + $0x1dc8] sm:$0xff]   ;;  %24058 = vst [vmem:[%s33418_s1 + $0x19c8] sm:$0xff] %v26173_v62  ;;  %v26183_v8 = vld [vmem:[%s33417_s0 + $0x1dd8] sm:$0xff]   ;;  %24094 = vst [vmem:[%s33418_s1 + $0x19d8] sm:$0xff] %v26182_v7 }
 0x1a3   :  { %v26175_v0 = vld [vmem:[%s33417_s0 + $0x11c8] sm:$0xff]   ;;  %24062 = vst [vmem:[%s33418_s1 + $0x5c8] sm:$0xff] %v26174_v63  ;;  %v26184_v9 = vld [vmem:[%s33417_s0 + $0x11d8] sm:$0xff]   ;;  %24098 = vst [vmem:[%s33418_s1 + $0x5d8] sm:$0xff] %v26183_v8 }
 0x1a4   :  { %v26176_v1 = vld [vmem:[%s33417_s0 + $0x5c8] sm:$0xff]   ;;  %24066 = vst [vmem:[%s33418_s1 + $0x11c8] sm:$0xff] %v26175_v0  ;;  %v26185_v10 = vld [vmem:[%s33417_s0 + $0x5d8] sm:$0xff]   ;;  %24102 = vst [vmem:[%s33418_s1 + $0x11d8] sm:$0xff] %v26184_v9 }
 0x1a5   :  { %v26177_v2 = vld [vmem:[%s33417_s0 + $0x19c8] sm:$0xff]   ;;  %24070 = vst [vmem:[%s33418_s1 + $0x1dc8] sm:$0xff] %v26176_v1  ;;  %v26186_v11 = vld [vmem:[%s33417_s0 + $0x19d8] sm:$0xff]   ;;  %24106 = vst [vmem:[%s33418_s1 + $0x1dd8] sm:$0xff] %v26185_v10 }
 0x1a6   :  { %v26178_v3 = vld [vmem:[%s33417_s0 + $0xdc8] sm:$0xff]   ;;  %24074 = vst [vmem:[%s33418_s1 + $0x9c8] sm:$0xff] %v26177_v2  ;;  %v26187_v12 = vld [vmem:[%s33417_s0 + $0xdd8] sm:$0xff]   ;;  %24110 = vst [vmem:[%s33418_s1 + $0x9d8] sm:$0xff] %v26186_v11 }
 0x1a7   :  { %v26179_v4 = vld [vmem:[%s33417_s0 + $0x1c8] sm:$0xff]   ;;  %24078 = vst [vmem:[%s33418_s1 + $0x15c8] sm:$0xff] %v26178_v3  ;;  %v26188_v13 = vld [vmem:[%s33417_s0 + $0x1d8] sm:$0xff]   ;;  %24114 = vst [vmem:[%s33418_s1 + $0x15d8] sm:$0xff] %v26187_v12 }
 0x1a8   :  { %24082 = vst [vmem:[%s33418_s1 + $0x21c8] sm:$0xff] %v26179_v4  ;;  %v26189_v14 = vld [vmem:[%s33417_s0 + $0x21e8] sm:$0xff]   ;;  %24118 = vst [vmem:[%s33418_s1 + $0x21d8] sm:$0xff] %v26188_v13  ;;  %v26198_v23 = vld [vmem:[%s33417_s0 + $0x21f8] sm:$0xff]  }
 0x1a9   :  { %v26190_v15 = vld [vmem:[%s33417_s0 + $0x15e8] sm:$0xff]   ;;  %24122 = vst [vmem:[%s33418_s1 + $0x1e8] sm:$0xff] %v26189_v14  ;;  %v26199_v24 = vld [vmem:[%s33417_s0 + $0x15f8] sm:$0xff]   ;;  %24158 = vst [vmem:[%s33418_s1 + $0x1f8] sm:$0xff] %v26198_v23 }
 0x1aa   :  { %v26191_v16 = vld [vmem:[%s33417_s0 + $0x9e8] sm:$0xff]   ;;  %24126 = vst [vmem:[%s33418_s1 + $0xde8] sm:$0xff] %v26190_v15  ;;  %v26200_v25 = vld [vmem:[%s33417_s0 + $0x9f8] sm:$0xff]   ;;  %24162 = vst [vmem:[%s33418_s1 + $0xdf8] sm:$0xff] %v26199_v24 }
 0x1ab   :  { %v26192_v17 = vld [vmem:[%s33417_s0 + $0x1de8] sm:$0xff]   ;;  %24130 = vst [vmem:[%s33418_s1 + $0x19e8] sm:$0xff] %v26191_v16  ;;  %v26201_v26 = vld [vmem:[%s33417_s0 + $0x1df8] sm:$0xff]   ;;  %24166 = vst [vmem:[%s33418_s1 + $0x19f8] sm:$0xff] %v26200_v25 }
 0x1ac   :  { %v26193_v18 = vld [vmem:[%s33417_s0 + $0x11e8] sm:$0xff]   ;;  %24134 = vst [vmem:[%s33418_s1 + $0x5e8] sm:$0xff] %v26192_v17  ;;  %v26202_v27 = vld [vmem:[%s33417_s0 + $0x11f8] sm:$0xff]   ;;  %24170 = vst [vmem:[%s33418_s1 + $0x5f8] sm:$0xff] %v26201_v26 }
 0x1ad   :  { %v26194_v19 = vld [vmem:[%s33417_s0 + $0x5e8] sm:$0xff]   ;;  %24138 = vst [vmem:[%s33418_s1 + $0x11e8] sm:$0xff] %v26193_v18  ;;  %v26203_v28 = vld [vmem:[%s33417_s0 + $0x5f8] sm:$0xff]   ;;  %24174 = vst [vmem:[%s33418_s1 + $0x11f8] sm:$0xff] %v26202_v27 }
 0x1ae   :  { %v26195_v20 = vld [vmem:[%s33417_s0 + $0x19e8] sm:$0xff]   ;;  %24142 = vst [vmem:[%s33418_s1 + $0x1de8] sm:$0xff] %v26194_v19  ;;  %v26204_v29 = vld [vmem:[%s33417_s0 + $0x19f8] sm:$0xff]   ;;  %24178 = vst [vmem:[%s33418_s1 + $0x1df8] sm:$0xff] %v26203_v28 }
 0x1af   :  { %v26196_v21 = vld [vmem:[%s33417_s0 + $0xde8] sm:$0xff]   ;;  %24146 = vst [vmem:[%s33418_s1 + $0x9e8] sm:$0xff] %v26195_v20  ;;  %v26205_v30 = vld [vmem:[%s33417_s0 + $0xdf8] sm:$0xff]   ;;  %24182 = vst [vmem:[%s33418_s1 + $0x9f8] sm:$0xff] %v26204_v29 }
 0x1b0   :  { %v26197_v22 = vld [vmem:[%s33417_s0 + $0x1e8] sm:$0xff]   ;;  %24150 = vst [vmem:[%s33418_s1 + $0x15e8] sm:$0xff] %v26196_v21  ;;  %v26206_v31 = vld [vmem:[%s33417_s0 + $0x1f8] sm:$0xff]   ;;  %24186 = vst [vmem:[%s33418_s1 + $0x15f8] sm:$0xff] %v26205_v30 }
 0x1b1   :  { %24154 = vst [vmem:[%s33418_s1 + $0x21e8] sm:$0xff] %v26197_v22  ;;  %v26207_v32 = vld [vmem:[%s33417_s0 + $0x2208] sm:$0xff]   ;;  %24190 = vst [vmem:[%s33418_s1 + $0x21f8] sm:$0xff] %v26206_v31  ;;  %v26216_v41 = vld [vmem:[%s33417_s0 + $0x2218] sm:$0xff]  }
 0x1b2   :  { %v26208_v33 = vld [vmem:[%s33417_s0 + $0x1608] sm:$0xff]   ;;  %24194 = vst [vmem:[%s33418_s1 + $0x208] sm:$0xff] %v26207_v32  ;;  %v26217_v42 = vld [vmem:[%s33417_s0 + $0x1618] sm:$0xff]   ;;  %24230 = vst [vmem:[%s33418_s1 + $0x218] sm:$0xff] %v26216_v41 }
 0x1b3   :  { %v26209_v34 = vld [vmem:[%s33417_s0 + $0xa08] sm:$0xff]   ;;  %24198 = vst [vmem:[%s33418_s1 + $0xe08] sm:$0xff] %v26208_v33  ;;  %v26218_v43 = vld [vmem:[%s33417_s0 + $0xa18] sm:$0xff]   ;;  %24234 = vst [vmem:[%s33418_s1 + $0xe18] sm:$0xff] %v26217_v42 }
 0x1b4   :  { %v26210_v35 = vld [vmem:[%s33417_s0 + $0x1e08] sm:$0xff]   ;;  %24202 = vst [vmem:[%s33418_s1 + $0x1a08] sm:$0xff] %v26209_v34  ;;  %v26219_v44 = vld [vmem:[%s33417_s0 + $0x1e18] sm:$0xff]   ;;  %24238 = vst [vmem:[%s33418_s1 + $0x1a18] sm:$0xff] %v26218_v43 }
 0x1b5   :  { %v26211_v36 = vld [vmem:[%s33417_s0 + $0x1208] sm:$0xff]   ;;  %24206 = vst [vmem:[%s33418_s1 + $0x608] sm:$0xff] %v26210_v35  ;;  %v26220_v45 = vld [vmem:[%s33417_s0 + $0x1218] sm:$0xff]   ;;  %24242 = vst [vmem:[%s33418_s1 + $0x618] sm:$0xff] %v26219_v44 }
 0x1b6   :  { %v26212_v37 = vld [vmem:[%s33417_s0 + $0x608] sm:$0xff]   ;;  %24210 = vst [vmem:[%s33418_s1 + $0x1208] sm:$0xff] %v26211_v36  ;;  %v26221_v46 = vld [vmem:[%s33417_s0 + $0x618] sm:$0xff]   ;;  %24246 = vst [vmem:[%s33418_s1 + $0x1218] sm:$0xff] %v26220_v45 }
 0x1b7   :  { %v26213_v38 = vld [vmem:[%s33417_s0 + $0x1a08] sm:$0xff]   ;;  %24214 = vst [vmem:[%s33418_s1 + $0x1e08] sm:$0xff] %v26212_v37  ;;  %v26222_v47 = vld [vmem:[%s33417_s0 + $0x1a18] sm:$0xff]   ;;  %24250 = vst [vmem:[%s33418_s1 + $0x1e18] sm:$0xff] %v26221_v46 }
 0x1b8   :  { %v26214_v39 = vld [vmem:[%s33417_s0 + $0xe08] sm:$0xff]   ;;  %24218 = vst [vmem:[%s33418_s1 + $0xa08] sm:$0xff] %v26213_v38  ;;  %v26223_v48 = vld [vmem:[%s33417_s0 + $0xe18] sm:$0xff]   ;;  %24254 = vst [vmem:[%s33418_s1 + $0xa18] sm:$0xff] %v26222_v47 }
 0x1b9   :  { %v26215_v40 = vld [vmem:[%s33417_s0 + $0x208] sm:$0xff]   ;;  %24222 = vst [vmem:[%s33418_s1 + $0x1608] sm:$0xff] %v26214_v39  ;;  %v26224_v49 = vld [vmem:[%s33417_s0 + $0x218] sm:$0xff]   ;;  %24258 = vst [vmem:[%s33418_s1 + $0x1618] sm:$0xff] %v26223_v48 }
 0x1ba   :  { %24226 = vst [vmem:[%s33418_s1 + $0x2208] sm:$0xff] %v26215_v40  ;;  %v26225_v50 = vld [vmem:[%s33417_s0 + $0x2228] sm:$0xff]   ;;  %24262 = vst [vmem:[%s33418_s1 + $0x2218] sm:$0xff] %v26224_v49  ;;  %v26234_v59 = vld [vmem:[%s33417_s0 + $0x2238] sm:$0xff]  }
 0x1bb   :  { %v26226_v51 = vld [vmem:[%s33417_s0 + $0x1628] sm:$0xff]   ;;  %24266 = vst [vmem:[%s33418_s1 + $0x228] sm:$0xff] %v26225_v50  ;;  %v26235_v60 = vld [vmem:[%s33417_s0 + $0x1638] sm:$0xff]   ;;  %24302 = vst [vmem:[%s33418_s1 + $0x238] sm:$0xff] %v26234_v59 }
 0x1bc   :  { %v26227_v52 = vld [vmem:[%s33417_s0 + $0xa28] sm:$0xff]   ;;  %24270 = vst [vmem:[%s33418_s1 + $0xe28] sm:$0xff] %v26226_v51  ;;  %v26236_v61 = vld [vmem:[%s33417_s0 + $0xa38] sm:$0xff]   ;;  %24306 = vst [vmem:[%s33418_s1 + $0xe38] sm:$0xff] %v26235_v60 }
 0x1bd   :  { %v26228_v53 = vld [vmem:[%s33417_s0 + $0x1e28] sm:$0xff]   ;;  %24274 = vst [vmem:[%s33418_s1 + $0x1a28] sm:$0xff] %v26227_v52  ;;  %v26237_v62 = vld [vmem:[%s33417_s0 + $0x1e38] sm:$0xff]   ;;  %24310 = vst [vmem:[%s33418_s1 + $0x1a38] sm:$0xff] %v26236_v61 }
 0x1be   :  { %v26229_v54 = vld [vmem:[%s33417_s0 + $0x1228] sm:$0xff]   ;;  %24278 = vst [vmem:[%s33418_s1 + $0x628] sm:$0xff] %v26228_v53  ;;  %v26238_v63 = vld [vmem:[%s33417_s0 + $0x1238] sm:$0xff]   ;;  %24314 = vst [vmem:[%s33418_s1 + $0x638] sm:$0xff] %v26237_v62 }
 0x1bf   :  { %v26230_v55 = vld [vmem:[%s33417_s0 + $0x628] sm:$0xff]   ;;  %24282 = vst [vmem:[%s33418_s1 + $0x1228] sm:$0xff] %v26229_v54  ;;  %v26239_v0 = vld [vmem:[%s33417_s0 + $0x638] sm:$0xff]   ;;  %24318 = vst [vmem:[%s33418_s1 + $0x1238] sm:$0xff] %v26238_v63 }
 0x1c0   :  { %v26231_v56 = vld [vmem:[%s33417_s0 + $0x1a28] sm:$0xff]   ;;  %24286 = vst [vmem:[%s33418_s1 + $0x1e28] sm:$0xff] %v26230_v55  ;;  %v26240_v1 = vld [vmem:[%s33417_s0 + $0x1a38] sm:$0xff]   ;;  %24322 = vst [vmem:[%s33418_s1 + $0x1e38] sm:$0xff] %v26239_v0 }
 0x1c1   :  { %v26232_v57 = vld [vmem:[%s33417_s0 + $0xe28] sm:$0xff]   ;;  %24290 = vst [vmem:[%s33418_s1 + $0xa28] sm:$0xff] %v26231_v56  ;;  %v26241_v2 = vld [vmem:[%s33417_s0 + $0xe38] sm:$0xff]   ;;  %24326 = vst [vmem:[%s33418_s1 + $0xa38] sm:$0xff] %v26240_v1 }
 0x1c2   :  { %v26233_v58 = vld [vmem:[%s33417_s0 + $0x228] sm:$0xff]   ;;  %24294 = vst [vmem:[%s33418_s1 + $0x1628] sm:$0xff] %v26232_v57  ;;  %v26242_v3 = vld [vmem:[%s33417_s0 + $0x238] sm:$0xff]   ;;  %24330 = vst [vmem:[%s33418_s1 + $0x1638] sm:$0xff] %v26241_v2 }
 0x1c3   :  { %24298 = vst [vmem:[%s33418_s1 + $0x2228] sm:$0xff] %v26233_v58  ;;  %v26243_v4 = vld [vmem:[%s33417_s0 + $0x2248] sm:$0xff]   ;;  %24334 = vst [vmem:[%s33418_s1 + $0x2238] sm:$0xff] %v26242_v3  ;;  %v26252_v13 = vld [vmem:[%s33417_s0 + $0x2258] sm:$0xff]  }
 0x1c4   :  { %v26244_v5 = vld [vmem:[%s33417_s0 + $0x1648] sm:$0xff]   ;;  %24338 = vst [vmem:[%s33418_s1 + $0x248] sm:$0xff] %v26243_v4  ;;  %v26253_v14 = vld [vmem:[%s33417_s0 + $0x1658] sm:$0xff]   ;;  %24374 = vst [vmem:[%s33418_s1 + $0x258] sm:$0xff] %v26252_v13 }
 0x1c5   :  { %v26245_v6 = vld [vmem:[%s33417_s0 + $0xa48] sm:$0xff]   ;;  %24342 = vst [vmem:[%s33418_s1 + $0xe48] sm:$0xff] %v26244_v5  ;;  %v26254_v15 = vld [vmem:[%s33417_s0 + $0xa58] sm:$0xff]   ;;  %24378 = vst [vmem:[%s33418_s1 + $0xe58] sm:$0xff] %v26253_v14 }
 0x1c6   :  { %v26246_v7 = vld [vmem:[%s33417_s0 + $0x1e48] sm:$0xff]   ;;  %24346 = vst [vmem:[%s33418_s1 + $0x1a48] sm:$0xff] %v26245_v6  ;;  %v26255_v16 = vld [vmem:[%s33417_s0 + $0x1e58] sm:$0xff]   ;;  %24382 = vst [vmem:[%s33418_s1 + $0x1a58] sm:$0xff] %v26254_v15 }
 0x1c7   :  { %v26247_v8 = vld [vmem:[%s33417_s0 + $0x1248] sm:$0xff]   ;;  %24350 = vst [vmem:[%s33418_s1 + $0x648] sm:$0xff] %v26246_v7  ;;  %v26256_v17 = vld [vmem:[%s33417_s0 + $0x1258] sm:$0xff]   ;;  %24386 = vst [vmem:[%s33418_s1 + $0x658] sm:$0xff] %v26255_v16 }
 0x1c8   :  { %v26248_v9 = vld [vmem:[%s33417_s0 + $0x648] sm:$0xff]   ;;  %24354 = vst [vmem:[%s33418_s1 + $0x1248] sm:$0xff] %v26247_v8  ;;  %v26257_v18 = vld [vmem:[%s33417_s0 + $0x658] sm:$0xff]   ;;  %24390 = vst [vmem:[%s33418_s1 + $0x1258] sm:$0xff] %v26256_v17 }
 0x1c9   :  { %v26249_v10 = vld [vmem:[%s33417_s0 + $0x1a48] sm:$0xff]   ;;  %24358 = vst [vmem:[%s33418_s1 + $0x1e48] sm:$0xff] %v26248_v9  ;;  %v26258_v19 = vld [vmem:[%s33417_s0 + $0x1a58] sm:$0xff]   ;;  %24394 = vst [vmem:[%s33418_s1 + $0x1e58] sm:$0xff] %v26257_v18 }
 0x1ca   :  { %v26250_v11 = vld [vmem:[%s33417_s0 + $0xe48] sm:$0xff]   ;;  %24362 = vst [vmem:[%s33418_s1 + $0xa48] sm:$0xff] %v26249_v10  ;;  %v26259_v20 = vld [vmem:[%s33417_s0 + $0xe58] sm:$0xff]   ;;  %24398 = vst [vmem:[%s33418_s1 + $0xa58] sm:$0xff] %v26258_v19 }
 0x1cb   :  { %v26251_v12 = vld [vmem:[%s33417_s0 + $0x248] sm:$0xff]   ;;  %24366 = vst [vmem:[%s33418_s1 + $0x1648] sm:$0xff] %v26250_v11  ;;  %v26260_v21 = vld [vmem:[%s33417_s0 + $0x258] sm:$0xff]   ;;  %24402 = vst [vmem:[%s33418_s1 + $0x1658] sm:$0xff] %v26259_v20 }
 0x1cc   :  { %24370 = vst [vmem:[%s33418_s1 + $0x2248] sm:$0xff] %v26251_v12  ;;  %v26261_v22 = vld [vmem:[%s33417_s0 + $0x2268] sm:$0xff]   ;;  %24406 = vst [vmem:[%s33418_s1 + $0x2258] sm:$0xff] %v26260_v21  ;;  %v26270_v31 = vld [vmem:[%s33417_s0 + $0x2278] sm:$0xff]  }
 0x1cd   :  { %v26262_v23 = vld [vmem:[%s33417_s0 + $0x1668] sm:$0xff]   ;;  %24410 = vst [vmem:[%s33418_s1 + $0x268] sm:$0xff] %v26261_v22  ;;  %v26271_v32 = vld [vmem:[%s33417_s0 + $0x1678] sm:$0xff]   ;;  %24446 = vst [vmem:[%s33418_s1 + $0x278] sm:$0xff] %v26270_v31 }
 0x1ce   :  { %v26263_v24 = vld [vmem:[%s33417_s0 + $0xa68] sm:$0xff]   ;;  %24414 = vst [vmem:[%s33418_s1 + $0xe68] sm:$0xff] %v26262_v23  ;;  %v26272_v33 = vld [vmem:[%s33417_s0 + $0xa78] sm:$0xff]   ;;  %24450 = vst [vmem:[%s33418_s1 + $0xe78] sm:$0xff] %v26271_v32 }
 0x1cf   :  { %v26264_v25 = vld [vmem:[%s33417_s0 + $0x1e68] sm:$0xff]   ;;  %24418 = vst [vmem:[%s33418_s1 + $0x1a68] sm:$0xff] %v26263_v24  ;;  %v26273_v34 = vld [vmem:[%s33417_s0 + $0x1e78] sm:$0xff]   ;;  %24454 = vst [vmem:[%s33418_s1 + $0x1a78] sm:$0xff] %v26272_v33 }
 0x1d0   :  { %v26265_v26 = vld [vmem:[%s33417_s0 + $0x1268] sm:$0xff]   ;;  %24422 = vst [vmem:[%s33418_s1 + $0x668] sm:$0xff] %v26264_v25  ;;  %v26274_v35 = vld [vmem:[%s33417_s0 + $0x1278] sm:$0xff]   ;;  %24458 = vst [vmem:[%s33418_s1 + $0x678] sm:$0xff] %v26273_v34 }
 0x1d1   :  { %v26266_v27 = vld [vmem:[%s33417_s0 + $0x668] sm:$0xff]   ;;  %24426 = vst [vmem:[%s33418_s1 + $0x1268] sm:$0xff] %v26265_v26  ;;  %v26275_v36 = vld [vmem:[%s33417_s0 + $0x678] sm:$0xff]   ;;  %24462 = vst [vmem:[%s33418_s1 + $0x1278] sm:$0xff] %v26274_v35 }
 0x1d2   :  { %v26267_v28 = vld [vmem:[%s33417_s0 + $0x1a68] sm:$0xff]   ;;  %24430 = vst [vmem:[%s33418_s1 + $0x1e68] sm:$0xff] %v26266_v27  ;;  %v26276_v37 = vld [vmem:[%s33417_s0 + $0x1a78] sm:$0xff]   ;;  %24466 = vst [vmem:[%s33418_s1 + $0x1e78] sm:$0xff] %v26275_v36 }
 0x1d3   :  { %v26268_v29 = vld [vmem:[%s33417_s0 + $0xe68] sm:$0xff]   ;;  %24434 = vst [vmem:[%s33418_s1 + $0xa68] sm:$0xff] %v26267_v28  ;;  %v26277_v38 = vld [vmem:[%s33417_s0 + $0xe78] sm:$0xff]   ;;  %24470 = vst [vmem:[%s33418_s1 + $0xa78] sm:$0xff] %v26276_v37 }
 0x1d4   :  { %v26269_v30 = vld [vmem:[%s33417_s0 + $0x268] sm:$0xff]   ;;  %24438 = vst [vmem:[%s33418_s1 + $0x1668] sm:$0xff] %v26268_v29  ;;  %v26278_v39 = vld [vmem:[%s33417_s0 + $0x278] sm:$0xff]   ;;  %24474 = vst [vmem:[%s33418_s1 + $0x1678] sm:$0xff] %v26277_v38 }
 0x1d5   :  { %24442 = vst [vmem:[%s33418_s1 + $0x2268] sm:$0xff] %v26269_v30  ;;  %v26279_v40 = vld [vmem:[%s33417_s0 + $0x2288] sm:$0xff]   ;;  %24478 = vst [vmem:[%s33418_s1 + $0x2278] sm:$0xff] %v26278_v39  ;;  %v26288_v49 = vld [vmem:[%s33417_s0 + $0x2298] sm:$0xff]  }
 0x1d6   :  { %v26280_v41 = vld [vmem:[%s33417_s0 + $0x1688] sm:$0xff]   ;;  %24482 = vst [vmem:[%s33418_s1 + $0x288] sm:$0xff] %v26279_v40  ;;  %v26289_v50 = vld [vmem:[%s33417_s0 + $0x1698] sm:$0xff]   ;;  %24518 = vst [vmem:[%s33418_s1 + $0x298] sm:$0xff] %v26288_v49 }
 0x1d7   :  { %v26281_v42 = vld [vmem:[%s33417_s0 + $0xa88] sm:$0xff]   ;;  %24486 = vst [vmem:[%s33418_s1 + $0xe88] sm:$0xff] %v26280_v41  ;;  %v26290_v51 = vld [vmem:[%s33417_s0 + $0xa98] sm:$0xff]   ;;  %24522 = vst [vmem:[%s33418_s1 + $0xe98] sm:$0xff] %v26289_v50 }
 0x1d8   :  { %v26282_v43 = vld [vmem:[%s33417_s0 + $0x1e88] sm:$0xff]   ;;  %24490 = vst [vmem:[%s33418_s1 + $0x1a88] sm:$0xff] %v26281_v42  ;;  %v26291_v52 = vld [vmem:[%s33417_s0 + $0x1e98] sm:$0xff]   ;;  %24526 = vst [vmem:[%s33418_s1 + $0x1a98] sm:$0xff] %v26290_v51 }
 0x1d9   :  { %v26283_v44 = vld [vmem:[%s33417_s0 + $0x1288] sm:$0xff]   ;;  %24494 = vst [vmem:[%s33418_s1 + $0x688] sm:$0xff] %v26282_v43  ;;  %v26292_v53 = vld [vmem:[%s33417_s0 + $0x1298] sm:$0xff]   ;;  %24530 = vst [vmem:[%s33418_s1 + $0x698] sm:$0xff] %v26291_v52 }
 0x1da   :  { %v26284_v45 = vld [vmem:[%s33417_s0 + $0x688] sm:$0xff]   ;;  %24498 = vst [vmem:[%s33418_s1 + $0x1288] sm:$0xff] %v26283_v44  ;;  %v26293_v54 = vld [vmem:[%s33417_s0 + $0x698] sm:$0xff]   ;;  %24534 = vst [vmem:[%s33418_s1 + $0x1298] sm:$0xff] %v26292_v53 }
 0x1db   :  { %v26285_v46 = vld [vmem:[%s33417_s0 + $0x1a88] sm:$0xff]   ;;  %24502 = vst [vmem:[%s33418_s1 + $0x1e88] sm:$0xff] %v26284_v45  ;;  %v26294_v55 = vld [vmem:[%s33417_s0 + $0x1a98] sm:$0xff]   ;;  %24538 = vst [vmem:[%s33418_s1 + $0x1e98] sm:$0xff] %v26293_v54 }
 0x1dc   :  { %v26286_v47 = vld [vmem:[%s33417_s0 + $0xe88] sm:$0xff]   ;;  %24506 = vst [vmem:[%s33418_s1 + $0xa88] sm:$0xff] %v26285_v46  ;;  %v26295_v56 = vld [vmem:[%s33417_s0 + $0xe98] sm:$0xff]   ;;  %24542 = vst [vmem:[%s33418_s1 + $0xa98] sm:$0xff] %v26294_v55 }
 0x1dd   :  { %v26287_v48 = vld [vmem:[%s33417_s0 + $0x288] sm:$0xff]   ;;  %24510 = vst [vmem:[%s33418_s1 + $0x1688] sm:$0xff] %v26286_v47  ;;  %v26296_v57 = vld [vmem:[%s33417_s0 + $0x298] sm:$0xff]   ;;  %24546 = vst [vmem:[%s33418_s1 + $0x1698] sm:$0xff] %v26295_v56 }
 0x1de   :  { %24514 = vst [vmem:[%s33418_s1 + $0x2288] sm:$0xff] %v26287_v48  ;;  %v26297_v58 = vld [vmem:[%s33417_s0 + $0x22a8] sm:$0xff]   ;;  %24550 = vst [vmem:[%s33418_s1 + $0x2298] sm:$0xff] %v26296_v57  ;;  %v26306_v3 = vld [vmem:[%s33417_s0 + $0x22b8] sm:$0xff]  }
 0x1df   :  { %v26298_v59 = vld [vmem:[%s33417_s0 + $0x16a8] sm:$0xff]   ;;  %24554 = vst [vmem:[%s33418_s1 + $0x2a8] sm:$0xff] %v26297_v58  ;;  %v26307_v4 = vld [vmem:[%s33417_s0 + $0x16b8] sm:$0xff]   ;;  %24590 = vst [vmem:[%s33418_s1 + $0x2b8] sm:$0xff] %v26306_v3 }
 0x1e0   :  { %v26299_v60 = vld [vmem:[%s33417_s0 + $0xaa8] sm:$0xff]   ;;  %24558 = vst [vmem:[%s33418_s1 + $0xea8] sm:$0xff] %v26298_v59  ;;  %v26308_v5 = vld [vmem:[%s33417_s0 + $0xab8] sm:$0xff]   ;;  %24594 = vst [vmem:[%s33418_s1 + $0xeb8] sm:$0xff] %v26307_v4 }
 0x1e1   :  { %v26300_v61 = vld [vmem:[%s33417_s0 + $0x1ea8] sm:$0xff]   ;;  %24562 = vst [vmem:[%s33418_s1 + $0x1aa8] sm:$0xff] %v26299_v60  ;;  %v26309_v6 = vld [vmem:[%s33417_s0 + $0x1eb8] sm:$0xff]   ;;  %24598 = vst [vmem:[%s33418_s1 + $0x1ab8] sm:$0xff] %v26308_v5 }
 0x1e2   :  { %v26301_v62 = vld [vmem:[%s33417_s0 + $0x12a8] sm:$0xff]   ;;  %24566 = vst [vmem:[%s33418_s1 + $0x6a8] sm:$0xff] %v26300_v61  ;;  %v26310_v7 = vld [vmem:[%s33417_s0 + $0x12b8] sm:$0xff]   ;;  %24602 = vst [vmem:[%s33418_s1 + $0x6b8] sm:$0xff] %v26309_v6 }
 0x1e3   :  { %v26302_v63 = vld [vmem:[%s33417_s0 + $0x6a8] sm:$0xff]   ;;  %24570 = vst [vmem:[%s33418_s1 + $0x12a8] sm:$0xff] %v26301_v62  ;;  %v26311_v8 = vld [vmem:[%s33417_s0 + $0x6b8] sm:$0xff]   ;;  %24606 = vst [vmem:[%s33418_s1 + $0x12b8] sm:$0xff] %v26310_v7 }
 0x1e4   :  { %v26303_v0 = vld [vmem:[%s33417_s0 + $0x1aa8] sm:$0xff]   ;;  %24574 = vst [vmem:[%s33418_s1 + $0x1ea8] sm:$0xff] %v26302_v63  ;;  %v26312_v9 = vld [vmem:[%s33417_s0 + $0x1ab8] sm:$0xff]   ;;  %24610 = vst [vmem:[%s33418_s1 + $0x1eb8] sm:$0xff] %v26311_v8 }
 0x1e5   :  { %v26304_v1 = vld [vmem:[%s33417_s0 + $0xea8] sm:$0xff]   ;;  %24578 = vst [vmem:[%s33418_s1 + $0xaa8] sm:$0xff] %v26303_v0  ;;  %v26313_v10 = vld [vmem:[%s33417_s0 + $0xeb8] sm:$0xff]   ;;  %24614 = vst [vmem:[%s33418_s1 + $0xab8] sm:$0xff] %v26312_v9 }
 0x1e6   :  { %v26305_v2 = vld [vmem:[%s33417_s0 + $0x2a8] sm:$0xff]   ;;  %24582 = vst [vmem:[%s33418_s1 + $0x16a8] sm:$0xff] %v26304_v1  ;;  %v26314_v11 = vld [vmem:[%s33417_s0 + $0x2b8] sm:$0xff]   ;;  %24618 = vst [vmem:[%s33418_s1 + $0x16b8] sm:$0xff] %v26313_v10 }
 0x1e7   :  { %24586 = vst [vmem:[%s33418_s1 + $0x22a8] sm:$0xff] %v26305_v2  ;;  %v26315_v12 = vld [vmem:[%s33417_s0 + $0x22c8] sm:$0xff]   ;;  %24622 = vst [vmem:[%s33418_s1 + $0x22b8] sm:$0xff] %v26314_v11  ;;  %v26324_v21 = vld [vmem:[%s33417_s0 + $0x22d8] sm:$0xff]  }
 0x1e8   :  { %v26316_v13 = vld [vmem:[%s33417_s0 + $0x16c8] sm:$0xff]   ;;  %24626 = vst [vmem:[%s33418_s1 + $0x2c8] sm:$0xff] %v26315_v12  ;;  %v26325_v22 = vld [vmem:[%s33417_s0 + $0x16d8] sm:$0xff]   ;;  %24662 = vst [vmem:[%s33418_s1 + $0x2d8] sm:$0xff] %v26324_v21 }
 0x1e9   :  { %v26317_v14 = vld [vmem:[%s33417_s0 + $0xac8] sm:$0xff]   ;;  %24630 = vst [vmem:[%s33418_s1 + $0xec8] sm:$0xff] %v26316_v13  ;;  %v26326_v23 = vld [vmem:[%s33417_s0 + $0xad8] sm:$0xff]   ;;  %24666 = vst [vmem:[%s33418_s1 + $0xed8] sm:$0xff] %v26325_v22 }
 0x1ea   :  { %v26318_v15 = vld [vmem:[%s33417_s0 + $0x1ec8] sm:$0xff]   ;;  %24634 = vst [vmem:[%s33418_s1 + $0x1ac8] sm:$0xff] %v26317_v14  ;;  %v26327_v24 = vld [vmem:[%s33417_s0 + $0x1ed8] sm:$0xff]   ;;  %24670 = vst [vmem:[%s33418_s1 + $0x1ad8] sm:$0xff] %v26326_v23 }
 0x1eb   :  { %v26319_v16 = vld [vmem:[%s33417_s0 + $0x12c8] sm:$0xff]   ;;  %24638 = vst [vmem:[%s33418_s1 + $0x6c8] sm:$0xff] %v26318_v15  ;;  %v26328_v25 = vld [vmem:[%s33417_s0 + $0x12d8] sm:$0xff]   ;;  %24674 = vst [vmem:[%s33418_s1 + $0x6d8] sm:$0xff] %v26327_v24 }
 0x1ec   :  { %v26320_v17 = vld [vmem:[%s33417_s0 + $0x6c8] sm:$0xff]   ;;  %24642 = vst [vmem:[%s33418_s1 + $0x12c8] sm:$0xff] %v26319_v16  ;;  %v26329_v26 = vld [vmem:[%s33417_s0 + $0x6d8] sm:$0xff]   ;;  %24678 = vst [vmem:[%s33418_s1 + $0x12d8] sm:$0xff] %v26328_v25 }
 0x1ed   :  { %v26321_v18 = vld [vmem:[%s33417_s0 + $0x1ac8] sm:$0xff]   ;;  %24646 = vst [vmem:[%s33418_s1 + $0x1ec8] sm:$0xff] %v26320_v17  ;;  %v26330_v27 = vld [vmem:[%s33417_s0 + $0x1ad8] sm:$0xff]   ;;  %24682 = vst [vmem:[%s33418_s1 + $0x1ed8] sm:$0xff] %v26329_v26 }
 0x1ee   :  { %v26322_v19 = vld [vmem:[%s33417_s0 + $0xec8] sm:$0xff]   ;;  %24650 = vst [vmem:[%s33418_s1 + $0xac8] sm:$0xff] %v26321_v18  ;;  %v26331_v28 = vld [vmem:[%s33417_s0 + $0xed8] sm:$0xff]   ;;  %24686 = vst [vmem:[%s33418_s1 + $0xad8] sm:$0xff] %v26330_v27 }
 0x1ef   :  { %v26323_v20 = vld [vmem:[%s33417_s0 + $0x2c8] sm:$0xff]   ;;  %24654 = vst [vmem:[%s33418_s1 + $0x16c8] sm:$0xff] %v26322_v19  ;;  %v26332_v29 = vld [vmem:[%s33417_s0 + $0x2d8] sm:$0xff]   ;;  %24690 = vst [vmem:[%s33418_s1 + $0x16d8] sm:$0xff] %v26331_v28 }
 0x1f0   :  { %24658 = vst [vmem:[%s33418_s1 + $0x22c8] sm:$0xff] %v26323_v20  ;;  %v26333_v30 = vld [vmem:[%s33417_s0 + $0x22e8] sm:$0xff]   ;;  %24694 = vst [vmem:[%s33418_s1 + $0x22d8] sm:$0xff] %v26332_v29  ;;  %v26342_v39 = vld [vmem:[%s33417_s0 + $0x22f8] sm:$0xff]  }
 0x1f1   :  { %v26334_v31 = vld [vmem:[%s33417_s0 + $0x16e8] sm:$0xff]   ;;  %24698 = vst [vmem:[%s33418_s1 + $0x2e8] sm:$0xff] %v26333_v30  ;;  %v26343_v40 = vld [vmem:[%s33417_s0 + $0x16f8] sm:$0xff]   ;;  %24734 = vst [vmem:[%s33418_s1 + $0x2f8] sm:$0xff] %v26342_v39 }
 0x1f2   :  { %v26335_v32 = vld [vmem:[%s33417_s0 + $0xae8] sm:$0xff]   ;;  %24702 = vst [vmem:[%s33418_s1 + $0xee8] sm:$0xff] %v26334_v31  ;;  %v26344_v41 = vld [vmem:[%s33417_s0 + $0xaf8] sm:$0xff]   ;;  %24738 = vst [vmem:[%s33418_s1 + $0xef8] sm:$0xff] %v26343_v40 }
 0x1f3   :  { %v26336_v33 = vld [vmem:[%s33417_s0 + $0x1ee8] sm:$0xff]   ;;  %24706 = vst [vmem:[%s33418_s1 + $0x1ae8] sm:$0xff] %v26335_v32  ;;  %v26345_v42 = vld [vmem:[%s33417_s0 + $0x1ef8] sm:$0xff]   ;;  %24742 = vst [vmem:[%s33418_s1 + $0x1af8] sm:$0xff] %v26344_v41 }
 0x1f4   :  { %v26337_v34 = vld [vmem:[%s33417_s0 + $0x12e8] sm:$0xff]   ;;  %24710 = vst [vmem:[%s33418_s1 + $0x6e8] sm:$0xff] %v26336_v33  ;;  %v26346_v43 = vld [vmem:[%s33417_s0 + $0x12f8] sm:$0xff]   ;;  %24746 = vst [vmem:[%s33418_s1 + $0x6f8] sm:$0xff] %v26345_v42 }
 0x1f5   :  { %v26338_v35 = vld [vmem:[%s33417_s0 + $0x6e8] sm:$0xff]   ;;  %24714 = vst [vmem:[%s33418_s1 + $0x12e8] sm:$0xff] %v26337_v34  ;;  %v26347_v44 = vld [vmem:[%s33417_s0 + $0x6f8] sm:$0xff]   ;;  %24750 = vst [vmem:[%s33418_s1 + $0x12f8] sm:$0xff] %v26346_v43 }
 0x1f6   :  { %v26339_v36 = vld [vmem:[%s33417_s0 + $0x1ae8] sm:$0xff]   ;;  %24718 = vst [vmem:[%s33418_s1 + $0x1ee8] sm:$0xff] %v26338_v35  ;;  %v26348_v45 = vld [vmem:[%s33417_s0 + $0x1af8] sm:$0xff]   ;;  %24754 = vst [vmem:[%s33418_s1 + $0x1ef8] sm:$0xff] %v26347_v44 }
 0x1f7   :  { %v26340_v37 = vld [vmem:[%s33417_s0 + $0xee8] sm:$0xff]   ;;  %24722 = vst [vmem:[%s33418_s1 + $0xae8] sm:$0xff] %v26339_v36  ;;  %v26349_v46 = vld [vmem:[%s33417_s0 + $0xef8] sm:$0xff]   ;;  %24758 = vst [vmem:[%s33418_s1 + $0xaf8] sm:$0xff] %v26348_v45 }
 0x1f8   :  { %v26341_v38 = vld [vmem:[%s33417_s0 + $0x2e8] sm:$0xff]   ;;  %24726 = vst [vmem:[%s33418_s1 + $0x16e8] sm:$0xff] %v26340_v37  ;;  %v26350_v47 = vld [vmem:[%s33417_s0 + $0x2f8] sm:$0xff]   ;;  %24762 = vst [vmem:[%s33418_s1 + $0x16f8] sm:$0xff] %v26349_v46 }
 0x1f9   :  { %24730 = vst [vmem:[%s33418_s1 + $0x22e8] sm:$0xff] %v26341_v38  ;;  %v26351_v48 = vld [vmem:[%s33417_s0 + $0x2308] sm:$0xff]   ;;  %24766 = vst [vmem:[%s33418_s1 + $0x22f8] sm:$0xff] %v26350_v47  ;;  %v26360_v57 = vld [vmem:[%s33417_s0 + $0x2318] sm:$0xff]  }
 0x1fa   :  { %v26352_v49 = vld [vmem:[%s33417_s0 + $0x1708] sm:$0xff]   ;;  %24770 = vst [vmem:[%s33418_s1 + $0x308] sm:$0xff] %v26351_v48  ;;  %v26361_v58 = vld [vmem:[%s33417_s0 + $0x1718] sm:$0xff]   ;;  %24806 = vst [vmem:[%s33418_s1 + $0x318] sm:$0xff] %v26360_v57 }
 0x1fb   :  { %v26353_v50 = vld [vmem:[%s33417_s0 + $0xb08] sm:$0xff]   ;;  %24774 = vst [vmem:[%s33418_s1 + $0xf08] sm:$0xff] %v26352_v49  ;;  %v26362_v59 = vld [vmem:[%s33417_s0 + $0xb18] sm:$0xff]   ;;  %24810 = vst [vmem:[%s33418_s1 + $0xf18] sm:$0xff] %v26361_v58 }
 0x1fc   :  { %v26354_v51 = vld [vmem:[%s33417_s0 + $0x1f08] sm:$0xff]   ;;  %24778 = vst [vmem:[%s33418_s1 + $0x1b08] sm:$0xff] %v26353_v50  ;;  %v26363_v60 = vld [vmem:[%s33417_s0 + $0x1f18] sm:$0xff]   ;;  %24814 = vst [vmem:[%s33418_s1 + $0x1b18] sm:$0xff] %v26362_v59 }
 0x1fd   :  { %v26355_v52 = vld [vmem:[%s33417_s0 + $0x1308] sm:$0xff]   ;;  %24782 = vst [vmem:[%s33418_s1 + $0x708] sm:$0xff] %v26354_v51  ;;  %v26364_v61 = vld [vmem:[%s33417_s0 + $0x1318] sm:$0xff]   ;;  %24818 = vst [vmem:[%s33418_s1 + $0x718] sm:$0xff] %v26363_v60 }
 0x1fe   :  { %v26356_v53 = vld [vmem:[%s33417_s0 + $0x708] sm:$0xff]   ;;  %24786 = vst [vmem:[%s33418_s1 + $0x1308] sm:$0xff] %v26355_v52  ;;  %v26365_v62 = vld [vmem:[%s33417_s0 + $0x718] sm:$0xff]   ;;  %24822 = vst [vmem:[%s33418_s1 + $0x1318] sm:$0xff] %v26364_v61 }
 0x1ff   :  { %v26357_v54 = vld [vmem:[%s33417_s0 + $0x1b08] sm:$0xff]   ;;  %24790 = vst [vmem:[%s33418_s1 + $0x1f08] sm:$0xff] %v26356_v53  ;;  %v26366_v63 = vld [vmem:[%s33417_s0 + $0x1b18] sm:$0xff]   ;;  %24826 = vst [vmem:[%s33418_s1 + $0x1f18] sm:$0xff] %v26365_v62 }
 0x200   :  { %v26358_v55 = vld [vmem:[%s33417_s0 + $0xf08] sm:$0xff]   ;;  %24794 = vst [vmem:[%s33418_s1 + $0xb08] sm:$0xff] %v26357_v54  ;;  %v26367_v0 = vld [vmem:[%s33417_s0 + $0xf18] sm:$0xff]   ;;  %24830 = vst [vmem:[%s33418_s1 + $0xb18] sm:$0xff] %v26366_v63 }
 0x201   :  { %v26359_v56 = vld [vmem:[%s33417_s0 + $0x308] sm:$0xff]   ;;  %24798 = vst [vmem:[%s33418_s1 + $0x1708] sm:$0xff] %v26358_v55  ;;  %v26368_v1 = vld [vmem:[%s33417_s0 + $0x318] sm:$0xff]   ;;  %24834 = vst [vmem:[%s33418_s1 + $0x1718] sm:$0xff] %v26367_v0 }
 0x202   :  { %24802 = vst [vmem:[%s33418_s1 + $0x2308] sm:$0xff] %v26359_v56  ;;  %v26369_v2 = vld [vmem:[%s33417_s0 + $0x2328] sm:$0xff]   ;;  %24838 = vst [vmem:[%s33418_s1 + $0x2318] sm:$0xff] %v26368_v1  ;;  %v26378_v11 = vld [vmem:[%s33417_s0 + $0x2338] sm:$0xff]  }
 0x203   :  { %v26370_v3 = vld [vmem:[%s33417_s0 + $0x1728] sm:$0xff]   ;;  %24842 = vst [vmem:[%s33418_s1 + $0x328] sm:$0xff] %v26369_v2  ;;  %v26379_v12 = vld [vmem:[%s33417_s0 + $0x1738] sm:$0xff]   ;;  %24878 = vst [vmem:[%s33418_s1 + $0x338] sm:$0xff] %v26378_v11 }
 0x204   :  { %v26371_v4 = vld [vmem:[%s33417_s0 + $0xb28] sm:$0xff]   ;;  %24846 = vst [vmem:[%s33418_s1 + $0xf28] sm:$0xff] %v26370_v3  ;;  %v26380_v13 = vld [vmem:[%s33417_s0 + $0xb38] sm:$0xff]   ;;  %24882 = vst [vmem:[%s33418_s1 + $0xf38] sm:$0xff] %v26379_v12 }
 0x205   :  { %v26372_v5 = vld [vmem:[%s33417_s0 + $0x1f28] sm:$0xff]   ;;  %24850 = vst [vmem:[%s33418_s1 + $0x1b28] sm:$0xff] %v26371_v4  ;;  %v26381_v14 = vld [vmem:[%s33417_s0 + $0x1f38] sm:$0xff]   ;;  %24886 = vst [vmem:[%s33418_s1 + $0x1b38] sm:$0xff] %v26380_v13 }
 0x206   :  { %v26373_v6 = vld [vmem:[%s33417_s0 + $0x1328] sm:$0xff]   ;;  %24854 = vst [vmem:[%s33418_s1 + $0x728] sm:$0xff] %v26372_v5  ;;  %v26382_v15 = vld [vmem:[%s33417_s0 + $0x1338] sm:$0xff]   ;;  %24890 = vst [vmem:[%s33418_s1 + $0x738] sm:$0xff] %v26381_v14 }
 0x207   :  { %v26374_v7 = vld [vmem:[%s33417_s0 + $0x728] sm:$0xff]   ;;  %24858 = vst [vmem:[%s33418_s1 + $0x1328] sm:$0xff] %v26373_v6  ;;  %v26383_v16 = vld [vmem:[%s33417_s0 + $0x738] sm:$0xff]   ;;  %24894 = vst [vmem:[%s33418_s1 + $0x1338] sm:$0xff] %v26382_v15 }
 0x208   :  { %v26375_v8 = vld [vmem:[%s33417_s0 + $0x1b28] sm:$0xff]   ;;  %24862 = vst [vmem:[%s33418_s1 + $0x1f28] sm:$0xff] %v26374_v7  ;;  %v26384_v17 = vld [vmem:[%s33417_s0 + $0x1b38] sm:$0xff]   ;;  %24898 = vst [vmem:[%s33418_s1 + $0x1f38] sm:$0xff] %v26383_v16 }
 0x209   :  { %v26376_v9 = vld [vmem:[%s33417_s0 + $0xf28] sm:$0xff]   ;;  %24866 = vst [vmem:[%s33418_s1 + $0xb28] sm:$0xff] %v26375_v8  ;;  %v26385_v18 = vld [vmem:[%s33417_s0 + $0xf38] sm:$0xff]   ;;  %24902 = vst [vmem:[%s33418_s1 + $0xb38] sm:$0xff] %v26384_v17 }
 0x20a   :  { %v26377_v10 = vld [vmem:[%s33417_s0 + $0x328] sm:$0xff]   ;;  %24870 = vst [vmem:[%s33418_s1 + $0x1728] sm:$0xff] %v26376_v9  ;;  %v26386_v19 = vld [vmem:[%s33417_s0 + $0x338] sm:$0xff]   ;;  %24906 = vst [vmem:[%s33418_s1 + $0x1738] sm:$0xff] %v26385_v18 }
 0x20b   :  { %24874 = vst [vmem:[%s33418_s1 + $0x2328] sm:$0xff] %v26377_v10  ;;  %v26387_v20 = vld [vmem:[%s33417_s0 + $0x2348] sm:$0xff]   ;;  %24910 = vst [vmem:[%s33418_s1 + $0x2338] sm:$0xff] %v26386_v19  ;;  %v26396_v29 = vld [vmem:[%s33417_s0 + $0x2358] sm:$0xff]  }
 0x20c   :  { %v26388_v21 = vld [vmem:[%s33417_s0 + $0x1748] sm:$0xff]   ;;  %24914 = vst [vmem:[%s33418_s1 + $0x348] sm:$0xff] %v26387_v20  ;;  %v26397_v30 = vld [vmem:[%s33417_s0 + $0x1758] sm:$0xff]   ;;  %24950 = vst [vmem:[%s33418_s1 + $0x358] sm:$0xff] %v26396_v29 }
 0x20d   :  { %v26389_v22 = vld [vmem:[%s33417_s0 + $0xb48] sm:$0xff]   ;;  %24918 = vst [vmem:[%s33418_s1 + $0xf48] sm:$0xff] %v26388_v21  ;;  %v26398_v31 = vld [vmem:[%s33417_s0 + $0xb58] sm:$0xff]   ;;  %24954 = vst [vmem:[%s33418_s1 + $0xf58] sm:$0xff] %v26397_v30 }
 0x20e   :  { %v26390_v23 = vld [vmem:[%s33417_s0 + $0x1f48] sm:$0xff]   ;;  %24922 = vst [vmem:[%s33418_s1 + $0x1b48] sm:$0xff] %v26389_v22  ;;  %v26399_v32 = vld [vmem:[%s33417_s0 + $0x1f58] sm:$0xff]   ;;  %24958 = vst [vmem:[%s33418_s1 + $0x1b58] sm:$0xff] %v26398_v31 }
 0x20f   :  { %v26391_v24 = vld [vmem:[%s33417_s0 + $0x1348] sm:$0xff]   ;;  %24926 = vst [vmem:[%s33418_s1 + $0x748] sm:$0xff] %v26390_v23  ;;  %v26400_v33 = vld [vmem:[%s33417_s0 + $0x1358] sm:$0xff]   ;;  %24962 = vst [vmem:[%s33418_s1 + $0x758] sm:$0xff] %v26399_v32 }
 0x210   :  { %v26392_v25 = vld [vmem:[%s33417_s0 + $0x748] sm:$0xff]   ;;  %24930 = vst [vmem:[%s33418_s1 + $0x1348] sm:$0xff] %v26391_v24  ;;  %v26401_v34 = vld [vmem:[%s33417_s0 + $0x758] sm:$0xff]   ;;  %24966 = vst [vmem:[%s33418_s1 + $0x1358] sm:$0xff] %v26400_v33 }
 0x211   :  { %v26393_v26 = vld [vmem:[%s33417_s0 + $0x1b48] sm:$0xff]   ;;  %24934 = vst [vmem:[%s33418_s1 + $0x1f48] sm:$0xff] %v26392_v25  ;;  %v26402_v35 = vld [vmem:[%s33417_s0 + $0x1b58] sm:$0xff]   ;;  %24970 = vst [vmem:[%s33418_s1 + $0x1f58] sm:$0xff] %v26401_v34 }
 0x212   :  { %v26394_v27 = vld [vmem:[%s33417_s0 + $0xf48] sm:$0xff]   ;;  %24938 = vst [vmem:[%s33418_s1 + $0xb48] sm:$0xff] %v26393_v26  ;;  %v26403_v36 = vld [vmem:[%s33417_s0 + $0xf58] sm:$0xff]   ;;  %24974 = vst [vmem:[%s33418_s1 + $0xb58] sm:$0xff] %v26402_v35 }
 0x213   :  { %v26395_v28 = vld [vmem:[%s33417_s0 + $0x348] sm:$0xff]   ;;  %24942 = vst [vmem:[%s33418_s1 + $0x1748] sm:$0xff] %v26394_v27  ;;  %v26404_v37 = vld [vmem:[%s33417_s0 + $0x358] sm:$0xff]   ;;  %24978 = vst [vmem:[%s33418_s1 + $0x1758] sm:$0xff] %v26403_v36 }
 0x214   :  { %24946 = vst [vmem:[%s33418_s1 + $0x2348] sm:$0xff] %v26395_v28  ;;  %v26405_v38 = vld [vmem:[%s33417_s0 + $0x2368] sm:$0xff]   ;;  %24982 = vst [vmem:[%s33418_s1 + $0x2358] sm:$0xff] %v26404_v37  ;;  %v26414_v47 = vld [vmem:[%s33417_s0 + $0x2378] sm:$0xff]  }
 0x215   :  { %v26406_v39 = vld [vmem:[%s33417_s0 + $0x1768] sm:$0xff]   ;;  %24986 = vst [vmem:[%s33418_s1 + $0x368] sm:$0xff] %v26405_v38  ;;  %v26415_v48 = vld [vmem:[%s33417_s0 + $0x1778] sm:$0xff]   ;;  %25022 = vst [vmem:[%s33418_s1 + $0x378] sm:$0xff] %v26414_v47 }
 0x216   :  { %v26407_v40 = vld [vmem:[%s33417_s0 + $0xb68] sm:$0xff]   ;;  %24990 = vst [vmem:[%s33418_s1 + $0xf68] sm:$0xff] %v26406_v39  ;;  %v26416_v49 = vld [vmem:[%s33417_s0 + $0xb78] sm:$0xff]   ;;  %25026 = vst [vmem:[%s33418_s1 + $0xf78] sm:$0xff] %v26415_v48 }
 0x217   :  { %v26408_v41 = vld [vmem:[%s33417_s0 + $0x1f68] sm:$0xff]   ;;  %24994 = vst [vmem:[%s33418_s1 + $0x1b68] sm:$0xff] %v26407_v40  ;;  %v26417_v50 = vld [vmem:[%s33417_s0 + $0x1f78] sm:$0xff]   ;;  %25030 = vst [vmem:[%s33418_s1 + $0x1b78] sm:$0xff] %v26416_v49 }
 0x218   :  { %v26409_v42 = vld [vmem:[%s33417_s0 + $0x1368] sm:$0xff]   ;;  %24998 = vst [vmem:[%s33418_s1 + $0x768] sm:$0xff] %v26408_v41  ;;  %v26418_v51 = vld [vmem:[%s33417_s0 + $0x1378] sm:$0xff]   ;;  %25034 = vst [vmem:[%s33418_s1 + $0x778] sm:$0xff] %v26417_v50 }
 0x219   :  { %v26410_v43 = vld [vmem:[%s33417_s0 + $0x768] sm:$0xff]   ;;  %25002 = vst [vmem:[%s33418_s1 + $0x1368] sm:$0xff] %v26409_v42  ;;  %v26419_v52 = vld [vmem:[%s33417_s0 + $0x778] sm:$0xff]   ;;  %25038 = vst [vmem:[%s33418_s1 + $0x1378] sm:$0xff] %v26418_v51 }
 0x21a   :  { %v26411_v44 = vld [vmem:[%s33417_s0 + $0x1b68] sm:$0xff]   ;;  %25006 = vst [vmem:[%s33418_s1 + $0x1f68] sm:$0xff] %v26410_v43  ;;  %v26420_v53 = vld [vmem:[%s33417_s0 + $0x1b78] sm:$0xff]   ;;  %25042 = vst [vmem:[%s33418_s1 + $0x1f78] sm:$0xff] %v26419_v52 }
 0x21b   :  { %v26412_v45 = vld [vmem:[%s33417_s0 + $0xf68] sm:$0xff]   ;;  %25010 = vst [vmem:[%s33418_s1 + $0xb68] sm:$0xff] %v26411_v44  ;;  %v26421_v54 = vld [vmem:[%s33417_s0 + $0xf78] sm:$0xff]   ;;  %25046 = vst [vmem:[%s33418_s1 + $0xb78] sm:$0xff] %v26420_v53 }
 0x21c   :  { %v26413_v46 = vld [vmem:[%s33417_s0 + $0x368] sm:$0xff]   ;;  %25014 = vst [vmem:[%s33418_s1 + $0x1768] sm:$0xff] %v26412_v45  ;;  %v26422_v55 = vld [vmem:[%s33417_s0 + $0x378] sm:$0xff]   ;;  %25050 = vst [vmem:[%s33418_s1 + $0x1778] sm:$0xff] %v26421_v54 }
 0x21d   :  { %25018 = vst [vmem:[%s33418_s1 + $0x2368] sm:$0xff] %v26413_v46  ;;  %v26423_v56 = vld [vmem:[%s33417_s0 + $0x2388] sm:$0xff]   ;;  %25054 = vst [vmem:[%s33418_s1 + $0x2378] sm:$0xff] %v26422_v55  ;;  %v26432_v1 = vld [vmem:[%s33417_s0 + $0x2398] sm:$0xff]  }
 0x21e   :  { %v26424_v57 = vld [vmem:[%s33417_s0 + $0x1788] sm:$0xff]   ;;  %25058 = vst [vmem:[%s33418_s1 + $0x388] sm:$0xff] %v26423_v56  ;;  %v26433_v2 = vld [vmem:[%s33417_s0 + $0x1798] sm:$0xff]   ;;  %25094 = vst [vmem:[%s33418_s1 + $0x398] sm:$0xff] %v26432_v1 }
 0x21f   :  { %v26425_v58 = vld [vmem:[%s33417_s0 + $0xb88] sm:$0xff]   ;;  %25062 = vst [vmem:[%s33418_s1 + $0xf88] sm:$0xff] %v26424_v57  ;;  %v26434_v3 = vld [vmem:[%s33417_s0 + $0xb98] sm:$0xff]   ;;  %25098 = vst [vmem:[%s33418_s1 + $0xf98] sm:$0xff] %v26433_v2 }
 0x220   :  { %v26426_v59 = vld [vmem:[%s33417_s0 + $0x1f88] sm:$0xff]   ;;  %25066 = vst [vmem:[%s33418_s1 + $0x1b88] sm:$0xff] %v26425_v58  ;;  %v26435_v4 = vld [vmem:[%s33417_s0 + $0x1f98] sm:$0xff]   ;;  %25102 = vst [vmem:[%s33418_s1 + $0x1b98] sm:$0xff] %v26434_v3 }
 0x221   :  { %v26427_v60 = vld [vmem:[%s33417_s0 + $0x1388] sm:$0xff]   ;;  %25070 = vst [vmem:[%s33418_s1 + $0x788] sm:$0xff] %v26426_v59  ;;  %v26436_v5 = vld [vmem:[%s33417_s0 + $0x1398] sm:$0xff]   ;;  %25106 = vst [vmem:[%s33418_s1 + $0x798] sm:$0xff] %v26435_v4 }
 0x222   :  { %v26428_v61 = vld [vmem:[%s33417_s0 + $0x788] sm:$0xff]   ;;  %25074 = vst [vmem:[%s33418_s1 + $0x1388] sm:$0xff] %v26427_v60  ;;  %v26437_v6 = vld [vmem:[%s33417_s0 + $0x798] sm:$0xff]   ;;  %25110 = vst [vmem:[%s33418_s1 + $0x1398] sm:$0xff] %v26436_v5 }
 0x223   :  { %v26429_v62 = vld [vmem:[%s33417_s0 + $0x1b88] sm:$0xff]   ;;  %25078 = vst [vmem:[%s33418_s1 + $0x1f88] sm:$0xff] %v26428_v61  ;;  %v26438_v7 = vld [vmem:[%s33417_s0 + $0x1b98] sm:$0xff]   ;;  %25114 = vst [vmem:[%s33418_s1 + $0x1f98] sm:$0xff] %v26437_v6 }
 0x224   :  { %v26430_v63 = vld [vmem:[%s33417_s0 + $0xf88] sm:$0xff]   ;;  %25082 = vst [vmem:[%s33418_s1 + $0xb88] sm:$0xff] %v26429_v62  ;;  %v26439_v8 = vld [vmem:[%s33417_s0 + $0xf98] sm:$0xff]   ;;  %25118 = vst [vmem:[%s33418_s1 + $0xb98] sm:$0xff] %v26438_v7 }
 0x225   :  { %v26431_v0 = vld [vmem:[%s33417_s0 + $0x388] sm:$0xff]   ;;  %25086 = vst [vmem:[%s33418_s1 + $0x1788] sm:$0xff] %v26430_v63  ;;  %v26440_v9 = vld [vmem:[%s33417_s0 + $0x398] sm:$0xff]   ;;  %25122 = vst [vmem:[%s33418_s1 + $0x1798] sm:$0xff] %v26439_v8 }
 0x226   :  { %25090 = vst [vmem:[%s33418_s1 + $0x2388] sm:$0xff] %v26431_v0  ;;  %v26441_v10 = vld [vmem:[%s33417_s0 + $0x23a8] sm:$0xff]   ;;  %25126 = vst [vmem:[%s33418_s1 + $0x2398] sm:$0xff] %v26440_v9  ;;  %v26450_v19 = vld [vmem:[%s33417_s0 + $0x23b8] sm:$0xff]  }
 0x227   :  { %v26442_v11 = vld [vmem:[%s33417_s0 + $0x17a8] sm:$0xff]   ;;  %25130 = vst [vmem:[%s33418_s1 + $0x3a8] sm:$0xff] %v26441_v10  ;;  %v26451_v20 = vld [vmem:[%s33417_s0 + $0x17b8] sm:$0xff]   ;;  %25166 = vst [vmem:[%s33418_s1 + $0x3b8] sm:$0xff] %v26450_v19 }
 0x228   :  { %v26443_v12 = vld [vmem:[%s33417_s0 + $0xba8] sm:$0xff]   ;;  %25134 = vst [vmem:[%s33418_s1 + $0xfa8] sm:$0xff] %v26442_v11  ;;  %v26452_v21 = vld [vmem:[%s33417_s0 + $0xbb8] sm:$0xff]   ;;  %25170 = vst [vmem:[%s33418_s1 + $0xfb8] sm:$0xff] %v26451_v20 }
 0x229   :  { %v26444_v13 = vld [vmem:[%s33417_s0 + $0x1fa8] sm:$0xff]   ;;  %25138 = vst [vmem:[%s33418_s1 + $0x1ba8] sm:$0xff] %v26443_v12  ;;  %v26453_v22 = vld [vmem:[%s33417_s0 + $0x1fb8] sm:$0xff]   ;;  %25174 = vst [vmem:[%s33418_s1 + $0x1bb8] sm:$0xff] %v26452_v21 }
 0x22a   :  { %v26445_v14 = vld [vmem:[%s33417_s0 + $0x13a8] sm:$0xff]   ;;  %25142 = vst [vmem:[%s33418_s1 + $0x7a8] sm:$0xff] %v26444_v13  ;;  %v26454_v23 = vld [vmem:[%s33417_s0 + $0x13b8] sm:$0xff]   ;;  %25178 = vst [vmem:[%s33418_s1 + $0x7b8] sm:$0xff] %v26453_v22 }
 0x22b   :  { %v26446_v15 = vld [vmem:[%s33417_s0 + $0x7a8] sm:$0xff]   ;;  %25146 = vst [vmem:[%s33418_s1 + $0x13a8] sm:$0xff] %v26445_v14  ;;  %v26455_v24 = vld [vmem:[%s33417_s0 + $0x7b8] sm:$0xff]   ;;  %25182 = vst [vmem:[%s33418_s1 + $0x13b8] sm:$0xff] %v26454_v23 }
 0x22c   :  { %v26447_v16 = vld [vmem:[%s33417_s0 + $0x1ba8] sm:$0xff]   ;;  %25150 = vst [vmem:[%s33418_s1 + $0x1fa8] sm:$0xff] %v26446_v15  ;;  %v26456_v25 = vld [vmem:[%s33417_s0 + $0x1bb8] sm:$0xff]   ;;  %25186 = vst [vmem:[%s33418_s1 + $0x1fb8] sm:$0xff] %v26455_v24 }
 0x22d   :  { %v26448_v17 = vld [vmem:[%s33417_s0 + $0xfa8] sm:$0xff]   ;;  %25154 = vst [vmem:[%s33418_s1 + $0xba8] sm:$0xff] %v26447_v16  ;;  %v26457_v26 = vld [vmem:[%s33417_s0 + $0xfb8] sm:$0xff]   ;;  %25190 = vst [vmem:[%s33418_s1 + $0xbb8] sm:$0xff] %v26456_v25 }
 0x22e   :  { %v26449_v18 = vld [vmem:[%s33417_s0 + $0x3a8] sm:$0xff]   ;;  %25158 = vst [vmem:[%s33418_s1 + $0x17a8] sm:$0xff] %v26448_v17  ;;  %v26458_v27 = vld [vmem:[%s33417_s0 + $0x3b8] sm:$0xff]   ;;  %25194 = vst [vmem:[%s33418_s1 + $0x17b8] sm:$0xff] %v26457_v26 }
 0x22f   :  { %25162 = vst [vmem:[%s33418_s1 + $0x23a8] sm:$0xff] %v26449_v18  ;;  %v26459_v28 = vld [vmem:[%s33417_s0 + $0x23c8] sm:$0xff]   ;;  %25198 = vst [vmem:[%s33418_s1 + $0x23b8] sm:$0xff] %v26458_v27  ;;  %v26468_v37 = vld [vmem:[%s33417_s0 + $0x23d8] sm:$0xff]  }
 0x230   :  { %v26460_v29 = vld [vmem:[%s33417_s0 + $0x17c8] sm:$0xff]   ;;  %25202 = vst [vmem:[%s33418_s1 + $0x3c8] sm:$0xff] %v26459_v28  ;;  %v26469_v38 = vld [vmem:[%s33417_s0 + $0x17d8] sm:$0xff]   ;;  %25238 = vst [vmem:[%s33418_s1 + $0x3d8] sm:$0xff] %v26468_v37 }
 0x231   :  { %v26461_v30 = vld [vmem:[%s33417_s0 + $0xbc8] sm:$0xff]   ;;  %25206 = vst [vmem:[%s33418_s1 + $0xfc8] sm:$0xff] %v26460_v29  ;;  %v26470_v39 = vld [vmem:[%s33417_s0 + $0xbd8] sm:$0xff]   ;;  %25242 = vst [vmem:[%s33418_s1 + $0xfd8] sm:$0xff] %v26469_v38 }
 0x232   :  { %v26462_v31 = vld [vmem:[%s33417_s0 + $0x1fc8] sm:$0xff]   ;;  %25210 = vst [vmem:[%s33418_s1 + $0x1bc8] sm:$0xff] %v26461_v30  ;;  %v26471_v40 = vld [vmem:[%s33417_s0 + $0x1fd8] sm:$0xff]   ;;  %25246 = vst [vmem:[%s33418_s1 + $0x1bd8] sm:$0xff] %v26470_v39 }
 0x233   :  { %v26463_v32 = vld [vmem:[%s33417_s0 + $0x13c8] sm:$0xff]   ;;  %25214 = vst [vmem:[%s33418_s1 + $0x7c8] sm:$0xff] %v26462_v31  ;;  %v26472_v41 = vld [vmem:[%s33417_s0 + $0x13d8] sm:$0xff]   ;;  %25250 = vst [vmem:[%s33418_s1 + $0x7d8] sm:$0xff] %v26471_v40 }
 0x234   :  { %v26464_v33 = vld [vmem:[%s33417_s0 + $0x7c8] sm:$0xff]   ;;  %25218 = vst [vmem:[%s33418_s1 + $0x13c8] sm:$0xff] %v26463_v32  ;;  %v26473_v42 = vld [vmem:[%s33417_s0 + $0x7d8] sm:$0xff]   ;;  %25254 = vst [vmem:[%s33418_s1 + $0x13d8] sm:$0xff] %v26472_v41 }
 0x235   :  { %v26465_v34 = vld [vmem:[%s33417_s0 + $0x1bc8] sm:$0xff]   ;;  %25222 = vst [vmem:[%s33418_s1 + $0x1fc8] sm:$0xff] %v26464_v33  ;;  %v26474_v43 = vld [vmem:[%s33417_s0 + $0x1bd8] sm:$0xff]   ;;  %25258 = vst [vmem:[%s33418_s1 + $0x1fd8] sm:$0xff] %v26473_v42 }
 0x236   :  { %v26466_v35 = vld [vmem:[%s33417_s0 + $0xfc8] sm:$0xff]   ;;  %25226 = vst [vmem:[%s33418_s1 + $0xbc8] sm:$0xff] %v26465_v34  ;;  %v26475_v44 = vld [vmem:[%s33417_s0 + $0xfd8] sm:$0xff]   ;;  %25262 = vst [vmem:[%s33418_s1 + $0xbd8] sm:$0xff] %v26474_v43 }
 0x237   :  { %v26467_v36 = vld [vmem:[%s33417_s0 + $0x3c8] sm:$0xff]   ;;  %25230 = vst [vmem:[%s33418_s1 + $0x17c8] sm:$0xff] %v26466_v35  ;;  %v26476_v45 = vld [vmem:[%s33417_s0 + $0x3d8] sm:$0xff]   ;;  %25266 = vst [vmem:[%s33418_s1 + $0x17d8] sm:$0xff] %v26475_v44 }
 0x238   :  { %25234 = vst [vmem:[%s33418_s1 + $0x23c8] sm:$0xff] %v26467_v36  ;;  %v26477_v46 = vld [vmem:[%s33417_s0 + $0x23e8] sm:$0xff]   ;;  %25270 = vst [vmem:[%s33418_s1 + $0x23d8] sm:$0xff] %v26476_v45  ;;  %v26486_v55 = vld [vmem:[%s33417_s0 + $0x23f8] sm:$0xff]  }
 0x239   :  { %v26478_v47 = vld [vmem:[%s33417_s0 + $0x17e8] sm:$0xff]   ;;  %25274 = vst [vmem:[%s33418_s1 + $0x3e8] sm:$0xff] %v26477_v46  ;;  %v26487_v56 = vld [vmem:[%s33417_s0 + $0x17f8] sm:$0xff]   ;;  %25310 = vst [vmem:[%s33418_s1 + $0x3f8] sm:$0xff] %v26486_v55 }
 0x23a   :  { %v26479_v48 = vld [vmem:[%s33417_s0 + $0xbe8] sm:$0xff]   ;;  %25278 = vst [vmem:[%s33418_s1 + $0xfe8] sm:$0xff] %v26478_v47  ;;  %v26488_v57 = vld [vmem:[%s33417_s0 + $0xbf8] sm:$0xff]   ;;  %25314 = vst [vmem:[%s33418_s1 + $0xff8] sm:$0xff] %v26487_v56 }
 0x23b   :  { %v26480_v49 = vld [vmem:[%s33417_s0 + $0x1fe8] sm:$0xff]   ;;  %25282 = vst [vmem:[%s33418_s1 + $0x1be8] sm:$0xff] %v26479_v48  ;;  %v26489_v58 = vld [vmem:[%s33417_s0 + $0x1ff8] sm:$0xff]   ;;  %25318 = vst [vmem:[%s33418_s1 + $0x1bf8] sm:$0xff] %v26488_v57 }
 0x23c   :  { %v26481_v50 = vld [vmem:[%s33417_s0 + $0x13e8] sm:$0xff]   ;;  %25286 = vst [vmem:[%s33418_s1 + $0x7e8] sm:$0xff] %v26480_v49  ;;  %v26490_v59 = vld [vmem:[%s33417_s0 + $0x13f8] sm:$0xff]   ;;  %25322 = vst [vmem:[%s33418_s1 + $0x7f8] sm:$0xff] %v26489_v58 }
 0x23d   :  { %v26482_v51 = vld [vmem:[%s33417_s0 + $0x7e8] sm:$0xff]   ;;  %25290 = vst [vmem:[%s33418_s1 + $0x13e8] sm:$0xff] %v26481_v50  ;;  %v26491_v60 = vld [vmem:[%s33417_s0 + $0x7f8] sm:$0xff]   ;;  %25326 = vst [vmem:[%s33418_s1 + $0x13f8] sm:$0xff] %v26490_v59 }
 0x23e   :  { %v26483_v52 = vld [vmem:[%s33417_s0 + $0x1be8] sm:$0xff]   ;;  %25294 = vst [vmem:[%s33418_s1 + $0x1fe8] sm:$0xff] %v26482_v51  ;;  %v26492_v61 = vld [vmem:[%s33417_s0 + $0x1bf8] sm:$0xff]   ;;  %25330 = vst [vmem:[%s33418_s1 + $0x1ff8] sm:$0xff] %v26491_v60 }
 0x23f   :  { %v26484_v53 = vld [vmem:[%s33417_s0 + $0xfe8] sm:$0xff]   ;;  %25298 = vst [vmem:[%s33418_s1 + $0xbe8] sm:$0xff] %v26483_v52  ;;  %v26493_v62 = vld [vmem:[%s33417_s0 + $0xff8] sm:$0xff]   ;;  %25334 = vst [vmem:[%s33418_s1 + $0xbf8] sm:$0xff] %v26492_v61 }
 0x240   :  { %v26485_v54 = vld [vmem:[%s33417_s0 + $0x3e8] sm:$0xff]   ;;  %25302 = vst [vmem:[%s33418_s1 + $0x17e8] sm:$0xff] %v26484_v53  ;;  %v26494_v63 = vld [vmem:[%s33417_s0 + $0x3f8] sm:$0xff]   ;;  %25338 = vst [vmem:[%s33418_s1 + $0x17f8] sm:$0xff] %v26493_v62 }
 0x241   :  { %25306 = vst [vmem:[%s33418_s1 + $0x23e8] sm:$0xff] %v26485_v54  ;;  %25342 = vst [vmem:[%s33418_s1 + $0x23f8] sm:$0xff] %v26494_v63 }

</bundles_post_ra>
